<compile_context>
chip_gen: v6e
topology: v6e:2x2x1
jax: 0.10.0
libtpu: 0.0.40
codegen_flags: <defaults>
</compile_context>

<pallas_src>
import functools

import jax
import jax.numpy as jnp
from jax.experimental import pallas as pl
from jax.experimental.pallas import tpu as pltpu

NUM_CLASSES = 2
HEAD_PAD = 128  # lane-dense head output width (sliced back to NUM_CLASSES)


def _pick_row_tile(h):
    """Largest divisor of H that is <= 8 (rows per inner im2col block)."""
    for cand in (8, 4, 2, 1):
        if h % cand == 0:
            return cand
    return 1


# ----------------------------------------------------------------------------
# Fused kernel: [conv3x3 + bias] x L  ->  global avg pool  ->  linear head
# ----------------------------------------------------------------------------
def fused_segmentation_kernel(x_ref, w9_ref, b_ref, lw_ref, lb_ref, o_ref,
                              buf_a, buf_b, lhs_s, *, H, W, C, L, TH):
    """Processes one batch element per grid step.

    x_ref : (H*W, C)        endpoint feature map (row-major spatial, C on lanes)
    w9_ref: (L, 9*C, C)     per-layer conv weights, (dy,dx,ci) concatenated, bf16
    b_ref : (L, 1, C)       per-layer conv bias, f32
    lw_ref: (C, HEAD_PAD)   linear weight padded to 128 lanes, f32
    lb_ref: (1, HEAD_PAD)   linear bias padded to 128 lanes, f32
    o_ref : (1, HEAD_PAD)   class scores (only first NUM_CLASSES are real)

    buf_a, buf_b : ((H+2)*(W+2)+8, C) padded ping-pong activation buffers
    lhs_s        : (TH*(W+2), 9*C)    im2col row-block scratch

    Layout trick: the padded map is stored flattened as rows r*(W+2)+s with C
    on the lane axis.  For a 3x3 tap (dy,dx) the im2col column block is then a
    single contiguous sublane slice starting at dy*(W+2)+dx; output rows whose
    (index mod (W+2)) >= W are "junk" columns and are masked to zero, which
    also keeps the 1-pixel halo of the next layer's buffer zero.
    """
    WP = W + 2           # padded row width in pixels
    MBLK = TH * WP       # rows (incl. junk columns) produced per inner block
    NBLK = H // TH

    if L == 0:
        pooled = jnp.sum(x_ref[...].astype(jnp.float32), axis=0, keepdims=True)
    else:
        # Zero the padded buffers once per image: provides the zero halo for
        # every layer (pad rows/cols are never overwritten with data) and
        # makes the small junk-row overhang reads defined.
        buf_a[...] = jnp.zeros_like(buf_a)
        if L > 1:
            buf_b[...] = jnp.zeros_like(buf_b)

        # Stage the input into the interior of the padded buffer:
        #   buf[(h+1)*WP + (w+1), c] = x[h*W + w, c]
        for h in range(H):
            buf_a[pl.ds((h + 1) * WP + 1, W), :] = x_ref[pl.ds(h * W, W), :]

        # Junk-column mask: flattened row i maps to pixel (i // WP, i % WP);
        # only (i % WP) < W is a real output pixel.  Same for every block
        # since block starts are multiples of WP.
        col = jax.lax.broadcasted_iota(jnp.int32, (MBLK, 1), 0) % WP
        valid = col < W

        pooled = jnp.zeros((1, C), jnp.float32)
        bufs = (buf_a, buf_b)
        for layer in range(L):
            src = bufs[layer % 2]
            dst = bufs[(layer + 1) % 2]
            last = layer == L - 1
            w_l = w9_ref[layer]                      # (9C, C) bf16
            b_l = b_ref[layer]                       # (1, C)  f32

            for blk in range(NBLK):
                base = blk * MBLK
                # im2col: 9 shifted sublane views written side-by-side on the
                # lane axis -> one deep K=9C contraction instead of 9 K=C dots.
                for dy in range(3):
                    for dx in range(3):
                        t = dy * 3 + dx
                        lhs_s[:, t * C:(t + 1) * C] = (
                            src[pl.ds(base + dy * WP + dx, MBLK), :])
                acc = jnp.dot(lhs_s[...].astype(jnp.bfloat16), w_l,
                              preferred_element_type=jnp.float32)
                acc = jnp.where(valid, acc + b_l, 0.0)   # bias + junk masking
                if last:
                    # Fused global average pool (junk/pad entries are zero).
                    pooled = pooled + jnp.sum(acc, axis=0, keepdims=True)
                else:
                    # Write into the interior of the next padded buffer:
                    # output row i -> padded row i + (W+3).
                    dst[pl.ds(base + W + 3, MBLK), :] = acc

    pooled = pooled * (1.0 / float(H * W))                       # (1, C)
    scores = jnp.dot(pooled, lw_ref[...],
                     preferred_element_type=jnp.float32) + lb_ref[...]
    o_ref[...] = scores                                          # lane-dense


# ----------------------------------------------------------------------------
# Wrapper
# ----------------------------------------------------------------------------
@jax.jit
def efficientnet_segmentation_forward(hidden_state_nchw, conv_ws, conv_bs,
                                      lin_w, lin_b):
    """Forward pass (return_cam=False) downstream of the backbone endpoint.

    hidden_state_nchw: (B, C, H, W) -- backbone's reduction_<endpoint> map.
    Returns class_scores: (B, NUM_CLASSES).
    """
    B, C, H, W = hidden_state_nchw.shape
    L = len(conv_ws)
    TH = _pick_row_tile(H)
    WP = W + 2
    MBLK = TH * WP
    NPA = (H + 2) * WP + 8     # padded rows + slack for the (dy,dx) overhang

    # NCHW -> NHWC -> (B, H*W, C): channels on the MXU contraction axis.
    x = jnp.transpose(hidden_state_nchw, (0, 2, 3, 1)).reshape(B, H * W, C)

    if L > 0:
        # (3,3,Cin,Cout) -> (9*Cin, Cout), rows ordered (dy, dx, ci); bf16 for MXU.
        w9 = jnp.stack([w.reshape(9 * C, C) for w in conv_ws]).astype(jnp.bfloat16)
        bs = jnp.stack([b.reshape(1, C) for b in conv_bs]).astype(jnp.float32)
    else:  # num_layers=0 path: dummy (unused) weight tensors
        w9 = jnp.zeros((1, 9 * C, C), jnp.bfloat16)
        bs = jnp.zeros((1, 1, C), jnp.float32)

    lw = jnp.pad(lin_w.astype(jnp.float32),
                 ((0, 0), (0, HEAD_PAD - lin_w.shape[1])))
    lb = jnp.pad(lin_b.astype(jnp.float32),
                 ((0, 0), (0, HEAD_PAD - lin_b.shape[1])))

    kernel = functools.partial(fused_segmentation_kernel,
                               H=H, W=W, C=C, L=L, TH=TH)

    out = pl.pallas_call(
        kernel,
        out_shape=jax.ShapeDtypeStruct((B, 1, HEAD_PAD), jnp.float32),
        grid=(B,),
        in_specs=[
            pl.BlockSpec((None, H * W, C), lambda b: (b, 0, 0)),
            pl.BlockSpec(w9.shape, lambda b: (0, 0, 0)),
            pl.BlockSpec(bs.shape, lambda b: (0, 0, 0)),
            pl.BlockSpec((C, HEAD_PAD), lambda b: (0, 0)),
            pl.BlockSpec((1, HEAD_PAD), lambda b: (0, 0)),
        ],
        out_specs=pl.BlockSpec((None, 1, HEAD_PAD), lambda b: (b, 0, 0)),
        scratch_shapes=[
            pltpu.VMEM((NPA, C), jnp.float32),        # padded ping buffer
            pltpu.VMEM((NPA, C), jnp.float32),        # padded pong buffer
            pltpu.VMEM((MBLK, 9 * C), jnp.float32),   # im2col row-block
        ],
        compiler_params=pltpu.CompilerParams(
            dimension_semantics=("parallel",)),
    )(x, w9, bs, lw, lb)

    return out[:, 0, :NUM_CLASSES]


# ----------------------------------------------------------------------------
# Pure-JAX reference (same numerics: bf16 matmul operands, f32 accumulation)
# ----------------------------------------------------------------------------
def reference_forward(hidden_state_nchw, conv_ws, conv_bs, lin_w, lin_b):
    x = jnp.transpose(hidden_state_nchw, (0, 2, 3, 1))
    for w, b in zip(conv_ws, conv_bs):
        x = jax.lax.conv_general_dilated(
            x.astype(jnp.bfloat16), w.astype(jnp.bfloat16),
            window_strides=(1, 1), padding="SAME",
            dimension_numbers=("NHWC", "HWIO", "NHWC"),
            preferred_element_type=jnp.float32) + b[0][None, None, None, :]
    pooled = jnp.mean(x, axis=(1, 2))      # AvgPool2d(full spatial) + squeeze
    return pooled @ lin_w + lin_b[0]       # Linear(C, 2)


# ----------------------------------------------------------------------------
# Main
# ----------------------------------------------------------------------------
if __name__ == "__main__":
    # Module config: endpoint=1 -> num_channels = 16; num_layers = 2.
    # Small spatial size (16) stands in for the real cam_resolution (112).
    B, C, H, W = 2, 16, 16, 16
    NUM_LAYERS = 2

    key = jax.random.PRNGKey(0)
    k_x, k_cw, k_cb, k_lw, k_lb = jax.random.split(key, 5)

    # Endpoint feature map (what backbone.extract_endpoints()['reduction_1'] yields).
    hidden_state = jax.random.normal(k_x, (B, C, H, W), dtype=jnp.float32)

    # Deterministic parameter init (HWIO conv weights, (C,2) linear weight).
    cw_keys = jax.random.split(k_cw, NUM_LAYERS)
    cb_keys = jax.random.split(k_cb, NUM_LAYERS)
    conv_ws = [jax.random.normal(cw_keys[i], (3, 3, C, C), jnp.float32)
               * (1.0 / jnp.sqrt(9.0 * C)) for i in range(NUM_LAYERS)]
    conv_bs = [jax.random.normal(cb_keys[i], (1, C), jnp.float32) * 0.01
               for i in range(NUM_LAYERS)]
    lin_w = jax.random.normal(k_lw, (C, 2), jnp.float32) * (1.0 / jnp.sqrt(C))
    lin_b = jax.random.normal(k_lb, (1, 2), jnp.float32) * 0.01

    scores = efficientnet_segmentation_forward(
        hidden_state, conv_ws, conv_bs, lin_w, lin_b)
    scores = jax.block_until_ready(scores)

    ref = reference_forward(hidden_state, conv_ws, conv_bs, lin_w, lin_b)
    ref = jax.block_until_ready(ref)

    assert scores.shape == (B, NUM_CLASSES), scores.shape
    assert jnp.allclose(scores, ref, atol=2e-3, rtol=2e-3), (scores, ref)

    print("KERNEL_OK")
</pallas_src>

<mosaic_0001>
module attributes {stable_mosaic.version = 11 : i64} {
  func.func @fused_segmentation_kernel(%arg0: i32, %arg1: memref<1x256x16xf32, #tpu.memory_space<vmem>>, %arg2: memref<2x144x16xbf16, #tpu.memory_space<vmem>>, %arg3: memref<2x1x16xf32, #tpu.memory_space<vmem>>, %arg4: memref<16x128xf32, #tpu.memory_space<vmem>>, %arg5: memref<1x128xf32, #tpu.memory_space<vmem>>, %arg6: memref<1x1x128xf32, #tpu.memory_space<vmem>>, %arg7: memref<332x16xf32, #tpu.memory_space<vmem>>, %arg8: memref<332x16xf32, #tpu.memory_space<vmem>>, %arg9: memref<144x144xf32, #tpu.memory_space<vmem>>) attributes {dimension_semantics = [#tpu.dimension_semantics<parallel>], iteration_bounds = array<i64: 2>, scalar_prefetch = 0 : i64, scratch_operands = 3 : i64, tpu.core_type = #tpu.core_type<tc>, window_params = [{transform_indices = @transform_0, window_bounds = array<i64: 1, 256, 16>}, {pipeline_mode = #tpu.pipeline_mode<synchronous>, transform_indices = @transform_1, window_bounds = array<i64: 2, 144, 16>}, {pipeline_mode = #tpu.pipeline_mode<synchronous>, transform_indices = @transform_2, window_bounds = array<i64: 2, 1, 16>}, {pipeline_mode = #tpu.pipeline_mode<synchronous>, transform_indices = @transform_3, window_bounds = array<i64: 16, 128>}, {pipeline_mode = #tpu.pipeline_mode<synchronous>, transform_indices = @transform_4, window_bounds = array<i64: 1, 128>}, {transform_indices = @transform_5, window_bounds = array<i64: 1, 1, 128>}]} {
    %cst = arith.constant 0.000000e+00 : f32
    %0 = vector.broadcast %cst : f32 to vector<332x16xf32>
    %c0 = arith.constant 0 : index
    %c0_0 = arith.constant 0 : index
    %1 = vector.load %arg7[%c0, %c0_0] : memref<332x16xf32, #tpu.memory_space<vmem>>, vector<332x16xf32>
    tpu.vector_store %arg7[%c0, %c0_0], %0 {strides = array<i32>} : memref<332x16xf32, #tpu.memory_space<vmem>>, vector<332x16xf32>,
    %cst_1 = arith.constant 0.000000e+00 : f32
    %2 = vector.broadcast %cst_1 : f32 to vector<332x16xf32>
    %c0_2 = arith.constant 0 : index
    %c0_3 = arith.constant 0 : index
    %3 = vector.load %arg8[%c0_2, %c0_3] : memref<332x16xf32, #tpu.memory_space<vmem>>, vector<332x16xf32>
    tpu.vector_store %arg8[%c0_2, %c0_3], %2 {strides = array<i32>} : memref<332x16xf32, #tpu.memory_space<vmem>>, vector<332x16xf32>,
    %c0_4 = arith.constant 0 : index
    %c0_5 = arith.constant 0 : index
    %c0_6 = arith.constant 0 : index
    %4 = vector.load %arg1[%c0_4, %c0_5, %c0_6] : memref<1x256x16xf32, #tpu.memory_space<vmem>>, vector<1x16x16xf32>
    %5 = vector.shape_cast %4 : vector<1x16x16xf32> to vector<16x16xf32>
    %c19 = arith.constant 19 : index
    %c0_7 = arith.constant 0 : index
    %6 = vector.load %arg7[%c19, %c0_7] : memref<332x16xf32, #tpu.memory_space<vmem>>, vector<16x16xf32>
    tpu.vector_store %arg7[%c19, %c0_7], %5 {strides = array<i32>} : memref<332x16xf32, #tpu.memory_space<vmem>>, vector<16x16xf32>,
    %c0_8 = arith.constant 0 : index
    %c16 = arith.constant 16 : index
    %c0_9 = arith.constant 0 : index
    %7 = vector.load %arg1[%c0_8, %c16, %c0_9] : memref<1x256x16xf32, #tpu.memory_space<vmem>>, vector<1x16x16xf32>
    %8 = vector.shape_cast %7 : vector<1x16x16xf32> to vector<16x16xf32>
    %c37 = arith.constant 37 : index
    %c0_10 = arith.constant 0 : index
    %9 = vector.load %arg7[%c37, %c0_10] : memref<332x16xf32, #tpu.memory_space<vmem>>, vector<16x16xf32>
    tpu.vector_store %arg7[%c37, %c0_10], %8 {strides = array<i32>} : memref<332x16xf32, #tpu.memory_space<vmem>>, vector<16x16xf32>,
    %c0_11 = arith.constant 0 : index
    %c32 = arith.constant 32 : index
    %c0_12 = arith.constant 0 : index
    %10 = vector.load %arg1[%c0_11, %c32, %c0_12] : memref<1x256x16xf32, #tpu.memory_space<vmem>>, vector<1x16x16xf32>
    %11 = vector.shape_cast %10 : vector<1x16x16xf32> to vector<16x16xf32>
    %c55 = arith.constant 55 : index
    %c0_13 = arith.constant 0 : index
    %12 = vector.load %arg7[%c55, %c0_13] : memref<332x16xf32, #tpu.memory_space<vmem>>, vector<16x16xf32>
    tpu.vector_store %arg7[%c55, %c0_13], %11 {strides = array<i32>} : memref<332x16xf32, #tpu.memory_space<vmem>>, vector<16x16xf32>,
    %c0_14 = arith.constant 0 : index
    %c48 = arith.constant 48 : index
    %c0_15 = arith.constant 0 : index
    %13 = vector.load %arg1[%c0_14, %c48, %c0_15] : memref<1x256x16xf32, #tpu.memory_space<vmem>>, vector<1x16x16xf32>
    %14 = vector.shape_cast %13 : vector<1x16x16xf32> to vector<16x16xf32>
    %c73 = arith.constant 73 : index
    %c0_16 = arith.constant 0 : index
    %15 = vector.load %arg7[%c73, %c0_16] : memref<332x16xf32, #tpu.memory_space<vmem>>, vector<16x16xf32>
    tpu.vector_store %arg7[%c73, %c0_16], %14 {strides = array<i32>} : memref<332x16xf32, #tpu.memory_space<vmem>>, vector<16x16xf32>,
    %c0_17 = arith.constant 0 : index
    %c64 = arith.constant 64 : index
    %c0_18 = arith.constant 0 : index
    %16 = vector.load %arg1[%c0_17, %c64, %c0_18] : memref<1x256x16xf32, #tpu.memory_space<vmem>>, vector<1x16x16xf32>
    %17 = vector.shape_cast %16 : vector<1x16x16xf32> to vector<16x16xf32>
    %c91 = arith.constant 91 : index
    %c0_19 = arith.constant 0 : index
    %18 = vector.load %arg7[%c91, %c0_19] : memref<332x16xf32, #tpu.memory_space<vmem>>, vector<16x16xf32>
    tpu.vector_store %arg7[%c91, %c0_19], %17 {strides = array<i32>} : memref<332x16xf32, #tpu.memory_space<vmem>>, vector<16x16xf32>,
    %c0_20 = arith.constant 0 : index
    %c80 = arith.constant 80 : index
    %c0_21 = arith.constant 0 : index
    %19 = vector.load %arg1[%c0_20, %c80, %c0_21] : memref<1x256x16xf32, #tpu.memory_space<vmem>>, vector<1x16x16xf32>
    %20 = vector.shape_cast %19 : vector<1x16x16xf32> to vector<16x16xf32>
    %c109 = arith.constant 109 : index
    %c0_22 = arith.constant 0 : index
    %21 = vector.load %arg7[%c109, %c0_22] : memref<332x16xf32, #tpu.memory_space<vmem>>, vector<16x16xf32>
    tpu.vector_store %arg7[%c109, %c0_22], %20 {strides = array<i32>} : memref<332x16xf32, #tpu.memory_space<vmem>>, vector<16x16xf32>,
    %c0_23 = arith.constant 0 : index
    %c96 = arith.constant 96 : index
    %c0_24 = arith.constant 0 : index
    %22 = vector.load %arg1[%c0_23, %c96, %c0_24] : memref<1x256x16xf32, #tpu.memory_space<vmem>>, vector<1x16x16xf32>
    %23 = vector.shape_cast %22 : vector<1x16x16xf32> to vector<16x16xf32>
    %c127 = arith.constant 127 : index
    %c0_25 = arith.constant 0 : index
    %24 = vector.load %arg7[%c127, %c0_25] : memref<332x16xf32, #tpu.memory_space<vmem>>, vector<16x16xf32>
    tpu.vector_store %arg7[%c127, %c0_25], %23 {strides = array<i32>} : memref<332x16xf32, #tpu.memory_space<vmem>>, vector<16x16xf32>,
    %c0_26 = arith.constant 0 : index
    %c112 = arith.constant 112 : index
    %c0_27 = arith.constant 0 : index
    %25 = vector.load %arg1[%c0_26, %c112, %c0_27] : memref<1x256x16xf32, #tpu.memory_space<vmem>>, vector<1x16x16xf32>
    %26 = vector.shape_cast %25 : vector<1x16x16xf32> to vector<16x16xf32>
    %c145 = arith.constant 145 : index
    %c0_28 = arith.constant 0 : index
    %27 = vector.load %arg7[%c145, %c0_28] : memref<332x16xf32, #tpu.memory_space<vmem>>, vector<16x16xf32>
    tpu.vector_store %arg7[%c145, %c0_28], %26 {strides = array<i32>} : memref<332x16xf32, #tpu.memory_space<vmem>>, vector<16x16xf32>,
    %c0_29 = arith.constant 0 : index
    %c128 = arith.constant 128 : index
    %c0_30 = arith.constant 0 : index
    %28 = vector.load %arg1[%c0_29, %c128, %c0_30] : memref<1x256x16xf32, #tpu.memory_space<vmem>>, vector<1x16x16xf32>
    %29 = vector.shape_cast %28 : vector<1x16x16xf32> to vector<16x16xf32>
    %c163 = arith.constant 163 : index
    %c0_31 = arith.constant 0 : index
    %30 = vector.load %arg7[%c163, %c0_31] : memref<332x16xf32, #tpu.memory_space<vmem>>, vector<16x16xf32>
    tpu.vector_store %arg7[%c163, %c0_31], %29 {strides = array<i32>} : memref<332x16xf32, #tpu.memory_space<vmem>>, vector<16x16xf32>,
    %c0_32 = arith.constant 0 : index
    %c144 = arith.constant 144 : index
    %c0_33 = arith.constant 0 : index
    %31 = vector.load %arg1[%c0_32, %c144, %c0_33] : memref<1x256x16xf32, #tpu.memory_space<vmem>>, vector<1x16x16xf32>
    %32 = vector.shape_cast %31 : vector<1x16x16xf32> to vector<16x16xf32>
    %c181 = arith.constant 181 : index
    %c0_34 = arith.constant 0 : index
    %33 = vector.load %arg7[%c181, %c0_34] : memref<332x16xf32, #tpu.memory_space<vmem>>, vector<16x16xf32>
    tpu.vector_store %arg7[%c181, %c0_34], %32 {strides = array<i32>} : memref<332x16xf32, #tpu.memory_space<vmem>>, vector<16x16xf32>,
    %c0_35 = arith.constant 0 : index
    %c160 = arith.constant 160 : index
    %c0_36 = arith.constant 0 : index
    %34 = vector.load %arg1[%c0_35, %c160, %c0_36] : memref<1x256x16xf32, #tpu.memory_space<vmem>>, vector<1x16x16xf32>
    %35 = vector.shape_cast %34 : vector<1x16x16xf32> to vector<16x16xf32>
    %c199 = arith.constant 199 : index
    %c0_37 = arith.constant 0 : index
    %36 = vector.load %arg7[%c199, %c0_37] : memref<332x16xf32, #tpu.memory_space<vmem>>, vector<16x16xf32>
    tpu.vector_store %arg7[%c199, %c0_37], %35 {strides = array<i32>} : memref<332x16xf32, #tpu.memory_space<vmem>>, vector<16x16xf32>,
    %c0_38 = arith.constant 0 : index
    %c176 = arith.constant 176 : index
    %c0_39 = arith.constant 0 : index
    %37 = vector.load %arg1[%c0_38, %c176, %c0_39] : memref<1x256x16xf32, #tpu.memory_space<vmem>>, vector<1x16x16xf32>
    %38 = vector.shape_cast %37 : vector<1x16x16xf32> to vector<16x16xf32>
    %c217 = arith.constant 217 : index
    %c0_40 = arith.constant 0 : index
    %39 = vector.load %arg7[%c217, %c0_40] : memref<332x16xf32, #tpu.memory_space<vmem>>, vector<16x16xf32>
    tpu.vector_store %arg7[%c217, %c0_40], %38 {strides = array<i32>} : memref<332x16xf32, #tpu.memory_space<vmem>>, vector<16x16xf32>,
    %c0_41 = arith.constant 0 : index
    %c192 = arith.constant 192 : index
    %c0_42 = arith.constant 0 : index
    %40 = vector.load %arg1[%c0_41, %c192, %c0_42] : memref<1x256x16xf32, #tpu.memory_space<vmem>>, vector<1x16x16xf32>
    %41 = vector.shape_cast %40 : vector<1x16x16xf32> to vector<16x16xf32>
    %c235 = arith.constant 235 : index
    %c0_43 = arith.constant 0 : index
    %42 = vector.load %arg7[%c235, %c0_43] : memref<332x16xf32, #tpu.memory_space<vmem>>, vector<16x16xf32>
    tpu.vector_store %arg7[%c235, %c0_43], %41 {strides = array<i32>} : memref<332x16xf32, #tpu.memory_space<vmem>>, vector<16x16xf32>,
    %c0_44 = arith.constant 0 : index
    %c208 = arith.constant 208 : index
    %c0_45 = arith.constant 0 : index
    %43 = vector.load %arg1[%c0_44, %c208, %c0_45] : memref<1x256x16xf32, #tpu.memory_space<vmem>>, vector<1x16x16xf32>
    %44 = vector.shape_cast %43 : vector<1x16x16xf32> to vector<16x16xf32>
    %c253 = arith.constant 253 : index
    %c0_46 = arith.constant 0 : index
    %45 = vector.load %arg7[%c253, %c0_46] : memref<332x16xf32, #tpu.memory_space<vmem>>, vector<16x16xf32>
    tpu.vector_store %arg7[%c253, %c0_46], %44 {strides = array<i32>} : memref<332x16xf32, #tpu.memory_space<vmem>>, vector<16x16xf32>,
    %c0_47 = arith.constant 0 : index
    %c224 = arith.constant 224 : index
    %c0_48 = arith.constant 0 : index
    %46 = vector.load %arg1[%c0_47, %c224, %c0_48] : memref<1x256x16xf32, #tpu.memory_space<vmem>>, vector<1x16x16xf32>
    %47 = vector.shape_cast %46 : vector<1x16x16xf32> to vector<16x16xf32>
    %c271 = arith.constant 271 : index
    %c0_49 = arith.constant 0 : index
    %48 = vector.load %arg7[%c271, %c0_49] : memref<332x16xf32, #tpu.memory_space<vmem>>, vector<16x16xf32>
    tpu.vector_store %arg7[%c271, %c0_49], %47 {strides = array<i32>} : memref<332x16xf32, #tpu.memory_space<vmem>>, vector<16x16xf32>,
    %c0_50 = arith.constant 0 : index
    %c240 = arith.constant 240 : index
    %c0_51 = arith.constant 0 : index
    %49 = vector.load %arg1[%c0_50, %c240, %c0_51] : memref<1x256x16xf32, #tpu.memory_space<vmem>>, vector<1x16x16xf32>
    %50 = vector.shape_cast %49 : vector<1x16x16xf32> to vector<16x16xf32>
    %c289 = arith.constant 289 : index
    %c0_52 = arith.constant 0 : index
    %51 = vector.load %arg7[%c289, %c0_52] : memref<332x16xf32, #tpu.memory_space<vmem>>, vector<16x16xf32>
    tpu.vector_store %arg7[%c289, %c0_52], %50 {strides = array<i32>} : memref<332x16xf32, #tpu.memory_space<vmem>>, vector<16x16xf32>,
    %52 = tpu.iota {dimensions = array<i32: 0>} : vector<144x1xi32>
    %c18_i32 = arith.constant 18 : i32
    %c0_i32 = arith.constant 0 : i32
    %53 = arith.cmpi eq, %c18_i32, %c0_i32 : i32
    %c1_i32 = arith.constant 1 : i32
    %54 = arith.select %53, %c1_i32, %c18_i32 : i32
    %55 = vector.broadcast %54 : i32 to vector<144x1xi32>
    %56 = arith.remsi %52, %55 : vector<144x1xi32>
    %c0_i32_53 = arith.constant 0 : i32
    %57 = vector.broadcast %c0_i32_53 : i32 to vector<144x1xi32>
    %58 = arith.cmpi ne, %56, %57 : vector<144x1xi32>
    %c0_i32_54 = arith.constant 0 : i32
    %59 = vector.broadcast %c0_i32_54 : i32 to vector<144x1xi32>
    %60 = arith.cmpi slt, %56, %59 : vector<144x1xi32>
    %c0_i32_55 = arith.constant 0 : i32
    %61 = arith.cmpi slt, %54, %c0_i32_55 : i32
    %62 = vector.broadcast %61 : i1 to vector<144x1xi1>
    %63 = vector.broadcast %62 : vector<144x1xi1> to vector<144x1xi1>
    %64 = arith.xori %60, %63 : vector<144x1xi1>
    %65 = arith.andi %64, %58 : vector<144x1xi1>
    %66 = vector.broadcast %54 : i32 to vector<144x1xi32>
    %67 = arith.addi %56, %66 : vector<144x1xi32>
    %68 = arith.select %65, %67, %56 : vector<144x1xi1>, vector<144x1xi32>
    %c16_i32 = arith.constant 16 : i32
    %69 = vector.broadcast %c16_i32 : i32 to vector<144x1xi32>
    %70 = arith.cmpi slt, %68, %69 : vector<144x1xi32>
    %cst_56 = arith.constant 0.000000e+00 : f32
    %71 = vector.broadcast %cst_56 : f32 to vector<1x16xf32>
    %c0_57 = arith.constant 0 : index
    %c0_58 = arith.constant 0 : index
    %c0_59 = arith.constant 0 : index
    %72 = vector.load %arg2[%c0_57, %c0_58, %c0_59] : memref<2x144x16xbf16, #tpu.memory_space<vmem>>, vector<1x144x16xbf16>
    %73 = vector.shape_cast %72 : vector<1x144x16xbf16> to vector<144x16xbf16>
    %c0_60 = arith.constant 0 : index
    %c0_61 = arith.constant 0 : index
    %c0_62 = arith.constant 0 : index
    %74 = vector.load %arg3[%c0_60, %c0_61, %c0_62] : memref<2x1x16xf32, #tpu.memory_space<vmem>>, vector<1x1x16xf32>
    %75 = vector.shape_cast %74 : vector<1x1x16xf32> to vector<1x16xf32>
    %c0_63 = arith.constant 0 : index
    %c0_64 = arith.constant 0 : index
    %76 = vector.load %arg7[%c0_63, %c0_64] : memref<332x16xf32, #tpu.memory_space<vmem>>, vector<144x16xf32>
    %c0_65 = arith.constant 0 : index
    %c0_66 = arith.constant 0 : index
    %77 = vector.load %arg9[%c0_65, %c0_66] : memref<144x144xf32, #tpu.memory_space<vmem>>, vector<144x16xf32>
    tpu.vector_store %arg9[%c0_65, %c0_66], %76 {strides = array<i32>} : memref<144x144xf32, #tpu.memory_space<vmem>>, vector<144x16xf32>,
    %c1 = arith.constant 1 : index
    %c0_67 = arith.constant 0 : index
    %78 = vector.load %arg7[%c1, %c0_67] : memref<332x16xf32, #tpu.memory_space<vmem>>, vector<144x16xf32>
    %c0_68 = arith.constant 0 : index
    %c16_69 = arith.constant 16 : index
    %79 = vector.load %arg9[%c0_68, %c16_69] : memref<144x144xf32, #tpu.memory_space<vmem>>, vector<144x16xf32>
    tpu.vector_store %arg9[%c0_68, %c16_69], %78 {strides = array<i32>} : memref<144x144xf32, #tpu.memory_space<vmem>>, vector<144x16xf32>,
    %c2 = arith.constant 2 : index
    %c0_70 = arith.constant 0 : index
    %80 = vector.load %arg7[%c2, %c0_70] : memref<332x16xf32, #tpu.memory_space<vmem>>, vector<144x16xf32>
    %c0_71 = arith.constant 0 : index
    %c32_72 = arith.constant 32 : index
    %81 = vector.load %arg9[%c0_71, %c32_72] : memref<144x144xf32, #tpu.memory_space<vmem>>, vector<144x16xf32>
    tpu.vector_store %arg9[%c0_71, %c32_72], %80 {strides = array<i32>} : memref<144x144xf32, #tpu.memory_space<vmem>>, vector<144x16xf32>,
    %c18 = arith.constant 18 : index
    %c0_73 = arith.constant 0 : index
    %82 = vector.load %arg7[%c18, %c0_73] : memref<332x16xf32, #tpu.memory_space<vmem>>, vector<144x16xf32>
    %c0_74 = arith.constant 0 : index
    %c48_75 = arith.constant 48 : index
    %83 = vector.load %arg9[%c0_74, %c48_75] : memref<144x144xf32, #tpu.memory_space<vmem>>, vector<144x16xf32>
    tpu.vector_store %arg9[%c0_74, %c48_75], %82 {strides = array<i32>} : memref<144x144xf32, #tpu.memory_space<vmem>>, vector<144x16xf32>,
    %c19_76 = arith.constant 19 : index
    %c0_77 = arith.constant 0 : index
    %84 = vector.load %arg7[%c19_76, %c0_77] : memref<332x16xf32, #tpu.memory_space<vmem>>, vector<144x16xf32>
    %c0_78 = arith.constant 0 : index
    %c64_79 = arith.constant 64 : index
    %85 = vector.load %arg9[%c0_78, %c64_79] : memref<144x144xf32, #tpu.memory_space<vmem>>, vector<144x16xf32>
    tpu.vector_store %arg9[%c0_78, %c64_79], %84 {strides = array<i32>} : memref<144x144xf32, #tpu.memory_space<vmem>>, vector<144x16xf32>,
    %c20 = arith.constant 20 : index
    %c0_80 = arith.constant 0 : index
    %86 = vector.load %arg7[%c20, %c0_80] : memref<332x16xf32, #tpu.memory_space<vmem>>, vector<144x16xf32>
    %c0_81 = arith.constant 0 : index
    %c80_82 = arith.constant 80 : index
    %87 = vector.load %arg9[%c0_81, %c80_82] : memref<144x144xf32, #tpu.memory_space<vmem>>, vector<144x16xf32>
    tpu.vector_store %arg9[%c0_81, %c80_82], %86 {strides = array<i32>} : memref<144x144xf32, #tpu.memory_space<vmem>>, vector<144x16xf32>,
    %c36 = arith.constant 36 : index
    %c0_83 = arith.constant 0 : index
    %88 = vector.load %arg7[%c36, %c0_83] : memref<332x16xf32, #tpu.memory_space<vmem>>, vector<144x16xf32>
    %c0_84 = arith.constant 0 : index
    %c96_85 = arith.constant 96 : index
    %89 = vector.load %arg9[%c0_84, %c96_85] : memref<144x144xf32, #tpu.memory_space<vmem>>, vector<144x16xf32>
    tpu.vector_store %arg9[%c0_84, %c96_85], %88 {strides = array<i32>} : memref<144x144xf32, #tpu.memory_space<vmem>>, vector<144x16xf32>,
    %c37_86 = arith.constant 37 : index
    %c0_87 = arith.constant 0 : index
    %90 = vector.load %arg7[%c37_86, %c0_87] : memref<332x16xf32, #tpu.memory_space<vmem>>, vector<144x16xf32>
    %c0_88 = arith.constant 0 : index
    %c112_89 = arith.constant 112 : index
    %91 = vector.load %arg9[%c0_88, %c112_89] : memref<144x144xf32, #tpu.memory_space<vmem>>, vector<144x16xf32>
    tpu.vector_store %arg9[%c0_88, %c112_89], %90 {strides = array<i32>} : memref<144x144xf32, #tpu.memory_space<vmem>>, vector<144x16xf32>,
    %c38 = arith.constant 38 : index
    %c0_90 = arith.constant 0 : index
    %92 = vector.load %arg7[%c38, %c0_90] : memref<332x16xf32, #tpu.memory_space<vmem>>, vector<144x16xf32>
    %c0_91 = arith.constant 0 : index
    %c128_92 = arith.constant 128 : index
    %93 = vector.load %arg9[%c0_91, %c128_92] : memref<144x144xf32, #tpu.memory_space<vmem>>, vector<144x16xf32>
    tpu.vector_store %arg9[%c0_91, %c128_92], %92 {strides = array<i32>} : memref<144x144xf32, #tpu.memory_space<vmem>>, vector<144x16xf32>,
    %c0_93 = arith.constant 0 : index
    %c0_94 = arith.constant 0 : index
    %94 = vector.load %arg9[%c0_93, %c0_94] : memref<144x144xf32, #tpu.memory_space<vmem>>, vector<144x144xf32>
    %95 = arith.truncf %94 : vector<144x144xf32> to vector<144x144xbf16>
    %cst_95 = arith.constant dense<0.000000e+00> : vector<144x16xf32>
    %96 = tpu.matmul %95, %73, %cst_95 {dimension_numbers = #tpu.dot_dimension_numbers<[1], [0], [0], [1], [0, 0, 1, 1], [], []>} : vector<144x144xbf16>, vector<144x16xbf16>, vector<144x16xf32> -> vector<144x16xf32>
    %97 = vector.broadcast %75 : vector<1x16xf32> to vector<144x16xf32>
    %98 = arith.addf %96, %97 : vector<144x16xf32>
    %cst_96 = arith.constant 0.000000e+00 : f32
    %99 = vector.shape_cast %70 : vector<144x1xi1> to vector<144x1xi1>
    %100 = vector.broadcast %99 : vector<144x1xi1> to vector<144x16xi1>
    %101 = vector.broadcast %cst_96 : f32 to vector<144x16xf32>
    %102 = arith.select %100, %98, %101 : vector<144x16xi1>, vector<144x16xf32>
    %c19_97 = arith.constant 19 : index
    %c0_98 = arith.constant 0 : index
    %103 = vector.load %arg8[%c19_97, %c0_98] : memref<332x16xf32, #tpu.memory_space<vmem>>, vector<144x16xf32>
    tpu.vector_store %arg8[%c19_97, %c0_98], %102 {strides = array<i32>} : memref<332x16xf32, #tpu.memory_space<vmem>>, vector<144x16xf32>,
    %c144_99 = arith.constant 144 : index
    %c0_100 = arith.constant 0 : index
    %104 = vector.load %arg7[%c144_99, %c0_100] : memref<332x16xf32, #tpu.memory_space<vmem>>, vector<144x16xf32>
    %c0_101 = arith.constant 0 : index
    %c0_102 = arith.constant 0 : index
    %105 = vector.load %arg9[%c0_101, %c0_102] : memref<144x144xf32, #tpu.memory_space<vmem>>, vector<144x16xf32>
    tpu.vector_store %arg9[%c0_101, %c0_102], %104 {strides = array<i32>} : memref<144x144xf32, #tpu.memory_space<vmem>>, vector<144x16xf32>,
    %c145_103 = arith.constant 145 : index
    %c0_104 = arith.constant 0 : index
    %106 = vector.load %arg7[%c145_103, %c0_104] : memref<332x16xf32, #tpu.memory_space<vmem>>, vector<144x16xf32>
    %c0_105 = arith.constant 0 : index
    %c16_106 = arith.constant 16 : index
    %107 = vector.load %arg9[%c0_105, %c16_106] : memref<144x144xf32, #tpu.memory_space<vmem>>, vector<144x16xf32>
    tpu.vector_store %arg9[%c0_105, %c16_106], %106 {strides = array<i32>} : memref<144x144xf32, #tpu.memory_space<vmem>>, vector<144x16xf32>,
    %c146 = arith.constant 146 : index
    %c0_107 = arith.constant 0 : index
    %108 = vector.load %arg7[%c146, %c0_107] : memref<332x16xf32, #tpu.memory_space<vmem>>, vector<144x16xf32>
    %c0_108 = arith.constant 0 : index
    %c32_109 = arith.constant 32 : index
    %109 = vector.load %arg9[%c0_108, %c32_109] : memref<144x144xf32, #tpu.memory_space<vmem>>, vector<144x16xf32>
    tpu.vector_store %arg9[%c0_108, %c32_109], %108 {strides = array<i32>} : memref<144x144xf32, #tpu.memory_space<vmem>>, vector<144x16xf32>,
    %c162 = arith.constant 162 : index
    %c0_110 = arith.constant 0 : index
    %110 = vector.load %arg7[%c162, %c0_110] : memref<332x16xf32, #tpu.memory_space<vmem>>, vector<144x16xf32>
    %c0_111 = arith.constant 0 : index
    %c48_112 = arith.constant 48 : index
    %111 = vector.load %arg9[%c0_111, %c48_112] : memref<144x144xf32, #tpu.memory_space<vmem>>, vector<144x16xf32>
    tpu.vector_store %arg9[%c0_111, %c48_112], %110 {strides = array<i32>} : memref<144x144xf32, #tpu.memory_space<vmem>>, vector<144x16xf32>,
    %c163_113 = arith.constant 163 : index
    %c0_114 = arith.constant 0 : index
    %112 = vector.load %arg7[%c163_113, %c0_114] : memref<332x16xf32, #tpu.memory_space<vmem>>, vector<144x16xf32>
    %c0_115 = arith.constant 0 : index
    %c64_116 = arith.constant 64 : index
    %113 = vector.load %arg9[%c0_115, %c64_116] : memref<144x144xf32, #tpu.memory_space<vmem>>, vector<144x16xf32>
    tpu.vector_store %arg9[%c0_115, %c64_116], %112 {strides = array<i32>} : memref<144x144xf32, #tpu.memory_space<vmem>>, vector<144x16xf32>,
    %c164 = arith.constant 164 : index
    %c0_117 = arith.constant 0 : index
    %114 = vector.load %arg7[%c164, %c0_117] : memref<332x16xf32, #tpu.memory_space<vmem>>, vector<144x16xf32>
    %c0_118 = arith.constant 0 : index
    %c80_119 = arith.constant 80 : index
    %115 = vector.load %arg9[%c0_118, %c80_119] : memref<144x144xf32, #tpu.memory_space<vmem>>, vector<144x16xf32>
    tpu.vector_store %arg9[%c0_118, %c80_119], %114 {strides = array<i32>} : memref<144x144xf32, #tpu.memory_space<vmem>>, vector<144x16xf32>,
    %c180 = arith.constant 180 : index
    %c0_120 = arith.constant 0 : index
    %116 = vector.load %arg7[%c180, %c0_120] : memref<332x16xf32, #tpu.memory_space<vmem>>, vector<144x16xf32>
    %c0_121 = arith.constant 0 : index
    %c96_122 = arith.constant 96 : index
    %117 = vector.load %arg9[%c0_121, %c96_122] : memref<144x144xf32, #tpu.memory_space<vmem>>, vector<144x16xf32>
    tpu.vector_store %arg9[%c0_121, %c96_122], %116 {strides = array<i32>} : memref<144x144xf32, #tpu.memory_space<vmem>>, vector<144x16xf32>,
    %c181_123 = arith.constant 181 : index
    %c0_124 = arith.constant 0 : index
    %118 = vector.load %arg7[%c181_123, %c0_124] : memref<332x16xf32, #tpu.memory_space<vmem>>, vector<144x16xf32>
    %c0_125 = arith.constant 0 : index
    %c112_126 = arith.constant 112 : index
    %119 = vector.load %arg9[%c0_125, %c112_126] : memref<144x144xf32, #tpu.memory_space<vmem>>, vector<144x16xf32>
    tpu.vector_store %arg9[%c0_125, %c112_126], %118 {strides = array<i32>} : memref<144x144xf32, #tpu.memory_space<vmem>>, vector<144x16xf32>,
    %c182 = arith.constant 182 : index
    %c0_127 = arith.constant 0 : index
    %120 = vector.load %arg7[%c182, %c0_127] : memref<332x16xf32, #tpu.memory_space<vmem>>, vector<144x16xf32>
    %c0_128 = arith.constant 0 : index
    %c128_129 = arith.constant 128 : index
    %121 = vector.load %arg9[%c0_128, %c128_129] : memref<144x144xf32, #tpu.memory_space<vmem>>, vector<144x16xf32>
    tpu.vector_store %arg9[%c0_128, %c128_129], %120 {strides = array<i32>} : memref<144x144xf32, #tpu.memory_space<vmem>>, vector<144x16xf32>,
    %c0_130 = arith.constant 0 : index
    %c0_131 = arith.constant 0 : index
    %122 = vector.load %arg9[%c0_130, %c0_131] : memref<144x144xf32, #tpu.memory_space<vmem>>, vector<144x144xf32>
    %123 = arith.truncf %122 : vector<144x144xf32> to vector<144x144xbf16>
    %cst_132 = arith.constant dense<0.000000e+00> : vector<144x16xf32>
    %124 = tpu.matmul %123, %73, %cst_132 {dimension_numbers = #tpu.dot_dimension_numbers<[1], [0], [0], [1], [0, 0, 1, 1], [], []>} : vector<144x144xbf16>, vector<144x16xbf16>, vector<144x16xf32> -> vector<144x16xf32>
    %125 = vector.broadcast %75 : vector<1x16xf32> to vector<144x16xf32>
    %126 = arith.addf %124, %125 : vector<144x16xf32>
    %cst_133 = arith.constant 0.000000e+00 : f32
    %127 = vector.shape_cast %70 : vector<144x1xi1> to vector<144x1xi1>
    %128 = vector.broadcast %127 : vector<144x1xi1> to vector<144x16xi1>
    %129 = vector.broadcast %cst_133 : f32 to vector<144x16xf32>
    %130 = arith.select %128, %126, %129 : vector<144x16xi1>, vector<144x16xf32>
    %c163_134 = arith.constant 163 : index
    %c0_135 = arith.constant 0 : index
    %131 = vector.load %arg8[%c163_134, %c0_135] : memref<332x16xf32, #tpu.memory_space<vmem>>, vector<144x16xf32>
    tpu.vector_store %arg8[%c163_134, %c0_135], %130 {strides = array<i32>} : memref<332x16xf32, #tpu.memory_space<vmem>>, vector<144x16xf32>,
    %c1_136 = arith.constant 1 : index
    %c0_137 = arith.constant 0 : index
    %c0_138 = arith.constant 0 : index
    %132 = vector.load %arg2[%c1_136, %c0_137, %c0_138] : memref<2x144x16xbf16, #tpu.memory_space<vmem>>, vector<1x144x16xbf16>
    %133 = vector.shape_cast %132 : vector<1x144x16xbf16> to vector<144x16xbf16>
    %c1_139 = arith.constant 1 : index
    %c0_140 = arith.constant 0 : index
    %c0_141 = arith.constant 0 : index
    %134 = vector.load %arg3[%c1_139, %c0_140, %c0_141] : memref<2x1x16xf32, #tpu.memory_space<vmem>>, vector<1x1x16xf32>
    %135 = vector.shape_cast %134 : vector<1x1x16xf32> to vector<1x16xf32>
    %c0_142 = arith.constant 0 : index
    %c0_143 = arith.constant 0 : index
    %136 = vector.load %arg8[%c0_142, %c0_143] : memref<332x16xf32, #tpu.memory_space<vmem>>, vector<144x16xf32>
    %c0_144 = arith.constant 0 : index
    %c0_145 = arith.constant 0 : index
    %137 = vector.load %arg9[%c0_144, %c0_145] : memref<144x144xf32, #tpu.memory_space<vmem>>, vector<144x16xf32>
    tpu.vector_store %arg9[%c0_144, %c0_145], %136 {strides = array<i32>} : memref<144x144xf32, #tpu.memory_space<vmem>>, vector<144x16xf32>,
    %c1_146 = arith.constant 1 : index
    %c0_147 = arith.constant 0 : index
    %138 = vector.load %arg8[%c1_146, %c0_147] : memref<332x16xf32, #tpu.memory_space<vmem>>, vector<144x16xf32>
    %c0_148 = arith.constant 0 : index
    %c16_149 = arith.constant 16 : index
    %139 = vector.load %arg9[%c0_148, %c16_149] : memref<144x144xf32, #tpu.memory_space<vmem>>, vector<144x16xf32>
    tpu.vector_store %arg9[%c0_148, %c16_149], %138 {strides = array<i32>} : memref<144x144xf32, #tpu.memory_space<vmem>>, vector<144x16xf32>,
    %c2_150 = arith.constant 2 : index
    %c0_151 = arith.constant 0 : index
    %140 = vector.load %arg8[%c2_150, %c0_151] : memref<332x16xf32, #tpu.memory_space<vmem>>, vector<144x16xf32>
    %c0_152 = arith.constant 0 : index
    %c32_153 = arith.constant 32 : index
    %141 = vector.load %arg9[%c0_152, %c32_153] : memref<144x144xf32, #tpu.memory_space<vmem>>, vector<144x16xf32>
    tpu.vector_store %arg9[%c0_152, %c32_153], %140 {strides = array<i32>} : memref<144x144xf32, #tpu.memory_space<vmem>>, vector<144x16xf32>,
    %c18_154 = arith.constant 18 : index
    %c0_155 = arith.constant 0 : index
    %142 = vector.load %arg8[%c18_154, %c0_155] : memref<332x16xf32, #tpu.memory_space<vmem>>, vector<144x16xf32>
    %c0_156 = arith.constant 0 : index
    %c48_157 = arith.constant 48 : index
    %143 = vector.load %arg9[%c0_156, %c48_157] : memref<144x144xf32, #tpu.memory_space<vmem>>, vector<144x16xf32>
    tpu.vector_store %arg9[%c0_156, %c48_157], %142 {strides = array<i32>} : memref<144x144xf32, #tpu.memory_space<vmem>>, vector<144x16xf32>,
    %c19_158 = arith.constant 19 : index
    %c0_159 = arith.constant 0 : index
    %144 = vector.load %arg8[%c19_158, %c0_159] : memref<332x16xf32, #tpu.memory_space<vmem>>, vector<144x16xf32>
    %c0_160 = arith.constant 0 : index
    %c64_161 = arith.constant 64 : index
    %145 = vector.load %arg9[%c0_160, %c64_161] : memref<144x144xf32, #tpu.memory_space<vmem>>, vector<144x16xf32>
    tpu.vector_store %arg9[%c0_160, %c64_161], %144 {strides = array<i32>} : memref<144x144xf32, #tpu.memory_space<vmem>>, vector<144x16xf32>,
    %c20_162 = arith.constant 20 : index
    %c0_163 = arith.constant 0 : index
    %146 = vector.load %arg8[%c20_162, %c0_163] : memref<332x16xf32, #tpu.memory_space<vmem>>, vector<144x16xf32>
    %c0_164 = arith.constant 0 : index
    %c80_165 = arith.constant 80 : index
    %147 = vector.load %arg9[%c0_164, %c80_165] : memref<144x144xf32, #tpu.memory_space<vmem>>, vector<144x16xf32>
    tpu.vector_store %arg9[%c0_164, %c80_165], %146 {strides = array<i32>} : memref<144x144xf32, #tpu.memory_space<vmem>>, vector<144x16xf32>,
    %c36_166 = arith.constant 36 : index
    %c0_167 = arith.constant 0 : index
    %148 = vector.load %arg8[%c36_166, %c0_167] : memref<332x16xf32, #tpu.memory_space<vmem>>, vector<144x16xf32>
    %c0_168 = arith.constant 0 : index
    %c96_169 = arith.constant 96 : index
    %149 = vector.load %arg9[%c0_168, %c96_169] : memref<144x144xf32, #tpu.memory_space<vmem>>, vector<144x16xf32>
    tpu.vector_store %arg9[%c0_168, %c96_169], %148 {strides = array<i32>} : memref<144x144xf32, #tpu.memory_space<vmem>>, vector<144x16xf32>,
    %c37_170 = arith.constant 37 : index
    %c0_171 = arith.constant 0 : index
    %150 = vector.load %arg8[%c37_170, %c0_171] : memref<332x16xf32, #tpu.memory_space<vmem>>, vector<144x16xf32>
    %c0_172 = arith.constant 0 : index
    %c112_173 = arith.constant 112 : index
    %151 = vector.load %arg9[%c0_172, %c112_173] : memref<144x144xf32, #tpu.memory_space<vmem>>, vector<144x16xf32>
    tpu.vector_store %arg9[%c0_172, %c112_173], %150 {strides = array<i32>} : memref<144x144xf32, #tpu.memory_space<vmem>>, vector<144x16xf32>,
    %c38_174 = arith.constant 38 : index
    %c0_175 = arith.constant 0 : index
    %152 = vector.load %arg8[%c38_174, %c0_175] : memref<332x16xf32, #tpu.memory_space<vmem>>, vector<144x16xf32>
    %c0_176 = arith.constant 0 : index
    %c128_177 = arith.constant 128 : index
    %153 = vector.load %arg9[%c0_176, %c128_177] : memref<144x144xf32, #tpu.memory_space<vmem>>, vector<144x16xf32>
    tpu.vector_store %arg9[%c0_176, %c128_177], %152 {strides = array<i32>} : memref<144x144xf32, #tpu.memory_space<vmem>>, vector<144x16xf32>,
    %c0_178 = arith.constant 0 : index
    %c0_179 = arith.constant 0 : index
    %154 = vector.load %arg9[%c0_178, %c0_179] : memref<144x144xf32, #tpu.memory_space<vmem>>, vector<144x144xf32>
    %155 = arith.truncf %154 : vector<144x144xf32> to vector<144x144xbf16>
    %cst_180 = arith.constant dense<0.000000e+00> : vector<144x16xf32>
    %156 = tpu.matmul %155, %133, %cst_180 {dimension_numbers = #tpu.dot_dimension_numbers<[1], [0], [0], [1], [0, 0, 1, 1], [], []>} : vector<144x144xbf16>, vector<144x16xbf16>, vector<144x16xf32> -> vector<144x16xf32>
    %157 = vector.broadcast %135 : vector<1x16xf32> to vector<144x16xf32>
    %158 = arith.addf %156, %157 : vector<144x16xf32>
    %cst_181 = arith.constant 0.000000e+00 : f32
    %159 = vector.shape_cast %70 : vector<144x1xi1> to vector<144x1xi1>
    %160 = vector.broadcast %159 : vector<144x1xi1> to vector<144x16xi1>
    %161 = vector.broadcast %cst_181 : f32 to vector<144x16xf32>
    %162 = arith.select %160, %158, %161 : vector<144x16xi1>, vector<144x16xf32>
    %cst_182 = arith.constant dense<0.000000e+00> : vector<16xf32>
    %163 = vector.multi_reduction <add>, %162, %cst_182 [0] : vector<144x16xf32> to vector<16xf32>
    %164 = vector.shape_cast %163 : vector<16xf32> to vector<1x16xf32>
    %165 = arith.addf %71, %164 : vector<1x16xf32>
    %c144_183 = arith.constant 144 : index
    %c0_184 = arith.constant 0 : index
    %166 = vector.load %arg8[%c144_183, %c0_184] : memref<332x16xf32, #tpu.memory_space<vmem>>, vector<144x16xf32>
    %c0_185 = arith.constant 0 : index
    %c0_186 = arith.constant 0 : index
    %167 = vector.load %arg9[%c0_185, %c0_186] : memref<144x144xf32, #tpu.memory_space<vmem>>, vector<144x16xf32>
    tpu.vector_store %arg9[%c0_185, %c0_186], %166 {strides = array<i32>} : memref<144x144xf32, #tpu.memory_space<vmem>>, vector<144x16xf32>,
    %c145_187 = arith.constant 145 : index
    %c0_188 = arith.constant 0 : index
    %168 = vector.load %arg8[%c145_187, %c0_188] : memref<332x16xf32, #tpu.memory_space<vmem>>, vector<144x16xf32>
    %c0_189 = arith.constant 0 : index
    %c16_190 = arith.constant 16 : index
    %169 = vector.load %arg9[%c0_189, %c16_190] : memref<144x144xf32, #tpu.memory_space<vmem>>, vector<144x16xf32>
    tpu.vector_store %arg9[%c0_189, %c16_190], %168 {strides = array<i32>} : memref<144x144xf32, #tpu.memory_space<vmem>>, vector<144x16xf32>,
    %c146_191 = arith.constant 146 : index
    %c0_192 = arith.constant 0 : index
    %170 = vector.load %arg8[%c146_191, %c0_192] : memref<332x16xf32, #tpu.memory_space<vmem>>, vector<144x16xf32>
    %c0_193 = arith.constant 0 : index
    %c32_194 = arith.constant 32 : index
    %171 = vector.load %arg9[%c0_193, %c32_194] : memref<144x144xf32, #tpu.memory_space<vmem>>, vector<144x16xf32>
    tpu.vector_store %arg9[%c0_193, %c32_194], %170 {strides = array<i32>} : memref<144x144xf32, #tpu.memory_space<vmem>>, vector<144x16xf32>,
    %c162_195 = arith.constant 162 : index
    %c0_196 = arith.constant 0 : index
    %172 = vector.load %arg8[%c162_195, %c0_196] : memref<332x16xf32, #tpu.memory_space<vmem>>, vector<144x16xf32>
    %c0_197 = arith.constant 0 : index
    %c48_198 = arith.constant 48 : index
    %173 = vector.load %arg9[%c0_197, %c48_198] : memref<144x144xf32, #tpu.memory_space<vmem>>, vector<144x16xf32>
    tpu.vector_store %arg9[%c0_197, %c48_198], %172 {strides = array<i32>} : memref<144x144xf32, #tpu.memory_space<vmem>>, vector<144x16xf32>,
    %c163_199 = arith.constant 163 : index
    %c0_200 = arith.constant 0 : index
    %174 = vector.load %arg8[%c163_199, %c0_200] : memref<332x16xf32, #tpu.memory_space<vmem>>, vector<144x16xf32>
    %c0_201 = arith.constant 0 : index
    %c64_202 = arith.constant 64 : index
    %175 = vector.load %arg9[%c0_201, %c64_202] : memref<144x144xf32, #tpu.memory_space<vmem>>, vector<144x16xf32>
    tpu.vector_store %arg9[%c0_201, %c64_202], %174 {strides = array<i32>} : memref<144x144xf32, #tpu.memory_space<vmem>>, vector<144x16xf32>,
    %c164_203 = arith.constant 164 : index
    %c0_204 = arith.constant 0 : index
    %176 = vector.load %arg8[%c164_203, %c0_204] : memref<332x16xf32, #tpu.memory_space<vmem>>, vector<144x16xf32>
    %c0_205 = arith.constant 0 : index
    %c80_206 = arith.constant 80 : index
    %177 = vector.load %arg9[%c0_205, %c80_206] : memref<144x144xf32, #tpu.memory_space<vmem>>, vector<144x16xf32>
    tpu.vector_store %arg9[%c0_205, %c80_206], %176 {strides = array<i32>} : memref<144x144xf32, #tpu.memory_space<vmem>>, vector<144x16xf32>,
    %c180_207 = arith.constant 180 : index
    %c0_208 = arith.constant 0 : index
    %178 = vector.load %arg8[%c180_207, %c0_208] : memref<332x16xf32, #tpu.memory_space<vmem>>, vector<144x16xf32>
    %c0_209 = arith.constant 0 : index
    %c96_210 = arith.constant 96 : index
    %179 = vector.load %arg9[%c0_209, %c96_210] : memref<144x144xf32, #tpu.memory_space<vmem>>, vector<144x16xf32>
    tpu.vector_store %arg9[%c0_209, %c96_210], %178 {strides = array<i32>} : memref<144x144xf32, #tpu.memory_space<vmem>>, vector<144x16xf32>,
    %c181_211 = arith.constant 181 : index
    %c0_212 = arith.constant 0 : index
    %180 = vector.load %arg8[%c181_211, %c0_212] : memref<332x16xf32, #tpu.memory_space<vmem>>, vector<144x16xf32>
    %c0_213 = arith.constant 0 : index
    %c112_214 = arith.constant 112 : index
    %181 = vector.load %arg9[%c0_213, %c112_214] : memref<144x144xf32, #tpu.memory_space<vmem>>, vector<144x16xf32>
    tpu.vector_store %arg9[%c0_213, %c112_214], %180 {strides = array<i32>} : memref<144x144xf32, #tpu.memory_space<vmem>>, vector<144x16xf32>,
    %c182_215 = arith.constant 182 : index
    %c0_216 = arith.constant 0 : index
    %182 = vector.load %arg8[%c182_215, %c0_216] : memref<332x16xf32, #tpu.memory_space<vmem>>, vector<144x16xf32>
    %c0_217 = arith.constant 0 : index
    %c128_218 = arith.constant 128 : index
    %183 = vector.load %arg9[%c0_217, %c128_218] : memref<144x144xf32, #tpu.memory_space<vmem>>, vector<144x16xf32>
    tpu.vector_store %arg9[%c0_217, %c128_218], %182 {strides = array<i32>} : memref<144x144xf32, #tpu.memory_space<vmem>>, vector<144x16xf32>,
    %c0_219 = arith.constant 0 : index
    %c0_220 = arith.constant 0 : index
    %184 = vector.load %arg9[%c0_219, %c0_220] : memref<144x144xf32, #tpu.memory_space<vmem>>, vector<144x144xf32>
    %185 = arith.truncf %184 : vector<144x144xf32> to vector<144x144xbf16>
    %cst_221 = arith.constant dense<0.000000e+00> : vector<144x16xf32>
    %186 = tpu.matmul %185, %133, %cst_221 {dimension_numbers = #tpu.dot_dimension_numbers<[1], [0], [0], [1], [0, 0, 1, 1], [], []>} : vector<144x144xbf16>, vector<144x16xbf16>, vector<144x16xf32> -> vector<144x16xf32>
    %187 = vector.broadcast %135 : vector<1x16xf32> to vector<144x16xf32>
    %188 = arith.addf %186, %187 : vector<144x16xf32>
    %cst_222 = arith.constant 0.000000e+00 : f32
    %189 = vector.shape_cast %70 : vector<144x1xi1> to vector<144x1xi1>
    %190 = vector.broadcast %189 : vector<144x1xi1> to vector<144x16xi1>
    %191 = vector.broadcast %cst_222 : f32 to vector<144x16xf32>
    %192 = arith.select %190, %188, %191 : vector<144x16xi1>, vector<144x16xf32>
    %cst_223 = arith.constant dense<0.000000e+00> : vector<16xf32>
    %193 = vector.multi_reduction <add>, %192, %cst_223 [0] : vector<144x16xf32> to vector<16xf32>
    %194 = vector.shape_cast %193 : vector<16xf32> to vector<1x16xf32>
    %195 = arith.addf %165, %194 : vector<1x16xf32>
    %cst_224 = arith.constant 3.906250e-03 : f32
    %196 = vector.broadcast %cst_224 : f32 to vector<1x16xf32>
    %197 = arith.mulf %195, %196 : vector<1x16xf32>
    %c0_225 = arith.constant 0 : index
    %c0_226 = arith.constant 0 : index
    %198 = vector.load %arg4[%c0_225, %c0_226] : memref<16x128xf32, #tpu.memory_space<vmem>>, vector<16x128xf32>
    %cst_227 = arith.constant dense<0.000000e+00> : vector<1x128xf32>
    %199 = tpu.matmul %197, %198, %cst_227 {dimension_numbers = #tpu.dot_dimension_numbers<[1], [0], [0], [1], [0, 0, 1, 1], [], []>} : vector<1x16xf32>, vector<16x128xf32>, vector<1x128xf32> -> vector<1x128xf32>
    %c0_228 = arith.constant 0 : index
    %c0_229 = arith.constant 0 : index
    %200 = vector.load %arg5[%c0_228, %c0_229] : memref<1x128xf32, #tpu.memory_space<vmem>>, vector<1x128xf32>
    %201 = arith.addf %199, %200 : vector<1x128xf32>
    %c0_230 = arith.constant 0 : index
    %c0_231 = arith.constant 0 : index
    %c0_232 = arith.constant 0 : index
    %202 = vector.load %arg6[%c0_230, %c0_231, %c0_232] : memref<1x1x128xf32, #tpu.memory_space<vmem>>, vector<1x1x128xf32>
    %203 = vector.shape_cast %202 : vector<1x1x128xf32> to vector<1x128xf32>
    %204 = vector.shape_cast %201 : vector<1x128xf32> to vector<1x1x128xf32>
    tpu.vector_store %arg6[%c0_230, %c0_231, %c0_232], %204 {strides = array<i32>} : memref<1x1x128xf32, #tpu.memory_space<vmem>>, vector<1x1x128xf32>,
    return
  }
  func.func @transform_0(%arg0: i32) -> (i32, i32, i32) {
    %c0_i32 = arith.constant 0 : i32
    %c0_i32_0 = arith.constant 0 : i32
    %c0_i32_1 = arith.constant 0 : i32
    return %arg0, %c0_i32, %c0_i32_0 : i32, i32, i32
  }
  func.func @transform_1(%arg0: i32) -> (i32, i32, i32) {
    %c0_i32 = arith.constant 0 : i32
    %c0_i32_0 = arith.constant 0 : i32
    %c0_i32_1 = arith.constant 0 : i32
    %c0_i32_2 = arith.constant 0 : i32
    return %c0_i32, %c0_i32_0, %c0_i32_1 : i32, i32, i32
  }
  func.func @transform_2(%arg0: i32) -> (i32, i32, i32) {
    %c0_i32 = arith.constant 0 : i32
    %c0_i32_0 = arith.constant 0 : i32
    %c0_i32_1 = arith.constant 0 : i32
    %c0_i32_2 = arith.constant 0 : i32
    return %c0_i32, %c0_i32_0, %c0_i32_1 : i32, i32, i32
  }
  func.func @transform_3(%arg0: i32) -> (i32, i32) {
    %c0_i32 = arith.constant 0 : i32
    %c0_i32_0 = arith.constant 0 : i32
    %c0_i32_1 = arith.constant 0 : i32
    return %c0_i32, %c0_i32_0 : i32, i32
  }
  func.func @transform_4(%arg0: i32) -> (i32, i32) {
    %c0_i32 = arith.constant 0 : i32
    %c0_i32_0 = arith.constant 0 : i32
    %c0_i32_1 = arith.constant 0 : i32
    return %c0_i32, %c0_i32_0 : i32, i32
  }
  func.func @transform_5(%arg0: i32) -> (i32, i32, i32) {
    %c0_i32 = arith.constant 0 : i32
    %c0_i32_0 = arith.constant 0 : i32
    %c0_i32_1 = arith.constant 0 : i32
    return %arg0, %c0_i32, %c0_i32_0 : i32, i32, i32
  }
}

</mosaic_0001>

<bundles_post_ra>
// kernel: efficientnet_segmentation_forward.1
= control target key start
LH: loop header
LB: loop body
LE: loop exit
PB: predicated region body
PF: predicated region fallthrough
CT: control target
= control target key end

     0   :  { %10 = vsyncpa [#allocation6], 0  ;;  %s8406_s0 = inlined_call_operand.vmem [shape: f32[2,256,16], index: 0, kind: input, shape index: {}]   ;;  %s8407_s1 = inlined_call_operand.vmem [shape: bf16[2,144,16], index: 1, kind: input, shape index: {}]   ;;  %s8408_s2 = inlined_call_operand.vmem [shape: f32[2,1,16], index: 2, kind: input, shape index: {}]   ;;  %s8409_s3 = inlined_call_operand.vmem [shape: f32[16,128], index: 3, kind: input, shape index: {}]   ;;  %s8410_s4 = inlined_call_operand.vmem [shape: f32[1,128], index: 4, kind: input, shape index: {}]   ;;  %s8411_s5 = inlined_call_operand.hbm [shape: f32[2,1,128], index: 5, kind: output, shape index: {}]  }
   0x1   :  { %12 = vsyncpa [#allocation6 + $0x1], 0  ;;  %s5600_s18 = smov 0   ;;  %s5602_s19 = smov 0  }
   0x2   :  { %s5604_s20 = smov 0   ;;  %s5606_s21 = smov 0  }
   0x3 LB: > { %s5621_s22 = sadd.s32 4294967295, %s5557_s21   ;;  %s5295_s23 = sadd.s32 4294967294, %s5557_s21   ;;  %s5557_s21 = sphi %s5606_s21, %s8965_s21   ;;  %s5553_s20 = sphi %s5604_s20, %s8964_s20   ;;  %s5549_s19 = sphi %s5602_s19, %s8963_s19   ;;  %s5545_s18 = sphi %s5600_s18, %s8962_s18  }
   0x4   : > { %s5625_s24 = sadd.s32 1, %s5557_s21   ;;  %s135_s25 = sadd.s32 1, %s5553_s20 }
   0x5   : > { %s132_s26 = ssub.s32 %s5557_s21, %s5625_s24  ;;  %p145_p0 = scmp.ne.s32.totalorder %s5553_s20, %s5549_s19 }
   0x6   : > { %p133_p1 = scmp.eq.s32.totalorder %s132_s26, 0  ;;  %p146_p2 = scmp.eq.s32.totalorder %s5621_s22, 1 }
   0x7   : > { %p151_p3 = scmp.ne.s32.totalorder %s5549_s19, %s5545_s18  ;;  %p152_p4 = scmp.eq.s32.totalorder %s5295_s23, 1 }
   0x8   : > { %s5636_s27 = scalar_select %p133_p1, %s5553_s20, %s135_s25  }
   0x9   : > { %p5638_p5 = por %p146_p2, %p145_p0  ;;  %p5642_p6 = por %p152_p4, %p151_p3 }
   0xa   : > { %p5298_p7 = scmp.ge.s32.totalorder %s5557_s21, 1  ;;  %p190_p8 = scmp.lt.s32.totalorder %s5557_s21, 3 }
   0xc   : > { %p191_p9 = pnand %p5298_p7, %p190_p8 }
   0xd   : > { %p217_p10 = scmp.lt.s32.totalorder (!%p191_p9), %s5621_s22, 1  ;;  %s5560_s10 = smov (!%p191_p9), 16  }
   0xe   : > { %194 = sbr.rel (%p191_p9) target bundleno = 1694 (0x69e), region = 40  ;;  %s5561_s11 = smov (!%p191_p9), 32  }
   0xf   : > { %s5562_s12 = smov (!%p191_p9), 48   ;;  %s5564_s13 = smov (!%p191_p9), 64  }
  0x10   : > { %s5565_s23 = smov (!%p191_p9), 80   ;;  %s5377_s7 = sshll.u32 (!%p191_p9), %s5621_s22, 4 }
  0x11   : > { %s8371_s17 = scalar_lea.hbm (!%p191_p9), %s8411_s5, %s5377_s7 }
  0x13   : > { %vm8423_vm0 = vcmask 130048   ;;  %v5559_v0 = vmov 0.0   ;;  %s218_s30 = scalar_select %p217_p10, %s5621_s22, 1  ;;  %vm8418_vm1 = vcmask 261248   ;;  %vm8417_vm2 = vcmask 392448  }
  0x14   : > { %224 = vst.msk [vmem:[#allocation2] sm:$0xff] %vm8423_vm0, %v5559_v0  ;;  %225 = vst.msk [vmem:[#allocation2 + $0x8] sm:$0xff] %vm8423_vm0, %v5559_v0  ;;  %vm8412_vm3 = vcmask 523648   ;;  %vm8415_vm4 = vcmask 654848   ;;  %vm8416_vm5 = vcmask 786048   ;;  %vm8414_vm6 = vcmask 917248  }
  0x15   : > { %226 = vst.msk [vmem:[#allocation2 + $0x10] sm:$0xff] %vm8423_vm0, %v5559_v0  ;;  %227 = vst.msk [vmem:[#allocation2 + $0x18] sm:$0xff] %vm8423_vm0, %v5559_v0  ;;  %s5380_s6 = sshll.u32 %s218_s30, 8  ;;  %s5566_s30 = smov 96   ;;  %vm8413_vm7 = vcmask 1048448  }
  0x16   : > { %228 = vst.msk [vmem:[#allocation2 + $0x20] sm:$0xff] %vm8423_vm0, %v5559_v0  ;;  %229 = vst.msk [vmem:[#allocation2 + $0x28] sm:$0xff] %vm8423_vm0, %v5559_v0  ;;  %s5819_s9 = scalar_lea.vmem %s8406_s0, %s5380_s6  ;;  %s5567_s6 = smov 112  }
  0x17   : > { %230 = vst.msk [vmem:[#allocation2 + $0x30] sm:$0xff] %vm8423_vm0, %v5559_v0  ;;  %231 = vst.msk [vmem:[#allocation2 + $0x38] sm:$0xff] %vm8423_vm0, %v5559_v0  ;;  %v309_v1 = vld [vmem:[%s5819_s9] sm:$0xff]  ;;  %v310_v2 = vld [vmem:[%s5819_s9 + $0x8] sm:$0xff] }
  0x18   : > { %232 = vst.msk [vmem:[#allocation2 + $0x40] sm:$0xff] %vm8423_vm0, %v5559_v0  ;;  %233 = vst.msk [vmem:[#allocation2 + $0x48] sm:$0xff] %vm8423_vm0, %v5559_v0  ;;  %v313_v3 = vld [vmem:[%s5819_s9 + $0x10] sm:$0xff]  ;;  %v314_v4 = vld [vmem:[%s5819_s9 + $0x18] sm:$0xff] }
  0x19   : > { %234 = vst.msk [vmem:[#allocation2 + $0x50] sm:$0xff] %vm8423_vm0, %v5559_v0  ;;  %235 = vst.msk [vmem:[#allocation2 + $0x58] sm:$0xff] %vm8423_vm0, %v5559_v0  ;;  %v317_v5 = vld [vmem:[%s5819_s9 + $0x20] sm:$0xff]  ;;  %v318_v6 = vld [vmem:[%s5819_s9 + $0x28] sm:$0xff] }
  0x1a   : > { %236 = vst.msk [vmem:[#allocation2 + $0x60] sm:$0xff] %vm8423_vm0, %v5559_v0  ;;  %237 = vst.msk [vmem:[#allocation2 + $0x68] sm:$0xff] %vm8423_vm0, %v5559_v0  ;;  %v322_v9 = vld [vmem:[%s5819_s9 + $0x38] sm:$0xff]  ;;  %v321_v10 = vld [vmem:[%s5819_s9 + $0x30] sm:$0xff] }
  0x1b   : > { %238 = vst.msk [vmem:[#allocation2 + $0x70] sm:$0xff] %vm8423_vm0, %v5559_v0  ;;  %239 = vst.msk [vmem:[#allocation2 + $0x78] sm:$0xff] %vm8423_vm0, %v5559_v0  ;;  %v753_v7 = vld [vmem:[#allocation2 + $0x1] sm:$0xff]  ;;  %v329_v13 = vld [vmem:[%s5819_s9 + $0x50] sm:$0xff] }
  0x1c   : > { %240 = vst.msk [vmem:[#allocation2 + $0x80] sm:$0xff] %vm8423_vm0, %v5559_v0  ;;  %241 = vst.msk [vmem:[#allocation2 + $0x88] sm:$0xff] %vm8423_vm0, %v5559_v0  ;;  %v754_v8 = vld [vmem:[#allocation2 + $0x9] sm:$0xff]  ;;  %789 = vrot.lane.b32.xlu0 %v753_v7, %s5560_s10  ;;  %v325_v11 = vld [vmem:[%s5819_s9 + $0x40] sm:$0xff] }
  0x1d   : > { %242 = vst.msk [vmem:[#allocation2 + $0x90] sm:$0xff] %vm8423_vm0, %v5559_v0  ;;  %243 = vst.msk [vmem:[#allocation2 + $0x98] sm:$0xff] %vm8423_vm0, %v5559_v0  ;;  %v326_v12 = vld [vmem:[%s5819_s9 + $0x48] sm:$0xff]  ;;  %v330_v14 = vld [vmem:[%s5819_s9 + $0x58] sm:$0xff] }
  0x1e   : > { %244 = vst.msk [vmem:[#allocation2 + $0xa0] sm:$0xff] %vm8423_vm0, %v5559_v0  ;;  %245 = vst.msk [vmem:[#allocation2 + $0xa8] sm:$0xff] %vm8423_vm0, %v5559_v0  ;;  %v333_v15 = vld [vmem:[%s5819_s9 + $0x60] sm:$0xff]  ;;  %v334_v16 = vld [vmem:[%s5819_s9 + $0x68] sm:$0xff] }
  0x1f   : > { %246 = vst.msk [vmem:[#allocation2 + $0xb0] sm:$0xff] %vm8423_vm0, %v5559_v0  ;;  %247 = vst.msk [vmem:[#allocation2 + $0xb8] sm:$0xff] %vm8423_vm0, %v5559_v0  ;;  %v337_v17 = vld [vmem:[%s5819_s9 + $0x70] sm:$0xff]  ;;  %v338_v18 = vld [vmem:[%s5819_s9 + $0x78] sm:$0xff] }
  0x20   : > { %248 = vst.msk [vmem:[#allocation2 + $0xc0] sm:$0xff] %vm8423_vm0, %v5559_v0  ;;  %249 = vst.msk [vmem:[#allocation2 + $0xc8] sm:$0xff] %vm8423_vm0, %v5559_v0  ;;  %v717_v19 = vld [vmem:[#allocation2] sm:$0xff]  ;;  %791 = vrot.lane.b32.xlu0 %v754_v8, %s5560_s10  ;;  %v718_v20 = vld [vmem:[#allocation2 + $0x8] sm:$0xff] }
  0x21   : > { %250 = vst.msk [vmem:[#allocation2 + $0xd0] sm:$0xff] %vm8423_vm0, %v5559_v0  ;;  %251 = vst.msk [vmem:[#allocation2 + $0xd8] sm:$0xff] %vm8423_vm0, %v5559_v0  ;;  %v862_v52 = vld [vmem:[#allocation2 + $0x2] sm:$0xff]  ;;  %v863_v55 = vld [vmem:[#allocation2 + $0xa] sm:$0xff] }
  0x22   : > { %252 = vst.msk [vmem:[#allocation2 + $0xe0] sm:$0xff] %vm8423_vm0, %v5559_v0  ;;  %253 = vst.msk [vmem:[#allocation2 + $0xe8] sm:$0xff] %vm8423_vm0, %v5559_v0  ;;  %v5476_v8 = vld [vmem:[%s8407_s1 + $0x38] sm:$0xff]  }
  0x23   : > { %254 = vst.msk [vmem:[#allocation2 + $0xf0] sm:$0xff] %vm8423_vm0, %v5559_v0  ;;  %255 = vst.msk [vmem:[#allocation2 + $0xf8] sm:$0xff] %vm8423_vm0, %v5559_v0 }
  0x24   : > { %256 = vst.msk [vmem:[#allocation2 + $0x100] sm:$0xff] %vm8423_vm0, %v5559_v0  ;;  %257 = vst.msk [vmem:[#allocation2 + $0x108] sm:$0xff] %vm8423_vm0, %v5559_v0 }
  0x25   : > { %258 = vst.msk [vmem:[#allocation2 + $0x110] sm:$0xff] %vm8423_vm0, %v5559_v0  ;;  %259 = vst.msk [vmem:[#allocation2 + $0x118] sm:$0xff] %vm8423_vm0, %v5559_v0 }
  0x26   : > { %260 = vst.msk [vmem:[#allocation2 + $0x120] sm:$0xff] %vm8423_vm0, %v5559_v0  ;;  %261 = vst.msk [vmem:[#allocation2 + $0x128] sm:$0xff] %vm8423_vm0, %v5559_v0 }
  0x27   : > { %262 = vst.msk [vmem:[#allocation2 + $0x130] sm:$0xff] %vm8423_vm0, %v5559_v0  ;;  %263 = vst.msk [vmem:[#allocation2 + $0x138] sm:$0xff] %vm8423_vm0, %v5559_v0 }
  0x28   : > { %264 = vst.msk [vmem:[#allocation2 + $0x140] sm:$0xff] %vm8423_vm0, %v5559_v0  ;;  %267 = vst.msk [vmem:[#allocation3] sm:$0xff] %vm8423_vm0, %v5559_v0 }
  0x29   : > { %268 = vst.msk [vmem:[#allocation3 + $0x8] sm:$0xff] %vm8423_vm0, %v5559_v0  ;;  %269 = vst.msk [vmem:[#allocation3 + $0x10] sm:$0xff] %vm8423_vm0, %v5559_v0 }
  0x2a   : > { %270 = vst.msk [vmem:[#allocation3 + $0x18] sm:$0xff] %vm8423_vm0, %v5559_v0  ;;  %271 = vst.msk [vmem:[#allocation3 + $0x20] sm:$0xff] %vm8423_vm0, %v5559_v0 }
  0x2b   : > { %272 = vst.msk [vmem:[#allocation3 + $0x28] sm:$0xff] %vm8423_vm0, %v5559_v0  ;;  %273 = vst.msk [vmem:[#allocation3 + $0x30] sm:$0xff] %vm8423_vm0, %v5559_v0 }
  0x2c   : > { %274 = vst.msk [vmem:[#allocation3 + $0x38] sm:$0xff] %vm8423_vm0, %v5559_v0  ;;  %275 = vst.msk [vmem:[#allocation3 + $0x40] sm:$0xff] %vm8423_vm0, %v5559_v0 }
  0x2d   : > { %276 = vst.msk [vmem:[#allocation3 + $0x48] sm:$0xff] %vm8423_vm0, %v5559_v0  ;;  %277 = vst.msk [vmem:[#allocation3 + $0x50] sm:$0xff] %vm8423_vm0, %v5559_v0 }
  0x2e   : > { %278 = vst.msk [vmem:[#allocation3 + $0x58] sm:$0xff] %vm8423_vm0, %v5559_v0  ;;  %279 = vst.msk [vmem:[#allocation3 + $0x60] sm:$0xff] %vm8423_vm0, %v5559_v0 }
  0x2f   : > { %280 = vst.msk [vmem:[#allocation3 + $0x68] sm:$0xff] %vm8423_vm0, %v5559_v0  ;;  %281 = vst.msk [vmem:[#allocation3 + $0x70] sm:$0xff] %vm8423_vm0, %v5559_v0 }
  0x30   : > { %282 = vst.msk [vmem:[#allocation3 + $0x78] sm:$0xff] %vm8423_vm0, %v5559_v0  ;;  %283 = vst.msk [vmem:[#allocation3 + $0x80] sm:$0xff] %vm8423_vm0, %v5559_v0 }
  0x31   : > { %284 = vst.msk [vmem:[#allocation3 + $0x88] sm:$0xff] %vm8423_vm0, %v5559_v0  ;;  %285 = vst.msk [vmem:[#allocation3 + $0x90] sm:$0xff] %vm8423_vm0, %v5559_v0 }
  0x32   : > { %286 = vst.msk [vmem:[#allocation3 + $0x98] sm:$0xff] %vm8423_vm0, %v5559_v0  ;;  %287 = vst.msk [vmem:[#allocation3 + $0xa0] sm:$0xff] %vm8423_vm0, %v5559_v0 }
  0x33   : > { %288 = vst.msk [vmem:[#allocation3 + $0xa8] sm:$0xff] %vm8423_vm0, %v5559_v0  ;;  %289 = vst.msk [vmem:[#allocation3 + $0xb0] sm:$0xff] %vm8423_vm0, %v5559_v0 }
  0x34   : > { %290 = vst.msk [vmem:[#allocation3 + $0xb8] sm:$0xff] %vm8423_vm0, %v5559_v0  ;;  %291 = vst.msk [vmem:[#allocation3 + $0xc0] sm:$0xff] %vm8423_vm0, %v5559_v0 }
  0x35   : > { %292 = vst.msk [vmem:[#allocation3 + $0xc8] sm:$0xff] %vm8423_vm0, %v5559_v0  ;;  %293 = vst.msk [vmem:[#allocation3 + $0xd0] sm:$0xff] %vm8423_vm0, %v5559_v0 }
  0x36   : > { %294 = vst.msk [vmem:[#allocation3 + $0xd8] sm:$0xff] %vm8423_vm0, %v5559_v0  ;;  %295 = vst.msk [vmem:[#allocation3 + $0xe0] sm:$0xff] %vm8423_vm0, %v5559_v0 }
  0x37   : > { %296 = vst.msk [vmem:[#allocation3 + $0xe8] sm:$0xff] %vm8423_vm0, %v5559_v0  ;;  %297 = vst.msk [vmem:[#allocation3 + $0xf0] sm:$0xff] %vm8423_vm0, %v5559_v0 }
  0x38   : > { %298 = vst.msk [vmem:[#allocation3 + $0xf8] sm:$0xff] %vm8423_vm0, %v5559_v0  ;;  %299 = vst.msk [vmem:[#allocation3 + $0x100] sm:$0xff] %vm8423_vm0, %v5559_v0 }
  0x39   : > { %300 = vst.msk [vmem:[#allocation3 + $0x108] sm:$0xff] %vm8423_vm0, %v5559_v0  ;;  %301 = vst.msk [vmem:[#allocation3 + $0x110] sm:$0xff] %vm8423_vm0, %v5559_v0 }
  0x3a   : > { %302 = vst.msk [vmem:[#allocation3 + $0x118] sm:$0xff] %vm8423_vm0, %v5559_v0  ;;  %303 = vst.msk [vmem:[#allocation3 + $0x120] sm:$0xff] %vm8423_vm0, %v5559_v0 }
  0x3b   : > { %304 = vst.msk [vmem:[#allocation3 + $0x128] sm:$0xff] %vm8423_vm0, %v5559_v0  ;;  %305 = vst.msk [vmem:[#allocation3 + $0x130] sm:$0xff] %vm8423_vm0, %v5559_v0 }
  0x3c   : > { %306 = vst.msk [vmem:[#allocation3 + $0x138] sm:$0xff] %vm8423_vm0, %v5559_v0  ;;  %307 = vst.msk [vmem:[#allocation3 + $0x140] sm:$0xff] %vm8423_vm0, %v5559_v0 }
  0x3d   : > { %311 = vst.msk [vmem:[#allocation2 + $0x13] sm:$0xff] %vm8423_vm0, %v309_v1  ;;  %312 = vst.msk [vmem:[#allocation2 + $0x1b] sm:$0xff] %vm8423_vm0, %v310_v2 }
  0x3e   : > { %315 = vst.msk [vmem:[#allocation2 + $0x25] sm:$0xff] %vm8423_vm0, %v313_v3  ;;  %316 = vst.msk [vmem:[#allocation2 + $0x2d] sm:$0xff] %vm8423_vm0, %v314_v4 }
  0x3f   : > { %319 = vst.msk [vmem:[#allocation2 + $0x37] sm:$0xff] %vm8423_vm0, %v317_v5  ;;  %320 = vst.msk [vmem:[#allocation2 + $0x3f] sm:$0xff] %vm8423_vm0, %v318_v6 }
  0x40   : > { %324 = vst.msk [vmem:[#allocation2 + $0x51] sm:$0xff] %vm8423_vm0, %v322_v9  ;;  %323 = vst.msk [vmem:[#allocation2 + $0x49] sm:$0xff] %vm8423_vm0, %v321_v10  ;;  %v5563_v9 = vmov 0   ;;  %v5477_v10 = vld [vmem:[%s8407_s1 + $0x30] sm:$0xff]  }
  0x41   : > { %327 = vst.msk [vmem:[#allocation2 + $0x5b] sm:$0xff] %vm8423_vm0, %v325_v11  ;;  %328 = vst.msk [vmem:[#allocation2 + $0x63] sm:$0xff] %vm8423_vm0, %v326_v12  ;;  %1693 = vmatprep.subr.bf16.mxu0 %v5563_v9  ;;  %2779 = vmatprep.subr.bf16.mxu1 %v5563_v9  ;;  %v5478_v11 = vld [vmem:[%s8407_s1 + $0x28] sm:$0xff]   ;;  %v341_v12 = vld [vmem:[%s5819_s9 + $0x80] sm:$0xff] }
  0x42   : > { %331 = vst.msk [vmem:[#allocation2 + $0x6d] sm:$0xff] %vm8423_vm0, %v329_v13  ;;  %332 = vst.msk [vmem:[#allocation2 + $0x75] sm:$0xff] %vm8423_vm0, %v330_v14  ;;  %1694 = vmatpush1.bf16.msra.mxu0 %v5476_v8  ;;  %2780 = vmatpush1.bf16.msra.mxu1 %v5476_v8  ;;  %v5479_v13 = vld [vmem:[%s8407_s1 + $0x20] sm:$0xff]  }
  0x43   : > { %335 = vst.msk [vmem:[#allocation2 + $0x7f] sm:$0xff] %vm8423_vm0, %v333_v15  ;;  %336 = vst.msk [vmem:[#allocation2 + $0x87] sm:$0xff] %vm8423_vm0, %v334_v16  ;;  %1695 = vmatprep.subr.bf16.mxu0 %v5563_v9  ;;  %2781 = vmatprep.subr.bf16.mxu1 %v5563_v9  ;;  %v342_v15 = vld [vmem:[%s5819_s9 + $0x88] sm:$0xff]  ;;  %v5480_v16 = vld [vmem:[%s8407_s1 + $0x18] sm:$0xff]  }
  0x44   : > { %339 = vst.msk [vmem:[#allocation2 + $0x91] sm:$0xff] %vm8423_vm0, %v337_v17  ;;  %340 = vst.msk [vmem:[#allocation2 + $0x99] sm:$0xff] %vm8423_vm0, %v338_v18  ;;  %v755_v21 = vld [vmem:[#allocation2 + $0x11] sm:$0xff]  ;;  %v756_v23 = vld [vmem:[#allocation2 + $0x19] sm:$0xff] }
  0x45   : > { %735 = vst.msk [vmem:[#allocation4] sm:$0xff] %vm8423_vm0, %v717_v19  ;;  %v757_v22 = vld [vmem:[#allocation2 + $0x21] sm:$0xff]  ;;  %736 = vst.msk [vmem:[#allocation4 + $0x10] sm:$0xff] %vm8423_vm0, %v718_v20  ;;  %793 = vrot.lane.b32.xlu1 %v755_v21, %s5560_s10  ;;  %v758_v25 = vld [vmem:[#allocation2 + $0x29] sm:$0xff] }
  0x46   : > { %797 = vrot.lane.b32.xlu0 %v757_v22, %s5560_s10  ;;  %v759_v24 = vld [vmem:[#allocation2 + $0x31] sm:$0xff]  ;;  %v761_v26 = vld [vmem:[#allocation2 + $0x41] sm:$0xff]  ;;  %v760_v27 = vld [vmem:[#allocation2 + $0x39] sm:$0xff]  ;;  %1696 = vmatpush1.bf16.msra.mxu0 %v5477_v10  ;;  %343 = vst.msk [vmem:[#allocation2 + $0xa3] sm:$0xff] %vm8423_vm0, %v341_v12 }
  0x47   : > { %v763_v28 = vld [vmem:[#allocation2 + $0x51] sm:$0xff]  ;;  %v721_v30 = vld [vmem:[#allocation2 + $0x20] sm:$0xff]  ;;  %v762_v31 = vld [vmem:[#allocation2 + $0x49] sm:$0xff]  ;;  %1697 = vmatprep.subr.bf16.mxu0 %v5563_v9  ;;  %2782 = vmatpush1.bf16.msra.mxu1 %v5477_v10  ;;  %344 = vst.msk [vmem:[#allocation2 + $0xab] sm:$0xff] %vm8423_vm0, %v342_v15 }
  0x48   : > { %v719_v29 = vld [vmem:[#allocation2 + $0x10] sm:$0xff]  ;;  %739 = vst.msk [vmem:[#allocation4 + $0x40] sm:$0xff] %vm8423_vm0, %v721_v30  ;;  %v720_v32 = vld [vmem:[#allocation2 + $0x18] sm:$0xff]  ;;  %v722_v34 = vld [vmem:[#allocation2 + $0x28] sm:$0xff]  ;;  %2783 = vmatprep.subr.bf16.mxu1 %v5563_v9 }
  0x49   : > { %795 = vrot.lane.b32.xlu1 %v756_v23, %s5560_s10  ;;  %737 = vst.msk [vmem:[#allocation4 + $0x20] sm:$0xff] %vm8423_vm0, %v719_v29  ;;  %738 = vst.msk [vmem:[#allocation4 + $0x30] sm:$0xff] %vm8423_vm0, %v720_v32  ;;  %v723_v33 = vld [vmem:[#allocation2 + $0x30] sm:$0xff]  ;;  %v765_v35 = vld [vmem:[#allocation2 + $0x61] sm:$0xff] }
  0x4a   : > { %801 = vrot.lane.b32.xlu0 %v759_v24, %s5560_s10  ;;  %741 = vst.msk [vmem:[#allocation4 + $0x60] sm:$0xff] %vm8423_vm0, %v723_v33  ;;  %740 = vst.msk [vmem:[#allocation4 + $0x50] sm:$0xff] %vm8423_vm0, %v722_v34  ;;  %v725_v36 = vld [vmem:[#allocation2 + $0x40] sm:$0xff]  ;;  %v724_v37 = vld [vmem:[#allocation2 + $0x38] sm:$0xff]  ;;  %1698 = vmatpush1.bf16.msra.mxu0 %v5478_v11 }
  0x4b   : > { %743 = vst.msk [vmem:[#allocation4 + $0x80] sm:$0xff] %vm8423_vm0, %v725_v36  ;;  %v727_v38 = vld [vmem:[#allocation2 + $0x50] sm:$0xff]  ;;  %v764_v39 = vld [vmem:[#allocation2 + $0x59] sm:$0xff]  ;;  %742 = vst.msk [vmem:[#allocation4 + $0x70] sm:$0xff] %vm8423_vm0, %v724_v37  ;;  %1699 = vmatprep.subr.bf16.mxu0 %v5563_v9  ;;  %2784 = vmatpush1.bf16.msra.mxu1 %v5478_v11 }
  0x4c   : > { %745 = vst.msk [vmem:[#allocation4 + $0xa0] sm:$0xff] %vm8423_vm0, %v727_v38  ;;  %v726_v40 = vld [vmem:[#allocation2 + $0x48] sm:$0xff]  ;;  %v729_v41 = vld [vmem:[#allocation2 + $0x60] sm:$0xff]  ;;  %v728_v42 = vld [vmem:[#allocation2 + $0x58] sm:$0xff]  ;;  %2785 = vmatprep.subr.bf16.mxu1 %v5563_v9 }
  0x4d   : > { %799 = vrot.lane.b32.xlu1 %v758_v25, %s5560_s10  ;;  %744 = vst.msk [vmem:[#allocation4 + $0x90] sm:$0xff] %vm8423_vm0, %v726_v40  ;;  %747 = vst.msk [vmem:[#allocation4 + $0xc0] sm:$0xff] %vm8423_vm0, %v729_v41  ;;  %v731_v43 = vld [vmem:[#allocation2 + $0x70] sm:$0xff]  ;;  %v730_v45 = vld [vmem:[#allocation2 + $0x68] sm:$0xff] }
  0x4e   : > { %805 = vrot.lane.b32.xlu0 %v761_v26, %s5560_s10  ;;  %v767_v44 = vld [vmem:[#allocation2 + $0x71] sm:$0xff]  ;;  %746 = vst.msk [vmem:[#allocation4 + $0xb0] sm:$0xff] %vm8423_vm0, %v728_v42  ;;  %749 = vst.msk [vmem:[#allocation4 + $0xe0] sm:$0xff] %vm8423_vm0, %v731_v43  ;;  %v733_v46 = vld [vmem:[#allocation2 + $0x80] sm:$0xff]  ;;  %1700 = vmatpush1.bf16.msra.mxu0 %v5479_v13 }
  0x4f   : > { %748 = vst.msk [vmem:[#allocation4 + $0xd0] sm:$0xff] %vm8423_vm0, %v730_v45  ;;  %751 = vst.msk [vmem:[#allocation4 + $0x100] sm:$0xff] %vm8423_vm0, %v733_v46  ;;  %v732_v47 = vld [vmem:[#allocation2 + $0x78] sm:$0xff]  ;;  %v766_v48 = vld [vmem:[#allocation2 + $0x69] sm:$0xff]  ;;  %1701 = vmatprep.subr.bf16.mxu0 %v5563_v9  ;;  %2786 = vmatpush1.bf16.msra.mxu1 %v5479_v13 }
  0x50   : > { %750 = vst.msk [vmem:[#allocation4 + $0xf0] sm:$0xff] %vm8423_vm0, %v732_v47  ;;  %v734_v49 = vld [vmem:[#allocation2 + $0x88] sm:$0xff]  ;;  %v768_v51 = vld [vmem:[#allocation2 + $0x79] sm:$0xff]  ;;  %2787 = vmatprep.subr.bf16.mxu1 %v5563_v9  ;;  %v5481_v18 = vld [vmem:[%s8407_s1 + $0x10] sm:$0xff]  }
  0x51   : > { %803 = vrot.lane.b32.xlu1 %v760_v27, %s5560_s10  ;;  %752 = vst.msk [vmem:[#allocation4 + $0x110] sm:$0xff] %vm8423_vm0, %v734_v49  ;;  %v769_v50 = vld [vmem:[#allocation2 + $0x81] sm:$0xff]  ;;  %v770_v53 = vld [vmem:[#allocation2 + $0x89] sm:$0xff]  ;;  %v864_v54 = vld [vmem:[#allocation2 + $0x12] sm:$0xff] }
  0x52   : > { %809 = vrot.lane.b32.xlu0 %v763_v28, %s5560_s10  ;;  %v866_v56 = vld [vmem:[#allocation2 + $0x22] sm:$0xff]  ;;  %v865_v57 = vld [vmem:[#allocation2 + $0x1a] sm:$0xff]  ;;  %v868_v58 = vld [vmem:[#allocation2 + $0x32] sm:$0xff]  ;;  %1702 = vmatpush1.bf16.msra.mxu0 %v5480_v16 }
  0x53   : > { %v867_v59 = vld [vmem:[#allocation2 + $0x2a] sm:$0xff]  ;;  %v870_v60 = vld [vmem:[#allocation2 + $0x42] sm:$0xff]  ;;  %v869_v61 = vld [vmem:[#allocation2 + $0x3a] sm:$0xff]  ;;  %1703 = vmatprep.subr.bf16.mxu0 %v5563_v9  ;;  %2788 = vmatpush1.bf16.msra.mxu1 %v5480_v16 }
  0x54   : > { %v872_v62 = vld [vmem:[#allocation2 + $0x52] sm:$0xff]  ;;  %v871_v63 = vld [vmem:[#allocation2 + $0x4a] sm:$0xff]  ;;  %v874_v1 = vld [vmem:[#allocation2 + $0x62] sm:$0xff]  ;;  %2789 = vmatprep.subr.bf16.mxu1 %v5563_v9 }
  0x55   : > { %807 = vrot.lane.b32.xlu1 %v762_v31, %s5560_s10  ;;  %v873_v2 = vld [vmem:[#allocation2 + $0x5a] sm:$0xff]  ;;  %v876_v3 = vld [vmem:[#allocation2 + $0x72] sm:$0xff]  ;;  %v875_v4 = vld [vmem:[#allocation2 + $0x6a] sm:$0xff] }
  0x56   : > { %813 = vrot.lane.b32.xlu0 %v765_v35, %s5560_s10  ;;  %v878_v5 = vld [vmem:[#allocation2 + $0x82] sm:$0xff]  ;;  %v877_v6 = vld [vmem:[#allocation2 + $0x7a] sm:$0xff]  ;;  %v879_v7 = vld [vmem:[#allocation2 + $0x8a] sm:$0xff]  ;;  %1704 = vmatpush1.bf16.msra.mxu0 %v5481_v18 }
  0x57   : > { %v5943_v14 = vld [vmem:[#allocation2 + $0x92] sm:$0xff]  ;;  %v5961_v19 = vld [vmem:[#allocation2 + $0x9a] sm:$0xff]  ;;  %v1082_v20 = vld [vmem:[#allocation2 + $0x23] sm:$0xff]  ;;  %1705 = vmatprep.subr.bf16.mxu0 %v5563_v9  ;;  %2790 = vmatpush1.bf16.msra.mxu1 %v5481_v18 }
  0x58   : > { %v1080_v17 = vld [vmem:[#allocation2 + $0x13] sm:$0xff]  ;;  %v5482_v21 = vld [vmem:[%s8407_s1 + $0x8] sm:$0xff]   ;;  %2791 = vmatprep.subr.bf16.mxu1 %v5563_v9  ;;  %v1081_v22 = vld [vmem:[#allocation2 + $0x1b] sm:$0xff] }
  0x59   : > { %811 = vrot.lane.b32.xlu1 %v764_v39, %s5560_s10  ;;  %v1516_v23 = vld [vmem:[#allocation2 + $0x26] sm:$0xff]  ;;  %v1517_v24 = vld [vmem:[#allocation2 + $0x2e] sm:$0xff]  ;;  %v1190_v25 = vld [vmem:[#allocation2 + $0x1c] sm:$0xff] }
  0x5a   : > { %817 = vrot.lane.b32.xlu0 %v767_v44, %s5560_s10  ;;  %1706 = vmatpush1.bf16.msra.mxu0 %v5482_v21  ;;  %1534 = vst.msk [vmem:[#allocation4 + $0x8] sm:$0xff] %vm8423_vm0, %v1516_v23  ;;  %1535 = vst.msk [vmem:[#allocation4 + $0x18] sm:$0xff] %vm8423_vm0, %v1517_v24  ;;  %v5483_v27 = vld [vmem:[%s8407_s1] sm:$0xff]   ;;  %v1189_v28 = vld [vmem:[#allocation2 + $0x14] sm:$0xff] }
  0x5b   : > { %1707 = vmatprep.subr.bf16.mxu0 %v5563_v9  ;;  %2792 = vmatpush1.bf16.msra.mxu1 %v5482_v21  ;;  %v1299_v29 = vld [vmem:[#allocation2 + $0x2c] sm:$0xff]  ;;  %v5484_v31 = vld [vmem:[%s8407_s1 + $0x40] sm:$0xff]   ;;  %v346_v38 = vld [vmem:[%s5819_s9 + $0x98] sm:$0xff] }
  0x5c   : > { %2793 = vmatprep.subr.bf16.mxu1 %v5563_v9  ;;  %v1298_v32 = vld [vmem:[#allocation2 + $0x24] sm:$0xff]  ;;  %v345_v33 = vld [vmem:[%s5819_s9 + $0x90] sm:$0xff]  ;;  %348 = vst.msk [vmem:[#allocation2 + $0xbd] sm:$0xff] %vm8423_vm0, %v346_v38 }
  0x5d   : > { %815 = vrot.lane.b32.xlu1 %v766_v48, %s5560_s10  ;;  %347 = vst.msk [vmem:[#allocation2 + $0xb5] sm:$0xff] %vm8423_vm0, %v345_v33  ;;  %v1408_v37 = vld [vmem:[#allocation2 + $0x2d] sm:$0xff]  ;;  %v1407_v41 = vld [vmem:[#allocation2 + $0x25] sm:$0xff]  ;;  %v1518_v45 = vld [vmem:[#allocation2 + $0x36] sm:$0xff] }
  0x5e   : > { %821 = vrot.lane.b32.xlu0 %v769_v50, %s5560_s10  ;;  %1708 = vmatpush1.bf16.msra.mxu0 %v5483_v27  ;;  %v1083_v44 = vld [vmem:[#allocation2 + $0x2b] sm:$0xff]  ;;  %v1519_v46 = vld [vmem:[#allocation2 + $0x3e] sm:$0xff]  ;;  %1536 = vst.msk [vmem:[#allocation4 + $0x28] sm:$0xff] %vm8423_vm0, %v1518_v45  ;;  %v1300_v48 = vld [vmem:[#allocation2 + $0x34] sm:$0xff] }
  0x5f   : > { %1723 = vmatprep.subr.bf16.mxu0 %v5563_v9  ;;  %2794 = vmatpush1.bf16.msra.mxu1 %v5483_v27  ;;  %1537 = vst.msk [vmem:[#allocation4 + $0x38] sm:$0xff] %vm8423_vm0, %v1519_v46  ;;  %v1302_v8 = vld [vmem:[#allocation2 + $0x44] sm:$0xff]  ;;  %v354_v27 = vld [vmem:[%s5819_s9 + $0xb8] sm:$0xff] }
  0x60   : > { %2809 = vmatprep.subr.bf16.mxu1 %v5563_v9  ;;  %v1411_v15 = vld [vmem:[#allocation2 + $0x45] sm:$0xff]  ;;  %356 = vst.msk [vmem:[#allocation2 + $0xe1] sm:$0xff] %vm8423_vm0, %v354_v27  ;;  %v1088_v46 = vld [vmem:[#allocation2 + $0x53] sm:$0xff] }
  0x61   : > { %819 = vrot.lane.b32.xlu1 %v768_v51, %s5560_s10  ;;  %v1553_v34 = vld [vmem:[#allocation4 + $0x8] sm:$0xff]  ;;  %v1555_v36 = vld [vmem:[#allocation4 + $0x18] sm:$0xff] }
  0x62   : > { %898 = vrot.lane.b32.xlu0 %v862_v52, %s5561_s11  ;;  %1724 = vmatpush2.bf16.msra.mxu0 %v5484_v31  ;;  %v1589_v39 = vpack.c.bf16 %v1555_v36, %v1553_v34  ;;  %v1086_v23 = vld [vmem:[#allocation2 + $0x43] sm:$0xff]  ;;  %v1304_v34 = vld [vmem:[#allocation2 + $0x54] sm:$0xff] }
  0x63   : > { %2810 = vmatpush2.bf16.msra.mxu1 %v5484_v31  ;;  %3910 = vmatprep.subr.bf16.mxu0 %v5563_v9  ;;  %v2663_v50 = vld [vmem:[#allocation2 + $0xbe] sm:$0xff]  ;;  %v1522_v31 = vld [vmem:[#allocation2 + $0x56] sm:$0xff] }
  0x64   : > { %4984 = vmatprep.subr.bf16.mxu1 %v5563_v9  ;;  %5311 = vmatprep.mubr.msk.bf16.mxu0 %vm8423_vm0, %v1589_v39  ;;  %v2662_v49 = vld [vmem:[#allocation2 + $0xb6] sm:$0xff]  ;;  %2681 = vst.msk [vmem:[#allocation4 + $0x18] sm:$0xff] %vm8423_vm0, %v2663_v50  ;;  %1540 = vst.msk [vmem:[#allocation4 + $0x68] sm:$0xff] %vm8423_vm0, %v1522_v31  ;;  %v358_v50 = vld [vmem:[%s5819_s9 + $0xc8] sm:$0xff] }
  0x65   : > { %823 = vrot.lane.b32.xlu1 %v770_v53, %s5560_s10  ;;  %2680 = vst.msk [vmem:[#allocation4 + $0x8] sm:$0xff] %vm8423_vm0, %v2662_v49  ;;  %v1409_v53 = vld [vmem:[#allocation2 + $0x35] sm:$0xff]  ;;  %v357_v49 = vld [vmem:[%s5819_s9 + $0xc0] sm:$0xff]  ;;  %360 = vst.msk [vmem:[#allocation2 + $0xf3] sm:$0xff] %vm8423_vm0, %v358_v50 }
  0x66   : > { %902 = vrot.lane.b32.xlu0 %v864_v54, %s5561_s11  ;;  %v1413_v39 = vld [vmem:[#allocation2 + $0x55] sm:$0xff]  ;;  %359 = vst.msk [vmem:[#allocation2 + $0xeb] sm:$0xff] %vm8423_vm0, %v357_v49  ;;  %v1528_v49 = vld [vmem:[#allocation2 + $0x86] sm:$0xff] }
  0x67   : > { %v1417_v31 = vld [vmem:[#allocation2 + $0x75] sm:$0xff]  ;;  %1546 = vst.msk [vmem:[#allocation4 + $0xc8] sm:$0xff] %vm8423_vm0, %v1528_v49 }
  0x68   : > { %v1529_v50 = vld [vmem:[#allocation2 + $0x8e] sm:$0xff] }
  0x69   : > { %900 = vrot.lane.b32.xlu1 %v863_v55, %s5561_s11  ;;  %v1301_v55 = vld [vmem:[#allocation2 + $0x3c] sm:$0xff]  ;;  %1547 = vst.msk [vmem:[#allocation4 + $0xd8] sm:$0xff] %vm8423_vm0, %v1529_v50  ;;  %v1870_v50 = vld [vmem:[#allocation2 + $0x90] sm:$0xff] }
  0x6a   : > { %906 = vrot.lane.b32.xlu0 %v866_v56, %s5561_s11 }
  0x6d   : > { %904 = vrot.lane.b32.xlu1 %v865_v57, %s5561_s11 }
  0x6e   : > { %910 = vrot.lane.b32.xlu0 %v868_v58, %s5561_s11 }
  0x71   : > { %908 = vrot.lane.b32.xlu1 %v867_v59, %s5561_s11 }
  0x72   : > { %914 = vrot.lane.b32.xlu0 %v870_v60, %s5561_s11 }
  0x75   : > { %912 = vrot.lane.b32.xlu1 %v869_v61, %s5561_s11 }
  0x76   : > { %918 = vrot.lane.b32.xlu0 %v872_v62, %s5561_s11 }
  0x79   : > { %916 = vrot.lane.b32.xlu1 %v871_v63, %s5561_s11 }
  0x7a   : > { %922 = vrot.lane.b32.xlu0 %v874_v1, %s5561_s11 }
  0x7d   : > { %920 = vrot.lane.b32.xlu1 %v873_v2, %s5561_s11 }
  0x7e   : > { %926 = vrot.lane.b32.xlu0 %v876_v3, %s5561_s11 }
  0x81   : > { %924 = vrot.lane.b32.xlu1 %v875_v4, %s5561_s11 }
  0x82   : > { %930 = vrot.lane.b32.xlu0 %v878_v5, %s5561_s11 }
  0x85   : > { %928 = vrot.lane.b32.xlu1 %v877_v6, %s5561_s11 }
  0x86   : > { %1007 = vrot.lane.b32.xlu0 %v864_v54, %s5562_s12 }
  0x89   : > { %932 = vrot.lane.b32.xlu1 %v879_v7, %s5561_s11 }
  0x8a   : > { %1011 = vrot.lane.b32.xlu0 %v866_v56, %s5562_s12  ;;  %v6016_v56 = vld [vmem:[#allocation4 + $0x28] sm:$0xff] }
  0x8d   : > { %1009 = vrot.lane.b32.xlu1 %v865_v57, %s5562_s12  ;;  %v6018_v57 = vld [vmem:[#allocation4 + $0x38] sm:$0xff] }
  0x8e   : > { %1015 = vrot.lane.b32.xlu0 %v868_v58, %s5562_s12  ;;  %v790_v26 = vpop.permute.xlu0 %789 }
  0x8f   : > { %844 = vst.msk [vmem:[#allocation4] sm:$0xff] %vm8418_vm1, %v790_v26  ;;  %v353_v26 = vld [vmem:[%s5819_s9 + $0xb0] sm:$0xff] }
  0x90   : > { %355 = vst.msk [vmem:[#allocation2 + $0xd9] sm:$0xff] %vm8423_vm0, %v353_v26  ;;  %v1308_v26 = vld [vmem:[#allocation2 + $0x74] sm:$0xff] }
  0x91   : > { %1013 = vrot.lane.b32.xlu1 %v867_v59, %s5562_s12  ;;  %v1591_v59 = vpack.c.bf16 %v6018_v57, %v6016_v56  ;;  %v1872_v57 = vld [vmem:[#allocation2 + $0xa0] sm:$0xff] }
  0x92   : > { %1019 = vrot.lane.b32.xlu0 %v870_v60, %s5562_s12  ;;  %v792_v30 = vpop.permute.xlu0 %791  ;;  %v1084_v60 = vld [vmem:[#allocation2 + $0x33] sm:$0xff] }
  0x93   : > { %845 = vst.msk [vmem:[#allocation4 + $0x10] sm:$0xff] %vm8418_vm1, %v792_v30  ;;  %v1087_v30 = vld [vmem:[#allocation2 + $0x4b] sm:$0xff] }
  0x95   : > { %1017 = vrot.lane.b32.xlu1 %v869_v61, %s5562_s12 }
  0x96   : > { %1023 = vrot.lane.b32.xlu0 %v872_v62, %s5562_s12  ;;  %v1410_v62 = vld [vmem:[#allocation2 + $0x3d] sm:$0xff] }
  0x99   : > { %1021 = vrot.lane.b32.xlu1 %v871_v63, %s5562_s12  ;;  %v349_v63 = vld [vmem:[%s5819_s9 + $0xa0] sm:$0xff] }
  0x9a   : > { %1027 = vrot.lane.b32.xlu0 %v874_v1, %s5562_s12  ;;  %v350_v1 = vld [vmem:[%s5819_s9 + $0xa8] sm:$0xff]  ;;  %351 = vst.msk [vmem:[#allocation2 + $0xc7] sm:$0xff] %vm8423_vm0, %v349_v63 }
  0x9b   : > { %352 = vst.msk [vmem:[#allocation2 + $0xcf] sm:$0xff] %vm8423_vm0, %v350_v1  ;;  %v2669_v63 = vld [vmem:[#allocation2 + $0xee] sm:$0xff] }
  0x9d   : > { %1025 = vrot.lane.b32.xlu1 %v873_v2, %s5562_s12 }
  0x9e   : > { %1031 = vrot.lane.b32.xlu0 %v876_v3, %s5562_s12 }
  0xa1   : > { %1029 = vrot.lane.b32.xlu1 %v875_v4, %s5562_s12  ;;  %v1085_v4 = vld [vmem:[#allocation2 + $0x3b] sm:$0xff]  ;;  %v2664_v11 = vld [vmem:[#allocation2 + $0xc6] sm:$0xff] }
  0xa2   : > { %1035 = vrot.lane.b32.xlu0 %v878_v5, %s5562_s12  ;;  %v1520_v5 = vld [vmem:[#allocation2 + $0x46] sm:$0xff]  ;;  %v2665_v12 = vld [vmem:[#allocation2 + $0xce] sm:$0xff]  ;;  %2682 = vst.msk [vmem:[#allocation4 + $0x28] sm:$0xff] %vm8423_vm0, %v2664_v11  ;;  %v2666_v36 = vld [vmem:[#allocation2 + $0xd6] sm:$0xff] }
  0xa3   : > { %1538 = vst.msk [vmem:[#allocation4 + $0x48] sm:$0xff] %vm8423_vm0, %v1520_v5  ;;  %2683 = vst.msk [vmem:[#allocation4 + $0x38] sm:$0xff] %vm8423_vm0, %v2665_v12  ;;  %v1416_v12 = vld [vmem:[#allocation2 + $0x6d] sm:$0xff] }
  0xa5   : > { %1033 = vrot.lane.b32.xlu1 %v877_v6, %s5562_s12  ;;  %v1521_v6 = vld [vmem:[#allocation2 + $0x4e] sm:$0xff] }
  0xa6   : > { %1039 = vrot.lane.b32.xlu0 %v5943_v14, %s5562_s12  ;;  %1539 = vst.msk [vmem:[#allocation4 + $0x58] sm:$0xff] %vm8423_vm0, %v1521_v6 }
  0xa9   : > { %1037 = vrot.lane.b32.xlu1 %v879_v7, %s5562_s12 }
  0xaa   : > { %1116 = vrot.lane.b32.xlu0 %v1080_v17, %s5564_s13  ;;  %v1303_v17 = vld [vmem:[#allocation2 + $0x4c] sm:$0xff] }
  0xab   : > { %v6046_v18 = vld [vmem:[#allocation4 + $0x48] sm:$0xff] }
  0xac   : > { %2684 = vst.msk [vmem:[#allocation4 + $0x48] sm:$0xff] %vm8423_vm0, %v2666_v36 }
  0xad   : > { %1041 = vrot.lane.b32.xlu1 %v5961_v19, %s5562_s12 }
  0xae   : > { %1120 = vrot.lane.b32.xlu0 %v1082_v20, %s5564_s13  ;;  %v6048_v20 = vld [vmem:[#allocation4 + $0x58] sm:$0xff] }
  0xb1   : > { %1118 = vrot.lane.b32.xlu1 %v1081_v22, %s5564_s13  ;;  %v1593_v22 = vpack.c.bf16 %v6048_v20, %v6046_v18  ;;  %v1097_v18 = vld [vmem:[#allocation2 + $0x9b] sm:$0xff] }
  0xb2   : > { %1227 = vrot.lane.b32.xlu0 %v1190_v25, %s5565_s23  ;;  %v1412_v25 = vld [vmem:[#allocation2 + $0x4d] sm:$0xff] }
  0xb5   : > { %1225 = vrot.lane.b32.xlu1 %v1189_v28, %s5565_s23 }
  0xb6   : > { %1336 = vrot.lane.b32.xlu0 %v1299_v29, %s5566_s30 }
  0xb7   : > { %v794_v35 = vpop.permute.xlu1 %793 }
  0xb8   : > { %846 = vst.msk [vmem:[#allocation4 + $0x20] sm:$0xff] %vm8418_vm1, %v794_v35  ;;  %v798_v40 = vpop.permute.xlu0 %797 }
  0xb9   : > { %1334 = vrot.lane.b32.xlu1 %v1298_v32, %s5566_s30  ;;  %848 = vst.msk [vmem:[#allocation4 + $0x40] sm:$0xff] %vm8418_vm1, %v798_v40 }
  0xba   : > { %1445 = vrot.lane.b32.xlu0 %v1408_v37, %s5567_s6  ;;  %v2667_v37 = vld [vmem:[#allocation2 + $0xde] sm:$0xff] }
  0xbb   : > { %v796_v42 = vpop.permute.xlu1 %795  ;;  %2685 = vst.msk [vmem:[#allocation4 + $0x58] sm:$0xff] %vm8423_vm0, %v2667_v37 }
  0xbc   : > { %847 = vst.msk [vmem:[#allocation4 + $0x30] sm:$0xff] %vm8418_vm1, %v796_v42  ;;  %v802_v43 = vpop.permute.xlu0 %801  ;;  %v6076_v42 = vld [vmem:[#allocation4 + $0x68] sm:$0xff] }
  0xbd   : > { %1443 = vrot.lane.b32.xlu1 %v1407_v41, %s5567_s6  ;;  %850 = vst.msk [vmem:[#allocation4 + $0x60] sm:$0xff] %vm8418_vm1, %v802_v43  ;;  %v1305_v41 = vld [vmem:[#allocation2 + $0x5c] sm:$0xff] }
  0xbe   : > { %1229 = vrot.lane.b32.xlu0 %v1298_v32, %s5565_s23  ;;  %v1523_v32 = vld [vmem:[#allocation2 + $0x5e] sm:$0xff] }
  0xbf   : > { %v800_v47 = vpop.permute.xlu1 %799  ;;  %1541 = vst.msk [vmem:[#allocation4 + $0x78] sm:$0xff] %vm8423_vm0, %v1523_v32 }
  0xc0   : > { %849 = vst.msk [vmem:[#allocation4 + $0x50] sm:$0xff] %vm8418_vm1, %v800_v47  ;;  %v806_v51 = vpop.permute.xlu0 %805 }
  0xc1   : > { %1122 = vrot.lane.b32.xlu1 %v1083_v44, %s5564_s13  ;;  %852 = vst.msk [vmem:[#allocation4 + $0x80] sm:$0xff] %vm8418_vm1, %v806_v51 }
  0xc2   : > { %1338 = vrot.lane.b32.xlu0 %v1300_v48, %s5566_s30 }
  0xc3   : > { %v804_v52 = vpop.permute.xlu1 %803 }
  0xc4   : > { %851 = vst.msk [vmem:[#allocation4 + $0x70] sm:$0xff] %vm8418_vm1, %v804_v52  ;;  %v810_v54 = vpop.permute.xlu0 %809 }
  0xc5   : > { %1231 = vrot.lane.b32.xlu1 %v1299_v29, %s5565_s23  ;;  %854 = vst.msk [vmem:[#allocation4 + $0xa0] sm:$0xff] %vm8418_vm1, %v810_v54  ;;  %v1524_v54 = vld [vmem:[#allocation2 + $0x66] sm:$0xff] }
  0xc6   : > { %1447 = vrot.lane.b32.xlu0 %v1409_v53, %s5567_s6  ;;  %v6078_v43 = vld [vmem:[#allocation4 + $0x78] sm:$0xff]  ;;  %1542 = vst.msk [vmem:[#allocation4 + $0x88] sm:$0xff] %vm8423_vm0, %v1524_v54 }
  0xc7   : > { %v808_v58 = vpop.permute.xlu1 %807  ;;  %v1595_v45 = vpack.c.bf16 %v6078_v43, %v6076_v42  ;;  %v1089_v53 = vld [vmem:[#allocation2 + $0x5b] sm:$0xff]  ;;  %2687 = vst.msk [vmem:[#allocation4 + $0x78] sm:$0xff] %vm8423_vm0, %v2669_v63 }
  0xc8   : > { %853 = vst.msk [vmem:[#allocation4 + $0x90] sm:$0xff] %vm8418_vm1, %v808_v58  ;;  %v814_v61 = vpop.permute.xlu0 %813  ;;  %v6171_v63 = vld [vmem:[#allocation4 + $0xd8] sm:$0xff] }
  0xc9   : > { %1340 = vrot.lane.b32.xlu1 %v1301_v55, %s5566_s30  ;;  %856 = vst.msk [vmem:[#allocation4 + $0xc0] sm:$0xff] %vm8418_vm1, %v814_v61 }
  0xca   : > { %1124 = vrot.lane.b32.xlu0 %v1084_v60, %s5564_s13  ;;  %v1306_v60 = vld [vmem:[#allocation2 + $0x64] sm:$0xff] }
  0xcb   : > { %v812_v2 = vpop.permute.xlu1 %811 }
  0xcc   : > { %855 = vst.msk [vmem:[#allocation4 + $0xb0] sm:$0xff] %vm8418_vm1, %v812_v2  ;;  %v818_v3 = vpop.permute.xlu0 %817  ;;  %v1415_v2 = vld [vmem:[#allocation2 + $0x65] sm:$0xff] }
  0xcd   : > { %1449 = vrot.lane.b32.xlu1 %v1410_v62, %s5567_s6  ;;  %858 = vst.msk [vmem:[#allocation4 + $0xe0] sm:$0xff] %vm8418_vm1, %v818_v3  ;;  %v2668_v62 = vld [vmem:[#allocation2 + $0xe6] sm:$0xff] }
  0xce   : > { %1233 = vrot.lane.b32.xlu0 %v1300_v48, %s5565_s23  ;;  %v1414_v48 = vld [vmem:[#allocation2 + $0x5d] sm:$0xff]  ;;  %2686 = vst.msk [vmem:[#allocation4 + $0x68] sm:$0xff] %vm8423_vm0, %v2668_v62  ;;  %v6106_v5 = vld [vmem:[#allocation4 + $0x88] sm:$0xff] }
  0xcf   : > { %v816_v7 = vpop.permute.xlu1 %815  ;;  %v6169_v62 = vld [vmem:[#allocation4 + $0xc8] sm:$0xff] }
  0xd0   : > { %857 = vst.msk [vmem:[#allocation4 + $0xd0] sm:$0xff] %vm8418_vm1, %v816_v7  ;;  %v822_v10 = vpop.permute.xlu0 %821 }
  0xd1   : > { %1126 = vrot.lane.b32.xlu1 %v1085_v4, %s5564_s13  ;;  %860 = vst.msk [vmem:[#allocation4 + $0x100] sm:$0xff] %vm8418_vm1, %v822_v10  ;;  %v1307_v4 = vld [vmem:[#allocation2 + $0x6c] sm:$0xff]  ;;  %v1090_v10 = vld [vmem:[#allocation2 + $0x63] sm:$0xff] }
  0xd2   : > { %1342 = vrot.lane.b32.xlu0 %v1302_v8, %s5566_s30 }
  0xd3   : > { %v820_v13 = vpop.permute.xlu1 %819 }
  0xd4   : > { %859 = vst.msk [vmem:[#allocation4 + $0xf0] sm:$0xff] %vm8418_vm1, %v820_v13  ;;  %v899_v16 = vpop.permute.xlu0 %898  ;;  %v361_v13 = vld [vmem:[%s5819_s9 + $0xd0] sm:$0xff] }
  0xd5   : > { %1235 = vrot.lane.b32.xlu1 %v1301_v55, %s5565_s23  ;;  %953 = vst.msk [vmem:[#allocation4] sm:$0xff] %vm8417_vm2, %v899_v16  ;;  %v1525_v55 = vld [vmem:[#allocation2 + $0x6e] sm:$0xff] }
  0xd6   : > { %1451 = vrot.lane.b32.xlu0 %v1411_v15, %s5567_s6  ;;  %1543 = vst.msk [vmem:[#allocation4 + $0x98] sm:$0xff] %vm8423_vm0, %v1525_v55  ;;  %v362_v15 = vld [vmem:[%s5819_s9 + $0xd8] sm:$0xff]  ;;  %363 = vst.msk [vmem:[#allocation2 + $0xfd] sm:$0xff] %vm8423_vm0, %v361_v13 }
  0xd7   : > { %v824_v21 = vpop.permute.xlu1 %823  ;;  %364 = vst.msk [vmem:[#allocation2 + $0x105] sm:$0xff] %vm8423_vm0, %v362_v15  ;;  %v1907_v15 = vld [vmem:[#allocation2 + $0x99] sm:$0xff] }
  0xd8   : > { %861 = vst.msk [vmem:[#allocation4 + $0x110] sm:$0xff] %vm8418_vm1, %v824_v21  ;;  %v903_v24 = vpop.permute.xlu0 %902  ;;  %v1091_v21 = vld [vmem:[#allocation2 + $0x6b] sm:$0xff] }
  0xd9   : > { %1344 = vrot.lane.b32.xlu1 %v1303_v17, %s5566_s30  ;;  %955 = vst.msk [vmem:[#allocation4 + $0x20] sm:$0xff] %vm8417_vm2, %v903_v24  ;;  %v1527_v24 = vld [vmem:[#allocation2 + $0x7e] sm:$0xff] }
  0xda   : > { %1128 = vrot.lane.b32.xlu0 %v1086_v23, %s5564_s13  ;;  %v1526_v23 = vld [vmem:[#allocation2 + $0x76] sm:$0xff]  ;;  %1545 = vst.msk [vmem:[#allocation4 + $0xb8] sm:$0xff] %vm8423_vm0, %v1527_v24 }
  0xdb   : > { %v901_v28 = vpop.permute.xlu1 %900  ;;  %1544 = vst.msk [vmem:[#allocation4 + $0xa8] sm:$0xff] %vm8423_vm0, %v1526_v23 }
  0xdc   : > { %954 = vst.msk [vmem:[#allocation4 + $0x10] sm:$0xff] %vm8417_vm2, %v901_v28  ;;  %v907_v29 = vpop.permute.xlu0 %906 }
  0xdd   : > { %1453 = vrot.lane.b32.xlu1 %v1412_v25, %s5567_s6  ;;  %957 = vst.msk [vmem:[#allocation4 + $0x40] sm:$0xff] %vm8417_vm2, %v907_v29  ;;  %v6108_v6 = vld [vmem:[#allocation4 + $0x98] sm:$0xff] }
  0xde   : > { %1237 = vrot.lane.b32.xlu0 %v1302_v8, %s5565_s23  ;;  %v1597_v8 = vpack.c.bf16 %v6108_v6, %v6106_v5  ;;  %v2670_v28 = vld [vmem:[#allocation2 + $0xf6] sm:$0xff]  ;;  %v2671_v29 = vld [vmem:[#allocation2 + $0xfe] sm:$0xff] }
  0xdf   : > { %v905_v33 = vpop.permute.xlu1 %904  ;;  %2688 = vst.msk [vmem:[#allocation4 + $0x88] sm:$0xff] %vm8423_vm0, %v2670_v28  ;;  %2689 = vst.msk [vmem:[#allocation4 + $0x98] sm:$0xff] %vm8423_vm0, %v2671_v29  ;;  %v1910_v6 = vld [vmem:[#allocation2 + $0xb1] sm:$0xff] }
  0xe0   : > { %956 = vst.msk [vmem:[#allocation4 + $0x30] sm:$0xff] %vm8417_vm2, %v905_v33  ;;  %v911_v35 = vpop.permute.xlu0 %910  ;;  %v1309_v33 = vld [vmem:[#allocation2 + $0x7c] sm:$0xff] }
  0xe1   : > { %1130 = vrot.lane.b32.xlu1 %v1087_v30, %s5564_s13  ;;  %959 = vst.msk [vmem:[#allocation4 + $0x60] sm:$0xff] %vm8417_vm2, %v911_v35  ;;  %v6138_v35 = vld [vmem:[#allocation4 + $0xb8] sm:$0xff] }
  0xe2   : > { %1346 = vrot.lane.b32.xlu0 %v1304_v34, %s5566_s30 }
  0xe3   : > { %v909_v38 = vpop.permute.xlu1 %908 }
  0xe4   : > { %958 = vst.msk [vmem:[#allocation4 + $0x50] sm:$0xff] %vm8417_vm2, %v909_v38  ;;  %v915_v40 = vpop.permute.xlu0 %914  ;;  %v1092_v38 = vld [vmem:[#allocation2 + $0x73] sm:$0xff] }
  0xe5   : > { %1239 = vrot.lane.b32.xlu1 %v1303_v17, %s5565_s23  ;;  %961 = vst.msk [vmem:[#allocation4 + $0x80] sm:$0xff] %vm8417_vm2, %v915_v40  ;;  %v1418_v40 = vld [vmem:[#allocation2 + $0x7d] sm:$0xff] }
  0xe6   : > { %1455 = vrot.lane.b32.xlu0 %v1413_v39, %s5567_s6 }
  0xe7   : > { %v913_v44 = vpop.permute.xlu1 %912 }
  0xe8   : > { %960 = vst.msk [vmem:[#allocation4 + $0x70] sm:$0xff] %vm8417_vm2, %v913_v44  ;;  %v919_v47 = vpop.permute.xlu0 %918  ;;  %v2672_v44 = vld [vmem:[#allocation2 + $0x106] sm:$0xff] }
  0xe9   : > { %1348 = vrot.lane.b32.xlu1 %v1305_v41, %s5566_s30  ;;  %963 = vst.msk [vmem:[#allocation4 + $0xa0] sm:$0xff] %vm8417_vm2, %v919_v47 }
  0xea   : > { %1132 = vrot.lane.b32.xlu0 %v1088_v46, %s5564_s13 }
  0xeb   : > { %v917_v51 = vpop.permute.xlu1 %916 }
  0xec   : > { %962 = vst.msk [vmem:[#allocation4 + $0x90] sm:$0xff] %vm8417_vm2, %v917_v51  ;;  %v923_v52 = vpop.permute.xlu0 %922 }
  0xed   : > { %1457 = vrot.lane.b32.xlu1 %v1414_v48, %s5567_s6  ;;  %965 = vst.msk [vmem:[#allocation4 + $0xc0] sm:$0xff] %vm8417_vm2, %v923_v52  ;;  %v1093_v48 = vld [vmem:[#allocation2 + $0x7b] sm:$0xff]  ;;  %v6157_v52 = vld [vmem:[#allocation2 + $0x84] sm:$0xff] }
  0xee   : > { %1241 = vrot.lane.b32.xlu0 %v1304_v34, %s5565_s23  ;;  %v6136_v34 = vld [vmem:[#allocation4 + $0xa8] sm:$0xff] }
  0xef   : > { %v921_v58 = vpop.permute.xlu1 %920  ;;  %v1599_v37 = vpack.c.bf16 %v6138_v35, %v6136_v34  ;;  %2690 = vst.msk [vmem:[#allocation4 + $0xa8] sm:$0xff] %vm8423_vm0, %v2672_v44  ;;  %v2235_v34 = vld [vmem:[#allocation2 + $0xcb] sm:$0xff]  ;;  %v1876_v35 = vld [vmem:[#allocation2 + $0xc0] sm:$0xff] }
  0xf0   : > { %964 = vst.msk [vmem:[#allocation4 + $0xb0] sm:$0xff] %vm8417_vm2, %v921_v58  ;;  %v927_v61 = vpop.permute.xlu0 %926  ;;  %v1419_v58 = vld [vmem:[#allocation2 + $0x85] sm:$0xff] }
  0xf1   : > { %1134 = vrot.lane.b32.xlu1 %v1089_v53, %s5564_s13  ;;  %967 = vst.msk [vmem:[#allocation4 + $0xe0] sm:$0xff] %vm8417_vm2, %v927_v61  ;;  %v6167_v61 = vld [vmem:[#allocation2 + $0x8c] sm:$0xff] }
  0xf2   : > { %1350 = vrot.lane.b32.xlu0 %v1306_v60, %s5566_s30 }
  0xf3   : > { %v925_v1 = vpop.permute.xlu1 %924 }
  0xf4   : > { %966 = vst.msk [vmem:[#allocation4 + $0xd0] sm:$0xff] %vm8417_vm2, %v925_v1  ;;  %v931_v3 = vpop.permute.xlu0 %930 }
  0xf5   : > { %1243 = vrot.lane.b32.xlu1 %v1305_v41, %s5565_s23  ;;  %969 = vst.msk [vmem:[#allocation4 + $0x100] sm:$0xff] %vm8417_vm2, %v931_v3  ;;  %v365_v41 = vld [vmem:[%s5819_s9 + $0xe0] sm:$0xff]  ;;  %v1906_v3 = vld [vmem:[#allocation2 + $0x91] sm:$0xff] }
  0xf6   : > { %1459 = vrot.lane.b32.xlu0 %v1415_v2, %s5567_s6  ;;  %367 = vst.msk [vmem:[#allocation2 + $0x10f] sm:$0xff] %vm8423_vm0, %v365_v41  ;;  %v1601_v2 = vpack.c.bf16 %v6171_v63, %v6169_v62  ;;  %v1531_v41 = vld [vmem:[#allocation2 + $0x9e] sm:$0xff]  ;;  %v1913_v62 = vld [vmem:[#allocation2 + $0xc9] sm:$0xff] }
  0xf7   : > { %v929_v7 = vpop.permute.xlu1 %928  ;;  %1549 = vst.msk [vmem:[#allocation4 + $0xf8] sm:$0xff] %vm8423_vm0, %v1531_v41  ;;  %v1096_v41 = vld [vmem:[#allocation2 + $0x93] sm:$0xff] }
  0xf8   : > { %968 = vst.msk [vmem:[#allocation4 + $0xf0] sm:$0xff] %vm8417_vm2, %v929_v7  ;;  %v1008_v11 = vpop.permute.xlu0 %1007  ;;  %v1420_v7 = vld [vmem:[#allocation2 + $0x8d] sm:$0xff] }
  0xf9   : > { %1352 = vrot.lane.b32.xlu1 %v1307_v4, %s5566_s30  ;;  %1062 = vst.msk [vmem:[#allocation4] sm:$0xff] %vm8412_vm3, %v1008_v11  ;;  %v369_v11 = vld [vmem:[%s5819_s9 + $0xf0] sm:$0xff] }
  0xfa   : > { %1136 = vrot.lane.b32.xlu0 %v1090_v10, %s5564_s13  ;;  %v366_v10 = vld [vmem:[%s5819_s9 + $0xe8] sm:$0xff]  ;;  %371 = vst.msk [vmem:[#allocation2 + $0x121] sm:$0xff] %vm8423_vm0, %v369_v11  ;;  %v1422_v11 = vld [vmem:[#allocation2 + $0x9d] sm:$0xff] }
  0xfb   : > { %v933_v16 = vpop.permute.xlu1 %932  ;;  %368 = vst.msk [vmem:[#allocation2 + $0x117] sm:$0xff] %vm8423_vm0, %v366_v10 }
  0xfc   : > { %970 = vst.msk [vmem:[#allocation4 + $0x110] sm:$0xff] %vm8417_vm2, %v933_v16  ;;  %v1012_v17 = vpop.permute.xlu0 %1011 }
  0xfd   : > { %1461 = vrot.lane.b32.xlu1 %v1416_v12, %s5567_s6  ;;  %1064 = vst.msk [vmem:[#allocation4 + $0x20] sm:$0xff] %vm8412_vm3, %v1012_v17  ;;  %v2673_v54 = vld [vmem:[#allocation2 + $0x10e] sm:$0xff]  ;;  %v1094_v17 = vld [vmem:[#allocation2 + $0x83] sm:$0xff] }
  0xfe   : > { %1245 = vrot.lane.b32.xlu0 %v1306_v60, %s5565_s23  ;;  %2691 = vst.msk [vmem:[#allocation4 + $0xb8] sm:$0xff] %vm8423_vm0, %v2673_v54 }
  0xff   : > { %v1010_v25 = vpop.permute.xlu1 %1009 }
 0x100   : > { %1063 = vst.msk [vmem:[#allocation4 + $0x10] sm:$0xff] %vm8412_vm3, %v1010_v25  ;;  %v1016_v27 = vpop.permute.xlu0 %1015 }
 0x101   : > { %1138 = vrot.lane.b32.xlu1 %v1091_v21, %s5564_s13  ;;  %1066 = vst.msk [vmem:[#allocation4 + $0x40] sm:$0xff] %vm8412_vm3, %v1016_v27  ;;  %v1095_v27 = vld [vmem:[#allocation2 + $0x8b] sm:$0xff] }
 0x102   : > { %1354 = vrot.lane.b32.xlu0 %v1308_v26, %s5566_s30  ;;  %v2674_v23 = vld [vmem:[#allocation2 + $0x116] sm:$0xff]  ;;  %v2675_v24 = vld [vmem:[#allocation2 + $0x11e] sm:$0xff] }
 0x103   : > { %v1014_v30 = vpop.permute.xlu1 %1013  ;;  %2692 = vst.msk [vmem:[#allocation4 + $0xc8] sm:$0xff] %vm8423_vm0, %v2674_v23  ;;  %2693 = vst.msk [vmem:[#allocation4 + $0xd8] sm:$0xff] %vm8423_vm0, %v2675_v24 }
 0x104   : > { %1065 = vst.msk [vmem:[#allocation4 + $0x30] sm:$0xff] %vm8412_vm3, %v1014_v30  ;;  %v1020_v32 = vpop.permute.xlu0 %1019  ;;  %v6207_v30 = vld [vmem:[#allocation2 + $0xaa] sm:$0xff] }
 0x105   : > { %1247 = vrot.lane.b32.xlu1 %v1307_v4, %s5565_s23  ;;  %1068 = vst.msk [vmem:[#allocation4 + $0x60] sm:$0xff] %vm8412_vm3, %v1020_v32 }
 0x106   : > { %1463 = vrot.lane.b32.xlu0 %v1417_v31, %s5567_s6  ;;  %v2230_v31 = vld [vmem:[#allocation2 + $0xa3] sm:$0xff] }
 0x107   : > { %v1018_v36 = vpop.permute.xlu1 %1017 }
 0x108   : > { %1067 = vst.msk [vmem:[#allocation4 + $0x50] sm:$0xff] %vm8412_vm3, %v1018_v36  ;;  %v1024_v39 = vpop.permute.xlu0 %1023  ;;  %v6217_v36 = vld [vmem:[#allocation2 + $0x94] sm:$0xff] }
 0x109   : > { %1356 = vrot.lane.b32.xlu1 %v1309_v33, %s5566_s30  ;;  %1070 = vst.msk [vmem:[#allocation4 + $0x80] sm:$0xff] %vm8412_vm3, %v1024_v39  ;;  %v2231_v39 = vld [vmem:[#allocation2 + $0xab] sm:$0xff] }
 0x10a   : > { %1140 = vrot.lane.b32.xlu0 %v1092_v38, %s5564_s13 }
 0x10b   : > { %v1022_v46 = vpop.permute.xlu1 %1021 }
 0x10c   : > { %1069 = vst.msk [vmem:[#allocation4 + $0x70] sm:$0xff] %vm8412_vm3, %v1022_v46  ;;  %v1028_v47 = vpop.permute.xlu0 %1027  ;;  %v1871_v46 = vld [vmem:[#allocation2 + $0x98] sm:$0xff] }
 0x10d   : > { %1465 = vrot.lane.b32.xlu1 %v1418_v40, %s5567_s6  ;;  %1072 = vst.msk [vmem:[#allocation4 + $0xa0] sm:$0xff] %vm8412_vm3, %v1028_v47  ;;  %v1530_v40 = vld [vmem:[#allocation2 + $0x96] sm:$0xff]  ;;  %v6227_v47 = vld [vmem:[#allocation2 + $0xa4] sm:$0xff] }
 0x10e   : > { %1249 = vrot.lane.b32.xlu0 %v1308_v26, %s5565_s23  ;;  %1548 = vst.msk [vmem:[#allocation4 + $0xe8] sm:$0xff] %vm8423_vm0, %v1530_v40 }
 0x10f   : > { %v1026_v51 = vpop.permute.xlu1 %1025 }
 0x110   : > { %1071 = vst.msk [vmem:[#allocation4 + $0x90] sm:$0xff] %vm8412_vm3, %v1026_v51  ;;  %v1032_v53 = vpop.permute.xlu0 %1031  ;;  %v6231_v51 = vld [vmem:[#allocation2 + $0x9c] sm:$0xff] }
 0x111   : > { %1142 = vrot.lane.b32.xlu1 %v1093_v48, %s5564_s13  ;;  %1074 = vst.msk [vmem:[#allocation4 + $0xc0] sm:$0xff] %vm8412_vm3, %v1032_v53 }
 0x112   : > { %1358 = vrot.lane.b32.xlu0 %v6157_v52, %s5566_s30 }
 0x113   : > { %v1030_v55 = vpop.permute.xlu1 %1029 }
 0x114   : > { %1073 = vst.msk [vmem:[#allocation4 + $0xb0] sm:$0xff] %vm8412_vm3, %v1030_v55  ;;  %v1036_v60 = vpop.permute.xlu0 %1035  ;;  %v1421_v55 = vld [vmem:[#allocation2 + $0x95] sm:$0xff] }
 0x115   : > { %1251 = vrot.lane.b32.xlu1 %v1309_v33, %s5565_s23  ;;  %1076 = vst.msk [vmem:[#allocation4 + $0xe0] sm:$0xff] %vm8412_vm3, %v1036_v60  ;;  %v6241_v60 = vld [vmem:[#allocation2 + $0xac] sm:$0xff] }
 0x116   : > { %1467 = vrot.lane.b32.xlu0 %v1419_v58, %s5567_s6 }
 0x117   : > { %v1034_v1 = vpop.permute.xlu1 %1033 }
 0x118   : > { %1075 = vst.msk [vmem:[#allocation4 + $0xd0] sm:$0xff] %vm8412_vm3, %v1034_v1  ;;  %v1040_v4 = vpop.permute.xlu0 %1039  ;;  %v6245_v1 = vld [vmem:[#allocation4 + $0xf8] sm:$0xff] }
 0x119   : > { %1360 = vrot.lane.b32.xlu1 %v6167_v61, %s5566_s30  ;;  %1078 = vst.msk [vmem:[#allocation4 + $0x100] sm:$0xff] %vm8412_vm3, %v1040_v4 }
 0x11a   : > { %1942 = vrot.lane.b32.xlu0 %v1906_v3, %s5560_s10 }
 0x11b   : > { %v1038_v12 = vpop.permute.xlu1 %1037 }
 0x11c   : > { %1077 = vst.msk [vmem:[#allocation4 + $0xf0] sm:$0xff] %vm8412_vm3, %v1038_v12  ;;  %v1117_v13 = vpop.permute.xlu0 %1116  ;;  %v370_v12 = vld [vmem:[%s5819_s9 + $0xf8] sm:$0xff]  ;;  %s5569_s9 = smov [#allocation5]  }
 0x11d   : > { %1469 = vrot.lane.b32.xlu1 %v1420_v7, %s5567_s6  ;;  %1171 = vst.msk [vmem:[#allocation4] sm:$0xff] %vm8415_vm4, %v1117_v13  ;;  %v6255_v7 = vld [vmem:[#allocation2 + $0xb4] sm:$0xff]  ;;  %s5501_s22 = sshll.u32 %s5569_s9, 4  ;;  %s5502_s22 = int_to_ptr.vmem [resolvable:$false] %s5501_s22 }
 0x11e   : > { %2050 = vrot.lane.b32.xlu0 %v5943_v14, %s5561_s11  ;;  %v6197_v14 = vld [vmem:[#allocation2 + $0xa2] sm:$0xff]  ;;  %372 = vst.msk [vmem:[#allocation2 + $0x129] sm:$0xff] %vm8423_vm0, %v370_v12 }
 0x11f   : > { %v1042_v16 = vpop.permute.xlu1 %1041 }
 0x120   : > { %1079 = vst.msk [vmem:[#allocation4 + $0x110] sm:$0xff] %vm8412_vm3, %v1042_v16  ;;  %v1121_v21 = vpop.permute.xlu0 %1120  ;;  %v6267_v16 = vld [vmem:[#allocation2 + $0xbc] sm:$0xff] }
 0x121   : > { %1944 = vrot.lane.b32.xlu1 %v1907_v15, %s5560_s10  ;;  %1173 = vst.msk [vmem:[#allocation4 + $0x20] sm:$0xff] %vm8415_vm4, %v1121_v21  ;;  %v2701_v21 = vld [vmem:[#allocation4 + $0x18] sm:$0xff] }
 0x122   : > { %1144 = vrot.lane.b32.xlu0 %v1094_v17, %s5564_s13  ;;  %v2699_v17 = vld [vmem:[#allocation4 + $0x8] sm:$0xff] }
 0x123   : > { %v1119_v25 = vpop.permute.xlu1 %1118  ;;  %v2735_v24 = vpack.c.bf16 %v2701_v21, %v2699_v17 }
 0x124   : > { %1172 = vst.msk [vmem:[#allocation4 + $0x10] sm:$0xff] %vm8415_vm4, %v1119_v25  ;;  %v1228_v26 = vpop.permute.xlu0 %1227  ;;  %v1908_v25 = vld [vmem:[#allocation2 + $0xa1] sm:$0xff] }
 0x125   : > { %2052 = vrot.lane.b32.xlu1 %v5961_v19, %s5561_s11  ;;  %1281 = vst.msk [vmem:[#allocation4 + $0x10] sm:$0xff] %vm8416_vm5, %v1228_v26  ;;  %5320 = vmatprep.mubr.msk.bf16.mxu1 %vm8423_vm0, %v2735_v24  ;;  %v2678_v24 = vld [vmem:[#allocation2 + $0x136] sm:$0xff] }
 0x126   : > { %2158 = vrot.lane.b32.xlu0 %v6197_v14, %s5562_s12 }
 0x127   : > { %v1226_v28 = vpop.permute.xlu1 %1225 }
 0x128   : > { %1280 = vst.msk [vmem:[#allocation4] sm:$0xff] %vm8416_vm5, %v1226_v28  ;;  %v1337_v29 = vpop.permute.xlu0 %1336  ;;  %v2555_v28 = vld [vmem:[#allocation2 + $0xbd] sm:$0xff] }
 0x129   : > { %1146 = vrot.lane.b32.xlu1 %v1095_v27, %s5564_s13  ;;  %1390 = vst.msk [vmem:[#allocation4 + $0x10] sm:$0xff] %vm8414_vm6, %v1337_v29  ;;  %v1873_v27 = vld [vmem:[#allocation2 + $0xa8] sm:$0xff] }
 0x12a   : > { %1253 = vrot.lane.b32.xlu0 %v6157_v52, %s5565_s23  ;;  %v2676_v29 = vld [vmem:[#allocation2 + $0x126] sm:$0xff] }
 0x12b   : > { %v1335_v19 = vpop.permute.xlu1 %1334 }
 0x12c   : > { %1389 = vst.msk [vmem:[#allocation4] sm:$0xff] %vm8414_vm6, %v1335_v19  ;;  %v1446_v32 = vpop.permute.xlu0 %1445  ;;  %v2677_v19 = vld [vmem:[#allocation2 + $0x12e] sm:$0xff] }
 0x12d   : > { %2160 = vrot.lane.b32.xlu1 %v6207_v30, %s5562_s12  ;;  %1499 = vst.msk [vmem:[#allocation4 + $0x10] sm:$0xff] %vm8413_vm7, %v1446_v32 }
 0x12e   : > { %2266 = vrot.lane.b32.xlu0 %v2230_v31, %s5564_s13  ;;  %2695 = vst.msk [vmem:[#allocation4 + $0xf8] sm:$0xff] %vm8423_vm0, %v2677_v19  ;;  %v2557_v19 = vld [vmem:[#allocation2 + $0xcd] sm:$0xff] }
 0x12f   : > { %v1444_v33 = vpop.permute.xlu1 %1443 }
 0x130   : > { %1498 = vst.msk [vmem:[#allocation4] sm:$0xff] %vm8413_vm7, %v1444_v33  ;;  %v1230_v38 = vpop.permute.xlu0 %1229 }
 0x131   : > { %1255 = vrot.lane.b32.xlu1 %v6167_v61, %s5565_s23  ;;  %1282 = vst.msk [vmem:[#allocation4 + $0x20] sm:$0xff] %vm8416_vm5, %v1230_v38  ;;  %v6243_v61 = vld [vmem:[#allocation4 + $0xe8] sm:$0xff] }
 0x132   : > { %1362 = vrot.lane.b32.xlu0 %v6217_v36, %s5566_s30  ;;  %v1603_v4 = vpack.c.bf16 %v6245_v1, %v6243_v61  ;;  %2694 = vst.msk [vmem:[#allocation4 + $0xe8] sm:$0xff] %vm8423_vm0, %v2676_v29  ;;  %v2449_v29 = vld [vmem:[#allocation2 + $0xcc] sm:$0xff] }
 0x133   : > { %v1123_v44 = vpop.permute.xlu1 %1122  ;;  %v2560_v1 = vld [vmem:[#allocation2 + $0xe5] sm:$0xff] }
 0x134   : > { %1174 = vst.msk [vmem:[#allocation4 + $0x30] sm:$0xff] %vm8415_vm4, %v1123_v44  ;;  %v1339_v48 = vpop.permute.xlu0 %1338  ;;  %v1554_v49 = vld [vmem:[#allocation4 + $0x10] sm:$0xff] }
 0x135   : > { %2268 = vrot.lane.b32.xlu1 %v2231_v39, %s5564_s13  ;;  %1391 = vst.msk [vmem:[#allocation4 + $0x20] sm:$0xff] %vm8414_vm6, %v1339_v48  ;;  %v1909_v39 = vld [vmem:[#allocation2 + $0xa9] sm:$0xff] }
 0x136   : > { %1889 = vst.msk [vmem:[#allocation4 + $0x10] sm:$0xff] %vm8423_vm0, %v1871_v46  ;;  %2374 = vrot.lane.b32.xlu0 %v6227_v47, %s5565_s23 }
 0x137   : > { %v1232_v52 = vpop.permute.xlu1 %1231  ;;  %v1552_v53 = vld [vmem:[#allocation4] sm:$0xff] }
 0x138   : > { %1283 = vst.msk [vmem:[#allocation4 + $0x30] sm:$0xff] %vm8416_vm5, %v1232_v52  ;;  %v1588_v54 = vpack.c.bf16 %v1554_v49, %v1552_v53  ;;  %v1448_v58 = vpop.permute.xlu0 %1447 }
 0x139   : > { %1888 = vst.msk [vmem:[#allocation4] sm:$0xff] %vm8423_vm0, %v1870_v50  ;;  %1364 = vrot.lane.b32.xlu1 %v6231_v51, %s5566_s30  ;;  %v6304_v50 = vld [vmem:[#allocation2 + $0xba] sm:$0xff] }
 0x13a   : > { %1500 = vst.msk [vmem:[#allocation4 + $0x20] sm:$0xff] %vm8413_vm7, %v1448_v58  ;;  %1726 = vmatmul.mubr.bf16.vlgmr.msra.gmra.mxu0 %v1588_v54  ;;  %1471 = vrot.lane.b32.xlu0 %v1421_v55, %s5567_s6  ;;  %v2232_v54 = vld [vmem:[#allocation2 + $0xb3] sm:$0xff] }
 0x13b   : > { %v1341_v3 = vpop.permute.xlu1 %1340  ;;  %5312 = vmatprep.mubr.msk.bf16.mxu0 %vm8423_vm0, %v1591_v59  ;;  %v2554_v59 = vld [vmem:[#allocation2 + $0xb5] sm:$0xff] }
 0x13c   : > { %1392 = vst.msk [vmem:[#allocation4 + $0x30] sm:$0xff] %vm8414_vm6, %v1341_v3  ;;  %v1125_v10 = vpop.permute.xlu0 %1124  ;;  %v2233_v3 = vld [vmem:[#allocation2 + $0xbb] sm:$0xff] }
 0x13d   : > { %2376 = vrot.lane.b32.xlu1 %v6241_v60, %s5565_s23  ;;  %1175 = vst.msk [vmem:[#allocation4 + $0x40] sm:$0xff] %vm8415_vm4, %v1125_v10  ;;  %v1532_v10 = vld [vmem:[#allocation2 + $0xa6] sm:$0xff] }
 0x13e   : > { %2482 = vrot.lane.b32.xlu0 %v6255_v7, %s5566_s30  ;;  %1550 = vst.msk [vmem:[#allocation4 + $0x108] sm:$0xff] %vm8423_vm0, %v1532_v10  ;;  %v2451_v10 = vld [vmem:[#allocation2 + $0xdc] sm:$0xff] }
 0x13f   : > { %v1450_v56 = vpop.permute.xlu1 %1449 }
 0x140   : > { %1501 = vst.msk [vmem:[#allocation4 + $0x30] sm:$0xff] %vm8413_vm7, %v1450_v56  ;;  %v1234_v13 = vpop.permute.xlu0 %1233 }
 0x141   : > { %1473 = vrot.lane.b32.xlu1 %v1422_v11, %s5567_s6  ;;  %v1556_v15 = vld [vmem:[#allocation4 + $0x20] sm:$0xff]  ;;  %1284 = vst.msk [vmem:[#allocation4 + $0x40] sm:$0xff] %vm8416_vm5, %v1234_v13  ;;  %v1533_v11 = vld [vmem:[#allocation2 + $0xae] sm:$0xff] }
 0x142   : > { %1890 = vst.msk [vmem:[#allocation4 + $0x20] sm:$0xff] %vm8423_vm0, %v1872_v57  ;;  %2590 = vrot.lane.b32.xlu0 %v2554_v59, %s5567_s6  ;;  %1551 = vst.msk [vmem:[#allocation4 + $0x118] sm:$0xff] %vm8423_vm0, %v1533_v11 }
 0x143   : > { %v1127_v23 = vpop.permute.xlu1 %1126 }
 0x144   : > { %1176 = vst.msk [vmem:[#allocation4 + $0x50] sm:$0xff] %vm8415_vm4, %v1127_v23  ;;  %v1343_v26 = vpop.permute.xlu0 %1342  ;;  %v1424_v23 = vld [vmem:[#allocation2 + $0xad] sm:$0xff] }
 0x145   : > { %2484 = vrot.lane.b32.xlu1 %v6267_v16, %s5566_s30  ;;  %1393 = vst.msk [vmem:[#allocation4 + $0x40] sm:$0xff] %vm8414_vm6, %v1343_v26  ;;  %v6335_v57 = vld [vmem:[#allocation4 + $0x108] sm:$0xff] }
 0x146   : > { %1946 = vrot.lane.b32.xlu0 %v1908_v25, %s5560_s10  ;;  %v2679_v25 = vld [vmem:[#allocation2 + $0x13e] sm:$0xff]  ;;  %2696 = vst.msk [vmem:[#allocation4 + $0x108] sm:$0xff] %vm8423_vm0, %v2678_v24 }
 0x147   : > { %v1236_v31 = vpop.permute.xlu1 %1235  ;;  %v1558_v32 = vld [vmem:[#allocation4 + $0x30] sm:$0xff] }
 0x148   : > { %1285 = vst.msk [vmem:[#allocation4 + $0x50] sm:$0xff] %vm8416_vm5, %v1236_v31  ;;  %v1590_v33 = vpack.c.bf16 %v1558_v32, %v1556_v15  ;;  %v1452_v38 = vpop.permute.xlu0 %1451 }
 0x149   : > { %1891 = vst.msk [vmem:[#allocation4 + $0x30] sm:$0xff] %vm8423_vm0, %v1873_v27  ;;  %2592 = vrot.lane.b32.xlu1 %v2555_v28, %s5567_s6  ;;  %v6337_v59 = vld [vmem:[#allocation4 + $0x118] sm:$0xff]  ;;  %v2556_v27 = vld [vmem:[#allocation2 + $0xc5] sm:$0xff] }
 0x14a   : > { %1502 = vst.msk [vmem:[#allocation4 + $0x40] sm:$0xff] %vm8413_vm7, %v1452_v38  ;;  %1734 = vmatmul.mubr.bf16.gmra.mxu0 %v1590_v33  ;;  %2054 = vrot.lane.b32.xlu0 %v6197_v14, %s5561_s11  ;;  %v6294_v14 = vld [vmem:[#allocation2 + $0xb2] sm:$0xff]  ;;  %v1605_v15 = vpack.c.bf16 %v6337_v59, %v6335_v57  ;;  %v1916_v59 = vld [vmem:[#allocation2 + $0xe1] sm:$0xff] }
 0x14b   : > { %v1345_v40 = vpop.permute.xlu1 %1344  ;;  %5313 = vmatprep.mubr.msk.bf16.mxu0 %vm8423_vm0, %v1593_v22  ;;  %2697 = vst.msk [vmem:[#allocation4 + $0x118] sm:$0xff] %vm8423_vm0, %v2679_v25  ;;  %v1911_v38 = vld [vmem:[#allocation2 + $0xb9] sm:$0xff] }
 0x14c   : > { %1394 = vst.msk [vmem:[#allocation4 + $0x50] sm:$0xff] %vm8414_vm6, %v1345_v40  ;;  %v1129_v44 = vpop.permute.xlu0 %1128 }
 0x14d   : > { %1948 = vrot.lane.b32.xlu1 %v1909_v39, %s5560_s10  ;;  %1177 = vst.msk [vmem:[#allocation4 + $0x60] sm:$0xff] %vm8415_vm4, %v1129_v44  ;;  %v2126_v44 = vld [vmem:[#allocation2 + $0xc2] sm:$0xff] }
 0x14e   : > { %1148 = vrot.lane.b32.xlu0 %v1096_v41, %s5564_s13 }
 0x14f   : > { %v1454_v46 = vpop.permute.xlu1 %1453 }
 0x150   : > { %1503 = vst.msk [vmem:[#allocation4 + $0x50] sm:$0xff] %vm8413_vm7, %v1454_v46  ;;  %v1238_v48 = vpop.permute.xlu0 %1237 }
 0x151   : > { %2056 = vrot.lane.b32.xlu1 %v6207_v30, %s5561_s11  ;;  %1286 = vst.msk [vmem:[#allocation4 + $0x60] sm:$0xff] %vm8416_vm5, %v1238_v48  ;;  %v1560_v49 = vld [vmem:[#allocation4 + $0x40] sm:$0xff] }
 0x152   : > { %2162 = vrot.lane.b32.xlu0 %v6294_v14, %s5562_s12 }
 0x153   : > { %v1131_v20 = vpop.permute.xlu1 %1130 }
 0x154   : > { %1178 = vst.msk [vmem:[#allocation4 + $0x70] sm:$0xff] %vm8415_vm4, %v1131_v20  ;;  %v1347_v22 = vpop.permute.xlu0 %1346  ;;  %v2127_v20 = vld [vmem:[#allocation2 + $0xca] sm:$0xff] }
 0x155   : > { %1150 = vrot.lane.b32.xlu1 %v1097_v18, %s5564_s13  ;;  %1395 = vst.msk [vmem:[#allocation4 + $0x60] sm:$0xff] %vm8414_vm6, %v1347_v22 }
 0x156   : > { %1257 = vrot.lane.b32.xlu0 %v6217_v36, %s5565_s23 }
 0x157   : > { %v1240_v30 = vpop.permute.xlu1 %1239  ;;  %v1562_v52 = vld [vmem:[#allocation4 + $0x50] sm:$0xff] }
 0x158   : > { %1287 = vst.msk [vmem:[#allocation4 + $0x70] sm:$0xff] %vm8416_vm5, %v1240_v30  ;;  %v1592_v53 = vpack.c.bf16 %v1562_v52, %v1560_v49  ;;  %v1456_v55 = vpop.permute.xlu0 %1455 }
 0x159   : > { %2164 = vrot.lane.b32.xlu1 %v6304_v50, %s5562_s12  ;;  %1504 = vst.msk [vmem:[#allocation4 + $0x60] sm:$0xff] %vm8413_vm7, %v1456_v55  ;;  %v1877_v55 = vld [vmem:[#allocation2 + $0xc8] sm:$0xff] }
 0x15a   : > { %1742 = vmatmul.mubr.bf16.gmra.mxu0 %v1592_v53  ;;  %2270 = vrot.lane.b32.xlu0 %v2232_v54, %s5564_s13 }
 0x15b   : > { %v1349_v58 = vpop.permute.xlu1 %1348  ;;  %5314 = vmatprep.mubr.msk.bf16.mxu0 %vm8423_vm0, %v1595_v45  ;;  %v1423_v45 = vld [vmem:[#allocation2 + $0xa5] sm:$0xff] }
 0x15c   : > { %1396 = vst.msk [vmem:[#allocation4 + $0x70] sm:$0xff] %vm8414_vm6, %v1349_v58  ;;  %v1133_v36 = vpop.permute.xlu0 %1132 }
 0x15d   : > { %1259 = vrot.lane.b32.xlu1 %v6231_v51, %s5565_s23  ;;  %1179 = vst.msk [vmem:[#allocation4 + $0x80] sm:$0xff] %vm8415_vm4, %v1133_v36  ;;  %v2558_v36 = vld [vmem:[#allocation2 + $0xd5] sm:$0xff] }
 0x15e   : > { %1366 = vrot.lane.b32.xlu0 %v6227_v47, %s5566_s30  ;;  %v1874_v47 = vld [vmem:[#allocation2 + $0xb0] sm:$0xff] }
 0x15f   : > { %v1458_v12 = vpop.permute.xlu1 %1457  ;;  %1892 = vst.msk [vmem:[#allocation4 + $0x40] sm:$0xff] %vm8423_vm0, %v1874_v47 }
 0x160   : > { %1505 = vst.msk [vmem:[#allocation4 + $0x70] sm:$0xff] %vm8413_vm7, %v1458_v12  ;;  %v1242_v42 = vpop.permute.xlu0 %1241  ;;  %v1564_v56 = vld [vmem:[#allocation4 + $0x60] sm:$0xff] }
 0x161   : > { %2272 = vrot.lane.b32.xlu1 %v2233_v3, %s5564_s13  ;;  %1288 = vst.msk [vmem:[#allocation4 + $0x80] sm:$0xff] %vm8416_vm5, %v1242_v42  ;;  %v1912_v12 = vld [vmem:[#allocation2 + $0xc1] sm:$0xff] }
 0x162   : > { %2378 = vrot.lane.b32.xlu0 %v6255_v7, %s5565_s23  ;;  %1894 = vst.msk [vmem:[#allocation4 + $0x60] sm:$0xff] %vm8423_vm0, %v1876_v35  ;;  %v1880_v35 = vld [vmem:[#allocation2 + $0xe0] sm:$0xff] }
 0x163   : > { %v1135_v43 = vpop.permute.xlu1 %1134 }
 0x164   : > { %1180 = vst.msk [vmem:[#allocation4 + $0x90] sm:$0xff] %vm8415_vm4, %v1135_v43  ;;  %v1351_v51 = vpop.permute.xlu0 %1350  ;;  %v2559_v43 = vld [vmem:[#allocation2 + $0xdd] sm:$0xff] }
 0x165   : > { %1368 = vrot.lane.b32.xlu1 %v6241_v60, %s5566_s30  ;;  %1397 = vst.msk [vmem:[#allocation4 + $0x80] sm:$0xff] %vm8414_vm6, %v1351_v51  ;;  %v6343_v60 = vld [vmem:[#allocation2 + $0xc4] sm:$0xff] }
 0x166   : > { %1475 = vrot.lane.b32.xlu0 %v1423_v45, %s5567_s6 }
 0x167   : > { %v1244_v7 = vpop.permute.xlu1 %1243  ;;  %v1566_v13 = vld [vmem:[#allocation4 + $0x70] sm:$0xff] }
 0x168   : > { %1289 = vst.msk [vmem:[#allocation4 + $0x90] sm:$0xff] %vm8416_vm5, %v1244_v7  ;;  %v1594_v17 = vpack.c.bf16 %v1566_v13, %v1564_v56  ;;  %v1460_v21 = vpop.permute.xlu0 %1459 }
 0x169   : > { %2380 = vrot.lane.b32.xlu1 %v6267_v16, %s5565_s23  ;;  %1506 = vst.msk [vmem:[#allocation4 + $0x80] sm:$0xff] %vm8413_vm7, %v1460_v21  ;;  %v1875_v16 = vld [vmem:[#allocation2 + $0xb8] sm:$0xff] }
 0x16a   : > { %1750 = vmatmul.mubr.bf16.gmra.mxu0 %v1594_v17  ;;  %2486 = vrot.lane.b32.xlu0 %v6343_v60, %s5566_s30  ;;  %1893 = vst.msk [vmem:[#allocation4 + $0x50] sm:$0xff] %vm8423_vm0, %v1875_v16  ;;  %1895 = vst.msk [vmem:[#allocation4 + $0x70] sm:$0xff] %vm8423_vm0, %v1877_v55  ;;  %v2562_v55 = vld [vmem:[#allocation2 + $0xf5] sm:$0xff] }
 0x16b   : > { %v1353_v26 = vpop.permute.xlu1 %1352  ;;  %5315 = vmatprep.mubr.msk.bf16.mxu0 %vm8423_vm0, %v1597_v8 }
 0x16c   : > { %1398 = vst.msk [vmem:[#allocation4 + $0x90] sm:$0xff] %vm8414_vm6, %v1353_v26  ;;  %v1137_v28 = vpop.permute.xlu0 %1136  ;;  %v2237_v26 = vld [vmem:[#allocation2 + $0xdb] sm:$0xff] }
 0x16d   : > { %1477 = vrot.lane.b32.xlu1 %v1424_v23, %s5567_s6  ;;  %1181 = vst.msk [vmem:[#allocation4 + $0xa0] sm:$0xff] %vm8415_vm4, %v1137_v28  ;;  %v2129_v23 = vld [vmem:[#allocation2 + $0xda] sm:$0xff] }
 0x16e   : > { %2594 = vrot.lane.b32.xlu0 %v2556_v27, %s5567_s6  ;;  %v2452_v27 = vld [vmem:[#allocation2 + $0xe4] sm:$0xff] }
 0x16f   : > { %v1462_v5 = vpop.permute.xlu1 %1461 }
 0x170   : > { %1507 = vst.msk [vmem:[#allocation4 + $0x90] sm:$0xff] %vm8413_vm7, %v1462_v5  ;;  %v1246_v8 = vpop.permute.xlu0 %1245  ;;  %v1568_v33 = vld [vmem:[#allocation4 + $0x80] sm:$0xff]  ;;  %v1878_v5 = vld [vmem:[#allocation2 + $0xd0] sm:$0xff] }
 0x171   : > { %2488 = vrot.lane.b32.xlu1 %v2449_v29, %s5566_s30  ;;  %1290 = vst.msk [vmem:[#allocation4 + $0xa0] sm:$0xff] %vm8416_vm5, %v1246_v8  ;;  %v1914_v8 = vld [vmem:[#allocation2 + $0xd1] sm:$0xff] }
 0x172   : > { %1950 = vrot.lane.b32.xlu0 %v1910_v6, %s5560_s10  ;;  %1896 = vst.msk [vmem:[#allocation4 + $0x80] sm:$0xff] %vm8423_vm0, %v1878_v5 }
 0x173   : > { %v1139_v31 = vpop.permute.xlu1 %1138 }
 0x174   : > { %1182 = vst.msk [vmem:[#allocation4 + $0xb0] sm:$0xff] %vm8415_vm4, %v1139_v31  ;;  %v1355_v32 = vpop.permute.xlu0 %1354  ;;  %v2561_v31 = vld [vmem:[#allocation2 + $0xed] sm:$0xff] }
 0x175   : > { %2596 = vrot.lane.b32.xlu1 %v2557_v19, %s5567_s6  ;;  %1399 = vst.msk [vmem:[#allocation4 + $0xa0] sm:$0xff] %vm8414_vm6, %v1355_v32  ;;  %v1879_v32 = vld [vmem:[#allocation2 + $0xd8] sm:$0xff] }
 0x176   : > { %2058 = vrot.lane.b32.xlu0 %v6294_v14, %s5561_s11  ;;  %v2234_v14 = vld [vmem:[#allocation2 + $0xc3] sm:$0xff] }
 0x177   : > { %v1248_v39 = vpop.permute.xlu1 %1247  ;;  %v1570_v40 = vld [vmem:[#allocation4 + $0x90] sm:$0xff] }
 0x178   : > { %1291 = vst.msk [vmem:[#allocation4 + $0xb0] sm:$0xff] %vm8416_vm5, %v1248_v39  ;;  %v1596_v41 = vpack.c.bf16 %v1570_v40, %v1568_v33  ;;  %v1464_v46 = vpop.permute.xlu0 %1463  ;;  %v1915_v39 = vld [vmem:[#allocation2 + $0xd9] sm:$0xff] }
 0x179   : > { %1952 = vrot.lane.b32.xlu1 %v1911_v38, %s5560_s10  ;;  %1508 = vst.msk [vmem:[#allocation4 + $0xa0] sm:$0xff] %vm8413_vm7, %v1464_v46 }
 0x17a   : > { %1758 = vmatmul.mubr.bf16.gmra.mxu0 %v1596_v41  ;;  %2166 = vrot.lane.b32.xlu0 %v2126_v44, %s5562_s12  ;;  %1897 = vst.msk [vmem:[#allocation4 + $0x90] sm:$0xff] %vm8423_vm0, %v1879_v32  ;;  %v6445_v41 = vld [vmem:[#allocation2 + $0xe2] sm:$0xff]  ;;  %v1883_v32 = vld [vmem:[#allocation2 + $0xf8] sm:$0xff] }
 0x17b   : > { %v1357_v48 = vpop.permute.xlu1 %1356  ;;  %5316 = vmatprep.mubr.msk.bf16.mxu0 %vm8423_vm0, %v1599_v37 }
 0x17c   : > { %1400 = vst.msk [vmem:[#allocation4 + $0xb0] sm:$0xff] %vm8414_vm6, %v1357_v48  ;;  %v1141_v18 = vpop.permute.xlu0 %1140  ;;  %v2238_v48 = vld [vmem:[#allocation2 + $0xe3] sm:$0xff] }
 0x17d   : > { %2060 = vrot.lane.b32.xlu1 %v6304_v50, %s5561_s11  ;;  %1183 = vst.msk [vmem:[#allocation4 + $0xc0] sm:$0xff] %vm8415_vm4, %v1141_v18  ;;  %v2450_v50 = vld [vmem:[#allocation2 + $0xd4] sm:$0xff]  ;;  %v6454_v18 = vld [vmem:[#allocation2 + $0xea] sm:$0xff] }
 0x17e   : > { %2274 = vrot.lane.b32.xlu0 %v2234_v14, %s5564_s13 }
 0x17f   : > { %v1466_v22 = vpop.permute.xlu1 %1465 }
 0x180   : > { %1509 = vst.msk [vmem:[#allocation4 + $0xb0] sm:$0xff] %vm8413_vm7, %v1466_v22  ;;  %v1250_v49 = vpop.permute.xlu0 %1249  ;;  %v1572_v52 = vld [vmem:[#allocation4 + $0xa0] sm:$0xff] }
 0x181   : > { %2168 = vrot.lane.b32.xlu1 %v2127_v20, %s5562_s12  ;;  %1292 = vst.msk [vmem:[#allocation4 + $0xc0] sm:$0xff] %vm8416_vm5, %v1250_v49 }
 0x182   : > { %2382 = vrot.lane.b32.xlu0 %v6343_v60, %s5565_s23  ;;  %v2236_v60 = vld [vmem:[#allocation2 + $0xd3] sm:$0xff]  ;;  %1898 = vst.msk [vmem:[#allocation4 + $0xa0] sm:$0xff] %vm8423_vm0, %v1880_v35  ;;  %v6545_v35 = vld [vmem:[#allocation2 + $0x102] sm:$0xff] }
 0x183   : > { %v1143_v37 = vpop.permute.xlu1 %1142 }
 0x184   : > { %1184 = vst.msk [vmem:[#allocation4 + $0xd0] sm:$0xff] %vm8415_vm4, %v1143_v37  ;;  %v1359_v30 = vpop.permute.xlu0 %1358 }
 0x185   : > { %2276 = vrot.lane.b32.xlu1 %v2235_v34, %s5564_s13  ;;  %1401 = vst.msk [vmem:[#allocation4 + $0xc0] sm:$0xff] %vm8414_vm6, %v1359_v30  ;;  %v2239_v34 = vld [vmem:[#allocation2 + $0xeb] sm:$0xff] }
 0x186   : > { %2490 = vrot.lane.b32.xlu0 %v2450_v50, %s5566_s30 }
 0x187   : > { %v1252_v53 = vpop.permute.xlu1 %1251  ;;  %v1574_v54 = vld [vmem:[#allocation4 + $0xb0] sm:$0xff] }
 0x188   : > { %1293 = vst.msk [vmem:[#allocation4 + $0xd0] sm:$0xff] %vm8416_vm5, %v1252_v53  ;;  %v1598_v58 = vpack.c.bf16 %v1574_v54, %v1572_v52  ;;  %v1468_v3 = vpop.permute.xlu0 %1467  ;;  %v6464_v52 = vld [vmem:[#allocation2 + $0xf4] sm:$0xff] }
 0x189   : > { %2384 = vrot.lane.b32.xlu1 %v2449_v29, %s5565_s23  ;;  %1510 = vst.msk [vmem:[#allocation4 + $0xc0] sm:$0xff] %vm8413_vm7, %v1468_v3  ;;  %v2453_v29 = vld [vmem:[#allocation2 + $0xec] sm:$0xff] }
 0x18a   : > { %1766 = vmatmul.mubr.bf16.gmra.mxu0 %v1598_v58  ;;  %2598 = vrot.lane.b32.xlu0 %v2558_v36, %s5567_s6  ;;  %v2703_v58 = vld [vmem:[#allocation4 + $0x28] sm:$0xff]  ;;  %v2705_v36 = vld [vmem:[#allocation4 + $0x38] sm:$0xff] }
 0x18b   : > { %v1361_v11 = vpop.permute.xlu1 %1360  ;;  %5317 = vmatprep.mubr.msk.bf16.mxu0 %vm8423_vm0, %v1601_v2  ;;  %v2128_v2 = vld [vmem:[#allocation2 + $0xd2] sm:$0xff] }
 0x18c   : > { %1402 = vst.msk [vmem:[#allocation4 + $0xd0] sm:$0xff] %vm8414_vm6, %v1361_v11  ;;  %v1943_v42 = vpop.permute.xlu0 %1942  ;;  %v2455_v11 = vld [vmem:[#allocation2 + $0xfc] sm:$0xff] }
 0x18d   : > { %2492 = vrot.lane.b32.xlu1 %v2451_v10, %s5566_s30  ;;  %1996 = vst.msk [vmem:[#allocation4] sm:$0xff] %vm8418_vm1, %v1943_v42 }
 0x18e   : > { %1954 = vrot.lane.b32.xlu0 %v1912_v12, %s5560_s10 }
 0x18f   : > { %v1470_v45 = vpop.permute.xlu1 %1469 }
 0x190   : > { %1511 = vst.msk [vmem:[#allocation4 + $0xd0] sm:$0xff] %vm8413_vm7, %v1470_v45  ;;  %v2051_v47 = vpop.permute.xlu0 %2050  ;;  %v1576_v56 = vld [vmem:[#allocation4 + $0xc0] sm:$0xff] }
 0x191   : > { %2600 = vrot.lane.b32.xlu1 %v2559_v43, %s5567_s6  ;;  %2104 = vst.msk [vmem:[#allocation4] sm:$0xff] %vm8417_vm2, %v2051_v47  ;;  %v2737_v43 = vpack.c.bf16 %v2705_v36, %v2703_v58  ;;  %v2563_v45 = vld [vmem:[#allocation2 + $0xfd] sm:$0xff]  ;;  %v1881_v47 = vld [vmem:[#allocation2 + $0xe8] sm:$0xff] }
 0x192   : > { %2062 = vrot.lane.b32.xlu0 %v2126_v44, %s5561_s11  ;;  %1899 = vst.msk [vmem:[#allocation4 + $0xb0] sm:$0xff] %vm8423_vm0, %v1881_v47  ;;  %v2707_v36 = vld [vmem:[#allocation4 + $0x48] sm:$0xff] }
 0x193   : > { %v1945_v63 = vpop.permute.xlu1 %1944 }
 0x194   : > { %1997 = vst.msk [vmem:[#allocation4 + $0x10] sm:$0xff] %vm8418_vm1, %v1945_v63  ;;  %v1145_v51 = vpop.permute.xlu0 %1144 }
 0x195   : > { %1956 = vrot.lane.b32.xlu1 %v1913_v62, %s5560_s10  ;;  %1185 = vst.msk [vmem:[#allocation4 + $0xe0] sm:$0xff] %vm8415_vm4, %v1145_v51 }
 0x196   : > { %2170 = vrot.lane.b32.xlu0 %v2128_v2, %s5562_s12 }
 0x197   : > { %v2053_v7 = vpop.permute.xlu1 %2052  ;;  %v1578_v13 = vld [vmem:[#allocation4 + $0xd0] sm:$0xff] }
 0x198   : > { %2105 = vst.msk [vmem:[#allocation4 + $0x10] sm:$0xff] %vm8417_vm2, %v2053_v7  ;;  %v1600_v17 = vpack.c.bf16 %v1578_v13, %v1576_v56  ;;  %v2159_v21 = vpop.permute.xlu0 %2158  ;;  %v2132_v56 = vld [vmem:[#allocation2 + $0xf2] sm:$0xff] }
 0x199   : > { %2064 = vrot.lane.b32.xlu1 %v2127_v20, %s5561_s11  ;;  %2212 = vst.msk [vmem:[#allocation4] sm:$0xff] %vm8412_vm3, %v2159_v21  ;;  %v6497_v21 = vld [vmem:[#allocation2 + $0xfa] sm:$0xff] }
 0x19a   : > { %1774 = vmatmul.mubr.bf16.gmra.mxu0 %v1600_v17  ;;  %2278 = vrot.lane.b32.xlu0 %v2236_v60, %s5564_s13  ;;  %v2240_v17 = vld [vmem:[#allocation2 + $0xf3] sm:$0xff]  ;;  %1901 = vst.msk [vmem:[#allocation4 + $0xd0] sm:$0xff] %vm8423_vm0, %v1883_v32 }
 0x19b   : > { %v1147_v24 = vpop.permute.xlu1 %1146  ;;  %5318 = vmatprep.mubr.msk.bf16.mxu0 %vm8423_vm0, %v1603_v4 }
 0x19c   : > { %1186 = vst.msk [vmem:[#allocation4 + $0xf0] sm:$0xff] %vm8415_vm4, %v1147_v24  ;;  %v1254_v25 = vpop.permute.xlu0 %1253  ;;  %v1882_v24 = vld [vmem:[#allocation2 + $0xf0] sm:$0xff] }
 0x19d   : > { %2172 = vrot.lane.b32.xlu1 %v2129_v23, %s5562_s12  ;;  %1294 = vst.msk [vmem:[#allocation4 + $0xe0] sm:$0xff] %vm8416_vm5, %v1254_v25 }
 0x19e   : > { %2386 = vrot.lane.b32.xlu0 %v2450_v50, %s5565_s23  ;;  %1900 = vst.msk [vmem:[#allocation4 + $0xc0] sm:$0xff] %vm8423_vm0, %v1882_v24 }
 0x19f   : > { %v2161_v16 = vpop.permute.xlu1 %2160 }
 0x1a0   : > { %2213 = vst.msk [vmem:[#allocation4 + $0x10] sm:$0xff] %vm8412_vm3, %v2161_v16  ;;  %v2267_v28 = vpop.permute.xlu0 %2266  ;;  %v2241_v16 = vld [vmem:[#allocation2 + $0xfb] sm:$0xff] }
 0x1a1   : > { %2280 = vrot.lane.b32.xlu1 %v2237_v26, %s5564_s13  ;;  %2320 = vst.msk [vmem:[#allocation4] sm:$0xff] %vm8415_vm4, %v2267_v28  ;;  %v373_v26 = vlaneseq  ;;  %v6508_v28 = vld [vmem:[#allocation2 + $0x104] sm:$0xff] }
 0x1a2   : > { %2494 = vrot.lane.b32.xlu0 %v2452_v27, %s5566_s30 }
 0x1a3   : > { %v1256_v61 = vpop.permute.xlu1 %1255 }
 0x1a4   : > { %1295 = vst.msk [vmem:[#allocation4 + $0xf0] sm:$0xff] %vm8416_vm5, %v1256_v61  ;;  %v1363_v4 = vpop.permute.xlu0 %1362 }
 0x1a5   : > { %2388 = vrot.lane.b32.xlu1 %v2451_v10, %s5565_s23  ;;  %1403 = vst.msk [vmem:[#allocation4 + $0xe0] sm:$0xff] %vm8414_vm6, %v1363_v4 }
 0x1a6   : > { %2602 = vrot.lane.b32.xlu0 %v2560_v1, %s5567_s6  ;;  %v6511_v1 = vshrl.u32 %v373_v26, 7 }
 0x1a7   : > { %v2269_v6 = vpop.permute.xlu1 %2268 }
 0x1a8   : > { %2321 = vst.msk [vmem:[#allocation4 + $0x10] sm:$0xff] %vm8415_vm4, %v2269_v6  ;;  %v2375_v19 = vpop.permute.xlu0 %2374 }
 0x1a9   : > { %2496 = vrot.lane.b32.xlu1 %v2453_v29, %s5566_s30  ;;  %2428 = vst.msk [vmem:[#allocation4] sm:$0xff] %vm8416_vm5, %v2375_v19  ;;  %v6523_v19 = vadd.s32 8, %v6511_v1 }
 0x1aa   : > { %1958 = vrot.lane.b32.xlu0 %v1914_v8, %s5560_s10  ;;  %v6519_v6 = vmul.u32.u64.low 3817748708, %v6511_v1  ;;  %v6520_v8 = vmul.u32.u64.high 3817748708, %v6511_v1, %v6519_v6 }
 0x1ab   : > { %v1365_v33 = vpop.permute.xlu1 %1364 }
 0x1ac   : > { %1404 = vst.msk [vmem:[#allocation4 + $0xf0] sm:$0xff] %vm8414_vm6, %v1365_v33  ;;  %v1472_v38 = vpop.permute.xlu0 %1471 }
 0x1ad   : > { %2604 = vrot.lane.b32.xlu1 %v2561_v31, %s5567_s6  ;;  %1512 = vst.msk [vmem:[#allocation4 + $0xe0] sm:$0xff] %vm8413_vm7, %v1472_v38  ;;  %v6526_v31 = vld [vmem:[#allocation2 + $0x10c] sm:$0xff] }
 0x1ae   : > { %2066 = vrot.lane.b32.xlu0 %v2128_v2, %s5561_s11  ;;  %v1917_v2 = vld [vmem:[#allocation2 + $0xe9] sm:$0xff]  ;;  %v1918_v38 = vld [vmem:[#allocation2 + $0xf1] sm:$0xff] }
 0x1af   : > { %v2377_v40 = vpop.permute.xlu1 %2376 }
 0x1b0   : > { %2429 = vst.msk [vmem:[#allocation4 + $0x10] sm:$0xff] %vm8416_vm5, %v2377_v40  ;;  %v2483_v44 = vpop.permute.xlu0 %2482 }
 0x1b1   : > { %1960 = vrot.lane.b32.xlu1 %v1915_v39, %s5560_s10  ;;  %2536 = vst.msk [vmem:[#allocation4] sm:$0xff] %vm8414_vm6, %v2483_v44  ;;  %v2565_v44 = vld [vmem:[#allocation2 + $0x10d] sm:$0xff] }
 0x1b2   : > { %2174 = vrot.lane.b32.xlu0 %v6445_v41, %s5562_s12 }
 0x1b3   : > { %v1474_v46 = vpop.permute.xlu1 %1473 }
 0x1b4   : > { %1513 = vst.msk [vmem:[#allocation4 + $0xf0] sm:$0xff] %vm8413_vm7, %v1474_v46  ;;  %v2591_v14 = vpop.permute.xlu0 %2590  ;;  %v1580_v49 = vld [vmem:[#allocation4 + $0xe0] sm:$0xff] }
 0x1b5   : > { %2068 = vrot.lane.b32.xlu1 %v2129_v23, %s5561_s11  ;;  %2644 = vst.msk [vmem:[#allocation4] sm:$0xff] %vm8413_vm7, %v2591_v14 }
 0x1b6   : > { %2282 = vrot.lane.b32.xlu0 %v2238_v48, %s5564_s13 }
 0x1b7   : > { %v2485_v20 = vpop.permute.xlu1 %2484 }
 0x1b8   : > { %2537 = vst.msk [vmem:[#allocation4 + $0x10] sm:$0xff] %vm8414_vm6, %v2485_v20  ;;  %v1947_v22 = vpop.permute.xlu0 %1946  ;;  %v1919_v20 = vld [vmem:[#allocation2 + $0xf9] sm:$0xff] }
 0x1b9   : > { %2176 = vrot.lane.b32.xlu1 %v6454_v18, %s5562_s12  ;;  %1998 = vst.msk [vmem:[#allocation4 + $0x20] sm:$0xff] %vm8418_vm1, %v1947_v22 }
 0x1ba   : > { %2390 = vrot.lane.b32.xlu0 %v2452_v27, %s5565_s23 }
 0x1bb   : > { %v2593_v37 = vpop.permute.xlu1 %2592  ;;  %v1582_v50 = vld [vmem:[#allocation4 + $0xf0] sm:$0xff] }
 0x1bc   : > { %2645 = vst.msk [vmem:[#allocation4 + $0x10] sm:$0xff] %vm8413_vm7, %v2593_v37  ;;  %v1602_v30 = vpack.c.bf16 %v1582_v50, %v1580_v49  ;;  %v2055_v53 = vpop.permute.xlu0 %2054  ;;  %v2698_v10 = vld [vmem:[#allocation4] sm:$0xff]  ;;  %v6548_v37 = vadd.s32 16, %v6511_v1 }
 0x1bd   : > { %2284 = vrot.lane.b32.xlu1 %v2239_v34, %s5564_s13  ;;  %2106 = vst.msk [vmem:[#allocation4 + $0x20] sm:$0xff] %vm8417_vm2, %v2055_v53 }
 0x1be   : > { %1782 = vmatmul.mubr.bf16.gmra.mxu0 %v1602_v30  ;;  %2498 = vrot.lane.b32.xlu0 %v6464_v52, %s5566_s30 }
 0x1bf   : > { %v1949_v54 = vpop.permute.xlu1 %1948  ;;  %5319 = vmatprep.mubr.msk.bf16.mxu0 %vm8423_vm0, %v1605_v15 }
 0x1c0   : > { %1999 = vst.msk [vmem:[#allocation4 + $0x30] sm:$0xff] %vm8418_vm1, %v1949_v54  ;;  %v1149_v3 = vpop.permute.xlu0 %1148  ;;  %v2242_v54 = vld [vmem:[#allocation2 + $0x103] sm:$0xff] }
 0x1c1   : > { %2392 = vrot.lane.b32.xlu1 %v2453_v29, %s5565_s23  ;;  %1187 = vst.msk [vmem:[#allocation4 + $0x100] sm:$0xff] %vm8415_vm4, %v1149_v3  ;;  %v2564_v29 = vld [vmem:[#allocation2 + $0x105] sm:$0xff]  ;;  %v2709_v3 = vld [vmem:[#allocation4 + $0x58] sm:$0xff] }
 0x1c2   : > { %2606 = vrot.lane.b32.xlu0 %v2562_v55, %s5567_s6  ;;  %v6557_v55 = vmul.u32.u64.low 3817748708, %v6548_v37  ;;  %v6558_v58 = vmul.u32.u64.high 3817748708, %v6548_v37, %v6557_v55 }
 0x1c3   : > { %v2057_v12 = vpop.permute.xlu1 %2056  ;;  %v2700_v42 = vld [vmem:[#allocation4 + $0x10] sm:$0xff] }
 0x1c4   : > { %2107 = vst.msk [vmem:[#allocation4 + $0x30] sm:$0xff] %vm8417_vm2, %v2057_v12  ;;  %v2734_v57 = vpack.c.bf16 %v2700_v42, %v2698_v10  ;;  %v2163_v15 = vpop.permute.xlu0 %2162  ;;  %v6561_v10 = vadd.s32 24, %v6511_v1 }
 0x1c5   : > { %2500 = vrot.lane.b32.xlu1 %v2455_v11, %s5566_s30  ;;  %2214 = vst.msk [vmem:[#allocation4 + $0x20] sm:$0xff] %vm8412_vm3, %v2163_v15 }
 0x1c6   : > { %2812 = vmatmul.mubr.bf16.vlgmr.msra.gmra.mxu1 %v2734_v57  ;;  %1962 = vrot.lane.b32.xlu0 %v1916_v59, %s5560_s10  ;;  %v6567_v57 = vld [vmem:[#allocation2 + $0x10a] sm:$0xff] }
 0x1c7   : > { %v1151_v62 = vpop.permute.xlu1 %1150  ;;  %5321 = vmatprep.mubr.msk.bf16.mxu1 %vm8423_vm0, %v2737_v43 }
 0x1c8   : > { %1188 = vst.msk [vmem:[#allocation4 + $0x110] sm:$0xff] %vm8415_vm4, %v1151_v62  ;;  %v1258_v63 = vpop.permute.xlu0 %1257 }
 0x1c9   : > { %2608 = vrot.lane.b32.xlu1 %v2563_v45, %s5567_s6  ;;  %1296 = vst.msk [vmem:[#allocation4 + $0x100] sm:$0xff] %vm8416_vm5, %v1258_v63  ;;  %v2739_v45 = vpack.c.bf16 %v2709_v3, %v2707_v36  ;;  %v6572_v62 = vmul.u32.u64.low 3817748708, %v6561_v10  ;;  %v6573_v63 = vmul.u32.u64.high 3817748708, %v6561_v10, %v6572_v62  ;;  %v1921_v3 = vld [vmem:[#allocation2 + $0x109] sm:$0xff] }
 0x1ca   : > { %2070 = vrot.lane.b32.xlu0 %v6445_v41, %s5561_s11  ;;  %v6534_v40 = vmul.u32.u64.low 3817748708, %v6523_v19  ;;  %v6535_v41 = vmul.u32.u64.high 3817748708, %v6523_v19, %v6534_v40 }
 0x1cb   : > { %v2165_v51 = vpop.permute.xlu1 %2164 }
 0x1cc   : > { %2215 = vst.msk [vmem:[#allocation4 + $0x30] sm:$0xff] %vm8412_vm3, %v2165_v51  ;;  %v2271_v7 = vpop.permute.xlu0 %2270 }
 0x1cd   : > { %1964 = vrot.lane.b32.xlu1 %v1917_v2, %s5560_s10  ;;  %2322 = vst.msk [vmem:[#allocation4 + $0x20] sm:$0xff] %vm8415_vm4, %v2271_v7  ;;  %v1884_v2 = vld [vmem:[#allocation2 + $0x100] sm:$0xff]  ;;  %v2243_v7 = vld [vmem:[#allocation2 + $0x10b] sm:$0xff] }
 0x1ce   : > { %2178 = vrot.lane.b32.xlu0 %v2132_v56, %s5562_s12  ;;  %1902 = vst.msk [vmem:[#allocation4 + $0xe0] sm:$0xff] %vm8423_vm0, %v1884_v2  ;;  %v2711_v2 = vld [vmem:[#allocation4 + $0x68] sm:$0xff] }
 0x1cf   : > { %v1260_v13 = vpop.permute.xlu1 %1259 }
 0x1d0   : > { %1297 = vst.msk [vmem:[#allocation4 + $0x110] sm:$0xff] %vm8416_vm5, %v1260_v13  ;;  %v1367_v60 = vpop.permute.xlu0 %1366 }
 0x1d1   : > { %2072 = vrot.lane.b32.xlu1 %v6454_v18, %s5561_s11  ;;  %1405 = vst.msk [vmem:[#allocation4 + $0x100] sm:$0xff] %vm8414_vm6, %v1367_v60  ;;  %v398_v18 = vshrl.u32 %v6520_v8, 4  ;;  %v6584_v60 = vld [vmem:[#allocation2 + $0x114] sm:$0xff]  ;;  %v6612_v8 = vadd.s32 32, %v6511_v1 }
 0x1d2   : > { %2286 = vrot.lane.b32.xlu0 %v2240_v17, %s5564_s13 }
 0x1d3   : > { %v2273_v23 = vpop.permute.xlu1 %2272  ;;  %v399_v30 = vmul.u32 18, %v398_v18 }
 0x1d4   : > { %2323 = vst.msk [vmem:[#allocation4 + $0x30] sm:$0xff] %vm8415_vm4, %v2273_v23  ;;  %v2379_v25 = vpop.permute.xlu0 %2378  ;;  %v420_v23 = vshrl.u32 %v6558_v58, 4 }
 0x1d5   : > { %2180 = vrot.lane.b32.xlu1 %v6497_v21, %s5562_s12  ;;  %2430 = vst.msk [vmem:[#allocation4 + $0x20] sm:$0xff] %vm8416_vm5, %v2379_v25  ;;  %v400_v42 = vsub.s32 %v6511_v1, %v399_v30  ;;  %v1885_v25 = vld [vmem:[#allocation2 + $0x108] sm:$0xff] }
 0x1d6   : > { %2394 = vrot.lane.b32.xlu0 %v6464_v52, %s5565_s23  ;;  %v409_v52 = vshrl.u32 %v6535_v41, 4  ;;  %1903 = vst.msk [vmem:[#allocation4 + $0xf0] sm:$0xff] %vm8423_vm0, %v1885_v25  ;;  %v1920_v41 = vld [vmem:[#allocation2 + $0x101] sm:$0xff] }
 0x1d7   : > { %v1369_v27 = vpop.permute.xlu1 %1368  ;;  %vm590_vm8 = vcmp.ne.s32.totalorder %v400_v42, 0  ;;  %vm608_vm9 = vcmp.lt.s32.totalorder %v400_v42, 0  ;;  %v644_v17 = vadd.s32 18, %v400_v42  ;;  %v6692_v25 = vld [vmem:[#allocation2 + $0x11a] sm:$0xff] }
 0x1d8   : > { %1406 = vst.msk [vmem:[#allocation4 + $0x110] sm:$0xff] %vm8414_vm6, %v1369_v27  ;;  %v1476_v61 = vpop.permute.xlu0 %1475  ;;  %v410_v43 = vmul.u32 18, %v409_v52  ;;  %vm6586_vm10 = vmand %vm608_vm9, %vm590_vm8 }
 0x1d9   : > { %2288 = vrot.lane.b32.xlu1 %v2241_v16, %s5564_s13  ;;  %1514 = vst.msk [vmem:[#allocation4 + $0x100] sm:$0xff] %vm8413_vm7, %v1476_v61  ;;  %v662_v16 = vsel %vm6586_vm10, %v644_v17, %v400_v42  ;;  %v2566_v61 = vld [vmem:[#allocation2 + $0x115] sm:$0xff] }
 0x1da   : > { %2502 = vrot.lane.b32.xlu0 %v6508_v28, %s5566_s30  ;;  %vm6615_vm14 = vcmp.lt.s32.totalorder %v662_v16, 16  ;;  %v6660_v42 = vld [vmem:[#allocation2 + $0x112] sm:$0xff] }
 0x1db   : > { %v2381_v4 = vpop.permute.xlu1 %2380 }
 0x1dc   : > { %2431 = vst.msk [vmem:[#allocation4 + $0x30] sm:$0xff] %vm8416_vm5, %v2381_v4  ;;  %v2487_v5 = vpop.permute.xlu0 %2486 }
 0x1dd   : > { %2396 = vrot.lane.b32.xlu1 %v2455_v11, %s5565_s23  ;;  %2538 = vst.msk [vmem:[#allocation4 + $0x20] sm:$0xff] %vm8414_vm6, %v2487_v5  ;;  %v431_v5 = vshrl.u32 %v6573_v63, 4  ;;  %v6763_v63 = vadd.s32 64, %v6511_v1 }
 0x1de   : > { %2610 = vrot.lane.b32.xlu0 %v2564_v29, %s5567_s6  ;;  %v421_v29 = vmul.u32 18, %v420_v23 }
 0x1df   : > { %v1478_v33 = vpop.permute.xlu1 %1477 }
 0x1e0   : > { %1515 = vst.msk [vmem:[#allocation4 + $0x110] sm:$0xff] %vm8413_vm7, %v1478_v33  ;;  %v2595_v39 = vpop.permute.xlu0 %2594  ;;  %v1584_v14 = vld [vmem:[#allocation4 + $0x100] sm:$0xff] }
 0x1e1   : > { %2504 = vrot.lane.b32.xlu1 %v6526_v31, %s5566_s30  ;;  %2646 = vst.msk [vmem:[#allocation4 + $0x20] sm:$0xff] %vm8413_vm7, %v2595_v39  ;;  %v6619_v33 = vld [vmem:[#allocation2 + $0x11c] sm:$0xff] }
 0x1e2   : > { %1966 = vrot.lane.b32.xlu0 %v1918_v38, %s5560_s10 }
 0x1e3   : > { %v2489_v46 = vpop.permute.xlu1 %2488 }
 0x1e4   : > { %2539 = vst.msk [vmem:[#allocation4 + $0x30] sm:$0xff] %vm8414_vm6, %v2489_v46  ;;  %v1951_v48 = vpop.permute.xlu0 %1950  ;;  %v432_v46 = vmul.u32 18, %v431_v5 }
 0x1e5   : > { %2612 = vrot.lane.b32.xlu1 %v2565_v44, %s5567_s6  ;;  %2000 = vst.msk [vmem:[#allocation4 + $0x40] sm:$0xff] %vm8418_vm1, %v1951_v48  ;;  %v422_v44 = vsub.s32 %v6548_v37, %v421_v29  ;;  %v2567_v37 = vld [vmem:[#allocation2 + $0x11d] sm:$0xff] }
 0x1e6   : > { %2074 = vrot.lane.b32.xlu0 %v2132_v56, %s5561_s11  ;;  %v411_v56 = vsub.s32 %v6523_v19, %v410_v43  ;;  %v8452_v19 = vmov 0  ;;  %v433_v55 = vsub.s32 %v6561_v10, %v432_v46 }
 0x1e7   : > { %v2597_v22 = vpop.permute.xlu1 %2596  ;;  %v1586_v49 = vld [vmem:[#allocation4 + $0x110] sm:$0xff]  ;;  %v8453_v19 = vsel %vm6615_vm14, 4294967295, %v8452_v19  ;;  %vm592_vm8 = vcmp.ne.s32.totalorder %v422_v44, 0  ;;  %vm610_vm9 = vcmp.lt.s32.totalorder %v422_v44, 0 }
 0x1e8   : > { %2647 = vst.msk [vmem:[#allocation4 + $0x30] sm:$0xff] %vm8413_vm7, %v2597_v22  ;;  %v1604_v34 = vpack.c.bf16 %v1586_v49, %v1584_v14  ;;  %v2059_v50 = vpop.permute.xlu0 %2058  ;;  %v2702_v12 = vld [vmem:[#allocation4 + $0x20] sm:$0xff]  ;;  %vm591_vm11 = vcmp.ne.s32.totalorder %v411_v56, 0  ;;  %vm609_vm12 = vcmp.lt.s32.totalorder %v411_v56, 0  ;;  %v645_v27 = vadd.s32 18, %v411_v56  ;;  %vm6664_vm10 = vmand %vm610_vm9, %vm592_vm8 }
 0x1e9   : > { %1968 = vrot.lane.b32.xlu1 %v1919_v20, %s5560_s10  ;;  %2108 = vst.msk [vmem:[#allocation4 + $0x40] sm:$0xff] %vm8417_vm2, %v2059_v50  ;;  %vm6604_vm13 = vmand %vm609_vm12, %vm591_vm11  ;;  %v6632_v18 = vmul.u32.u64.low 3817748708, %v6612_v8  ;;  %v6633_v20 = vmul.u32.u64.high 3817748708, %v6612_v8, %v6632_v18  ;;  %v6636_v22 = vadd.s32 40, %v6511_v1  ;;  %v8454_v49 = vmov 0 }
 0x1ea   : > { %1790 = vmatmul.mubr.bf16.gmra.mxu0 %v1604_v34  ;;  %2182 = vrot.lane.b32.xlu0 %v6545_v35, %s5562_s12  ;;  %vm593_vm11 = vcmp.ne.s32.totalorder %v433_v55, 0  ;;  %vm611_vm12 = vcmp.lt.s32.totalorder %v433_v55, 0  ;;  %v647_v62 = vadd.s32 18, %v433_v55 }
 0x1eb   : > { %v1953_v53 = vpop.permute.xlu1 %1952  ;;  %v6652_v58 = vmul.u32.u64.low 3817748708, %v6636_v22  ;;  %v6653_v36 = vmul.u32.u64.high 3817748708, %v6636_v22, %v6652_v58 }
 0x1ec   : > { %2001 = vst.msk [vmem:[#allocation4 + $0x50] sm:$0xff] %vm8418_vm1, %v1953_v53  ;;  %v2167_v11 = vpop.permute.xlu0 %2166  ;;  %v2568_v58 = vld [vmem:[#allocation2 + $0x125] sm:$0xff] }
 0x1ed   : > { %2076 = vrot.lane.b32.xlu1 %v6497_v21, %s5561_s11  ;;  %2216 = vst.msk [vmem:[#allocation4 + $0x40] sm:$0xff] %vm8412_vm3, %v2167_v11  ;;  %v453_v21 = vshrl.u32 %v6653_v36, 4 }
 0x1ee   : > { %2290 = vrot.lane.b32.xlu0 %v2242_v54, %s5564_s13 }
 0x1ef   : > { %v2061_v59 = vpop.permute.xlu1 %2060  ;;  %v2704_v15 = vld [vmem:[#allocation4 + $0x30] sm:$0xff] }
 0x1f0   : > { %2109 = vst.msk [vmem:[#allocation4 + $0x50] sm:$0xff] %vm8417_vm2, %v2061_v59  ;;  %v2736_v47 = vpack.c.bf16 %v2704_v15, %v2702_v12  ;;  %v2275_v51 = vpop.permute.xlu0 %2274  ;;  %v646_v12 = vadd.s32 18, %v422_v44  ;;  %v442_v59 = vshrl.u32 %v6633_v20, 4 }
 0x1f1   : > { %2184 = vrot.lane.b32.xlu1 %v6567_v57, %s5562_s12  ;;  %2324 = vst.msk [vmem:[#allocation4 + $0x40] sm:$0xff] %vm8415_vm4, %v2275_v51  ;;  %v2713_v51 = vld [vmem:[#allocation4 + $0x78] sm:$0xff] }
 0x1f2   : > { %2820 = vmatmul.mubr.bf16.gmra.mxu1 %v2736_v47  ;;  %2398 = vrot.lane.b32.xlu0 %v6508_v28, %s5565_s23  ;;  %v6602_v28 = vld [vmem:[%s8408_s2] ss:$0 sm:$0xff]  ;;  %v2244_v47 = vld [vmem:[#allocation2 + $0x113] sm:$0xff]  ;;  %v443_v17 = vmul.u32 18, %v442_v59  ;;  %v2741_v4 = vpack.c.bf16 %v2713_v51, %v2711_v2 }
 0x1f3   : > { %v2169_v13 = vpop.permute.xlu1 %2168  ;;  %5322 = vmatprep.mubr.msk.bf16.mxu1 %vm8423_vm0, %v2739_v45  ;;  %v664_v45 = vsel %vm6664_vm10, %v646_v12, %v422_v44 }
 0x1f4   : > { %2217 = vst.msk [vmem:[#allocation4 + $0x50] sm:$0xff] %vm8412_vm3, %v2169_v13  ;;  %v2383_v24 = vpop.permute.xlu0 %2382  ;;  %vm6688_vm8 = vcmp.lt.s32.totalorder %v664_v45, 16 }
 0x1f5   : > { %2292 = vrot.lane.b32.xlu1 %v2243_v7, %s5564_s13  ;;  %2432 = vst.msk [vmem:[#allocation4 + $0x40] sm:$0xff] %vm8416_vm5, %v2383_v24 }
 0x1f6   : > { %2506 = vrot.lane.b32.xlu0 %v6584_v60, %s5566_s30 }
 0x1f7   : > { %v2277_v26 = vpop.permute.xlu1 %2276 }
 0x1f8   : > { %2325 = vst.msk [vmem:[#allocation4 + $0x50] sm:$0xff] %vm8415_vm4, %v2277_v26  ;;  %v2491_v6 = vpop.permute.xlu0 %2490 }
 0x1f9   : > { %2400 = vrot.lane.b32.xlu1 %v6526_v31, %s5565_s23  ;;  %2540 = vst.msk [vmem:[#allocation4 + $0x40] sm:$0xff] %vm8414_vm6, %v2491_v6  ;;  %v663_v31 = vsel %vm6604_vm13, %v645_v27, %v411_v56  ;;  %vm6677_vm13 = vmand %vm611_vm12, %vm593_vm11  ;;  %v6682_v56 = vadd.s32 48, %v6511_v1 }
 0x1fa   : > { %v1727_v32 = vpop.f32.mrf.mxu0  ;;  %2614 = vrot.lane.b32.xlu0 %v2566_v61, %s5567_s6  ;;  %vm6640_vm15 = vcmp.lt.s32.totalorder %v663_v31, 16 }
 0x1fb   : > { %v1728_v38 = vadd.f32 %v6602_v28, %v1727_v32  ;;  %v2385_v39 = vpop.permute.xlu1 %2384  ;;  %v8455_v49 = vsel %vm6640_vm15, 4294967295, %v8454_v49  ;;  %v6701_v6 = vmul.u32.u64.low 3817748708, %v6682_v56  ;;  %v6702_v32 = vmul.u32.u64.high 3817748708, %v6682_v56, %v6701_v6 }
 0x1fc   : > { %2433 = vst.msk [vmem:[#allocation4 + $0x50] sm:$0xff] %vm8416_vm5, %v2385_v39  ;;  %v1729_v40 = vpop.f32.mrf.mxu0  ;;  %v2599_v14 = vpop.permute.xlu0 %2598 }
 0x1fd   : > { %v1834_v48 = vsel %vm6615_vm14, %v1728_v38, 0.0  ;;  %2508 = vrot.lane.b32.xlu1 %v6619_v33, %s5566_s30  ;;  %2648 = vst.msk [vmem:[#allocation4 + $0x40] sm:$0xff] %vm8413_vm7, %v2599_v14  ;;  %v6705_v38 = vadd.s32 56, %v6511_v1  ;;  %v444_v40 = vsub.s32 %v6612_v8, %v443_v17  ;;  %v1886_v14 = vld [vmem:[#allocation2 + $0x110] sm:$0xff] }
 0x1fe   : > { %1852 = vst.msk [vmem:[#allocation3 + $0x13] sm:$0xff] %vm8423_vm0, %v1834_v48  ;;  %v1730_v34 = vpop.f32.mrf.mxu0  ;;  %1970 = vrot.lane.b32.xlu0 %v1920_v41, %s5560_s10  ;;  %v454_v41 = vmul.u32 18, %v453_v21  ;;  %v2245_v48 = vld [vmem:[#allocation2 + $0x11b] sm:$0xff]  ;;  %1904 = vst.msk [vmem:[#allocation4 + $0x100] sm:$0xff] %vm8423_vm0, %v1886_v14 }
 0x1ff   : > { %v1731_v50 = vadd.f32 %v6602_v28, %v1730_v34  ;;  %v2493_v30 = vpop.permute.xlu1 %2492  ;;  %v6724_v34 = vld [vmem:[#allocation2 + $0x124] sm:$0xff]  ;;  %vm594_vm10 = vcmp.ne.s32.totalorder %v444_v40, 0  ;;  %vm612_vm11 = vcmp.lt.s32.totalorder %v444_v40, 0 }
 0x200   : > { %2541 = vst.msk [vmem:[#allocation4 + $0x50] sm:$0xff] %vm8414_vm6, %v2493_v30  ;;  %v1732_v52 = vpop.f32.mrf.mxu0  ;;  %v1955_v54 = vpop.permute.xlu0 %1954  ;;  %vm6740_vm12 = vmand %vm612_vm11, %vm594_vm10 }
 0x201   : > { %v1835_v53 = vsel %vm6640_vm15, %v1731_v50, 0.0  ;;  %2616 = vrot.lane.b32.xlu1 %v2567_v37, %s5567_s6  ;;  %2002 = vst.msk [vmem:[#allocation4 + $0x60] sm:$0xff] %vm8418_vm1, %v1955_v54  ;;  %v6727_v37 = vmul.u32.u64.low 3817748708, %v6705_v38  ;;  %v6728_v50 = vmul.u32.u64.high 3817748708, %v6705_v38, %v6727_v37 }
 0x202   : > { %1853 = vst.msk [vmem:[#allocation3 + $0x1b] sm:$0xff] %vm8423_vm0, %v1835_v53  ;;  %2078 = vrot.lane.b32.xlu0 %v6545_v35, %s5561_s11  ;;  %v1887_v53 = vld [vmem:[#allocation2 + $0x118] sm:$0xff] }
 0x203   : > { %v2601_v11 = vpop.permute.xlu1 %2600  ;;  %1905 = vst.msk [vmem:[#allocation4 + $0x110] sm:$0xff] %vm8423_vm0, %v1887_v53  ;;  %v475_v45 = vshrl.u32 %v6728_v50, 4  ;;  %v2715_v50 = vld [vmem:[#allocation4 + $0x88] sm:$0xff] }
 0x204   : > { %2649 = vst.msk [vmem:[#allocation4 + $0x50] sm:$0xff] %vm8413_vm7, %v2601_v11  ;;  %v2063_v43 = vpop.permute.xlu0 %2062  ;;  %v2706_v13 = vld [vmem:[#allocation4 + $0x40] sm:$0xff]  ;;  %v6748_v11 = vld [vmem:[#allocation2 + $0x12c] sm:$0xff] }
 0x205   : > { %1972 = vrot.lane.b32.xlu1 %v1921_v3, %s5560_s10  ;;  %2110 = vst.msk [vmem:[#allocation4 + $0x60] sm:$0xff] %vm8417_vm2, %v2063_v43  ;;  %v2943_v35 = vld [vmem:[#allocation3 + $0x10] sm:$0xff] }
 0x206   : > { %2186 = vrot.lane.b32.xlu0 %v6660_v42, %s5562_s12  ;;  %2961 = vst.msk [vmem:[#allocation4 + $0x20] sm:$0xff] %vm8423_vm0, %v2943_v35  ;;  %v1922_v35 = vld [vmem:[#allocation2 + $0x111] sm:$0xff] }
 0x207   : > { %v1957_v15 = vpop.permute.xlu1 %1956 }
 0x208   : > { %2003 = vst.msk [vmem:[#allocation4 + $0x70] sm:$0xff] %vm8418_vm1, %v1957_v15  ;;  %v2171_v7 = vpop.permute.xlu0 %2170 }
 0x209   : > { %2080 = vrot.lane.b32.xlu1 %v6567_v57, %s5561_s11  ;;  %2218 = vst.msk [vmem:[#allocation4 + $0x60] sm:$0xff] %vm8412_vm3, %v2171_v7  ;;  %v2944_v26 = vld [vmem:[#allocation3 + $0x18] sm:$0xff]  ;;  %v665_v57 = vsel %vm6677_vm13, %v647_v62, %v433_v55  ;;  %v648_v55 = vadd.s32 18, %v444_v40 }
 0x20a   : > { %v1735_v24 = vpop.f32.mrf.mxu0  ;;  %2294 = vrot.lane.b32.xlu0 %v2244_v47, %s5564_s13  ;;  %2962 = vst.msk [vmem:[#allocation4 + $0x30] sm:$0xff] %vm8423_vm0, %v2944_v26  ;;  %vm6714_vm9 = vcmp.lt.s32.totalorder %v665_v57, 16  ;;  %v2569_v7 = vld [vmem:[#allocation2 + $0x12d] sm:$0xff] }
 0x20b   : > { %v1736_v16 = vadd.f32 %v6602_v28, %v1735_v24  ;;  %v2065_v27 = vpop.permute.xlu1 %2064  ;;  %v2708_v61 = vld [vmem:[#allocation4 + $0x50] sm:$0xff]  ;;  %v666_v43 = vsel %vm6740_vm12, %v648_v55, %v444_v40 }
 0x20c   : > { %2111 = vst.msk [vmem:[#allocation4 + $0x70] sm:$0xff] %vm8417_vm2, %v2065_v27  ;;  %v1737_v29 = vpop.f32.mrf.mxu0  ;;  %v2738_v5 = vpack.c.bf16 %v2708_v61, %v2706_v13  ;;  %v2279_v31 = vpop.permute.xlu0 %2278  ;;  %vm6767_vm11 = vcmp.lt.s32.totalorder %v666_v43, 16  ;;  %v476_v27 = vmul.u32 18, %v475_v45  ;;  %v2139_v55 = vld [vmem:[#allocation2 + $0x12a] sm:$0xff] }
 0x20d   : > { %v1836_v39 = vsel %vm6688_vm8, %v1736_v16, 0.0  ;;  %2188 = vrot.lane.b32.xlu1 %v6692_v25, %s5562_s12  ;;  %2326 = vst.msk [vmem:[#allocation4 + $0x60] sm:$0xff] %vm8415_vm4, %v2279_v31  ;;  %v5491_v43 = vld [vmem:[%s8407_s1 + $0x50] sm:$0xff]  }
 0x20e   : > { %1854 = vst.msk [vmem:[#allocation3 + $0x23] sm:$0xff] %vm8423_vm0, %v1836_v39  ;;  %v1738_v46 = vpop.f32.mrf.mxu0  ;;  %2828 = vmatmul.mubr.bf16.gmra.mxu1 %v2738_v5  ;;  %2402 = vrot.lane.b32.xlu0 %v6584_v60, %s5565_s23  ;;  %v455_v60 = vsub.s32 %v6636_v22, %v454_v41  ;;  %v464_v22 = vshrl.u32 %v6702_v32, 4  ;;  %v6788_v5 = vadd.s32 72, %v6511_v1  ;;  %v1923_v32 = vld [vmem:[#allocation2 + $0x119] sm:$0xff]  ;;  %v2138_v41 = vld [vmem:[#allocation2 + $0x122] sm:$0xff]  ;;  %v6806_v14 = vsub.s32 %v6705_v38, %v476_v27 }
 0x20f   : > { %v1739_v18 = vadd.f32 %v6602_v28, %v1738_v46  ;;  %v2173_v20 = vpop.permute.xlu1 %2172  ;;  %5323 = vmatprep.mubr.msk.bf16.mxu1 %vm8423_vm0, %v2741_v4  ;;  %v6784_v4 = vmul.u32.u64.low 3817748708, %v6763_v63  ;;  %v6785_v29 = vmul.u32.u64.high 3817748708, %v6763_v63, %v6784_v4 }
 0x210   : > { %2219 = vst.msk [vmem:[#allocation4 + $0x70] sm:$0xff] %vm8412_vm3, %v2173_v20  ;;  %v1740_v8 = vpop.f32.mrf.mxu0  ;;  %v2387_v52 = vpop.permute.xlu0 %2386  ;;  %vm595_vm13 = vcmp.ne.s32.totalorder %v455_v60, 0  ;;  %vm613_vm3 = vcmp.lt.s32.totalorder %v455_v60, 0  ;;  %v649_v59 = vadd.s32 18, %v455_v60  ;;  %v465_v15 = vmul.u32 18, %v464_v22 }
 0x211   : > { %v1837_v30 = vsel %vm6714_vm9, %v1739_v18, 0.0  ;;  %2296 = vrot.lane.b32.xlu1 %v2245_v48, %s5564_s13  ;;  %2434 = vst.msk [vmem:[#allocation4 + $0x60] sm:$0xff] %vm8416_vm5, %v2387_v52  ;;  %vm6755_vm10 = vmand %vm613_vm3, %vm595_vm13  ;;  %v2246_v8 = vld [vmem:[#allocation2 + $0x123] sm:$0xff]  ;;  %v651_v22 = vadd.s32 18, %v6806_v14 }
 0x212   : > { %1855 = vst.msk [vmem:[#allocation3 + $0x2b] sm:$0xff] %vm8423_vm0, %v1837_v30  ;;  %2510 = vrot.lane.b32.xlu0 %v6724_v34, %s5566_s30  ;;  %v667_v21 = vsel %vm6755_vm10, %v649_v59, %v455_v60  ;;  %v6777_v16 = vsub.s32 %v6682_v56, %v465_v15  ;;  %v2717_v30 = vld [vmem:[#allocation4 + $0x98] sm:$0xff]  ;;  %v6845_v59 = vadd.s32 80, %v6511_v1 }
 0x213   : > { %v2281_v54 = vpop.permute.xlu1 %2280  ;;  %vm6792_vm3 = vcmp.lt.s32.totalorder %v667_v21, 16 }
 0x214   : > { %2327 = vst.msk [vmem:[#allocation4 + $0x70] sm:$0xff] %vm8415_vm4, %v2281_v54  ;;  %v2495_v3 = vpop.permute.xlu0 %2494  ;;  %vm596_vm12 = vcmp.ne.s32.totalorder %v6777_v16, 0  ;;  %vm614_vm13 = vcmp.lt.s32.totalorder %v6777_v16, 0  ;;  %v650_v37 = vadd.s32 18, %v6777_v16  ;;  %v486_v54 = vshrl.u32 %v6785_v29, 4 }
 0x215   : > { %2404 = vrot.lane.b32.xlu1 %v6619_v33, %s5565_s23  ;;  %2542 = vst.msk [vmem:[#allocation4 + $0x60] sm:$0xff] %vm8414_vm6, %v2495_v3  ;;  %v2945_v12 = vld [vmem:[#allocation3 + $0x20] sm:$0xff]  ;;  %vm6819_vm10 = vmand %vm614_vm13, %vm596_vm12  ;;  %vm8474_vm12 = vcmask 523648   ;;  %v2743_v3 = vpack.c.bf16 %v2717_v30, %v2715_v50  ;;  %v2463_v50 = vld [vmem:[#allocation2 + $0x13c] sm:$0xff] }
 0x216   : > { %2618 = vrot.lane.b32.xlu0 %v2568_v58, %s5567_s6  ;;  %2963 = vst.msk [vmem:[#allocation4 + $0x40] sm:$0xff] %vm8423_vm0, %v2945_v12  ;;  %v668_v36 = vsel %vm6819_vm10, %v650_v37, %v6777_v16  ;;  %v487_v45 = vmul.u32 18, %v486_v54  ;;  %v2462_v16 = vld [vmem:[#allocation2 + $0x134] sm:$0xff] }
 0x217   : > { %v2389_v10 = vpop.permute.xlu1 %2388  ;;  %v2942_v30 = vld [vmem:[#allocation3 + $0x8] sm:$0xff] }
 0x218   : > { %2435 = vst.msk [vmem:[#allocation4 + $0x70] sm:$0xff] %vm8416_vm5, %v2389_v10  ;;  %v2603_v62 = vpop.permute.xlu0 %2602 }
 0x219   : > { %v3733_v47 = vld [vmem:[#allocation3 + $0x26] sm:$0xff]  ;;  %2512 = vrot.lane.b32.xlu1 %v6748_v11, %s5566_s30  ;;  %2650 = vst.msk [vmem:[#allocation4 + $0x60] sm:$0xff] %vm8413_vm7, %v2603_v62 }
 0x21a   : > { %3751 = vst.msk [vmem:[#allocation4 + $0x8] sm:$0xff] %vm8423_vm0, %v3733_v47  ;;  %v1743_v51 = vpop.f32.mrf.mxu0  ;;  %1974 = vrot.lane.b32.xlu0 %v1922_v35, %s5560_s10  ;;  %v2946_v24 = vld [vmem:[#allocation3 + $0x28] sm:$0xff]  ;;  %v2941_v35 = vld [vmem:[#allocation3] sm:$0xff]  ;;  %2960 = vst.msk [vmem:[#allocation4 + $0x10] sm:$0xff] %vm8423_vm0, %v2942_v30 }
 0x21b   : > { %v1744_v13 = vadd.f32 %v6602_v28, %v1743_v51  ;;  %v2497_v17 = vpop.permute.xlu1 %2496  ;;  %2964 = vst.msk [vmem:[#allocation4 + $0x50] sm:$0xff] %vm8423_vm0, %v2946_v24  ;;  %2959 = vst.msk [vmem:[#allocation4] sm:$0xff] %vm8423_vm0, %v2941_v35 }
 0x21c   : > { %2543 = vst.msk [vmem:[#allocation4 + $0x70] sm:$0xff] %vm8414_vm6, %v2497_v17  ;;  %v1745_v26 = vpop.f32.mrf.mxu0  ;;  %v1959_v61 = vpop.permute.xlu0 %1958  ;;  %vm615_vm6 = vcmp.lt.s32.totalorder %v6806_v14, 0 }
 0x21d   : > { %v1838_v57 = vsel %vm6767_vm11, %v1744_v13, 0.0  ;;  %2620 = vrot.lane.b32.xlu1 %v2569_v7, %s5567_s6  ;;  %2004 = vst.msk [vmem:[#allocation4 + $0x80] sm:$0xff] %vm8418_vm1, %v1959_v61  ;;  %v2247_v7 = vld [vmem:[#allocation2 + $0x12b] sm:$0xff]  ;;  %v6870_v61 = vadd.s32 88, %v6511_v1 }
 0x21e   : > { %1856 = vst.msk [vmem:[#allocation3 + $0x33] sm:$0xff] %vm8423_vm0, %v1838_v57  ;;  %v1746_v6 = vpop.f32.mrf.mxu0  ;;  %2082 = vrot.lane.b32.xlu0 %v6660_v42, %s5561_s11  ;;  %v6809_v42 = vmul.u32.u64.low 3817748708, %v6788_v5  ;;  %v6810_v18 = vmul.u32.u64.high 3817748708, %v6788_v5, %v6809_v42  ;;  %v6866_v27 = vmul.u32.u64.low 3817748708, %v6845_v59  ;;  %v6867_v57 = vmul.u32.u64.high 3817748708, %v6845_v59, %v6866_v27 }
 0x21f   : > { %v1747_v39 = vadd.f32 %v6602_v28, %v1746_v6  ;;  %v2605_v31 = vpop.permute.xlu1 %2604  ;;  %v2570_v42 = vld [vmem:[#allocation2 + $0x135] sm:$0xff] }
 0x220   : > { %2651 = vst.msk [vmem:[#allocation4 + $0x70] sm:$0xff] %vm8413_vm7, %v2605_v31  ;;  %v1748_v40 = vpop.f32.mrf.mxu0  ;;  %v2067_v48 = vpop.permute.xlu0 %2066  ;;  %v2710_v53 = vld [vmem:[#allocation4 + $0x60] sm:$0xff]  ;;  %vm597_vm7 = vcmp.ne.s32.totalorder %v6806_v14, 0  ;;  %v497_v47 = vshrl.u32 %v6810_v18, 4  ;;  %v8480_v31 = vmov 0  ;;  %v508_v54 = vshrl.u32 %v6867_v57, 4 }
 0x221   : > { %v1839_v46 = vsel %vm6792_vm3, %v1747_v39, 0.0  ;;  %1976 = vrot.lane.b32.xlu1 %v1923_v32, %s5560_s10  ;;  %2112 = vst.msk [vmem:[#allocation4 + $0x80] sm:$0xff] %vm8417_vm2, %v2067_v48  ;;  %vm6840_vm13 = vmand %vm615_vm6, %vm597_vm7  ;;  %vm6853_vm6 = vcmp.lt.s32.totalorder %v668_v36, 16  ;;  %v3770_v29 = vld [vmem:[#allocation4 + $0x8] sm:$0xff]  ;;  %v6877_v32 = vsub.s32 %v6763_v63, %v487_v45  ;;  %v2571_v36 = vld [vmem:[#allocation2 + $0x13d] sm:$0xff] }
 0x222   : > { %1857 = vst.msk [vmem:[#allocation3 + $0x3b] sm:$0xff] %vm8423_vm0, %v1839_v46  ;;  %2190 = vrot.lane.b32.xlu0 %v2138_v41, %s5562_s12  ;;  %v669_v21 = vsel %vm6840_vm13, %v651_v22, %v6806_v14  ;;  %vm8479_vm7 = vmmov %vm8474_vm12  ;;  %v498_v39 = vmul.u32 18, %v497_v47  ;;  %v5485_v46 = vld [vmem:[%s8407_s1 + $0x80] sm:$0xff]   ;;  %v509_v35 = vmul.u32 18, %v508_v54  ;;  %v6950_v47 = vadd.s32 96, %v6511_v1 }
 0x223   : > { %v1961_v20 = vpop.permute.xlu1 %1960  ;;  %vm6881_vm10 = vcmp.lt.s32.totalorder %v669_v21, 16  ;;  %3911 = vmatpush1.bf16.msra.mxu0 %v5485_v46  ;;  %vm616_vm13 = vcmp.lt.s32.totalorder %v6877_v32, 0  ;;  %4985 = vmatpush1.bf16.msra.mxu1 %v5485_v46  ;;  %v6989_v46 = vld [vmem:[#allocation3 + $0x12] sm:$0xff] }
 0x224   : > { %2005 = vst.msk [vmem:[#allocation4 + $0x90] sm:$0xff] %vm8418_vm1, %v1961_v20  ;;  %v2175_v60 = vpop.permute.xlu0 %2174  ;;  %v8481_v31 = vsel %vm6881_vm10, 4294967295, %v8480_v31  ;;  %v6893_v18 = vmul.u32.u64.low 3817748708, %v6870_v61  ;;  %v6894_v20 = vmul.u32.u64.high 3817748708, %v6870_v61, %v6893_v18  ;;  %v6903_v38 = vsub.s32 %v6788_v5, %v498_v39  ;;  %3912 = vmatprep.subr.bf16.mxu0 %v5563_v9  ;;  %4986 = vmatprep.subr.bf16.mxu1 %v5563_v9  ;;  %v2977_v5 = vld [vmem:[#allocation3 + $0x1] sm:$0xff] }
 0x225   : > { %v3734_v52 = vld [vmem:[#allocation3 + $0x2e] sm:$0xff]  ;;  %2084 = vrot.lane.b32.xlu1 %v6692_v25, %s5561_s11  ;;  %2220 = vst.msk [vmem:[#allocation4 + $0x80] sm:$0xff] %vm8474_vm12, %v2175_v60  ;;  %vm598_vm12 = vcmp.ne.s32.totalorder %v6877_v32, 0  ;;  %v652_v60 = vadd.s32 18, %v6877_v32  ;;  %v6970_v27 = vsub.s32 %v6845_v59, %v509_v35  ;;  %v6980_v39 = vadd.s32 104, %v6511_v1 }
 0x226   : > { %3752 = vst.msk [vmem:[#allocation4 + $0x18] sm:$0xff] %vm8423_vm0, %v3734_v52  ;;  %2298 = vrot.lane.b32.xlu0 %v2246_v8, %s5564_s13  ;;  %v2947_v12 = vld [vmem:[#allocation3 + $0x30] sm:$0xff]  ;;  %v5486_v52 = vld [vmem:[%s8407_s1 + $0x78] sm:$0xff]  }
 0x227   : > { %v2069_v58 = vpop.permute.xlu1 %2068  ;;  %v2712_v25 = vld [vmem:[#allocation4 + $0x70] sm:$0xff]  ;;  %2965 = vst.msk [vmem:[#allocation4 + $0x60] sm:$0xff] %vm8423_vm0, %v2947_v12  ;;  %3913 = vmatpush1.bf16.msra.mxu0 %v5486_v52  ;;  %4987 = vmatpush1.bf16.msra.mxu1 %v5486_v52  ;;  %v653_v12 = vadd.s32 18, %v6903_v38  ;;  %v3301_v52 = vld [vmem:[#allocation3 + $0x13] sm:$0xff] }
 0x228   : > { %2113 = vst.msk [vmem:[#allocation4 + $0x90] sm:$0xff] %vm8417_vm2, %v2069_v58  ;;  %v2740_v10 = vpack.c.bf16 %v2712_v25, %v2710_v53  ;;  %v2283_v15 = vpop.permute.xlu0 %2282  ;;  %3914 = vmatprep.subr.bf16.mxu0 %v5563_v9  ;;  %vm8485_vm2 = vcmask 1048448   ;;  %v5487_v25 = vld [vmem:[%s8407_s1 + $0x70] sm:$0xff]   ;;  %4988 = vmatprep.subr.bf16.mxu1 %v5563_v9 }
 0x229   : > { %v3735_v33 = vld [vmem:[#allocation3 + $0x36] sm:$0xff]  ;;  %2192 = vrot.lane.b32.xlu1 %v2139_v55, %s5562_s12  ;;  %2328 = vst.msk [vmem:[#allocation4 + $0x80] sm:$0xff] %vm8415_vm4, %v2283_v15 }
 0x22a   : > { %3753 = vst.msk [vmem:[#allocation4 + $0x28] sm:$0xff] %vm8423_vm0, %v3735_v33  ;;  %v1751_v51 = vpop.f32.mrf.mxu0  ;;  %2836 = vmatmul.mubr.bf16.gmra.mxu1 %v2740_v10  ;;  %2406 = vrot.lane.b32.xlu0 %v6724_v34, %s5565_s23  ;;  %v2948_v24 = vld [vmem:[#allocation3 + $0x38] sm:$0xff]  ;;  %v3085_v10 = vld [vmem:[#allocation3 + $0x2] sm:$0xff]  ;;  %v519_v33 = vshrl.u32 %v6894_v20, 4 }
 0x22b   : > { %v1752_v13 = vadd.f32 %v6602_v28, %v1751_v51  ;;  %v2177_v17 = vpop.permute.xlu1 %2176  ;;  %5324 = vmatprep.mubr.msk.bf16.mxu1 %vm8423_vm0, %v2743_v3  ;;  %2966 = vst.msk [vmem:[#allocation4 + $0x70] sm:$0xff] %vm8423_vm0, %v2948_v24  ;;  %3915 = vmatpush1.bf16.msra.mxu0 %v5487_v25  ;;  %v8489_v51 = vmov 0  ;;  %v2721_v20 = vld [vmem:[#allocation4 + $0xb8] sm:$0xff] }
 0x22c   : > { %2221 = vst.msk [vmem:[#allocation4 + $0x90] sm:$0xff] %vm8479_vm7, %v2177_v17  ;;  %v1753_v26 = vpop.f32.mrf.mxu0  ;;  %v2391_v4 = vpop.permute.xlu0 %2390  ;;  %vm8482_vm7 = vcmask 917248   ;;  %3916 = vmatprep.subr.bf16.mxu0 %v5563_v9  ;;  %v5488_v17 = vld [vmem:[%s8407_s1 + $0x68] sm:$0xff]   ;;  %4989 = vmatpush1.bf16.msra.mxu1 %v5487_v25  ;;  %v520_v57 = vmul.u32 18, %v519_v33 }
 0x22d   : > { %v1840_v34 = vsel %vm6853_vm6, %v1752_v13, 0.0  ;;  %2300 = vrot.lane.b32.xlu1 %v2247_v7, %s5564_s13  ;;  %v3772_v6 = vld [vmem:[#allocation4 + $0x18] sm:$0xff]  ;;  %2436 = vst.msk [vmem:[#allocation4 + $0x80] sm:$0xff] %vm8416_vm5, %v2391_v4  ;;  %4990 = vmatprep.subr.bf16.mxu1 %v5563_v9 }
 0x22e   : > { %1858 = vst.msk [vmem:[#allocation3 + $0x43] sm:$0xff] %vm8423_vm0, %v1840_v34  ;;  %v1754_v40 = vpop.f32.mrf.mxu0  ;;  %v3806_v41 = vpack.c.bf16 %v3772_v6, %v3770_v29  ;;  %2514 = vrot.lane.b32.xlu0 %v2462_v16, %s5566_s30  ;;  %v2978_v13 = vld [vmem:[#allocation3 + $0x9] sm:$0xff] }
 0x22f   : > { %v1755_v48 = vadd.f32 %v6602_v28, %v1754_v40  ;;  %v2285_v63 = vpop.permute.xlu1 %2284  ;;  %3917 = vmatpush1.bf16.msra.mxu0 %v5488_v17  ;;  %v8493_v40 = vmov 0 }
 0x230   : > { %2329 = vst.msk [vmem:[#allocation4 + $0x90] sm:$0xff] %vm8415_vm4, %v2285_v63  ;;  %v1756_v14 = vpop.f32.mrf.mxu0  ;;  %5358 = vmatprep.mubr.msk.bf16.mxu0 %vm8423_vm0, %v3806_v41  ;;  %v2499_v37 = vpop.permute.xlu0 %2498  ;;  %vm599_vm4 = vcmp.ne.s32.totalorder %v6903_v38, 0  ;;  %3918 = vmatprep.subr.bf16.mxu0 %v5563_v9  ;;  %v5489_v63 = vld [vmem:[%s8407_s1 + $0x60] sm:$0xff]  }
 0x231   : > { %v1841_v8 = vsel %vm6881_vm10, %v1755_v48, 0.0  ;;  %2408 = vrot.lane.b32.xlu1 %v6748_v11, %s5565_s23  ;;  %2544 = vst.msk [vmem:[#allocation4 + $0x80] sm:$0xff] %vm8482_vm7, %v2499_v37  ;;  %vm6920_vm7 = vmand %vm616_vm13, %vm598_vm12  ;;  %vm8486_vm12 = vcmask 917248   ;;  %vm8492_vm13 = vcmask 392448   ;;  %v3086_v48 = vld [vmem:[#allocation3 + $0xa] sm:$0xff]  ;;  %4991 = vmatpush1.bf16.msra.mxu1 %v5488_v17  ;;  %vm8546_vm10 = vcmask 523648  }
 0x232   : > { %1859 = vst.msk [vmem:[#allocation3 + $0x4b] sm:$0xff] %vm8423_vm0, %v1841_v8  ;;  %2622 = vrot.lane.b32.xlu0 %v2570_v42, %s5567_s6  ;;  %v670_v3 = vsel %vm6920_vm7, %v652_v60, %v6877_v32  ;;  %v6976_v6 = vmul.u32.u64.low 3817748708, %v6950_v47  ;;  %v6977_v32 = vmul.u32.u64.high 3817748708, %v6950_v47, %v6976_v6  ;;  %4992 = vmatprep.subr.bf16.mxu1 %v5563_v9  ;;  %v5490_v60 = vld [vmem:[%s8407_s1 + $0x58] sm:$0xff]  }
 0x233   : > { %v2393_v11 = vpop.permute.xlu1 %2392  ;;  %3919 = vmatpush1.bf16.msra.mxu0 %v5489_v63 }
 0x234   : > { %2437 = vst.msk [vmem:[#allocation4 + $0x90] sm:$0xff] %vm8416_vm5, %v2393_v11  ;;  %v2607_v58 = vpop.permute.xlu0 %2606  ;;  %vm617_vm5 = vcmp.lt.s32.totalorder %v6903_v38, 0  ;;  %3920 = vmatprep.subr.bf16.mxu0 %v5563_v9  ;;  %v2719_v11 = vld [vmem:[#allocation4 + $0xa8] sm:$0xff] }
 0x235   : > { %v3736_v55 = vld [vmem:[#allocation3 + $0x3e] sm:$0xff]  ;;  %2516 = vrot.lane.b32.xlu1 %v2463_v50, %s5566_s30  ;;  %2652 = vst.msk [vmem:[#allocation4 + $0x80] sm:$0xff] %vm8485_vm2, %v2607_v58  ;;  %vm6943_vm2 = vmand %vm617_vm5, %vm599_vm4  ;;  %vm6955_vm4 = vcmp.lt.s32.totalorder %v670_v3, 16  ;;  %vm8491_vm5 = vcmask 1048448   ;;  %v7009_v50 = vmul.u32.u64.low 3817748708, %v6980_v39  ;;  %v7010_v30 = vmul.u32.u64.high 3817748708, %v6980_v39, %v7009_v50  ;;  %4993 = vmatpush1.bf16.msra.mxu1 %v5489_v63 }
 0x236   : > { %3754 = vst.msk [vmem:[#allocation4 + $0x38] sm:$0xff] %vm8423_vm0, %v3736_v55  ;;  %3013 = vrot.lane.b32.xlu0 %v2977_v5, %s5560_s10  ;;  %v8490_v51 = vsel %vm6955_vm4, 4294967295, %v8489_v51  ;;  %v671_v26 = vsel %vm6943_vm2, %v653_v12, %v6903_v38  ;;  %v2949_v59 = vld [vmem:[#allocation3 + $0x40] sm:$0xff]  ;;  %vm618_vm2 = vcmp.lt.s32.totalorder %v6970_v27, 0  ;;  %v7006_v38 = vsub.s32 %v6870_v61, %v520_v57  ;;  %4994 = vmatprep.subr.bf16.mxu1 %v5563_v9 }
 0x237   : > { %v2501_v22 = vpop.permute.xlu1 %2500  ;;  %vm6985_vm7 = vcmp.lt.s32.totalorder %v671_v26, 16  ;;  %v654_v5 = vadd.s32 18, %v6970_v27  ;;  %v2745_v54 = vpack.c.bf16 %v2721_v20, %v2719_v11  ;;  %v7022_v58 = vld [vmem:[#allocation3 + $0x1a] sm:$0xff]  ;;  %3921 = vmatpush1.bf16.msra.mxu0 %v5490_v60  ;;  %v530_v12 = vshrl.u32 %v6977_v32, 4  ;;  %v2979_v11 = vld [vmem:[#allocation3 + $0x11] sm:$0xff] }
 0x238   : > { %2545 = vst.msk [vmem:[#allocation4 + $0x90] sm:$0xff] %vm8486_vm12, %v2501_v22  ;;  %v1963_v45 = vpop.permute.xlu0 %1962  ;;  %v8494_v40 = vsel %vm6985_vm7, 4294967295, %v8493_v40  ;;  %vm600_vm12 = vcmp.ne.s32.totalorder %v6970_v27, 0  ;;  %3922 = vmatprep.subr.bf16.mxu0 %v5563_v9  ;;  %v3410_v32 = vld [vmem:[#allocation3 + $0x1c] sm:$0xff] }
 0x239   : > { %v3737_v15 = vld [vmem:[#allocation3 + $0x46] sm:$0xff]  ;;  %2624 = vrot.lane.b32.xlu1 %v2571_v36, %s5567_s6  ;;  %2006 = vst.msk [vmem:[#allocation4 + $0xa0] sm:$0xff] %vm8418_vm1, %v1963_v45  ;;  %v3302_v45 = vld [vmem:[#allocation3 + $0x1b] sm:$0xff]  ;;  %4995 = vmatpush1.bf16.msra.mxu1 %v5490_v60  ;;  %v531_v17 = vmul.u32 18, %v530_v12 }
 0x23a   : > { %3755 = vst.msk [vmem:[#allocation4 + $0x48] sm:$0xff] %vm8423_vm0, %v3737_v15  ;;  %v1759_v7 = vpop.f32.mrf.mxu0  ;;  %3121 = vrot.lane.b32.xlu0 %v3085_v10, %s5561_s11  ;;  %v2950_v55 = vld [vmem:[#allocation3 + $0x48] sm:$0xff]  ;;  %v3409_v10 = vld [vmem:[#allocation3 + $0x14] sm:$0xff]  ;;  %v655_v15 = vadd.s32 18, %v7006_v38  ;;  %4996 = vmatprep.subr.bf16.mxu1 %v5563_v9 }
 0x23b   : > { %v1760_v21 = vadd.f32 %v6602_v28, %v1759_v7  ;;  %v2609_v24 = vpop.permute.xlu1 %2608  ;;  %3923 = vmatpush1.bf16.msra.mxu0 %v5491_v43  ;;  %v5493_v20 = vld [vmem:[%s8407_s1 + $0x88] sm:$0xff]  }
 0x23c   : > { %2653 = vst.msk [vmem:[#allocation4 + $0x90] sm:$0xff] %vm8491_vm5, %v2609_v24  ;;  %v1761_v16 = vpop.f32.mrf.mxu0  ;;  %v2071_v4 = vpop.permute.xlu0 %2070  ;;  %v2714_v29 = vld [vmem:[#allocation4 + $0x80] sm:$0xff]  ;;  %vm8495_vm5 = vcmask 523648   ;;  %3924 = vmatprep.subr.bf16.mxu0 %v5563_v9  ;;  %v8503_v24 = vmov 0 }
 0x23d   : > { %v1842_v34 = vsel %vm6955_vm4, %v1760_v21, 0.0  ;;  %3015 = vrot.lane.b32.xlu1 %v2978_v13, %s5560_s10  ;;  %2114 = vst.msk [vmem:[#allocation4 + $0xa0] sm:$0xff] %vm8492_vm13, %v2071_v4  ;;  %v541_v21 = vshrl.u32 %v7010_v30, 4  ;;  %v7067_v16 = vld [vmem:[#allocation3 + $0x24] sm:$0xff]  ;;  %4997 = vmatpush1.bf16.msra.mxu1 %v5491_v43  ;;  %vm8514_vm4 = vcmask 130048  }
 0x23e   : > { %1860 = vst.msk [vmem:[#allocation3 + $0x53] sm:$0xff] %vm8423_vm0, %v1842_v34  ;;  %v1762_v41 = vpop.f32.mrf.mxu0  ;;  %2967 = vst.msk [vmem:[#allocation4 + $0x80] sm:$0xff] %vm8423_vm0, %v2949_v59  ;;  %3229 = vrot.lane.b32.xlu0 %v6989_v46, %s5562_s12  ;;  %4998 = vmatprep.subr.bf16.mxu1 %v5563_v9 }
 0x23f   : > { %v1763_v14 = vadd.f32 %v6602_v28, %v1762_v41  ;;  %v1965_v42 = vpop.permute.xlu1 %1964  ;;  %v542_v63 = vmul.u32 18, %v541_v21 }
 0x240   : > { %2007 = vst.msk [vmem:[#allocation4 + $0xb0] sm:$0xff] %vm8418_vm1, %v1965_v42  ;;  %v1764_v18 = vpop.f32.mrf.mxu0  ;;  %v2179_v37 = vpop.permute.xlu0 %2178  ;;  %vm619_vm1 = vcmp.lt.s32.totalorder %v7006_v38, 0 }
 0x241   : > { %v1843_v8 = vsel %vm6985_vm7, %v1763_v14, 0.0  ;;  %3123 = vrot.lane.b32.xlu1 %v3086_v48, %s5561_s11  ;;  %2222 = vst.msk [vmem:[#allocation4 + $0xa0] sm:$0xff] %vm8495_vm5, %v2179_v37  ;;  %vm7028_vm5 = vmand %vm618_vm2, %vm600_vm12  ;;  %vm8498_vm12 = vcmask 654848   ;;  %vm8499_vm2 = vcmask 523648   ;;  %v532_v48 = vsub.s32 %v6950_v47, %v531_v17  ;;  %v3625_v18 = vld [vmem:[#allocation3 + $0x25] sm:$0xff] }
 0x242   : > { %1861 = vst.msk [vmem:[#allocation3 + $0x5b] sm:$0xff] %vm8423_vm0, %v1843_v8  ;;  %3337 = vrot.lane.b32.xlu0 %v3301_v52, %s5564_s13  ;;  %v672_v33 = vsel %vm7028_vm5, %v654_v5, %v6970_v27  ;;  %vm8502_vm5 = vcmask 786048   ;;  %v5492_v27 = vld [vmem:[%s8407_s1 + $0x48] sm:$0xff]   ;;  %v8507_v14 = vmov 0  ;;  %v543_v52 = vsub.s32 %v6980_v39, %v542_v63  ;;  %v3626_v5 = vld [vmem:[#allocation3 + $0x2d] sm:$0xff] }
 0x243   : > { %v2073_v61 = vpop.permute.xlu1 %2072  ;;  %v2716_v53 = vld [vmem:[#allocation4 + $0x90] sm:$0xff]  ;;  %3925 = vmatpush1.bf16.msra.mxu0 %v5492_v27  ;;  %4999 = vmatpush1.bf16.msra.mxu1 %v5492_v27  ;;  %vm8513_vm7 = vcmask 261248   ;;  %v2725_v17 = vld [vmem:[#allocation4 + $0xd8] sm:$0xff]  ;;  %v8526_v27 = vmov 0 }
 0x244   : > { %2115 = vst.msk [vmem:[#allocation4 + $0xb0] sm:$0xff] %vm8492_vm13, %v2073_v61  ;;  %v2742_v25 = vpack.c.bf16 %v2716_v53, %v2714_v29  ;;  %v2287_v3 = vpop.permute.xlu0 %2286  ;;  %vm601_vm13 = vcmp.ne.s32.totalorder %v7006_v38, 0  ;;  %3940 = vmatprep.subr.bf16.mxu0 %v5563_v9  ;;  %5014 = vmatprep.subr.bf16.mxu1 %v5563_v9  ;;  %v656_v61 = vadd.s32 18, %v532_v48  ;;  %v657_v36 = vadd.s32 18, %v543_v52  ;;  %v7165_v63 = vld [vmem:[#allocation3 + $0x2a] sm:$0xff] }
 0x245   : > { %2968 = vst.msk [vmem:[#allocation4 + $0x90] sm:$0xff] %vm8423_vm0, %v2950_v55  ;;  %v3738_v22 = vld [vmem:[#allocation3 + $0x4e] sm:$0xff]  ;;  %3231 = vrot.lane.b32.xlu1 %v7022_v58, %s5562_s12 }
 0x246   : > { %3756 = vst.msk [vmem:[#allocation4 + $0x58] sm:$0xff] %vm8423_vm0, %v3738_v22  ;;  %2844 = vmatmul.mubr.bf16.gmra.mxu1 %v2742_v25  ;;  %3445 = vrot.lane.b32.xlu0 %v3409_v10, %s5565_s23  ;;  %v2980_v25 = vld [vmem:[#allocation3 + $0x19] sm:$0xff]  ;;  %v2951_v10 = vld [vmem:[#allocation3 + $0x50] sm:$0xff] }
 0x247   : > { %2330 = vst.msk [vmem:[#allocation4 + $0xa0] sm:$0xff] %vm8498_vm12, %v2287_v3  ;;  %v2181_v35 = vpop.permute.xlu1 %2180  ;;  %5325 = vmatprep.mubr.msk.bf16.mxu1 %vm8423_vm0, %v2745_v54  ;;  %vm7055_vm12 = vmand %vm619_vm1, %vm601_vm13  ;;  %vm8505_vm1 = vcmask 654848   ;;  %vm8506_vm13 = vcmask 917248   ;;  %3941 = vmatpush2.bf16.msra.mxu0 %v5493_v20 }
 0x248   : > { %2223 = vst.msk [vmem:[#allocation4 + $0xb0] sm:$0xff] %vm8499_vm2, %v2181_v35  ;;  %v2395_v13 = vpop.permute.xlu0 %2394  ;;  %vm7063_vm2 = vcmp.lt.s32.totalorder %v672_v33, 16  ;;  %v673_v4 = vsel %vm7055_vm12, %v655_v15, %v7006_v38  ;;  %v7099_v38 = vld [vmem:[#allocation3 + $0x2c] sm:$0xff]  ;;  %5384 = vmatprep.subr.mxu0 %v5559_v0  ;;  %5015 = vmatpush2.bf16.msra.mxu1 %v5493_v20  ;;  %v7134_v35 = vld [vmem:[#allocation3 + $0x22] sm:$0xff] }
 0x249   : > { %3339 = vrot.lane.b32.xlu1 %v3302_v45, %s5564_s13  ;;  %2438 = vst.msk [vmem:[#allocation4 + $0xa0] sm:$0xff] %vm8502_vm5, %v2395_v13  ;;  %v8504_v24 = vsel %vm7063_vm2, 4294967295, %v8503_v24  ;;  %v3739_v29 = vld [vmem:[#allocation3 + $0x56] sm:$0xff]  ;;  %vm7088_vm12 = vcmp.lt.s32.totalorder %v673_v4, 16 }
 0x24a   : > { %v1767_v26 = vpop.f32.mrf.mxu0  ;;  %3553 = vrot.lane.b32.xlu0 %v7067_v16, %s5566_s30  ;;  %3757 = vst.msk [vmem:[#allocation4 + $0x68] sm:$0xff] %vm8423_vm0, %v3739_v29  ;;  %v8508_v14 = vsel %vm7088_vm12, 4294967295, %v8507_v14  ;;  %v2723_v4 = vld [vmem:[#allocation4 + $0xc8] sm:$0xff]  ;;  %v7160_v29 = vld [vmem:[%s8408_s2] ss:$0 sm:$0xff] }
 0x24b   : > { %v1768_v57 = vadd.f32 %v6602_v28, %v1767_v26  ;;  %v2289_v34 = vpop.permute.xlu1 %2288 }
 0x24c   : > { %2331 = vst.msk [vmem:[#allocation4 + $0xb0] sm:$0xff] %vm8505_vm1, %v2289_v34  ;;  %v1769_v6 = vpop.f32.mrf.mxu0  ;;  %v2503_v41 = vpop.permute.xlu0 %2502  ;;  %vm602_vm1 = vcmp.ne.s32.totalorder %v532_v48, 0  ;;  %v3303_v34 = vld [vmem:[#allocation3 + $0x23] sm:$0xff] }
 0x24d   : > { %v1844_v59 = vsel %vm7063_vm2, %v1768_v57, 0.0  ;;  %3447 = vrot.lane.b32.xlu1 %v3410_v32, %s5565_s23  ;;  %2546 = vst.msk [vmem:[#allocation4 + $0xa0] sm:$0xff] %vm8506_vm13, %v2503_v41  ;;  %vm620_vm13 = vcmp.lt.s32.totalorder %v532_v48, 0  ;;  %v2952_v41 = vld [vmem:[#allocation3 + $0x58] sm:$0xff] }
 0x24e   : > { %1862 = vst.msk [vmem:[#allocation3 + $0x63] sm:$0xff] %vm8423_vm0, %v1844_v59  ;;  %v1770_v42 = vpop.f32.mrf.mxu0  ;;  %3661 = vrot.lane.b32.xlu0 %v3625_v18, %s5567_s6  ;;  %vm7112_vm2 = vmand %vm620_vm13, %vm602_vm1  ;;  %v2747_v59 = vpack.c.bf16 %v2725_v17, %v2723_v4  ;;  %v2729_v4 = vld [vmem:[#allocation4 + $0xf8] sm:$0xff] }
 0x24f   : > { %v1771_v47 = vadd.f32 %v6602_v28, %v1770_v42  ;;  %v2397_v8 = vpop.permute.xlu1 %2396  ;;  %v674_v55 = vsel %vm7112_vm2, %v656_v61, %v532_v48  ;;  %vm8521_vm2 = vcmask 130048  }
 0x250   : > { %2439 = vst.msk [vmem:[#allocation4 + $0xb0] sm:$0xff] %vm8502_vm5, %v2397_v8  ;;  %v1772_v37 = vpop.f32.mrf.mxu0  ;;  %v2611_v30 = vpop.permute.xlu0 %2610  ;;  %vm8509_vm5 = vcmask 1048448   ;;  %vm8523_vm13 = vmmov %vm8521_vm2 }
 0x251   : > { %v1845_v50 = vsel %vm7088_vm12, %v1771_v47, 0.0  ;;  %3555 = vrot.lane.b32.xlu1 %v7099_v38, %s5566_s30  ;;  %2654 = vst.msk [vmem:[#allocation4 + $0xa0] sm:$0xff] %vm8509_vm5, %v2611_v30  ;;  %vm8510_vm12 = vcmask 917248   ;;  %vm621_vm5 = vcmp.lt.s32.totalorder %v543_v52, 0  ;;  %v389_v37 = vadd.s32 120, %v6511_v1  ;;  %v3304_v30 = vld [vmem:[#allocation3 + $0x2b] sm:$0xff] }
 0x252   : > { %1863 = vst.msk [vmem:[#allocation3 + $0x6b] sm:$0xff] %vm8423_vm0, %v1845_v50  ;;  %3017 = vrot.lane.b32.xlu0 %v2979_v11, %s5560_s10  ;;  %vm603_vm0 = vcmp.ne.s32.totalorder %v543_v52, 0 }
 0x253   : > { %v2505_v60 = vpop.permute.xlu1 %2504  ;;  %vm7124_vm1 = vmand %vm621_vm5, %vm603_vm0  ;;  %vm8522_vm0 = vcmask 261248  }
 0x254   : > { %2547 = vst.msk [vmem:[#allocation4 + $0xb0] sm:$0xff] %vm8510_vm12, %v2505_v60  ;;  %v1967_v9 = vpop.permute.xlu0 %1966  ;;  %vm8515_vm12 = vcmask 1048448   ;;  %v675_v45 = vsel %vm7124_vm1, %v657_v36, %v543_v52  ;;  %vm8524_vm5 = vmmov %vm8521_vm2  ;;  %v7184_v11 = vmul.u32.u64.low 3817748708, %v389_v37  ;;  %v7185_v60 = vmul.u32.u64.high 3817748708, %v389_v37, %v7184_v11  ;;  %v7201_v36 = vld [vmem:[#allocation3 + $0x3c] sm:$0xff] }
 0x255   : > { %3663 = vrot.lane.b32.xlu1 %v3626_v5, %s5567_s6  ;;  %v3740_v39 = vld [vmem:[#allocation3 + $0x5e] sm:$0xff]  ;;  %2008 = vst.msk [vmem:[#allocation4 + $0xc0] sm:$0xff] %vm8513_vm7, %v1967_v9  ;;  %vm7130_vm7 = vcmp.lt.s32.totalorder %v674_v55, 16  ;;  %vm7153_vm1 = vcmp.lt.s32.totalorder %v675_v45, 16  ;;  %v7188_v5 = vld [vmem:[#allocation3 + $0x34] sm:$0xff] }
 0x256   : > { %3758 = vst.msk [vmem:[#allocation4 + $0x78] sm:$0xff] %vm8514_vm4, %v3740_v39  ;;  %3125 = vrot.lane.b32.xlu0 %v6989_v46, %s5561_s11  ;;  %vm8518_vm4 = vcmask 392448   ;;  %v8519_v46 = vmov 0  ;;  %v8527_v27 = vsel %vm7153_vm1, 4294967295, %v8526_v27  ;;  %v563_v22 = vshrl.u32 %v7185_v60, 4  ;;  %v2953_v17 = vld [vmem:[#allocation3 + $0x60] sm:$0xff] }
 0x257   : > { %v2613_v54 = vpop.permute.xlu1 %2612  ;;  %v8520_v46 = vsel %vm7130_vm7, 4294967295, %v8519_v46 }
 0x258   : > { %2655 = vst.msk [vmem:[#allocation4 + $0xb0] sm:$0xff] %vm8515_vm12, %v2613_v54  ;;  %v2075_v3 = vpop.permute.xlu0 %2074  ;;  %v2718_v12 = vld [vmem:[#allocation4 + $0xa0] sm:$0xff]  ;;  %vm8525_vm12 = vcmask 523648  }
 0x259   : > { %3019 = vrot.lane.b32.xlu1 %v2980_v25, %s5560_s10  ;;  %2116 = vst.msk [vmem:[#allocation4 + $0xc0] sm:$0xff] %vm8518_vm4, %v2075_v3  ;;  %v3741_v7 = vld [vmem:[#allocation3 + $0x66] sm:$0xff]  ;;  %v3627_v54 = vld [vmem:[#allocation3 + $0x35] sm:$0xff] }
 0x25a   : > { %v1775_v43 = vpop.f32.mrf.mxu0  ;;  %2969 = vst.msk [vmem:[#allocation4 + $0xa0] sm:$0xff] %vm8521_vm2, %v2951_v10  ;;  %3233 = vrot.lane.b32.xlu0 %v7134_v35, %s5562_s12 }
 0x25b   : > { %v1776_v33 = vadd.f32 %v6602_v28, %v1775_v43  ;;  %v1969_v15 = vpop.permute.xlu1 %1968  ;;  %3759 = vst.msk [vmem:[#allocation4 + $0x88] sm:$0xff] %vm8523_vm13, %v3741_v7  ;;  %v7149_v28 = vadd.s32 112, %v6511_v1  ;;  %vm8529_vm13 = vcmask 654848  }
 0x25c   : > { %2009 = vst.msk [vmem:[#allocation4 + $0xd0] sm:$0xff] %vm8522_vm0, %v1969_v15  ;;  %v1777_v13 = vpop.f32.mrf.mxu0  ;;  %v2183_v26 = vpop.permute.xlu0 %2182  ;;  %vm8528_vm0 = vmmov %vm8521_vm2 }
 0x25d   : > { %v1846_v21 = vsel %vm7130_vm7, %v1776_v33, 0.0  ;;  %3127 = vrot.lane.b32.xlu1 %v7022_v58, %s5561_s11  ;;  %2224 = vst.msk [vmem:[#allocation4 + $0xc0] sm:$0xff] %vm8525_vm12, %v2183_v26  ;;  %v7173_v47 = vmul.u32.u64.low 3817748708, %v7149_v28  ;;  %v7174_v8 = vmul.u32.u64.high 3817748708, %v7149_v28, %v7173_v47  ;;  %v564_v33 = vmul.u32 18, %v563_v22 }
 0x25e   : > { %1864 = vst.msk [vmem:[#allocation3 + $0x73] sm:$0xff] %vm8524_vm5, %v1846_v21  ;;  %v1778_v57 = vpop.f32.mrf.mxu0  ;;  %3341 = vrot.lane.b32.xlu0 %v3303_v34, %s5564_s13  ;;  %vm8530_vm5 = vmmov %vm8528_vm0  ;;  %v2727_v34 = vld [vmem:[#allocation4 + $0xe8] sm:$0xff]  ;;  %v8552_v47 = vmov 0 }
 0x25f   : > { %v1779_v58 = vadd.f32 %v7160_v29, %v1778_v57  ;;  %v2077_v6 = vpop.permute.xlu1 %2076  ;;  %v2720_v32 = vld [vmem:[#allocation4 + $0xb0] sm:$0xff]  ;;  %v552_v9 = vshrl.u32 %v7174_v8, 4  ;;  %v565_v7 = vsub.s32 %v389_v37, %v564_v33  ;;  %v390_v33 = vadd.s32 128, %v6511_v1 }
 0x260   : > { %2117 = vst.msk [vmem:[#allocation4 + $0xd0] sm:$0xff] %vm8518_vm4, %v2077_v6  ;;  %v1780_v48 = vpop.f32.mrf.mxu0  ;;  %v2744_v42 = vpack.c.bf16 %v2720_v32, %v2718_v12  ;;  %v2291_v20 = vpop.permute.xlu0 %2290  ;;  %vm8531_vm4 = vcmask 786048   ;;  %v3628_v12 = vld [vmem:[#allocation3 + $0x3d] sm:$0xff] }
 0x261   : > { %2970 = vst.msk [vmem:[#allocation4 + $0xb0] sm:$0xff] %vm8521_vm2, %v2952_v41  ;;  %v1847_v18 = vsel %vm7153_vm1, %v1779_v58, 0.0  ;;  %3235 = vrot.lane.b32.xlu1 %v7165_v63, %s5562_s12  ;;  %vm8532_vm2 = vmmov %vm8528_vm0  ;;  %v659_v32 = vadd.s32 18, %v565_v7  ;;  %v2749_v41 = vpack.c.bf16 %v2729_v4, %v2727_v34  ;;  %v2954_v48 = vld [vmem:[#allocation3 + $0x68] sm:$0xff]  ;;  %v391_v34 = vadd.s32 136, %v6511_v1 }
 0x262   : > { %1865 = vst.msk [vmem:[#allocation3 + $0x7b] sm:$0xff] %vm8528_vm0, %v1847_v18  ;;  %2852 = vmatmul.mubr.bf16.gmra.mxu1 %v2744_v42  ;;  %3449 = vrot.lane.b32.xlu0 %v7067_v16, %s5565_s23  ;;  %vm8533_vm0 = vmmov %vm8529_vm13 }
 0x263   : > { %2332 = vst.msk [vmem:[#allocation4 + $0xc0] sm:$0xff] %vm8529_vm13, %v2291_v20  ;;  %v2185_v50 = vpop.permute.xlu1 %2184  ;;  %5326 = vmatprep.mubr.msk.bf16.mxu1 %vm8530_vm5, %v2747_v59  ;;  %vm8534_vm13 = vcmask 917248   ;;  %vm8535_vm5 = vmmov %vm8532_vm2 }
 0x264   : > { %2225 = vst.msk [vmem:[#allocation4 + $0xd0] sm:$0xff] %vm8525_vm12, %v2185_v50  ;;  %v2399_v52 = vpop.permute.xlu0 %2398  ;;  %vm8536_vm12 = vmmov %vm8531_vm4 }
 0x265   : > { %3343 = vrot.lane.b32.xlu1 %v3304_v30, %s5564_s13  ;;  %v3742_v61 = vld [vmem:[#allocation3 + $0x6e] sm:$0xff]  ;;  %2440 = vst.msk [vmem:[#allocation4 + $0xc0] sm:$0xff] %vm8531_vm4, %v2399_v52  ;;  %vm8537_vm4 = vcmask 1048448  }
 0x266   : > { %3760 = vst.msk [vmem:[#allocation4 + $0x98] sm:$0xff] %vm8532_vm2, %v3742_v61  ;;  %3557 = vrot.lane.b32.xlu0 %v7188_v5, %s5566_s30  ;;  %vm8538_vm2 = vmmov %vm8534_vm13  ;;  %v8558_v61 = vmov 0 }
 0x267   : > { %v2293_v53 = vpop.permute.xlu1 %2292 }
 0x268   : > { %2333 = vst.msk [vmem:[#allocation4 + $0xd0] sm:$0xff] %vm8533_vm0, %v2293_v53  ;;  %v2507_v16 = vpop.permute.xlu0 %2506  ;;  %vm8539_vm0 = vcmask 261248  }
 0x269   : > { %3451 = vrot.lane.b32.xlu1 %v7099_v38, %s5565_s23  ;;  %v3743_v39 = vld [vmem:[#allocation3 + $0x76] sm:$0xff]  ;;  %2548 = vst.msk [vmem:[#allocation4 + $0xc0] sm:$0xff] %vm8534_vm13, %v2507_v16  ;;  %v553_v38 = vmul.u32 18, %v552_v9  ;;  %vm8540_vm13 = vmmov %vm8537_vm4 }
 0x26a   : > { %3761 = vst.msk [vmem:[#allocation4 + $0xa8] sm:$0xff] %vm8535_vm5, %v3743_v39  ;;  %3665 = vrot.lane.b32.xlu0 %v3627_v54, %s5567_s6  ;;  %vm8543_vm1 = vmmov %vm8539_vm0 }
 0x26b   : > { %v2401_v55 = vpop.permute.xlu1 %2400  ;;  %v554_v43 = vsub.s32 %v7149_v28, %v553_v38 }
 0x26c   : > { %2441 = vst.msk [vmem:[#allocation4 + $0xd0] sm:$0xff] %vm8536_vm12, %v2401_v55  ;;  %v2615_v25 = vpop.permute.xlu0 %2614 }
 0x26d   : > { %3559 = vrot.lane.b32.xlu1 %v7201_v36, %s5566_s30  ;;  %2656 = vst.msk [vmem:[#allocation4 + $0xc0] sm:$0xff] %vm8537_vm4, %v2615_v25  ;;  %vm604_vm5 = vcmp.ne.s32.totalorder %v554_v43, 0  ;;  %vm622_vm12 = vcmp.lt.s32.totalorder %v554_v43, 0  ;;  %vm8541_vm4 = vcmask 392448   ;;  %v658_v26 = vadd.s32 18, %v554_v43 }
 0x26e   : > { %vm7215_vm7 = vmand %vm622_vm12, %vm604_vm5 }
 0x26f   : > { %v2509_v3 = vpop.permute.xlu1 %2508  ;;  %v676_v6 = vsel %vm7215_vm7, %v658_v26, %v554_v43 }
 0x270   : > { %2549 = vst.msk [vmem:[#allocation4 + $0xd0] sm:$0xff] %vm8538_vm2, %v2509_v3  ;;  %v1971_v10 = vpop.permute.xlu0 %1970  ;;  %vm8542_vm2 = vcmask 130048  }
 0x271   : > { %3667 = vrot.lane.b32.xlu1 %v3628_v12, %s5567_s6  ;;  %2010 = vst.msk [vmem:[#allocation4 + $0xe0] sm:$0xff] %vm8539_vm0, %v1971_v10  ;;  %vm605_vm0 = vcmp.ne.s32.totalorder %v565_v7, 0  ;;  %vm8550_vm12 = vmmov %vm8542_vm2 }
 0x272   : > { %vm8554_vm7 = vmmov %vm8542_vm2 }
 0x273   : > { %v2617_v15 = vpop.permute.xlu1 %2616 }
 0x274   : > { %2657 = vst.msk [vmem:[#allocation4 + $0xd0] sm:$0xff] %vm8540_vm13, %v2617_v15  ;;  %v2079_v45 = vpop.permute.xlu0 %2078  ;;  %v2722_v13 = vld [vmem:[#allocation4 + $0xc0] sm:$0xff]  ;;  %vm623_vm13 = vcmp.lt.s32.totalorder %v565_v7, 0 }
 0x275   : > { %2118 = vst.msk [vmem:[#allocation4 + $0xe0] sm:$0xff] %vm8541_vm4, %v2079_v45  ;;  %vm7223_vm5 = vmand %vm623_vm13, %vm605_vm0  ;;  %vm8557_vm13 = vcmask 786048  }
 0x276   : > { %2971 = vst.msk [vmem:[#allocation4 + $0xc0] sm:$0xff] %vm8542_vm2, %v2953_v17  ;;  %v677_v30 = vsel %vm7223_vm5, %v659_v32, %v565_v7  ;;  %vm8555_vm2 = vcmask 523648   ;;  %vm8556_vm0 = vmmov %vm8554_vm7 }
 0x277   : > { %v1973_v21 = vpop.permute.xlu1 %1972 }
 0x278   : > { %2011 = vst.msk [vmem:[#allocation4 + $0xf0] sm:$0xff] %vm8543_vm1, %v1973_v21  ;;  %v2187_v57 = vpop.permute.xlu0 %2186  ;;  %vm8547_vm1 = vmmov %vm8541_vm4  ;;  %vm7229_vm4 = vcmp.lt.s32.totalorder %v676_v6, 16  ;;  %v7272_v6 = vmul.u32.u64.low 3817748708, %v391_v34  ;;  %v7273_v32 = vmul.u32.u64.high 3817748708, %v391_v34, %v7272_v6 }
 0x279   : > { %2226 = vst.msk [vmem:[#allocation4 + $0xe0] sm:$0xff] %vm8546_vm10, %v2187_v57  ;;  %vm8551_vm10 = vcmask 654848   ;;  %v8553_v47 = vsel %vm7229_vm4, 4294967295, %v8552_v47  ;;  %v7264_v28 = vmul.u32.u64.low 3817748708, %v390_v33  ;;  %v7265_v57 = vmul.u32.u64.high 3817748708, %v390_v33, %v7264_v28 }
 0x27a   : > { %vm8560_vm5 = vmmov %vm8551_vm10 }
 0x27b   : > { %v2081_v58 = vpop.permute.xlu1 %2080  ;;  %v2724_v59 = vld [vmem:[#allocation4 + $0xd0] sm:$0xff] }
 0x27c   : > { %2119 = vst.msk [vmem:[#allocation4 + $0xf0] sm:$0xff] %vm8547_vm1, %v2081_v58  ;;  %v2746_v18 = vpack.c.bf16 %v2724_v59, %v2722_v13  ;;  %v2295_v20 = vpop.permute.xlu0 %2294  ;;  %vm7242_vm1 = vcmp.lt.s32.totalorder %v677_v30, 16 }
 0x27d   : > { %2972 = vst.msk [vmem:[#allocation4 + $0xd0] sm:$0xff] %vm8550_vm12, %v2954_v48  ;;  %v8559_v61 = vsel %vm7242_vm1, 4294967295, %v8558_v61  ;;  %vm8561_vm12 = vmmov %vm8556_vm0  ;;  %v2731_v48 = vld [vmem:[#allocation4 + $0x108] sm:$0xff] }
 0x27e   : > { %2334 = vst.msk [vmem:[#allocation4 + $0xe0] sm:$0xff] %vm8551_vm10, %v2295_v20  ;;  %v1783_v8 = vpop.f32.mrf.mxu0  ;;  %2860 = vmatmul.mubr.bf16.gmra.mxu1 %v2746_v18  ;;  %vm8562_vm10 = vcmask 917248   ;;  %v574_v18 = vshrl.u32 %v7265_v57, 4  ;;  %v2733_v20 = vld [vmem:[#allocation4 + $0x118] sm:$0xff] }
 0x27f   : > { %v1784_v37 = vadd.f32 %v7160_v29, %v1783_v8  ;;  %v2189_v50 = vpop.permute.xlu1 %2188  ;;  %5327 = vmatprep.mubr.msk.bf16.mxu1 %vm8554_vm7, %v2749_v41  ;;  %vm8563_vm7 = vmmov %vm8557_vm13  ;;  %v2955_v41 = vld [vmem:[#allocation3 + $0x70] sm:$0xff]  ;;  %v2751_v30 = vpack.c.bf16 %v2733_v20, %v2731_v48 }
 0x280   : > { %2227 = vst.msk [vmem:[#allocation4 + $0xf0] sm:$0xff] %vm8555_vm2, %v2189_v50  ;;  %v1785_v52 = vpop.f32.mrf.mxu0  ;;  %v2403_v60 = vpop.permute.xlu0 %2402  ;;  %vm8564_vm2 = vmmov %vm8556_vm0 }
 0x281   : > { %v1848_v11 = vsel %vm7229_vm4, %v1784_v37, 0.0  ;;  %2442 = vst.msk [vmem:[#allocation4 + $0xe0] sm:$0xff] %vm8557_vm13, %v2403_v60  ;;  %vm8565_vm13 = vcmask 1048448   ;;  %v2956_v52 = vld [vmem:[#allocation3 + $0x78] sm:$0xff] }
 0x282   : > { %1866 = vst.msk [vmem:[#allocation3 + $0x83] sm:$0xff] %vm8556_vm0, %v1848_v11  ;;  %v1786_v53 = vpop.f32.mrf.mxu0 }
 0x283   : > { %v1787_v16 = vadd.f32 %v7160_v29, %v1786_v53  ;;  %v2297_v9 = vpop.permute.xlu1 %2296  ;;  %v575_v53 = vmul.u32 18, %v574_v18 }
 0x284   : > { %2335 = vst.msk [vmem:[#allocation4 + $0xf0] sm:$0xff] %vm8560_vm5, %v2297_v9  ;;  %v1788_v39 = vpop.f32.mrf.mxu0  ;;  %v2511_v55 = vpop.permute.xlu0 %2510  ;;  %vm8566_vm5 = vmmov %vm8562_vm10 }
 0x285   : > { %v1849_v54 = vsel %vm7242_vm1, %v1787_v16, 0.0  ;;  %2550 = vst.msk [vmem:[#allocation4 + $0xe0] sm:$0xff] %vm8562_vm10, %v2511_v55  ;;  %vm8568_vm10 = vcmask 261248   ;;  %v585_v16 = vshrl.u32 %v7273_v32, 4  ;;  %vm8585_vm1 = vcmask 1048448  }
 0x286   : > { %1867 = vst.msk [vmem:[#allocation3 + $0x8b] sm:$0xff] %vm8561_vm12, %v1849_v54  ;;  %v2813_v25 = vpop.f32.mrf.mxu1  ;;  %vm8567_vm12 = vmmov %vm8556_vm0  ;;  %v576_v54 = vsub.s32 %v390_v33, %v575_v53  ;;  %v8594_v32 = vmov 0 }
 0x287   : > { %v2814_v38 = vadd.f32 %v7160_v29, %v2813_v25  ;;  %v2405_v22 = vpop.permute.xlu1 %2404  ;;  %v586_v55 = vmul.u32 18, %v585_v16 }
 0x288   : > { %2443 = vst.msk [vmem:[#allocation4 + $0xf0] sm:$0xff] %vm8563_vm7, %v2405_v22  ;;  %v2815_v3 = vpop.f32.mrf.mxu1  ;;  %v2619_v43 = vpop.permute.xlu0 %2618  ;;  %vm8569_vm7 = vmmov %vm8556_vm0 }
 0x289   : > { %v3744_v12 = vld [vmem:[#allocation3 + $0x7e] sm:$0xff]  ;;  %v2884_v10 = vsel %vm6615_vm14, %v2814_v38, 0.0  ;;  %2658 = vst.msk [vmem:[#allocation4 + $0xe0] sm:$0xff] %vm8565_vm13, %v2619_v43  ;;  %v587_v22 = vsub.s32 %v391_v34, %v586_v55 }
 0x28a   : > { %3762 = vst.msk [vmem:[#allocation4 + $0xb8] sm:$0xff] %vm8564_vm2, %v3744_v12  ;;  %v2816_v15 = vpop.f32.mrf.mxu1  ;;  %vm8570_vm2 = vmmov %vm8565_vm13  ;;  %v660_v12 = vadd.s32 18, %v576_v54  ;;  %v2957_v6 = vld [vmem:[#allocation3 + $0x80] sm:$0xff] }
 0x28b   : > { %2902 = vst.msk [vmem:[#allocation3 + $0xa3] sm:$0xff] %vm8556_vm0, %v2884_v10  ;;  %v2817_v45 = vadd.f32 %v7160_v29, %v2816_v15  ;;  %v2513_v7 = vpop.permute.xlu1 %2512  ;;  %vm8571_vm0 = vcmask 392448   ;;  %vm8572_vm13 = vmmov %vm8569_vm7  ;;  %vm625_vm14 = vcmp.lt.s32.totalorder %v587_v22, 0  ;;  %v661_v15 = vadd.s32 18, %v587_v22 }
 0x28c   : > { %2551 = vst.msk [vmem:[#allocation4 + $0xf0] sm:$0xff] %vm8566_vm5, %v2513_v7  ;;  %v2818_v13 = vpop.f32.mrf.mxu1  ;;  %v1975_v21 = vpop.permute.xlu0 %1974  ;;  %vm8573_vm5 = vmmov %vm8568_vm10 }
 0x28d   : > { %v2885_v17 = vsel %vm6640_vm15, %v2817_v45, 0.0  ;;  %v3745_v26 = vld [vmem:[#allocation3 + $0x86] sm:$0xff]  ;;  %2012 = vst.msk [vmem:[#allocation4 + $0x100] sm:$0xff] %vm8568_vm10, %v1975_v21  ;;  %vm8575_vm10 = vmmov %vm8569_vm7  ;;  %vm8583_vm15 = vcmask 917248   ;;  %v8590_v13 = vmov 0 }
 0x28e   : > { %2903 = vst.msk [vmem:[#allocation3 + $0xab] sm:$0xff] %vm8567_vm12, %v2885_v17  ;;  %vm8574_vm12 = vcmask 523648   ;;  %v2982_v45 = vld [vmem:[#allocation3 + $0x29] sm:$0xff] }
 0x28f   : > { %3763 = vst.msk [vmem:[#allocation4 + $0xc8] sm:$0xff] %vm8569_vm7, %v3745_v26  ;;  %v2621_v4 = vpop.permute.xlu1 %2620  ;;  %vm8576_vm7 = vmmov %vm8571_vm0 }
 0x290   : > { %2659 = vst.msk [vmem:[#allocation4 + $0xf0] sm:$0xff] %vm8570_vm2, %v2621_v4  ;;  %v2083_v58 = vpop.permute.xlu0 %2082  ;;  %v2726_v59 = vld [vmem:[#allocation4 + $0xe0] sm:$0xff]  ;;  %vm8577_vm2 = vmmov %vm8575_vm10 }
 0x291   : > { %2120 = vst.msk [vmem:[#allocation4 + $0x100] sm:$0xff] %vm8571_vm0, %v2083_v58  ;;  %vm8578_vm0 = vcmask 654848  }
 0x292   : > { %2973 = vst.msk [vmem:[#allocation4 + $0xe0] sm:$0xff] %vm8572_vm13, %v2955_v41  ;;  %vm8579_vm13 = vmmov %vm8577_vm2 }
 0x293   : > { %v1977_v1 = vpop.permute.xlu1 %1976 }
 0x294   : > { %2013 = vst.msk [vmem:[#allocation4 + $0x110] sm:$0xff] %vm8573_vm5, %v1977_v1  ;;  %v2191_v42 = vpop.permute.xlu0 %2190  ;;  %vm8580_vm5 = vmmov %vm8574_vm12 }
 0x295   : > { %2228 = vst.msk [vmem:[#allocation4 + $0x100] sm:$0xff] %vm8574_vm12, %v2191_v42  ;;  %v3749_v8 = vld [vmem:[#allocation3 + $0xa6] sm:$0xff]  ;;  %vm8581_vm12 = vcmask 786048  }
 0x296   : > { %3767 = vst.msk [vmem:[#allocation4 + $0x108] sm:$0xff] %vm8575_vm10, %v3749_v8  ;;  %vm8582_vm10 = vmmov %vm8578_vm0 }
 0x297   : > { %v2085_v37 = vpop.permute.xlu1 %2084  ;;  %v2728_v50 = vld [vmem:[#allocation4 + $0xf0] sm:$0xff] }
 0x298   : > { %2121 = vst.msk [vmem:[#allocation4 + $0x110] sm:$0xff] %vm8576_vm7, %v2085_v37  ;;  %v2748_v11 = vpack.c.bf16 %v2728_v50, %v2726_v59  ;;  %v2299_v60 = vpop.permute.xlu0 %2298  ;;  %vm606_vm7 = vcmp.ne.s32.totalorder %v576_v54, 0 }
 0x299   : > { %2974 = vst.msk [vmem:[#allocation4 + $0xf0] sm:$0xff] %vm8577_vm2, %v2956_v52  ;;  %vm624_vm2 = vcmp.lt.s32.totalorder %v576_v54, 0 }
 0x29a   : > { %2336 = vst.msk [vmem:[#allocation4 + $0x100] sm:$0xff] %vm8578_vm0, %v2299_v60  ;;  %2868 = vmatmul.mubr.bf16.gmra.mxu1 %v2748_v11  ;;  %vm8584_vm0 = vmmov %vm8581_vm12 }
 0x29b   : > { %v2193_v9 = vpop.permute.xlu1 %2192  ;;  %5328 = vmatprep.mubr.msk.bf16.mxu1 %vm8579_vm13, %v2751_v30  ;;  %vm642_vm13 = vmand %vm624_vm2, %vm606_vm7  ;;  %vm8593_vm7 = vcmask 392448   ;;  %v2958_v30 = vld [vmem:[#allocation3 + $0x88] sm:$0xff] }
 0x29c   : > { %2229 = vst.msk [vmem:[#allocation4 + $0x110] sm:$0xff] %vm8580_vm5, %v2193_v9  ;;  %v2407_v39 = vpop.permute.xlu0 %2406  ;;  %vm607_vm5 = vcmp.ne.s32.totalorder %v587_v22, 0  ;;  %v678_v33 = vsel %vm642_vm13, %v660_v12, %v576_v54 }
 0x29d   : > { %2444 = vst.msk [vmem:[#allocation4 + $0x100] sm:$0xff] %vm8581_vm12, %v2407_v39  ;;  %vm8586_vm12 = vmmov %vm8583_vm15  ;;  %vm7298_vm4 = vcmp.lt.s32.totalorder %v678_v33, 16 }
 0x29e   : > { %v8591_v13 = vsel %vm7298_vm4, 4294967295, %v8590_v13 }
 0x29f   : > { %v2301_v25 = vpop.permute.xlu1 %2300 }
 0x2a0   : > { %2337 = vst.msk [vmem:[#allocation4 + $0x110] sm:$0xff] %vm8582_vm10, %v2301_v25  ;;  %v2515_v38 = vpop.permute.xlu0 %2514  ;;  %vm7293_vm10 = vmand %vm625_vm14, %vm607_vm5  ;;  %vm8592_vm14 = vcmask 130048  }
 0x2a1   : > { %2552 = vst.msk [vmem:[#allocation4 + $0x100] sm:$0xff] %vm8583_vm15, %v2515_v38  ;;  %vm8589_vm15 = vcmask 261248   ;;  %v679_v28 = vsel %vm7293_vm10, %v661_v15, %v587_v22  ;;  %vm8600_vm10 = vmmov %vm8593_vm7  ;;  %v2981_v38 = vld [vmem:[#allocation3 + $0x21] sm:$0xff] }
 0x2a2   : > { %vm7310_vm2 = vcmp.lt.s32.totalorder %v679_v28, 16  ;;  %vm8597_vm13 = vmmov %vm8589_vm15 }
 0x2a3   : > { %v2409_v3 = vpop.permute.xlu1 %2408  ;;  %v8595_v32 = vsel %vm7310_vm2, 4294967295, %v8594_v32 }
 0x2a4   : > { %2445 = vst.msk [vmem:[#allocation4 + $0x110] sm:$0xff] %vm8584_vm0, %v2409_v3  ;;  %v2623_v10 = vpop.permute.xlu0 %2622  ;;  %vm8596_vm0 = vmmov %vm8592_vm14 }
 0x2a5   : > { %2660 = vst.msk [vmem:[#allocation4 + $0x100] sm:$0xff] %vm8585_vm1, %v2623_v10  ;;  %vm8598_vm5 = vmmov %vm8596_vm0 }
 0x2a7   : > { %v2517_v43 = vpop.permute.xlu1 %2516 }
 0x2a8   : > { %2553 = vst.msk [vmem:[#allocation4 + $0x110] sm:$0xff] %vm8586_vm12, %v2517_v43  ;;  %v3014_v7 = vpop.permute.xlu0 %3013  ;;  %vm8599_vm12 = vcmask 523648  }
 0x2a9   : > { %3067 = vst.msk [vmem:[#allocation4] sm:$0xff] %vm8589_vm15, %v3014_v7  ;;  %vm8601_vm15 = vmmov %vm8596_vm0 }
 0x2aa   : > { %v1791_v17 = vpop.f32.mrf.mxu0 }
 0x2ab   : > { %v1792_v21 = vadd.f32 %v7160_v29, %v1791_v17  ;;  %v2625_v26 = vpop.permute.xlu1 %2624 }
 0x2ac   : > { %2661 = vst.msk [vmem:[#allocation4 + $0x110] sm:$0xff] %vm8585_vm1, %v2625_v26  ;;  %v1793_v57 = vpop.f32.mrf.mxu0  ;;  %v3122_v4 = vpop.permute.xlu0 %3121  ;;  %v2730_v58 = vld [vmem:[#allocation4 + $0x100] sm:$0xff]  ;;  %vm8602_vm1 = vmmov %vm8596_vm0 }
 0x2ad   : > { %v1850_v34 = vsel %vm7298_vm4, %v1792_v21, 0.0  ;;  %3175 = vst.msk [vmem:[#allocation4] sm:$0xff] %vm8593_vm7, %v3122_v4  ;;  %vm8604_vm7 = vmmov %vm8596_vm0 }
 0x2ae   : > { %1868 = vst.msk [vmem:[#allocation3 + $0x93] sm:$0xff] %vm8592_vm14, %v1850_v34  ;;  %v1794_v59 = vpop.f32.mrf.mxu0  ;;  %vm8603_vm14 = vcmask 654848  }
 0x2af   : > { %2975 = vst.msk [vmem:[#allocation4 + $0x100] sm:$0xff] %vm8596_vm0, %v2957_v6  ;;  %v1795_v41 = vadd.f32 %v7160_v29, %v1794_v59  ;;  %v3016_v1 = vpop.permute.xlu1 %3015  ;;  %vm8605_vm0 = vmmov %vm8599_vm12  ;;  %v7360_v59 = vld [vmem:[#allocation3 + $0x32] sm:$0xff] }
 0x2b0   : > { %3068 = vst.msk [vmem:[#allocation4 + $0x10] sm:$0xff] %vm8597_vm13, %v3016_v1  ;;  %v1796_v48 = vpop.f32.mrf.mxu0  ;;  %v3230_v18 = vpop.permute.xlu0 %3229  ;;  %vm8606_vm13 = vmmov %vm8602_vm1 }
 0x2b1   : > { %v1851_v42 = vsel %vm7310_vm2, %v1795_v41, 0.0  ;;  %3283 = vst.msk [vmem:[#allocation4] sm:$0xff] %vm8599_vm12, %v3230_v18  ;;  %vm8608_vm12 = vmmov %vm8602_vm1  ;;  %v7362_v41 = vld [vmem:[#allocation3 + $0xaa] sm:$0xff]  ;;  %v7371_v18 = vld [vmem:[#allocation3 + $0x3a] sm:$0xff] }
 0x2b2   : > { %1869 = vst.msk [vmem:[#allocation3 + $0x9b] sm:$0xff] %vm8598_vm5, %v1851_v42  ;;  %v2821_v20 = vpop.f32.mrf.mxu1  ;;  %vm8607_vm5 = vcmask 786048  }
 0x2b3   : > { %v2822_v8 = vadd.f32 %v7160_v29, %v2821_v20  ;;  %v3124_v37 = vpop.permute.xlu1 %3123  ;;  %v2732_v50 = vld [vmem:[#allocation4 + $0x110] sm:$0xff] }
 0x2b4   : > { %3176 = vst.msk [vmem:[#allocation4 + $0x10] sm:$0xff] %vm8600_vm10, %v3124_v37  ;;  %v2823_v52 = vpop.f32.mrf.mxu1  ;;  %v2750_v11 = vpack.c.bf16 %v2732_v50, %v2730_v58  ;;  %v3338_v53 = vpop.permute.xlu0 %3337  ;;  %vm8609_vm10 = vmmov %vm8602_vm1  ;;  %v4435_v20 = vld [vmem:[#allocation3 + $0xa3] sm:$0xff] }
 0x2b5   : > { %2976 = vst.msk [vmem:[#allocation4 + $0x110] sm:$0xff] %vm8601_vm15, %v2958_v30  ;;  %v2886_v60 = vsel %vm6688_vm8, %v2822_v8, 0.0  ;;  %v4111_v16 = vld [vmem:[#allocation3 + $0x91] sm:$0xff]  ;;  %vm8610_vm15 = vmmov %vm8603_vm14  ;;  %v3776_v37 = vld [vmem:[#allocation4 + $0x38] sm:$0xff] }
 0x2b6   : > { %2904 = vst.msk [vmem:[#allocation3 + $0xb3] sm:$0xff] %vm8602_vm1, %v2886_v60  ;;  %4147 = vrot.lane.b32.xlu0 %v4111_v16, %s5560_s10  ;;  %v2824_v9 = vpop.f32.mrf.mxu1  ;;  %2876 = vmatmul.mubr.bf16.gmra.mxu1 %v2750_v11  ;;  %v3746_v39 = vld [vmem:[#allocation3 + $0x8e] sm:$0xff]  ;;  %vm8611_vm1 = vcmask 917248   ;;  %v3774_v16 = vld [vmem:[#allocation4 + $0x28] sm:$0xff] }
 0x2b7   : > { %3391 = vst.msk [vmem:[#allocation4] sm:$0xff] %vm8603_vm14, %v3338_v53  ;;  %v3232_v54 = vpop.permute.xlu1 %3231  ;;  %v2825_v55 = vadd.f32 %v7160_v29, %v2824_v9  ;;  %v4219_v7 = vld [vmem:[#allocation3 + $0x92] sm:$0xff]  ;;  %vm8612_vm14 = vmmov %vm8604_vm7 }
 0x2b8   : > { %3764 = vst.msk [vmem:[#allocation4 + $0xd8] sm:$0xff] %vm8604_vm7, %v3746_v39  ;;  %v2826_v25 = vpop.f32.mrf.mxu1  ;;  %v3446_v3 = vpop.permute.xlu0 %3445  ;;  %vm8613_vm7 = vmmov %vm8607_vm5  ;;  %v4075_v48 = vld [vmem:[#allocation3 + $0x90] sm:$0xff] }
 0x2b9   : > { %3284 = vst.msk [vmem:[#allocation4 + $0x10] sm:$0xff] %vm8605_vm0, %v3232_v54  ;;  %v2887_v22 = vsel %vm6714_vm9, %v2825_v55, 0.0  ;;  %v4112_v12 = vld [vmem:[#allocation3 + $0x99] sm:$0xff]  ;;  %vm8614_vm0 = vmmov %vm8609_vm10  ;;  %v7352_v58 = vld [vmem:[#allocation3 + $0xa2] sm:$0xff]  ;;  %v3808_v55 = vpack.c.bf16 %v3776_v37, %v3774_v16 }
 0x2ba   : > { %v3747_v10 = vld [vmem:[#allocation3 + $0x96] sm:$0xff]  ;;  %v3748_v43 = vld [vmem:[#allocation3 + $0x9e] sm:$0xff]  ;;  %2905 = vst.msk [vmem:[#allocation3 + $0xbb] sm:$0xff] %vm8606_vm13, %v2887_v22  ;;  %4149 = vrot.lane.b32.xlu1 %v4112_v12, %s5560_s10  ;;  %3021 = vrot.lane.b32.xlu0 %v2981_v38, %s5560_s10  ;;  %vm8615_vm13 = vcmask 1048448   ;;  %v4436_v54 = vld [vmem:[#allocation3 + $0xab] sm:$0xff] }
 0x2bb   : > { %3499 = vst.msk [vmem:[#allocation4] sm:$0xff] %vm8607_vm5, %v3446_v3  ;;  %v3340_v33 = vpop.permute.xlu1 %3339  ;;  %v4220_v57 = vld [vmem:[#allocation3 + $0x9a] sm:$0xff]  ;;  %vm8616_vm5 = vmmov %vm8611_vm1 }
 0x2bc   : > { %3765 = vst.msk [vmem:[#allocation4 + $0xe8] sm:$0xff] %vm8608_vm12, %v3747_v10  ;;  %v3554_v15 = vpop.permute.xlu0 %3553  ;;  %vm8617_vm12 = vcmask 261248   ;;  %v4076_v11 = vld [vmem:[#allocation3 + $0x98] sm:$0xff] }
 0x2bd   : > { %3766 = vst.msk [vmem:[#allocation4 + $0xf8] sm:$0xff] %vm8609_vm10, %v3748_v43  ;;  %v3750_v17 = vld [vmem:[#allocation3 + $0xae] sm:$0xff]  ;;  %vm8618_vm10 = vmmov %vm8615_vm13 }
 0x2be   : > { %3392 = vst.msk [vmem:[#allocation4 + $0x10] sm:$0xff] %vm8610_vm15, %v3340_v33  ;;  %3023 = vrot.lane.b32.xlu1 %v2982_v45, %s5560_s10  ;;  %4255 = vrot.lane.b32.xlu0 %v4219_v7, %s5561_s11  ;;  %vm8619_vm15 = vcmask 392448   ;;  %v3305_v25 = vld [vmem:[#allocation3 + $0x33] sm:$0xff]  ;;  %v3306_v33 = vld [vmem:[#allocation3 + $0x3b] sm:$0xff] }
 0x2bf   : > { %3607 = vst.msk [vmem:[#allocation4] sm:$0xff] %vm8611_vm1, %v3554_v15  ;;  %v3448_v21 = vpop.permute.xlu1 %3447  ;;  %vm8620_vm1 = vmmov %vm8614_vm0  ;;  %v4543_v15 = vld [vmem:[#allocation3 + $0xa4] sm:$0xff] }
 0x2c0   : > { %3768 = vst.msk [vmem:[#allocation4 + $0x118] sm:$0xff] %vm8612_vm14, %v3750_v17  ;;  %v3662_v28 = vpop.permute.xlu0 %3661  ;;  %vm8621_vm14 = vmmov %vm8617_vm12 }
 0x2c1   : > { %3500 = vst.msk [vmem:[#allocation4 + $0x10] sm:$0xff] %vm8613_vm7, %v3448_v21  ;;  %v4867_v26 = vld [vmem:[#allocation3 + $0xb6] sm:$0xff]  ;;  %vm8622_vm7 = vcmask 523648   ;;  %v4544_v21 = vld [vmem:[#allocation3 + $0xac] sm:$0xff] }
 0x2c2   : > { %4885 = vst.msk [vmem:[#allocation4 + $0x8] sm:$0xff] %vm8614_vm0, %v4867_v26  ;;  %4257 = vrot.lane.b32.xlu1 %v4220_v57, %s5561_s11  ;;  %3129 = vrot.lane.b32.xlu0 %v7134_v35, %s5561_s11  ;;  %vm8623_vm0 = vmmov %vm8619_vm15 }
 0x2c3   : > { %3715 = vst.msk [vmem:[#allocation4] sm:$0xff] %vm8615_vm13, %v3662_v28  ;;  %v3556_v34 = vpop.permute.xlu1 %3555  ;;  %vm8624_vm13 = vmmov %vm8620_vm1 }
 0x2c4   : > { %3608 = vst.msk [vmem:[#allocation4 + $0x10] sm:$0xff] %vm8616_vm5, %v3556_v34  ;;  %v3018_v4 = vpop.permute.xlu0 %3017  ;;  %vm8625_vm5 = vmmov %vm8620_vm1  ;;  %v7406_v34 = vld [vmem:[#allocation3 + $0xb4] sm:$0xff] }
 0x2c5   : > { %3069 = vst.msk [vmem:[#allocation4 + $0x20] sm:$0xff] %vm8617_vm12, %v3018_v4  ;;  %vm8626_vm12 = vcmask 654848  }
 0x2c6   : > { %3131 = vrot.lane.b32.xlu1 %v7165_v63, %s5561_s11  ;;  %4363 = vrot.lane.b32.xlu0 %v7352_v58, %s5562_s12 }
 0x2c7   : > { %v3664_v6 = vpop.permute.xlu1 %3663 }
 0x2c8   : > { %3716 = vst.msk [vmem:[#allocation4 + $0x10] sm:$0xff] %vm8618_vm10, %v3664_v6  ;;  %v3126_v35 = vpop.permute.xlu0 %3125  ;;  %vm8627_vm10 = vmmov %vm8620_vm1 }
 0x2c9   : > { %3177 = vst.msk [vmem:[#allocation4 + $0x20] sm:$0xff] %vm8619_vm15, %v3126_v35  ;;  %vm8628_vm15 = vmmov %vm8622_vm7  ;;  %v4904_v6 = vld [vmem:[#allocation4 + $0x8] sm:$0xff] }
 0x2ca   : > { %v3769_v1 = vld [vmem:[#allocation4] sm:$0xff]  ;;  %4365 = vrot.lane.b32.xlu1 %v7362_v41, %s5562_s12  ;;  %3237 = vrot.lane.b32.xlu0 %v7360_v59, %s5562_s12 }
 0x2cb   : > { %4093 = vst.msk [vmem:[#allocation4] sm:$0xff] %vm8620_vm1, %v4075_v48  ;;  %v3020_v63 = vpop.permute.xlu1 %3019 }
 0x2cc   : > { %3070 = vst.msk [vmem:[#allocation4 + $0x30] sm:$0xff] %vm8621_vm14, %v3020_v63  ;;  %v3234_v42 = vpop.permute.xlu0 %3233  ;;  %vm8629_vm14 = vcmask 786048   ;;  %v7421_v63 = vld [vmem:[#allocation3 + $0x4c] sm:$0xff] }
 0x2cd   : > { %3285 = vst.msk [vmem:[#allocation4 + $0x20] sm:$0xff] %vm8622_vm7, %v3234_v42  ;;  %vm8630_vm7 = vmmov %vm8626_vm12 }
 0x2ce   : > { %v2829_v8 = vpop.f32.mrf.mxu1  ;;  %3239 = vrot.lane.b32.xlu1 %v7371_v18, %s5562_s12  ;;  %4471 = vrot.lane.b32.xlu0 %v4435_v20, %s5564_s13  ;;  %v4077_v20 = vld [vmem:[#allocation3 + $0xa0] sm:$0xff] }
 0x2cf   : > { %v2830_v50 = vadd.f32 %v7160_v29, %v2829_v8  ;;  %v3128_v30 = vpop.permute.xlu1 %3127  ;;  %v3771_v52 = vld [vmem:[#allocation4 + $0x10] sm:$0xff]  ;;  %v4759_v8 = vld [vmem:[#allocation3 + $0xb5] sm:$0xff] }
 0x2d0   : > { %3178 = vst.msk [vmem:[#allocation4 + $0x30] sm:$0xff] %vm8623_vm0, %v3128_v30  ;;  %v2831_v60 = vpop.f32.mrf.mxu1  ;;  %v3805_v53 = vpack.c.bf16 %v3771_v52, %v3769_v1  ;;  %v3342_v39 = vpop.permute.xlu0 %3341  ;;  %vm8631_vm0 = vmmov %vm8620_vm1  ;;  %v7415_v1 = vld [vmem:[#allocation3 + $0x44] sm:$0xff] }
 0x2d1   : > { %4094 = vst.msk [vmem:[#allocation4 + $0x10] sm:$0xff] %vm8624_vm13, %v4076_v11  ;;  %v2888_v9 = vsel %vm6767_vm11, %v2830_v50, 0.0  ;;  %vm8632_vm13 = vcmask 917248   ;;  %v3629_v30 = vld [vmem:[#allocation3 + $0x45] sm:$0xff] }
 0x2d2   : > { %2906 = vst.msk [vmem:[#allocation3 + $0xc3] sm:$0xff] %vm8625_vm5, %v2888_v9  ;;  %3943 = vmatmul.mubr.bf16.vlgmr.msra.gmra.mxu0 %v3805_v53  ;;  %4473 = vrot.lane.b32.xlu1 %v4436_v54, %s5564_s13  ;;  %v2832_v38 = vpop.f32.mrf.mxu1  ;;  %vm8633_vm5 = vmmov %vm8629_vm14  ;;  %v3780_v52 = vld [vmem:[#allocation4 + $0x58] sm:$0xff]  ;;  %v3778_v9 = vld [vmem:[#allocation4 + $0x48] sm:$0xff] }
 0x2d3   : > { %3393 = vst.msk [vmem:[#allocation4 + $0x20] sm:$0xff] %vm8626_vm12, %v3342_v39  ;;  %3345 = vrot.lane.b32.xlu0 %v3305_v25, %s5564_s13  ;;  %5359 = vmatprep.mubr.msk.bf16.mxu0 %vm8627_vm10, %v3808_v55  ;;  %v3236_v22 = vpop.permute.xlu1 %3235  ;;  %v2833_v3 = vadd.f32 %v7160_v29, %v2832_v38  ;;  %vm8634_vm12 = vmmov %vm8631_vm0  ;;  %vm8635_vm10 = vcmask 1048448   ;;  %v4078_v53 = vld [vmem:[#allocation3 + $0xa8] sm:$0xff]  ;;  %v3810_v25 = vpack.c.bf16 %v3780_v52, %v3778_v9  ;;  %v3632_v9 = vld [vmem:[#allocation3 + $0x5d] sm:$0xff] }
 0x2d4   : > { %3286 = vst.msk [vmem:[#allocation4 + $0x30] sm:$0xff] %vm8628_vm15, %v3236_v22  ;;  %v2834_v12 = vpop.f32.mrf.mxu1  ;;  %v3450_v43 = vpop.permute.xlu0 %3449  ;;  %vm8636_vm15 = vmmov %vm8632_vm13  ;;  %v3630_v55 = vld [vmem:[#allocation3 + $0x4d] sm:$0xff]  ;;  %v4113_v38 = vld [vmem:[#allocation3 + $0xa1] sm:$0xff] }
 0x2d5   : > { %v2889_v10 = vsel %vm6792_vm3, %v2833_v3, 0.0  ;;  %3501 = vst.msk [vmem:[#allocation4 + $0x20] sm:$0xff] %vm8629_vm14, %v3450_v43  ;;  %vm8638_vm14 = vmmov %vm8631_vm0 }
 0x2d6   : > { %2907 = vst.msk [vmem:[#allocation3 + $0xcb] sm:$0xff] %vm8620_vm1, %v2889_v10  ;;  %3347 = vrot.lane.b32.xlu1 %v3306_v33, %s5564_s13  ;;  %vm8637_vm1 = vmmov %vm8635_vm10  ;;  %v4114_v10 = vld [vmem:[#allocation3 + $0xa9] sm:$0xff]  ;;  %v2983_v33 = vld [vmem:[#allocation3 + $0x31] sm:$0xff] }
 0x2d7   : > { %4579 = vrot.lane.b32.xlu0 %v4543_v15, %s5565_s23  ;;  %v3344_v45 = vpop.permute.xlu1 %3343 }
 0x2d8   : > { %3394 = vst.msk [vmem:[#allocation4 + $0x30] sm:$0xff] %vm8630_vm7, %v3344_v45  ;;  %v3558_v17 = vpop.permute.xlu0 %3557  ;;  %vm8639_vm7 = vmmov %vm8631_vm0  ;;  %v2984_v45 = vld [vmem:[#allocation3 + $0x39] sm:$0xff] }
 0x2d9   : > { %v4868_v7 = vld [vmem:[#allocation3 + $0xbe] sm:$0xff]  ;;  %3609 = vst.msk [vmem:[#allocation4 + $0x20] sm:$0xff] %vm8632_vm13, %v3558_v17  ;;  %vm8640_vm13 = vmmov %vm8631_vm0  ;;  %v7454_v17 = vld [vmem:[#allocation3 + $0xb2] sm:$0xff] }
 0x2da   : > { %4886 = vst.msk [vmem:[#allocation4 + $0x18] sm:$0xff] %vm8631_vm0, %v4868_v7  ;;  %4581 = vrot.lane.b32.xlu1 %v4544_v21, %s5565_s23  ;;  %v4760_v37 = vld [vmem:[#allocation3 + $0xbd] sm:$0xff] }
 0x2db   : > { %3453 = vrot.lane.b32.xlu0 %v7188_v5, %s5565_s23  ;;  %v3452_v26 = vpop.permute.xlu1 %3451  ;;  %v7411_v5 = vld [vmem:[#allocation3 + $0xbc] sm:$0xff] }
 0x2dc   : > { %3502 = vst.msk [vmem:[#allocation4 + $0x30] sm:$0xff] %vm8633_vm5, %v3452_v26  ;;  %v3666_v57 = vpop.permute.xlu0 %3665  ;;  %vm8641_vm5 = vmmov %vm8631_vm0  ;;  %v7458_v21 = vld [vmem:[#allocation3 + $0xba] sm:$0xff] }
 0x2dd   : > { %v4869_v28 = vld [vmem:[#allocation3 + $0xc6] sm:$0xff]  ;;  %3717 = vst.msk [vmem:[#allocation4 + $0x20] sm:$0xff] %vm8635_vm10, %v3666_v57  ;;  %vm8643_vm10 = vmmov %vm8631_vm0  ;;  %v4438_v57 = vld [vmem:[#allocation3 + $0xbb] sm:$0xff] }
 0x2de   : > { %4887 = vst.msk [vmem:[#allocation4 + $0x28] sm:$0xff] %vm8634_vm12, %v4869_v28  ;;  %3455 = vrot.lane.b32.xlu1 %v7201_v36, %s5565_s23  ;;  %vm8642_vm12 = vnez %v8481_v31 }
 0x2df   : > { %4687 = vrot.lane.b32.xlu0 %v7406_v34, %s5566_s30  ;;  %v3560_v4 = vpop.permute.xlu1 %3559 }
 0x2e0   : > { %3610 = vst.msk [vmem:[#allocation4 + $0x30] sm:$0xff] %vm8636_vm15, %v3560_v4  ;;  %vm8644_vm15 = vmmov %vm8631_vm0 }
 0x2e1   : > { %v4906_v35 = vld [vmem:[#allocation4 + $0x18] sm:$0xff] }
 0x2e2   : > { %4689 = vrot.lane.b32.xlu1 %v7411_v5, %s5566_s30  ;;  %v4940_v48 = vpack.c.bf16 %v4906_v35, %v4904_v6  ;;  %v3307_v6 = vld [vmem:[#allocation3 + $0x43] sm:$0xff] }
 0x2e3   : > { %3561 = vrot.lane.b32.xlu0 %v7415_v1, %s5566_s30  ;;  %v3668_v36 = vpop.permute.xlu1 %3667 }
 0x2e4   : > { %3718 = vst.msk [vmem:[#allocation4 + $0x30] sm:$0xff] %vm8637_vm1, %v3668_v36  ;;  %5367 = vmatprep.mubr.msk.bf16.mxu1 %vm8638_vm14, %v4940_v48  ;;  %v3773_v42 = vld [vmem:[#allocation4 + $0x20] sm:$0xff]  ;;  %vm8645_vm1 = vmmov %vm8631_vm0  ;;  %vm8646_vm14 = vnez %v8490_v51 }
 0x2e5   : > { %4095 = vst.msk [vmem:[#allocation4 + $0x20] sm:$0xff] %vm8639_vm7, %v4077_v20  ;;  %vm8647_vm7 = vmmov %vm8631_vm0 }
 0x2e6   : > { %3563 = vrot.lane.b32.xlu1 %v7421_v63, %s5566_s30 }
 0x2e7   : > { %4795 = vrot.lane.b32.xlu0 %v4759_v8, %s5567_s6 }
 0x2ea   : > { %v2837_v50 = vpop.f32.mrf.mxu1  ;;  %4797 = vrot.lane.b32.xlu1 %v4760_v37, %s5567_s6  ;;  %v7489_v37 = vld [vmem:[#allocation4 + $0x68] sm:$0xff] }
 0x2eb   : > { %v2838_v11 = vadd.f32 %v7160_v29, %v2837_v50  ;;  %3669 = vrot.lane.b32.xlu0 %v3629_v30, %s5567_s6  ;;  %v3775_v60 = vld [vmem:[#allocation4 + $0x30] sm:$0xff] }
 0x2ec   : > { %v3807_v16 = vpack.c.bf16 %v3775_v60, %v3773_v42  ;;  %v2839_v39 = vpop.f32.mrf.mxu1  ;;  %4096 = vst.msk [vmem:[#allocation4 + $0x30] sm:$0xff] %vm8631_vm0, %v4078_v53  ;;  %v3308_v42 = vld [vmem:[#allocation3 + $0x4b] sm:$0xff]  ;;  %vm8648_vm0 = vnez %v8494_v40 }
 0x2ed   : > { %v2890_v54 = vsel %vm6853_vm6, %v2838_v11, 0.0  ;;  %v7493_v30 = vld [vmem:[#allocation3 + $0xc4] sm:$0xff]  ;;  %v3631_v11 = vld [vmem:[#allocation3 + $0x55] sm:$0xff] }
 0x2ee   : > { %2908 = vst.msk [vmem:[#allocation3 + $0xd3] sm:$0xff] %vm8640_vm13, %v2890_v54  ;;  %3951 = vmatmul.mubr.bf16.gmra.mxu0 %v3807_v16  ;;  %3671 = vrot.lane.b32.xlu1 %v3630_v55, %s5567_s6  ;;  %v2840_v22 = vpop.f32.mrf.mxu1  ;;  %vm8649_vm13 = vmmov %vm8645_vm1  ;;  %v4115_v54 = vld [vmem:[#allocation3 + $0xb1] sm:$0xff] }
 0x2ef   : > { %4151 = vrot.lane.b32.xlu0 %v4113_v38, %s5560_s10  ;;  %5360 = vmatprep.mubr.msk.bf16.mxu0 %vm8641_vm5, %v3810_v25  ;;  %v2841_v3 = vadd.f32 %v7160_v29, %v2840_v22  ;;  %vm8650_vm5 = vmmov %vm8645_vm1 }
 0x2f0   : > { %v2842_v12 = vpop.f32.mrf.mxu1 }
 0x2f1   : > { %v2891_v43 = vsel %vm8642_vm12, %v2841_v3, 0.0  ;;  %v4116_v3 = vld [vmem:[#allocation3 + $0xb9] sm:$0xff] }
 0x2f2   : > { %4153 = vrot.lane.b32.xlu1 %v4114_v10, %s5560_s10  ;;  %2909 = vst.msk [vmem:[#allocation3 + $0xdb] sm:$0xff] %vm8643_vm10, %v2891_v43  ;;  %vm8651_vm10 = vmmov %vm8645_vm1  ;;  %v2985_v10 = vld [vmem:[#allocation3 + $0x41] sm:$0xff] }
 0x2f3   : > { %3025 = vrot.lane.b32.xlu0 %v2983_v33, %s5560_s10 }
 0x2f5   : > { %v4870_v15 = vld [vmem:[#allocation3 + $0xce] sm:$0xff] }
 0x2f6   : > { %4888 = vst.msk [vmem:[#allocation4 + $0x38] sm:$0xff] %vm8644_vm15, %v4870_v15  ;;  %3027 = vrot.lane.b32.xlu1 %v2984_v45, %s5560_s10  ;;  %v4762_v52 = vld [vmem:[#allocation3 + $0xcd] sm:$0xff]  ;;  %vm8652_vm15 = vnez %v8504_v24 }
 0x2f7   : > { %4259 = vrot.lane.b32.xlu0 %v7352_v58, %s5561_s11  ;;  %v7462_v58 = vld [vmem:[#allocation3 + $0x42] sm:$0xff] }
 0x2f8   : > { %v7528_v15 = vld [vmem:[#allocation4 + $0x78] sm:$0xff] }
 0x2f9   : > { %v4871_v7 = vld [vmem:[#allocation3 + $0xd6] sm:$0xff] }
 0x2fa   : > { %4261 = vrot.lane.b32.xlu1 %v7362_v41, %s5561_s11  ;;  %4889 = vst.msk [vmem:[#allocation4 + $0x48] sm:$0xff] %vm8645_vm1, %v4871_v7  ;;  %v7466_v41 = vld [vmem:[#allocation3 + $0x4a] sm:$0xff] }
 0x2fb   : > { %3133 = vrot.lane.b32.xlu0 %v7360_v59, %s5561_s11  ;;  %v4437_v59 = vld [vmem:[#allocation3 + $0xb3] sm:$0xff] }
 0x2fe   : > { %3135 = vrot.lane.b32.xlu1 %v7371_v18, %s5561_s11 }
 0x2ff   : > { %4367 = vrot.lane.b32.xlu0 %v7454_v17, %s5562_s12 }
 0x302   : > { %4369 = vrot.lane.b32.xlu1 %v7458_v21, %s5562_s12 }
 0x303   : > { %3241 = vrot.lane.b32.xlu0 %v7462_v58, %s5562_s12 }
 0x306   : > { %3243 = vrot.lane.b32.xlu1 %v7466_v41, %s5562_s12  ;;  %v2845_v18 = vpop.f32.mrf.mxu1 }
 0x307   : > { %4475 = vrot.lane.b32.xlu0 %v4437_v59, %s5564_s13  ;;  %v2846_v26 = vadd.f32 %v7160_v29, %v2845_v18  ;;  %v7536_v18 = vld [vmem:[#allocation4 + $0x88] sm:$0xff] }
 0x308   : > { %v2847_v28 = vpop.f32.mrf.mxu1 }
 0x309   : > { %v2892_v4 = vsel %vm8646_vm14, %v2846_v26, 0.0 }
 0x30a   : > { %4477 = vrot.lane.b32.xlu1 %v4438_v57, %s5564_s13  ;;  %2910 = vst.msk [vmem:[#allocation3 + $0xe3] sm:$0xff] %vm8647_vm7, %v2892_v4  ;;  %v2848_v35 = vpop.f32.mrf.mxu1  ;;  %vm8653_vm7 = vcmask 261248  }
 0x30b   : > { %3349 = vrot.lane.b32.xlu0 %v3307_v6, %s5564_s13  ;;  %v2849_v48 = vadd.f32 %v7160_v29, %v2848_v35  ;;  %v7557_v6 = vld [vmem:[#allocation3 + $0x52] sm:$0xff] }
 0x30c   : > { %v2850_v36 = vpop.f32.mrf.mxu1 }
 0x30d   : > { %v2893_v20 = vsel %vm8648_vm0, %v2849_v48, 0.0  ;;  %v7563_v48 = vld [vmem:[#allocation3 + $0x5a] sm:$0xff]  ;;  %v4439_v36 = vld [vmem:[#allocation3 + $0xc3] sm:$0xff] }
 0x30e   : > { %3351 = vrot.lane.b32.xlu1 %v3308_v42, %s5564_s13  ;;  %2911 = vst.msk [vmem:[#allocation3 + $0xeb] sm:$0xff] %vm8649_vm13, %v2893_v20  ;;  %vm8654_vm13 = vnez %v8508_v14  ;;  %v7571_v20 = vld [vmem:[%s8408_s2] ss:$0 sm:$0xff] }
 0x30f   : > { %4583 = vrot.lane.b32.xlu0 %v7406_v34, %s5565_s23  ;;  %v7498_v34 = vld [vmem:[#allocation3 + $0xcc] sm:$0xff] }
 0x311   : > { %v4872_v8 = vld [vmem:[#allocation3 + $0xde] sm:$0xff] }
 0x312   : > { %4890 = vst.msk [vmem:[#allocation4 + $0x58] sm:$0xff] %vm8650_vm5, %v4872_v8  ;;  %4585 = vrot.lane.b32.xlu1 %v7411_v5, %s5565_s23  ;;  %v7502_v5 = vld [vmem:[#allocation3 + $0x54] sm:$0xff]  ;;  %vm8655_vm5 = vmmov %vm8645_vm1 }
 0x313   : > { %3457 = vrot.lane.b32.xlu0 %v7415_v1, %s5565_s23  ;;  %v7506_v1 = vld [vmem:[#allocation3 + $0x5c] sm:$0xff] }
 0x315   : > { %v4873_v50 = vld [vmem:[#allocation3 + $0xe6] sm:$0xff] }
 0x316   : > { %3459 = vrot.lane.b32.xlu1 %v7421_v63, %s5565_s23  ;;  %4891 = vst.msk [vmem:[#allocation4 + $0x68] sm:$0xff] %vm8651_vm10, %v4873_v50  ;;  %v4761_v63 = vld [vmem:[#allocation3 + $0xc5] sm:$0xff]  ;;  %vm8656_vm10 = vmmov %vm8653_vm7 }
 0x317   : > { %4691 = vrot.lane.b32.xlu0 %v7493_v30, %s5566_s30 }
 0x31a   : > { %4693 = vrot.lane.b32.xlu1 %v7498_v34, %s5566_s30 }
 0x31b   : > { %3565 = vrot.lane.b32.xlu0 %v7502_v5, %s5566_s30 }
 0x31e   : > { %3567 = vrot.lane.b32.xlu1 %v7506_v1, %s5566_s30 }
 0x31f   : > { %4799 = vrot.lane.b32.xlu0 %v4761_v63, %s5567_s6 }
 0x322   : > { %4801 = vrot.lane.b32.xlu1 %v4762_v52, %s5567_s6  ;;  %v2853_v60 = vpop.f32.mrf.mxu1  ;;  %v4440_v52 = vld [vmem:[#allocation3 + $0xcb] sm:$0xff] }
 0x323   : > { %3673 = vrot.lane.b32.xlu0 %v3631_v11, %s5567_s6  ;;  %v2854_v53 = vadd.f32 %v7160_v29, %v2853_v60 }
 0x324   : > { %v2855_v16 = vpop.f32.mrf.mxu1 }
 0x325   : > { %v2894_v39 = vsel %vm8652_vm15, %v2854_v53, 0.0  ;;  %v3309_v53 = vld [vmem:[#allocation3 + $0x53] sm:$0xff] }
 0x326   : > { %3675 = vrot.lane.b32.xlu1 %v3632_v9, %s5567_s6  ;;  %2912 = vst.msk [vmem:[#allocation3 + $0xf3] sm:$0xff] %vm8645_vm1, %v2894_v39  ;;  %v2856_v55 = vpop.f32.mrf.mxu1  ;;  %vm8657_vm1 = vmmov %vm8653_vm7 }
 0x327   : > { %4155 = vrot.lane.b32.xlu0 %v4115_v54, %s5560_s10  ;;  %v2857_v25 = vadd.f32 %v7160_v29, %v2856_v55  ;;  %v2986_v29 = vld [vmem:[#allocation3 + $0x49] sm:$0xff]  ;;  %v3310_v55 = vld [vmem:[#allocation3 + $0x5b] sm:$0xff] }
 0x328   : > { %v4148_v38 = vpop.permute.xlu0 %4147  ;;  %v2858_v22 = vpop.f32.mrf.mxu1 }
 0x329   : > { %4201 = vst.msk [vmem:[#allocation4] sm:$0xff] %vm8653_vm7, %v4148_v38  ;;  %v2895_v12 = vsel %vm8654_vm13, %v2857_v25, 0.0  ;;  %vm8658_vm7 = vmmov %vm8655_vm5  ;;  %vm8660_vm13 = vcmask 392448  }
 0x32a   : > { %4157 = vrot.lane.b32.xlu1 %v4116_v3, %s5560_s10  ;;  %2913 = vst.msk [vmem:[#allocation3 + $0xfb] sm:$0xff] %vm8655_vm5, %v2895_v12  ;;  %vm8659_vm5 = vmmov %vm8657_vm1  ;;  %v7591_v12 = vld [vmem:[#allocation4 + $0x98] sm:$0xff] }
 0x32b   : > { %3029 = vrot.lane.b32.xlu0 %v2985_v10, %s5560_s10 }
 0x32c   : > { %v4150_v43 = vpop.permute.xlu1 %4149  ;;  %v3022_v33 = vpop.permute.xlu0 %3021 }
 0x32d   : > { %4202 = vst.msk [vmem:[#allocation4 + $0x10] sm:$0xff] %vm8656_vm10, %v4150_v43  ;;  %v4874_v45 = vld [vmem:[#allocation3 + $0xee] sm:$0xff]  ;;  %vm8661_vm10 = vmmov %vm8658_vm7 }
 0x32e   : > { %3071 = vst.msk [vmem:[#allocation4 + $0x40] sm:$0xff] %vm8657_vm1, %v3022_v33  ;;  %3031 = vrot.lane.b32.xlu1 %v2986_v29, %s5560_s10  ;;  %vm8662_vm1 = vmmov %vm8660_vm13  ;;  %v7603_v33 = vld [vmem:[#allocation3 + $0xd4] sm:$0xff] }
 0x32f   : > { %4892 = vst.msk [vmem:[#allocation4 + $0x78] sm:$0xff] %vm8658_vm7, %v4874_v45  ;;  %4263 = vrot.lane.b32.xlu0 %v7454_v17, %s5561_s11  ;;  %vm8663_vm7 = vmmov %vm8662_vm1  ;;  %v7547_v17 = vld [vmem:[#allocation3 + $0xc2] sm:$0xff]  ;;  %v7605_v29 = vld [vmem:[#allocation4 + $0xa8] sm:$0xff] }
 0x330   : > { %v3024_v7 = vpop.permute.xlu1 %3023  ;;  %v4256_v59 = vpop.permute.xlu0 %4255 }
 0x331   : > { %3072 = vst.msk [vmem:[#allocation4 + $0x50] sm:$0xff] %vm8659_vm5, %v3024_v7  ;;  %v4875_v26 = vld [vmem:[#allocation3 + $0xf6] sm:$0xff]  ;;  %vm8665_vm5 = vcmask 523648  }
 0x332   : > { %4309 = vst.msk [vmem:[#allocation4] sm:$0xff] %vm8660_vm13, %v4256_v59  ;;  %4265 = vrot.lane.b32.xlu1 %v7458_v21, %s5561_s11  ;;  %vm8664_vm13 = vmmov %vm8662_vm1  ;;  %v7611_v7 = vld [vmem:[#allocation3 + $0xdc] sm:$0xff] }
 0x333   : > { %4893 = vst.msk [vmem:[#allocation4 + $0x88] sm:$0xff] %vm8661_vm10, %v4875_v26  ;;  %3137 = vrot.lane.b32.xlu0 %v7462_v58, %s5561_s11  ;;  %v7553_v58 = vld [vmem:[#allocation3 + $0xca] sm:$0xff]  ;;  %vm8666_vm10 = vmmov %vm8665_vm5 }
 0x334   : > { %v4258_v28 = vpop.permute.xlu1 %4257  ;;  %v3130_v57 = vpop.permute.xlu0 %3129 }
 0x335   : > { %4310 = vst.msk [vmem:[#allocation4 + $0x10] sm:$0xff] %vm8662_vm1, %v4258_v28  ;;  %vm8667_vm1 = vmmov %vm8665_vm5  ;;  %v7621_v28 = vld [vmem:[#allocation3 + $0x6c] sm:$0xff] }
 0x336   : > { %3179 = vst.msk [vmem:[#allocation4 + $0x40] sm:$0xff] %vm8663_vm7, %v3130_v57  ;;  %3139 = vrot.lane.b32.xlu1 %v7466_v41, %s5561_s11  ;;  %vm8668_vm7 = vmmov %vm8667_vm1  ;;  %v4763_v57 = vld [vmem:[#allocation3 + $0xd5] sm:$0xff] }
 0x337   : > { %4371 = vrot.lane.b32.xlu0 %v7547_v17, %s5562_s12 }
 0x338   : > { %v3132_v21 = vpop.permute.xlu1 %3131  ;;  %v4364_v4 = vpop.permute.xlu0 %4363 }
 0x339   : > { %3180 = vst.msk [vmem:[#allocation4 + $0x50] sm:$0xff] %vm8664_vm13, %v3132_v21  ;;  %vm8669_vm13 = vcmask 654848  }
 0x33a   : > { %4417 = vst.msk [vmem:[#allocation4] sm:$0xff] %vm8665_vm5, %v4364_v4  ;;  %4373 = vrot.lane.b32.xlu1 %v7553_v58, %s5562_s12  ;;  %vm8670_vm5 = vnez %v8520_v46 }
 0x33b   : > { %3245 = vrot.lane.b32.xlu0 %v7557_v6, %s5562_s12 }
 0x33c   : > { %v4366_v41 = vpop.permute.xlu1 %4365  ;;  %v3238_v35 = vpop.permute.xlu0 %3237 }
 0x33d   : > { %4418 = vst.msk [vmem:[#allocation4 + $0x10] sm:$0xff] %vm8666_vm10, %v4366_v41  ;;  %vm8671_vm10 = vcmask 130048   ;;  %v4764_v41 = vld [vmem:[#allocation3 + $0xdd] sm:$0xff] }
 0x33e   : > { %3287 = vst.msk [vmem:[#allocation4 + $0x40] sm:$0xff] %vm8667_vm1, %v3238_v35  ;;  %3247 = vrot.lane.b32.xlu1 %v7563_v48, %s5562_s12  ;;  %v2861_v42 = vpop.f32.mrf.mxu1  ;;  %vm8672_vm1 = vmmov %vm8669_vm13  ;;  %v3633_v35 = vld [vmem:[#allocation3 + $0x65] sm:$0xff] }
 0x33f   : > { %4479 = vrot.lane.b32.xlu0 %v4439_v36, %s5564_s13  ;;  %v2862_v8 = vadd.f32 %v7571_v20, %v2861_v42 }
 0x340   : > { %v3240_v50 = vpop.permute.xlu1 %3239  ;;  %v4472_v63 = vpop.permute.xlu0 %4471 }
 0x341   : > { %3288 = vst.msk [vmem:[#allocation4 + $0x50] sm:$0xff] %vm8668_vm7, %v3240_v50  ;;  %v2896_v11 = vsel %vm8670_vm5, %v2862_v8, 0.0  ;;  %v2863_v60 = vpop.f32.mrf.mxu1  ;;  %vm8673_vm7 = vmmov %vm8672_vm1 }
 0x342   : > { %4525 = vst.msk [vmem:[#allocation4] sm:$0xff] %vm8669_vm13, %v4472_v63  ;;  %4481 = vrot.lane.b32.xlu1 %v4440_v52, %s5564_s13  ;;  %vm8674_vm13 = vnez %v8527_v27  ;;  %vm8675_vm5 = vmmov %vm8672_vm1  ;;  %v3634_v52 = vld [vmem:[#allocation3 + $0x6d] sm:$0xff]  ;;  %v4117_v60 = vld [vmem:[#allocation3 + $0xc1] sm:$0xff] }
 0x343   : > { %2914 = vst.msk [vmem:[#allocation3 + $0x103] sm:$0xff] %vm8671_vm10, %v2896_v11  ;;  %3353 = vrot.lane.b32.xlu0 %v3309_v53, %s5564_s13  ;;  %v2864_v16 = vpop.f32.mrf.mxu1 }
 0x344   : > { %v4474_v9 = vpop.permute.xlu1 %4473  ;;  %v2865_v39 = vadd.f32 %v7571_v20, %v2864_v16 }
 0x345   : > { %4526 = vst.msk [vmem:[#allocation4 + $0x10] sm:$0xff] %vm8672_vm1, %v4474_v9  ;;  %v3346_v54 = vpop.permute.xlu0 %3345  ;;  %v2866_v25 = vpop.f32.mrf.mxu1  ;;  %vm8676_vm1 = vcmask 786048  }
 0x346   : > { %3395 = vst.msk [vmem:[#allocation4 + $0x40] sm:$0xff] %vm8673_vm7, %v3346_v54  ;;  %3355 = vrot.lane.b32.xlu1 %v3310_v55, %s5564_s13  ;;  %v2897_v38 = vsel %vm8674_vm13, %v2865_v39, 0.0  ;;  %vm8677_vm7 = vmmov %vm8671_vm10  ;;  %v4118_v55 = vld [vmem:[#allocation3 + $0xc9] sm:$0xff] }
 0x347   : > { %4587 = vrot.lane.b32.xlu0 %v7493_v30, %s5565_s23  ;;  %2915 = vst.msk [vmem:[#allocation3 + $0x10b] sm:$0xff] %vm8671_vm10, %v2897_v38  ;;  %vm8678_vm13 = vmmov %vm8676_vm1  ;;  %v2987_v38 = vld [vmem:[#allocation3 + $0x51] sm:$0xff] }
 0x348   : > { %v3348_v22 = vpop.permute.xlu1 %3347  ;;  %vm8679_vm10 = vmmov %vm8676_vm1 }
 0x349   : > { %3396 = vst.msk [vmem:[#allocation4 + $0x50] sm:$0xff] %vm8675_vm5, %v3348_v22  ;;  %v4580_v3 = vpop.permute.xlu0 %4579  ;;  %vm8680_vm5 = vmmov %vm8677_vm7  ;;  %v2988_v22 = vld [vmem:[#allocation3 + $0x59] sm:$0xff] }
 0x34a   : > { %v4876_v10 = vld [vmem:[#allocation3 + $0xfe] sm:$0xff]  ;;  %4633 = vst.msk [vmem:[#allocation4] sm:$0xff] %vm8676_vm1, %v4580_v3  ;;  %4589 = vrot.lane.b32.xlu1 %v7498_v34, %s5565_s23  ;;  %v4910_v3 = vld [vmem:[#allocation4 + $0x38] sm:$0xff] }
 0x34b   : > { %4894 = vst.msk [vmem:[#allocation4 + $0x98] sm:$0xff] %vm8677_vm7, %v4876_v10  ;;  %3461 = vrot.lane.b32.xlu0 %v7502_v5, %s5565_s23  ;;  %v7647_v10 = vld [vmem:[#allocation4 + $0xb8] sm:$0xff] }
 0x34c   : > { %v4582_v30 = vpop.permute.xlu1 %4581 }
 0x34d   : > { %4634 = vst.msk [vmem:[#allocation4 + $0x10] sm:$0xff] %vm8678_vm13, %v4582_v30  ;;  %v3454_v43 = vpop.permute.xlu0 %3453  ;;  %vm8681_vm13 = vcmask 917248  }
 0x34e   : > { %3503 = vst.msk [vmem:[#allocation4 + $0x40] sm:$0xff] %vm8679_vm10, %v3454_v43  ;;  %3463 = vrot.lane.b32.xlu1 %v7506_v1, %s5565_s23  ;;  %v4877_v45 = vld [vmem:[#allocation3 + $0x106] sm:$0xff]  ;;  %vm8682_vm7 = vmmov %vm8681_vm13 }
 0x34f   : > { %4695 = vrot.lane.b32.xlu0 %v7603_v33, %s5566_s30  ;;  %4895 = vst.msk [vmem:[#allocation4 + $0xa8] sm:$0xff] %vm8680_vm5, %v4877_v45  ;;  %v7616_v1 = vld [vmem:[#allocation3 + $0x64] sm:$0xff]  ;;  %vm8683_vm10 = vmmov %vm8682_vm7 }
 0x350   : > { %v3456_v34 = vpop.permute.xlu1 %3455  ;;  %vm8684_vm5 = vmmov %vm8682_vm7 }
 0x351   : > { %3504 = vst.msk [vmem:[#allocation4 + $0x50] sm:$0xff] %vm8676_vm1, %v3456_v34  ;;  %v4688_v5 = vpop.permute.xlu0 %4687  ;;  %vm8685_vm1 = vcmask 1048448   ;;  %v4079_v34 = vld [vmem:[#allocation3 + $0xb0] sm:$0xff] }
 0x352   : > { %4741 = vst.msk [vmem:[#allocation4] sm:$0xff] %vm8681_vm13, %v4688_v5  ;;  %4697 = vrot.lane.b32.xlu1 %v7611_v7, %s5566_s30  ;;  %vm8686_vm13 = vmmov %vm8685_vm1 }
 0x353   : > { %3569 = vrot.lane.b32.xlu0 %v7616_v1, %s5566_s30 }
 0x354   : > { %v4690_v59 = vpop.permute.xlu1 %4689 }
 0x355   : > { %4742 = vst.msk [vmem:[#allocation4 + $0x10] sm:$0xff] %vm8682_vm7, %v4690_v59  ;;  %v3562_v26 = vpop.permute.xlu0 %3561  ;;  %vm8687_vm7 = vnez %v8553_v47 }
 0x356   : > { %3611 = vst.msk [vmem:[#allocation4 + $0x40] sm:$0xff] %vm8683_vm10, %v3562_v26  ;;  %3571 = vrot.lane.b32.xlu1 %v7621_v28, %s5566_s30  ;;  %vm8688_vm10 = vmmov %vm8685_vm1  ;;  %v4908_v26 = vld [vmem:[#allocation4 + $0x28] sm:$0xff] }
 0x357   : > { %4803 = vrot.lane.b32.xlu0 %v4763_v57, %s5567_s6 }
 0x358   : > { %v3564_v21 = vpop.permute.xlu1 %3563 }
 0x359   : > { %3612 = vst.msk [vmem:[#allocation4 + $0x50] sm:$0xff] %vm8684_vm5, %v3564_v21  ;;  %v4796_v4 = vpop.permute.xlu0 %4795  ;;  %vm8689_vm5 = vcmask 130048  }
 0x35a   : > { %4849 = vst.msk [vmem:[#allocation4] sm:$0xff] %vm8685_vm1, %v4796_v4  ;;  %4805 = vrot.lane.b32.xlu1 %v4764_v41, %s5567_s6  ;;  %v2869_v36 = vpop.f32.mrf.mxu1  ;;  %v4942_v4 = vpack.c.bf16 %v4910_v3, %v4908_v26  ;;  %v3312_v26 = vld [vmem:[#allocation3 + $0x6b] sm:$0xff] }
 0x35b   : > { %3677 = vrot.lane.b32.xlu0 %v3633_v35, %s5567_s6  ;;  %v2870_v42 = vadd.f32 %v7571_v20, %v2869_v36  ;;  %v4080_v36 = vld [vmem:[#allocation3 + $0xb8] sm:$0xff] }
 0x35c   : > { %v4798_v8 = vpop.permute.xlu1 %4797  ;;  %v2871_v50 = vpop.f32.mrf.mxu1 }
 0x35d   : > { %4850 = vst.msk [vmem:[#allocation4 + $0x10] sm:$0xff] %vm8686_vm13, %v4798_v8  ;;  %v3670_v63 = vpop.permute.xlu0 %3669  ;;  %v2898_v11 = vsel %vm8687_vm7, %v2870_v42, 0.0  ;;  %vm8690_vm13 = vnez %v8559_v61  ;;  %v7659_v50 = vld [vmem:[#allocation4 + $0xc8] sm:$0xff] }
 0x35e   : > { %3719 = vst.msk [vmem:[#allocation4 + $0x40] sm:$0xff] %vm8688_vm10, %v3670_v63  ;;  %3679 = vrot.lane.b32.xlu1 %v3634_v52, %s5567_s6  ;;  %v2872_v53 = vpop.f32.mrf.mxu1  ;;  %vm8691_vm10 = vcmask 261248  }
 0x35f   : > { %2916 = vst.msk [vmem:[#allocation3 + $0x113] sm:$0xff] %vm8689_vm5, %v2898_v11  ;;  %4159 = vrot.lane.b32.xlu0 %v4117_v60, %s5560_s10  ;;  %v2873_v16 = vadd.f32 %v7571_v20, %v2872_v53  ;;  %v7684_v60 = vld [vmem:[#allocation3 + $0x62] sm:$0xff] }
 0x360   : > { %v3672_v9 = vpop.permute.xlu1 %3671  ;;  %v2874_v39 = vpop.f32.mrf.mxu1 }
 0x361   : > { %3720 = vst.msk [vmem:[#allocation4 + $0x50] sm:$0xff] %vm8685_vm1, %v3672_v9  ;;  %v4152_v54 = vpop.permute.xlu0 %4151  ;;  %v2899_v25 = vsel %vm8690_vm13, %v2873_v16, 0.0  ;;  %v4903_v43 = vld [vmem:[#allocation4] sm:$0xff]  ;;  %vm8692_vm1 = vmmov %vm8691_vm10 }
 0x362   : > { %4203 = vst.msk [vmem:[#allocation4 + $0x20] sm:$0xff] %vm8691_vm10, %v4152_v54  ;;  %4161 = vrot.lane.b32.xlu1 %v4118_v55, %s5560_s10  ;;  %vm8693_vm10 = vmmov %vm8692_vm1  ;;  %v7689_v16 = vld [vmem:[#allocation3 + $0x6a] sm:$0xff]  ;;  %v4441_v9 = vld [vmem:[#allocation3 + $0xd3] sm:$0xff] }
 0x363   : > { %2917 = vst.msk [vmem:[#allocation3 + $0x11b] sm:$0xff] %vm8689_vm5, %v2899_v25  ;;  %3033 = vrot.lane.b32.xlu0 %v2987_v38, %s5560_s10  ;;  %vm8694_vm13 = vmmov %vm8689_vm5 }
 0x364   : > { %v4154_v30 = vpop.permute.xlu1 %4153  ;;  %v4905_v45 = vld [vmem:[#allocation4 + $0x10] sm:$0xff]  ;;  %vm8696_vm7 = vmmov %vm8693_vm10 }
 0x365   : > { %4204 = vst.msk [vmem:[#allocation4 + $0x30] sm:$0xff] %vm8692_vm1, %v4154_v30  ;;  %v3026_v5 = vpop.permute.xlu0 %3025  ;;  %v4939_v59 = vpack.c.bf16 %v4905_v45, %v4903_v43  ;;  %v3777_v57 = vld [vmem:[#allocation4 + $0x40] sm:$0xff]  ;;  %vm8695_vm1 = vmmov %vm8689_vm5  ;;  %v3311_v30 = vld [vmem:[#allocation3 + $0x63] sm:$0xff] }
 0x366   : > { %v4878_v21 = vld [vmem:[#allocation3 + $0x10e] sm:$0xff]  ;;  %3073 = vst.msk [vmem:[#allocation4 + $0x60] sm:$0xff] %vm8693_vm10, %v3026_v5  ;;  %3035 = vrot.lane.b32.xlu1 %v2988_v22, %s5560_s10  ;;  %vm8697_vm10 = vmmov %vm8695_vm1  ;;  %v4442_v22 = vld [vmem:[#allocation3 + $0xdb] sm:$0xff] }
 0x367   : > { %4097 = vst.msk [vmem:[#allocation4 + $0x40] sm:$0xff] %vm8689_vm5, %v4079_v34  ;;  %4267 = vrot.lane.b32.xlu0 %v7547_v17, %s5561_s11  ;;  %5017 = vmatmul.mubr.bf16.vlgmr.msra.gmra.mxu1 %v4939_v59  ;;  %vm8698_vm5 = vcmask 392448   ;;  %v3812_v17 = vpack.c.bf16 %v7528_v15, %v7489_v37 }
 0x368   : > { %4896 = vst.msk [vmem:[#allocation4 + $0xb8] sm:$0xff] %vm8694_vm13, %v4878_v21  ;;  %v3028_v41 = vpop.permute.xlu1 %3027  ;;  %5368 = vmatprep.mubr.msk.bf16.mxu1 %vm8695_vm1, %v4942_v4  ;;  %v3779_v35 = vld [vmem:[#allocation4 + $0x50] sm:$0xff]  ;;  %vm8699_vm13 = vmmov %vm8695_vm1  ;;  %v7713_v4 = vld [vmem:[#allocation4 + $0xd8] sm:$0xff] }
 0x369   : > { %3074 = vst.msk [vmem:[#allocation4 + $0x70] sm:$0xff] %vm8696_vm7, %v3028_v41  ;;  %v4260_v42 = vpop.permute.xlu0 %4259  ;;  %v3809_v8 = vpack.c.bf16 %v3779_v35, %v3777_v57  ;;  %vm8700_vm7 = vmmov %vm8695_vm1 }
 0x36a   : > { %4098 = vst.msk [vmem:[#allocation4 + $0x50] sm:$0xff] %vm8697_vm10, %v4080_v36  ;;  %v4879_v63 = vld [vmem:[#allocation3 + $0x116] sm:$0xff]  ;;  %4269 = vrot.lane.b32.xlu1 %v7553_v58, %s5561_s11  ;;  %vm8701_vm1 = vmmov %vm8698_vm5 }
 0x36b   : > { %4311 = vst.msk [vmem:[#allocation4 + $0x20] sm:$0xff] %vm8698_vm5, %v4260_v42  ;;  %3141 = vrot.lane.b32.xlu0 %v7557_v6, %s5561_s11  ;;  %3959 = vmatmul.mubr.bf16.gmra.mxu0 %v3809_v8  ;;  %vm8702_vm10 = vmmov %vm8701_vm1  ;;  %v7674_v58 = vld [vmem:[#allocation3 + $0xd2] sm:$0xff]  ;;  %v7679_v6 = vld [vmem:[#allocation3 + $0xda] sm:$0xff] }
 0x36c   : > { %4897 = vst.msk [vmem:[#allocation4 + $0xc8] sm:$0xff] %vm8699_vm13, %v4879_v63  ;;  %v4262_v52 = vpop.permute.xlu1 %4261  ;;  %5361 = vmatprep.mubr.msk.bf16.mxu0 %vm8700_vm7, %v3812_v17  ;;  %vm8703_vm5 = vmmov %vm8701_vm1  ;;  %vm8704_vm13 = vcmask 523648   ;;  %v7721_v36 = vld [vmem:[#allocation4 + $0xe8] sm:$0xff]  ;;  %v7724_v42 = vld [vmem:[#allocation4 + $0xf8] sm:$0xff] }
 0x36d   : > { %4312 = vst.msk [vmem:[#allocation4 + $0x30] sm:$0xff] %vm8701_vm1, %v4262_v52  ;;  %v3134_v11 = vpop.permute.xlu0 %3133  ;;  %vm8705_vm7 = vmmov %vm8704_vm13  ;;  %v7736_v52 = vld [vmem:[#allocation3 + $0xec] sm:$0xff] }
 0x36e   : > { %3181 = vst.msk [vmem:[#allocation4 + $0x60] sm:$0xff] %vm8702_vm10, %v3134_v11  ;;  %3143 = vrot.lane.b32.xlu1 %v7563_v48, %s5561_s11  ;;  %vm8706_vm1 = vmmov %vm8705_vm7 }
 0x36f   : > { %4375 = vrot.lane.b32.xlu0 %v7674_v58, %s5562_s12  ;;  %vm8707_vm10 = vmmov %vm8706_vm1 }
 0x370   : > { %v3136_v37 = vpop.permute.xlu1 %3135 }
 0x371   : > { %3182 = vst.msk [vmem:[#allocation4 + $0x70] sm:$0xff] %vm8703_vm5, %v3136_v37  ;;  %v4368_v15 = vpop.permute.xlu0 %4367  ;;  %vm8708_vm5 = vcmask 654848  }
 0x372   : > { %4419 = vst.msk [vmem:[#allocation4 + $0x20] sm:$0xff] %vm8704_vm13, %v4368_v15  ;;  %4377 = vrot.lane.b32.xlu1 %v7679_v6, %s5562_s12  ;;  %vm8709_vm13 = vcmask 130048   ;;  %v7746_v15 = vld [vmem:[#allocation3 + $0x7c] sm:$0xff] }
 0x373   : > { %3249 = vrot.lane.b32.xlu0 %v7684_v60, %s5562_s12 }
 0x374   : > { %v4370_v48 = vpop.permute.xlu1 %4369 }
 0x375   : > { %4420 = vst.msk [vmem:[#allocation4 + $0x30] sm:$0xff] %vm8705_vm7, %v4370_v48  ;;  %v3242_v53 = vpop.permute.xlu0 %3241  ;;  %vm8710_vm7 = vmmov %vm8708_vm5  ;;  %v4765_v48 = vld [vmem:[#allocation3 + $0xe5] sm:$0xff] }
 0x376   : > { %3289 = vst.msk [vmem:[#allocation4 + $0x60] sm:$0xff] %vm8706_vm1, %v3242_v53  ;;  %3251 = vrot.lane.b32.xlu1 %v7689_v16, %s5562_s12  ;;  %v2877_v39 = vpop.f32.mrf.mxu1  ;;  %vm8711_vm1 = vmmov %vm8708_vm5 }
 0x377   : > { %4483 = vrot.lane.b32.xlu0 %v4441_v9, %s5564_s13  ;;  %v2878_v54 = vadd.f32 %v7571_v20, %v2877_v39  ;;  %v7755_v9 = vld [vmem:[%s8408_s2 + $0x1] ss:$0 sm:$0xff] }
 0x378   : > { %v3244_v55 = vpop.permute.xlu1 %3243  ;;  %v2879_v25 = vpop.f32.mrf.mxu1 }
 0x379   : > { %3290 = vst.msk [vmem:[#allocation4 + $0x70] sm:$0xff] %vm8707_vm10, %v3244_v55  ;;  %v4476_v38 = vpop.permute.xlu0 %4475  ;;  %v2900_v3 = vsel %vm7298_vm4, %v2878_v54, 0.0  ;;  %vm8712_vm10 = vmmov %vm8709_vm13  ;;  %v4766_v54 = vld [vmem:[#allocation3 + $0xed] sm:$0xff]  ;;  %v3635_v25 = vld [vmem:[#allocation3 + $0x75] sm:$0xff] }
 0x37a   : > { %4527 = vst.msk [vmem:[#allocation4 + $0x20] sm:$0xff] %vm8708_vm5, %v4476_v38  ;;  %4485 = vrot.lane.b32.xlu1 %v4442_v22, %s5564_s13  ;;  %v2880_v43 = vpop.f32.mrf.mxu1  ;;  %vm8713_vm5 = vmmov %vm8711_vm1 }
 0x37b   : > { %2918 = vst.msk [vmem:[#allocation3 + $0x123] sm:$0xff] %vm8709_vm13, %v2900_v3  ;;  %3357 = vrot.lane.b32.xlu0 %v3311_v30, %s5564_s13  ;;  %v2881_v45 = vadd.f32 %v7571_v20, %v2880_v43  ;;  %vm8714_vm13 = vcmask 786048   ;;  %v3636_v43 = vld [vmem:[#allocation3 + $0x7d] sm:$0xff] }
 0x37c   : > { %v4478_v34 = vpop.permute.xlu1 %4477  ;;  %v2882_v5 = vpop.f32.mrf.mxu1 }
 0x37d   : > { %4528 = vst.msk [vmem:[#allocation4 + $0x30] sm:$0xff] %vm8710_vm7, %v4478_v34  ;;  %v3350_v59 = vpop.permute.xlu0 %3349  ;;  %v2901_v57 = vsel %vm7310_vm2, %v2881_v45, 0.0  ;;  %vm8715_vm7 = vmmov %vm8712_vm10  ;;  %v4119_v34 = vld [vmem:[#allocation3 + $0xd1] sm:$0xff]  ;;  %vm8733_vm2 = vcmask 261248  }
 0x37e   : > { %3397 = vst.msk [vmem:[#allocation4 + $0x60] sm:$0xff] %vm8711_vm1, %v3350_v59  ;;  %3359 = vrot.lane.b32.xlu1 %v3312_v26, %s5564_s13  ;;  %vm8716_vm1 = vmmov %vm8714_vm13 }
 0x37f   : > { %2919 = vst.msk [vmem:[#allocation3 + $0x12b] sm:$0xff] %vm8712_vm10, %v2901_v57  ;;  %4591 = vrot.lane.b32.xlu0 %v7603_v33, %s5565_s23  ;;  %vm8717_vm10 = vmmov %vm8716_vm1 }
 0x380   : > { %v3352_v21 = vpop.permute.xlu1 %3351 }
 0x381   : > { %3398 = vst.msk [vmem:[#allocation4 + $0x70] sm:$0xff] %vm8713_vm5, %v3352_v21  ;;  %v4584_v20 = vpop.permute.xlu0 %4583  ;;  %vm8718_vm5 = vmmov %vm8715_vm7 }
 0x382   : > { %v4880_v41 = vld [vmem:[#allocation3 + $0x11e] sm:$0xff]  ;;  %4635 = vst.msk [vmem:[#allocation4 + $0x20] sm:$0xff] %vm8714_vm13, %v4584_v20  ;;  %4593 = vrot.lane.b32.xlu1 %v7611_v7, %s5565_s23  ;;  %vm8719_vm13 = vmmov %vm8718_vm5 }
 0x383   : > { %4898 = vst.msk [vmem:[#allocation4 + $0xd8] sm:$0xff] %vm8715_vm7, %v4880_v41  ;;  %3465 = vrot.lane.b32.xlu0 %v7616_v1, %s5565_s23  ;;  %v7729_v7 = vld [vmem:[#allocation3 + $0xe4] sm:$0xff]  ;;  %vm8720_vm7 = vmmov %vm8716_vm1  ;;  %v4120_v41 = vld [vmem:[#allocation3 + $0xd9] sm:$0xff] }
 0x384   : > { %v4586_v35 = vpop.permute.xlu1 %4585 }
 0x385   : > { %4636 = vst.msk [vmem:[#allocation4 + $0x30] sm:$0xff] %vm8716_vm1, %v4586_v35  ;;  %v3458_v33 = vpop.permute.xlu0 %3457  ;;  %vm8721_vm1 = vcmask 917248  }
 0x386   : > { %v4881_v8 = vld [vmem:[#allocation3 + $0x126] sm:$0xff]  ;;  %v4882_v63 = vld [vmem:[#allocation3 + $0x12e] sm:$0xff]  ;;  %3505 = vst.msk [vmem:[#allocation4 + $0x60] sm:$0xff] %vm8717_vm10, %v3458_v33  ;;  %3467 = vrot.lane.b32.xlu1 %v7621_v28, %s5565_s23  ;;  %vm8722_vm10 = vmmov %vm8721_vm1 }
 0x387   : > { %4899 = vst.msk [vmem:[#allocation4 + $0xe8] sm:$0xff] %vm8718_vm5, %v4881_v8  ;;  %4699 = vrot.lane.b32.xlu0 %v7729_v7, %s5566_s30  ;;  %v7741_v28 = vld [vmem:[#allocation3 + $0x74] sm:$0xff]  ;;  %vm8723_vm5 = vmmov %vm8721_vm1  ;;  %v2989_v8 = vld [vmem:[#allocation3 + $0x61] sm:$0xff] }
 0x388   : > { %4900 = vst.msk [vmem:[#allocation4 + $0xf8] sm:$0xff] %vm8719_vm13, %v4882_v63  ;;  %v3460_v1 = vpop.permute.xlu1 %3459  ;;  %vm8724_vm13 = vmmov %vm8721_vm1 }
 0x389   : > { %3506 = vst.msk [vmem:[#allocation4 + $0x70] sm:$0xff] %vm8720_vm7, %v3460_v1  ;;  %v4692_v17 = vpop.permute.xlu0 %4691  ;;  %vm8725_vm7 = vcmask 1048448   ;;  %v4912_v1 = vld [vmem:[#allocation4 + $0x48] sm:$0xff] }
 0x38a   : > { %4743 = vst.msk [vmem:[#allocation4 + $0x20] sm:$0xff] %vm8721_vm1, %v4692_v17  ;;  %4701 = vrot.lane.b32.xlu1 %v7736_v52, %s5566_s30  ;;  %vm8726_vm1 = vmmov %vm8725_vm7  ;;  %v4914_v17 = vld [vmem:[#allocation4 + $0x58] sm:$0xff] }
 0x38b   : > { %3573 = vrot.lane.b32.xlu0 %v7741_v28, %s5566_s30 }
 0x38c   : > { %v4694_v11 = vpop.permute.xlu1 %4693 }
 0x38d   : > { %4744 = vst.msk [vmem:[#allocation4 + $0x30] sm:$0xff] %vm8722_vm10, %v4694_v11  ;;  %v3566_v37 = vpop.permute.xlu0 %3565  ;;  %vm8727_vm10 = vmmov %vm8726_vm1 }
 0x38e   : > { %3613 = vst.msk [vmem:[#allocation4 + $0x60] sm:$0xff] %vm8723_vm5, %v3566_v37  ;;  %3575 = vrot.lane.b32.xlu1 %v7746_v15, %s5566_s30  ;;  %vm8728_vm5 = vnez %v8453_v19  ;;  %v8048_v19 = vld [vmem:[#allocation3 + $0x114] sm:$0xff] }
 0x38f   : > { %4807 = vrot.lane.b32.xlu0 %v4765_v48, %s5567_s6 }
 0x390   : > { %v3568_v53 = vpop.permute.xlu1 %3567 }
 0x391   : > { %3614 = vst.msk [vmem:[#allocation4 + $0x70] sm:$0xff] %vm8724_vm13, %v3568_v53  ;;  %v4800_v39 = vpop.permute.xlu0 %4799  ;;  %vm8729_vm13 = vnez %v8455_v49 }
 0x392   : > { %4851 = vst.msk [vmem:[#allocation4 + $0x20] sm:$0xff] %vm8725_vm7, %v4800_v39  ;;  %v3944_v55 = vpop.f32.mrf.mxu0  ;;  %4809 = vrot.lane.b32.xlu1 %v4766_v54, %s5567_s6  ;;  %vm8730_vm7 = vmmov %vm8726_vm1  ;;  %v2990_v39 = vld [vmem:[#allocation3 + $0x69] sm:$0xff] }
 0x393   : > { %v3945_v38 = vadd.f32 %v7755_v9, %v3944_v55  ;;  %3681 = vrot.lane.b32.xlu0 %v3635_v25, %s5567_s6  ;;  %v4081_v25 = vld [vmem:[#allocation3 + $0xc0] sm:$0xff] }
 0x394   : > { %v3946_v22 = vpop.f32.mrf.mxu0  ;;  %v4802_v3 = vpop.permute.xlu1 %4801 }
 0x395   : > { %4852 = vst.msk [vmem:[#allocation4 + $0x30] sm:$0xff] %vm8726_vm1, %v4802_v3  ;;  %v3674_v30 = vpop.permute.xlu0 %3673  ;;  %v4015_v5 = vsel %vm8728_vm5, %v3945_v38, 0.0  ;;  %vm8731_vm1 = vcmask 130048   ;;  %v4944_v38 = vpack.c.bf16 %v4914_v17, %v4912_v1  ;;  %v4444_v17 = vld [vmem:[#allocation3 + $0xeb] sm:$0xff] }
 0x396   : > { %3721 = vst.msk [vmem:[#allocation4 + $0x60] sm:$0xff] %vm8727_vm10, %v3674_v30  ;;  %v3947_v45 = vpop.f32.mrf.mxu0  ;;  %3683 = vrot.lane.b32.xlu1 %v3636_v43, %s5567_s6  ;;  %v4033_v35 = vsel %vm8731_vm1, %v4015_v5, 0.0  ;;  %vm8732_vm10 = vmmov %vm8731_vm1  ;;  %v4082_v30 = vld [vmem:[#allocation3 + $0xc8] sm:$0xff] }
 0x397   : > { %v3948_v59 = vadd.f32 %v7755_v9, %v3947_v45  ;;  %4163 = vrot.lane.b32.xlu0 %v4119_v34, %s5560_s10  ;;  %vm8737_vm4 = vmmov %vm8731_vm1 }
 0x398   : > { %v3949_v26 = vpop.f32.mrf.mxu0  ;;  %v3676_v57 = vpop.permute.xlu1 %3675 }
 0x399   : > { %v4016_v21 = vsel %vm8729_vm13, %v3948_v59, 0.0  ;;  %3722 = vst.msk [vmem:[#allocation4 + $0x70] sm:$0xff] %vm8730_vm7, %v3676_v57  ;;  %v4156_v20 = vpop.permute.xlu0 %4155  ;;  %v4907_v37 = vld [vmem:[#allocation4 + $0x20] sm:$0xff]  ;;  %vm8734_vm7 = vmmov %vm8733_vm2  ;;  %v7800_v59 = vld [vmem:[#allocation3 + $0xe2] sm:$0xff] }
 0x39a   : > { %v4034_v33 = vsel %vm8732_vm10, %v4016_v21, 0.0  ;;  %4205 = vst.msk [vmem:[#allocation4 + $0x40] sm:$0xff] %vm8733_vm2, %v4156_v20  ;;  %4165 = vrot.lane.b32.xlu1 %v4120_v41, %s5560_s10  ;;  %vm8735_vm10 = vmmov %vm8731_vm1  ;;  %v7815_v57 = vld [vmem:[#allocation3 + $0x7a] sm:$0xff]  ;;  %v4443_v20 = vld [vmem:[#allocation3 + $0xe3] sm:$0xff] }
 0x39b   : > { %v7776_v63 = vadd.f32 %v4034_v33, %v4033_v35  ;;  %3037 = vrot.lane.b32.xlu0 %v2989_v8, %s5560_s10 }
 0x39c   : > { %v4158_v11 = vpop.permute.xlu1 %4157  ;;  %v4909_v48 = vld [vmem:[#allocation4 + $0x30] sm:$0xff] }
 0x39d   : > { %4206 = vst.msk [vmem:[#allocation4 + $0x50] sm:$0xff] %vm8734_vm7, %v4158_v11  ;;  %v3030_v53 = vpop.permute.xlu0 %3029  ;;  %v4941_v54 = vpack.c.bf16 %v4909_v48, %v4907_v37  ;;  %v3781_v55 = vld [vmem:[#allocation4 + $0x60] sm:$0xff]  ;;  %vm8736_vm7 = vmmov %vm8733_vm2 }
 0x39e   : > { %3075 = vst.msk [vmem:[#allocation4 + $0x80] sm:$0xff] %vm8733_vm2, %v3030_v53  ;;  %3039 = vrot.lane.b32.xlu1 %v2990_v39, %s5560_s10  ;;  %vm8738_vm2 = vcmask 392448   ;;  %v3313_v48 = vld [vmem:[#allocation3 + $0x73] sm:$0xff] }
 0x39f   : > { %4099 = vst.msk [vmem:[#allocation4 + $0x60] sm:$0xff] %vm8731_vm1, %v4081_v25  ;;  %4271 = vrot.lane.b32.xlu0 %v7674_v58, %s5561_s11  ;;  %5025 = vmatmul.mubr.bf16.gmra.mxu1 %v4941_v54  ;;  %v3814_v58 = vpack.c.bf16 %v7591_v12, %v7536_v18 }
 0x3a0   : > { %v3032_v22 = vpop.permute.xlu1 %3031  ;;  %5369 = vmatprep.mubr.msk.bf16.mxu1 %vm8735_vm10, %v4944_v38  ;;  %v3783_v3 = vld [vmem:[#allocation4 + $0x70] sm:$0xff]  ;;  %vm8739_vm10 = vmmov %vm8738_vm2 }
 0x3a1   : > { %3076 = vst.msk [vmem:[#allocation4 + $0x90] sm:$0xff] %vm8736_vm7, %v3032_v22  ;;  %v4264_v43 = vpop.permute.xlu0 %4263  ;;  %v3811_v45 = vpack.c.bf16 %v3783_v3, %v3781_v55  ;;  %vm8740_vm7 = vmmov %vm8738_vm2  ;;  %v3314_v22 = vld [vmem:[#allocation3 + $0x7b] sm:$0xff] }
 0x3a2   : > { %4100 = vst.msk [vmem:[#allocation4 + $0x70] sm:$0xff] %vm8737_vm4, %v4082_v30  ;;  %4273 = vrot.lane.b32.xlu1 %v7679_v6, %s5561_s11  ;;  %vm8741_vm4 = vmmov %vm8738_vm2  ;;  %v7805_v6 = vld [vmem:[#allocation3 + $0xea] sm:$0xff] }
 0x3a3   : > { %4313 = vst.msk [vmem:[#allocation4 + $0x40] sm:$0xff] %vm8738_vm2, %v4264_v43  ;;  %3145 = vrot.lane.b32.xlu0 %v7684_v60, %s5561_s11  ;;  %3967 = vmatmul.mubr.bf16.gmra.mxu0 %v3811_v45  ;;  %vm8742_vm2 = vcmask 523648   ;;  %v7810_v60 = vld [vmem:[#allocation3 + $0x72] sm:$0xff] }
 0x3a4   : > { %v4266_v34 = vpop.permute.xlu1 %4265  ;;  %5362 = vmatprep.mubr.msk.bf16.mxu0 %vm8731_vm1, %v3814_v58  ;;  %vm8743_vm1 = vmmov %vm8742_vm2 }
 0x3a5   : > { %4314 = vst.msk [vmem:[#allocation4 + $0x50] sm:$0xff] %vm8739_vm10, %v4266_v34  ;;  %v3138_v5 = vpop.permute.xlu0 %3137  ;;  %vm8744_vm10 = vmmov %vm8743_vm1 }
 0x3a6   : > { %3183 = vst.msk [vmem:[#allocation4 + $0x80] sm:$0xff] %vm8740_vm7, %v3138_v5  ;;  %3147 = vrot.lane.b32.xlu1 %v7689_v16, %s5561_s11  ;;  %vm8745_vm7 = vmmov %vm8743_vm1  ;;  %v7856_v5 = vld [vmem:[#allocation3 + $0xfc] sm:$0xff] }
 0x3a7   : > { %4379 = vrot.lane.b32.xlu0 %v7800_v59, %s5562_s12 }
 0x3a8   : > { %v3140_v18 = vpop.permute.xlu1 %3139 }
 0x3a9   : > { %3184 = vst.msk [vmem:[#allocation4 + $0x90] sm:$0xff] %vm8741_vm4, %v3140_v18  ;;  %v4372_v12 = vpop.permute.xlu0 %4371  ;;  %vm8746_vm4 = vcmask 130048  }
 0x3aa   : > { %4421 = vst.msk [vmem:[#allocation4 + $0x40] sm:$0xff] %vm8742_vm2, %v4372_v12  ;;  %4381 = vrot.lane.b32.xlu1 %v7805_v6, %s5562_s12  ;;  %vm8747_vm2 = vcmask 654848   ;;  %v7866_v12 = vld [vmem:[#allocation3 + $0x8c] sm:$0xff] }
 0x3ab   : > { %3253 = vrot.lane.b32.xlu0 %v7810_v60, %s5562_s12 }
 0x3ac   : > { %v4374_v16 = vpop.permute.xlu1 %4373 }
 0x3ad   : > { %4422 = vst.msk [vmem:[#allocation4 + $0x50] sm:$0xff] %vm8743_vm1, %v4374_v16  ;;  %v3246_v26 = vpop.permute.xlu0 %3245  ;;  %vm8748_vm1 = vmmov %vm8747_vm2  ;;  %v4767_v16 = vld [vmem:[#allocation3 + $0xf5] sm:$0xff] }
 0x3ae   : > { %3291 = vst.msk [vmem:[#allocation4 + $0x80] sm:$0xff] %vm8744_vm10, %v3246_v26  ;;  %v3952_v21 = vpop.f32.mrf.mxu0  ;;  %3255 = vrot.lane.b32.xlu1 %v7815_v57, %s5562_s12  ;;  %vm8749_vm10 = vmmov %vm8746_vm4 }
 0x3af   : > { %v3953_v41 = vadd.f32 %v7755_v9, %v3952_v21  ;;  %4487 = vrot.lane.b32.xlu0 %v4443_v20, %s5564_s13  ;;  %v4768_v20 = vld [vmem:[#allocation3 + $0xfd] sm:$0xff] }
 0x3b0   : > { %v3954_v35 = vpop.f32.mrf.mxu0  ;;  %v3248_v33 = vpop.permute.xlu1 %3247 }
 0x3b1   : > { %v4017_v8 = vsel %vm6688_vm8, %v3953_v41, 0.0  ;;  %3292 = vst.msk [vmem:[#allocation4 + $0x90] sm:$0xff] %vm8745_vm7, %v3248_v33  ;;  %v4480_v1 = vpop.permute.xlu0 %4479  ;;  %vm8750_vm7 = vmmov %vm8748_vm1  ;;  %v3637_v41 = vld [vmem:[#allocation3 + $0x85] sm:$0xff] }
 0x3b2   : > { %v4036_v11 = vsel %vm8746_vm4, %v4017_v8, 0.0  ;;  %4529 = vst.msk [vmem:[#allocation4 + $0x40] sm:$0xff] %vm8747_vm2, %v4480_v1  ;;  %v3955_v37 = vpop.f32.mrf.mxu0  ;;  %4489 = vrot.lane.b32.xlu1 %v4444_v17, %s5564_s13  ;;  %vm8751_vm4 = vmmov %vm8748_vm1  ;;  %vm8752_vm2 = vcmask 786048   ;;  %v3638_v8 = vld [vmem:[#allocation3 + $0x8d] sm:$0xff]  ;;  %v4121_v1 = vld [vmem:[#allocation3 + $0xe1] sm:$0xff] }
 0x3b3   : > { %v4037_v53 = vadd.f32 %v4036_v11, %v7776_v63  ;;  %v3956_v39 = vadd.f32 %v7755_v9, %v3955_v37  ;;  %3361 = vrot.lane.b32.xlu0 %v3313_v48, %s5564_s13  ;;  %v4122_v37 = vld [vmem:[#allocation3 + $0xe9] sm:$0xff]  ;;  %v2991_v48 = vld [vmem:[#allocation3 + $0x71] sm:$0xff] }
 0x3b4   : > { %v3957_v54 = vpop.f32.mrf.mxu0  ;;  %v4482_v55 = vpop.permute.xlu1 %4481 }
 0x3b5   : > { %v4018_v25 = vsel %vm6714_vm9, %v3956_v39, 0.0  ;;  %4530 = vst.msk [vmem:[#allocation4 + $0x50] sm:$0xff] %vm8748_vm1, %v4482_v55  ;;  %v3354_v38 = vpop.permute.xlu0 %3353  ;;  %vm8753_vm1 = vmmov %vm8752_vm2  ;;  %v4918_v39 = vld [vmem:[#allocation4 + $0x78] sm:$0xff] }
 0x3b6   : > { %v4038_v3 = vsel %vm8749_vm10, %v4018_v25, 0.0  ;;  %3399 = vst.msk [vmem:[#allocation4 + $0x80] sm:$0xff] %vm8750_vm7, %v3354_v38  ;;  %3363 = vrot.lane.b32.xlu1 %v3314_v22, %s5564_s13  ;;  %vm8754_vm10 = vmmov %vm8753_vm1  ;;  %v2992_v22 = vld [vmem:[#allocation3 + $0x79] sm:$0xff] }
 0x3b7   : > { %v7837_v63 = vadd.f32 %v4038_v3, %v4037_v53  ;;  %4595 = vrot.lane.b32.xlu0 %v7729_v7, %s5565_s23  ;;  %v7851_v7 = vld [vmem:[#allocation3 + $0xf4] sm:$0xff]  ;;  %vm8755_vm7 = vmmov %vm8753_vm1 }
 0x3b8   : > { %v3356_v30 = vpop.permute.xlu1 %3355  ;;  %v4916_v53 = vld [vmem:[#allocation4 + $0x68] sm:$0xff] }
 0x3b9   : > { %3400 = vst.msk [vmem:[#allocation4 + $0x90] sm:$0xff] %vm8751_vm4, %v3356_v30  ;;  %v4588_v43 = vpop.permute.xlu0 %4587  ;;  %vm8756_vm4 = vcmask 917248  }
 0x3ba   : > { %4637 = vst.msk [vmem:[#allocation4 + $0x40] sm:$0xff] %vm8752_vm2, %v4588_v43  ;;  %4597 = vrot.lane.b32.xlu1 %v7736_v52, %s5565_s23  ;;  %vm8757_vm2 = vmmov %vm8756_vm4  ;;  %v4083_v43 = vld [vmem:[#allocation3 + $0xd0] sm:$0xff] }
 0x3bb   : > { %3469 = vrot.lane.b32.xlu0 %v7741_v28, %s5565_s23  ;;  %v7861_v28 = vld [vmem:[#allocation3 + $0x84] sm:$0xff] }
 0x3bc   : > { %v4590_v45 = vpop.permute.xlu1 %4589 }
 0x3bd   : > { %4638 = vst.msk [vmem:[#allocation4 + $0x50] sm:$0xff] %vm8753_vm1, %v4590_v45  ;;  %v3462_v58 = vpop.permute.xlu0 %3461  ;;  %vm8758_vm1 = vmmov %vm8757_vm2  ;;  %v4946_v45 = vpack.c.bf16 %v4918_v39, %v4916_v53 }
 0x3be   : > { %3507 = vst.msk [vmem:[#allocation4 + $0x80] sm:$0xff] %vm8754_vm10, %v3462_v58  ;;  %3471 = vrot.lane.b32.xlu1 %v7746_v15, %s5565_s23  ;;  %vm8759_vm10 = vmmov %vm8758_vm1 }
 0x3bf   : > { %4703 = vrot.lane.b32.xlu0 %v7851_v7, %s5566_s30 }
 0x3c0   : > { %v3464_v34 = vpop.permute.xlu1 %3463 }
 0x3c1   : > { %3508 = vst.msk [vmem:[#allocation4 + $0x90] sm:$0xff] %vm8755_vm7, %v3464_v34  ;;  %v4696_v52 = vpop.permute.xlu0 %4695  ;;  %vm8760_vm7 = vcmask 1048448  }
 0x3c2   : > { %4745 = vst.msk [vmem:[#allocation4 + $0x40] sm:$0xff] %vm8756_vm4, %v4696_v52  ;;  %4705 = vrot.lane.b32.xlu1 %v7856_v5, %s5566_s30  ;;  %vm8761_vm4 = vmmov %vm8760_vm7  ;;  %v4084_v52 = vld [vmem:[#allocation3 + $0xd8] sm:$0xff] }
 0x3c3   : > { %3577 = vrot.lane.b32.xlu0 %v7861_v28, %s5566_s30 }
 0x3c4   : > { %v4698_v15 = vpop.permute.xlu1 %4697 }
 0x3c5   : > { %4746 = vst.msk [vmem:[#allocation4 + $0x50] sm:$0xff] %vm8757_vm2, %v4698_v15  ;;  %v3570_v18 = vpop.permute.xlu0 %3569  ;;  %vm8762_vm2 = vmmov %vm8761_vm4 }
 0x3c6   : > { %3615 = vst.msk [vmem:[#allocation4 + $0x80] sm:$0xff] %vm8758_vm1, %v3570_v18  ;;  %3579 = vrot.lane.b32.xlu1 %v7866_v12, %s5566_s30  ;;  %vm8763_vm1 = vmmov %vm8762_vm2 }
 0x3c7   : > { %4811 = vrot.lane.b32.xlu0 %v4767_v16, %s5567_s6 }
 0x3c8   : > { %v3572_v26 = vpop.permute.xlu1 %3571 }
 0x3c9   : > { %3616 = vst.msk [vmem:[#allocation4 + $0x90] sm:$0xff] %vm8759_vm10, %v3572_v26  ;;  %v4804_v21 = vpop.permute.xlu0 %4803  ;;  %vm8764_vm10 = vcmask 261248  }
 0x3ca   : > { %4853 = vst.msk [vmem:[#allocation4 + $0x40] sm:$0xff] %vm8760_vm7, %v4804_v21  ;;  %4813 = vrot.lane.b32.xlu1 %v4768_v20, %s5567_s6  ;;  %vm8765_vm7 = vmmov %vm8764_vm10  ;;  %v7905_v21 = vld [vmem:[#allocation3 + $0xf2] sm:$0xff] }
 0x3cb   : > { %3685 = vrot.lane.b32.xlu0 %v3637_v41, %s5567_s6  ;;  %v7920_v41 = vld [vmem:[#allocation3 + $0x8a] sm:$0xff] }
 0x3cc   : > { %v4806_v35 = vpop.permute.xlu1 %4805 }
 0x3cd   : > { %4854 = vst.msk [vmem:[#allocation4 + $0x50] sm:$0xff] %vm8761_vm4, %v4806_v35  ;;  %v3678_v33 = vpop.permute.xlu0 %3677  ;;  %vm8766_vm4 = vmmov %vm8765_vm7  ;;  %v4445_v35 = vld [vmem:[#allocation3 + $0xf3] sm:$0xff] }
 0x3ce   : > { %3723 = vst.msk [vmem:[#allocation4 + $0x80] sm:$0xff] %vm8762_vm2, %v3678_v33  ;;  %3687 = vrot.lane.b32.xlu1 %v3638_v8, %s5567_s6  ;;  %vm8767_vm2 = vcmask 130048  }
 0x3cf   : > { %4167 = vrot.lane.b32.xlu0 %v4121_v1, %s5560_s10  ;;  %v4446_v1 = vld [vmem:[#allocation3 + $0xfb] sm:$0xff] }
 0x3d0   : > { %v3680_v17 = vpop.permute.xlu1 %3679 }
 0x3d1   : > { %3724 = vst.msk [vmem:[#allocation4 + $0x90] sm:$0xff] %vm8763_vm1, %v3680_v17  ;;  %v4160_v11 = vpop.permute.xlu0 %4159  ;;  %v4911_v55 = vld [vmem:[#allocation4 + $0x40] sm:$0xff]  ;;  %vm8768_vm1 = vmmov %vm8767_vm2  ;;  %v3315_v17 = vld [vmem:[#allocation3 + $0x83] sm:$0xff] }
 0x3d2   : > { %4207 = vst.msk [vmem:[#allocation4 + $0x60] sm:$0xff] %vm8764_vm10, %v4160_v11  ;;  %4169 = vrot.lane.b32.xlu1 %v4122_v37, %s5560_s10  ;;  %vm8769_vm10 = vmmov %vm8766_vm4 }
 0x3d3   : > { %3041 = vrot.lane.b32.xlu0 %v2991_v48, %s5560_s10  ;;  %v3316_v48 = vld [vmem:[#allocation3 + $0x8b] sm:$0xff] }
 0x3d4   : > { %v4162_v54 = vpop.permute.xlu1 %4161  ;;  %v4913_v25 = vld [vmem:[#allocation4 + $0x50] sm:$0xff] }
 0x3d5   : > { %4208 = vst.msk [vmem:[#allocation4 + $0x70] sm:$0xff] %vm8765_vm7, %v4162_v54  ;;  %v3034_v38 = vpop.permute.xlu0 %3033  ;;  %v4943_v3 = vpack.c.bf16 %v4913_v25, %v4911_v55  ;;  %v3785_v30 = vld [vmem:[#allocation4 + $0x80] sm:$0xff]  ;;  %vm8770_vm7 = vmmov %vm8768_vm1 }
 0x3d6   : > { %3077 = vst.msk [vmem:[#allocation4 + $0xa0] sm:$0xff] %vm8766_vm4, %v3034_v38  ;;  %3043 = vrot.lane.b32.xlu1 %v2992_v22, %s5560_s10  ;;  %vm8771_vm4 = vcmask 392448   ;;  %v7950_v38 = vld [vmem:[#allocation3 + $0x10c] sm:$0xff] }
 0x3d7   : > { %4101 = vst.msk [vmem:[#allocation4 + $0x80] sm:$0xff] %vm8767_vm2, %v4083_v43  ;;  %4275 = vrot.lane.b32.xlu0 %v7800_v59, %s5561_s11  ;;  %5033 = vmatmul.mubr.bf16.gmra.mxu1 %v4943_v3  ;;  %v3816_v59 = vpack.c.bf16 %v7647_v10, %v7605_v29  ;;  %vm8772_vm2 = vmmov %vm8768_vm1  ;;  %v7960_v3 = vld [vmem:[#allocation3 + $0x9c] sm:$0xff] }
 0x3d8   : > { %v3036_v58 = vpop.permute.xlu1 %3035  ;;  %5370 = vmatprep.mubr.msk.bf16.mxu1 %vm8768_vm1, %v4946_v45  ;;  %v3787_v34 = vld [vmem:[#allocation4 + $0x90] sm:$0xff]  ;;  %vm8773_vm1 = vmmov %vm8771_vm4 }
 0x3d9   : > { %3078 = vst.msk [vmem:[#allocation4 + $0xb0] sm:$0xff] %vm8769_vm10, %v3036_v58  ;;  %v4268_v15 = vpop.permute.xlu0 %4267  ;;  %v3813_v18 = vpack.c.bf16 %v3787_v34, %v3785_v30  ;;  %vm8774_vm10 = vmmov %vm8773_vm1  ;;  %v4769_v30 = vld [vmem:[#allocation3 + $0x105] sm:$0xff]  ;;  %v4770_v58 = vld [vmem:[#allocation3 + $0x10d] sm:$0xff] }
 0x3da   : > { %4102 = vst.msk [vmem:[#allocation4 + $0x90] sm:$0xff] %vm8770_vm7, %v4084_v52  ;;  %4277 = vrot.lane.b32.xlu1 %v7805_v6, %s5561_s11  ;;  %vm8775_vm7 = vmmov %vm8773_vm1  ;;  %v7910_v6 = vld [vmem:[#allocation3 + $0xfa] sm:$0xff] }
 0x3db   : > { %4315 = vst.msk [vmem:[#allocation4 + $0x60] sm:$0xff] %vm8771_vm4, %v4268_v15  ;;  %3149 = vrot.lane.b32.xlu0 %v7810_v60, %s5561_s11  ;;  %3975 = vmatmul.mubr.bf16.gmra.mxu0 %v3813_v18  ;;  %vm8776_vm4 = vcmask 523648   ;;  %v7915_v60 = vld [vmem:[#allocation3 + $0x82] sm:$0xff]  ;;  %v3639_v34 = vld [vmem:[#allocation3 + $0x95] sm:$0xff] }
 0x3dc   : > { %v4270_v16 = vpop.permute.xlu1 %4269  ;;  %5363 = vmatprep.mubr.msk.bf16.mxu0 %vm8772_vm2, %v3816_v59  ;;  %vm8777_vm2 = vmmov %vm8776_vm4  ;;  %v3640_v18 = vld [vmem:[#allocation3 + $0x9d] sm:$0xff] }
 0x3dd   : > { %4316 = vst.msk [vmem:[#allocation4 + $0x70] sm:$0xff] %vm8773_vm1, %v4270_v16  ;;  %v3142_v26 = vpop.permute.xlu0 %3141  ;;  %vm8778_vm1 = vmmov %vm8777_vm2  ;;  %v7971_v59 = vld [vmem:[#allocation4 + $0x108] sm:$0xff]  ;;  %v7973_v16 = vld [vmem:[#allocation4 + $0x118] sm:$0xff] }
 0x3de   : > { %3185 = vst.msk [vmem:[#allocation4 + $0xa0] sm:$0xff] %vm8774_vm10, %v3142_v26  ;;  %3151 = vrot.lane.b32.xlu1 %v7815_v57, %s5561_s11  ;;  %vm8779_vm10 = vmmov %vm8778_vm1  ;;  %v4123_v26 = vld [vmem:[#allocation3 + $0xf1] sm:$0xff] }
 0x3df   : > { %4383 = vrot.lane.b32.xlu0 %v7905_v21, %s5562_s12 }
 0x3e0   : > { %v3144_v29 = vpop.permute.xlu1 %3143 }
 0x3e1   : > { %3186 = vst.msk [vmem:[#allocation4 + $0xb0] sm:$0xff] %vm8775_vm7, %v3144_v29  ;;  %v4376_v10 = vpop.permute.xlu0 %4375  ;;  %vm8780_vm7 = vcmask 654848   ;;  %v4883_v29 = vld [vmem:[#allocation3 + $0x136] sm:$0xff] }
 0x3e2   : > { %4423 = vst.msk [vmem:[#allocation4 + $0x60] sm:$0xff] %vm8776_vm4, %v4376_v10  ;;  %4385 = vrot.lane.b32.xlu1 %v7910_v6, %s5562_s12  ;;  %vm8781_vm4 = vmmov %vm8780_vm7  ;;  %v4884_v10 = vld [vmem:[#allocation3 + $0x13e] sm:$0xff] }
 0x3e3   : > { %3257 = vrot.lane.b32.xlu0 %v7915_v60, %s5562_s12 }
 0x3e4   : > { %v4378_v57 = vpop.permute.xlu1 %4377 }
 0x3e5   : > { %4424 = vst.msk [vmem:[#allocation4 + $0x70] sm:$0xff] %vm8777_vm2, %v4378_v57  ;;  %v3250_v20 = vpop.permute.xlu0 %3249  ;;  %vm8782_vm2 = vmmov %vm8781_vm4 }
 0x3e6   : > { %3293 = vst.msk [vmem:[#allocation4 + $0xa0] sm:$0xff] %vm8778_vm1, %v3250_v20  ;;  %3259 = vrot.lane.b32.xlu1 %v7920_v41, %s5562_s12  ;;  %vm8783_vm1 = vmmov %vm8782_vm2 }
 0x3e7   : > { %4491 = vrot.lane.b32.xlu0 %v4445_v35, %s5564_s13  ;;  %v4124_v35 = vld [vmem:[#allocation3 + $0xf9] sm:$0xff] }
 0x3e8   : > { %v3252_v33 = vpop.permute.xlu1 %3251 }
 0x3e9   : > { %3294 = vst.msk [vmem:[#allocation4 + $0xb0] sm:$0xff] %vm8779_vm10, %v3252_v33  ;;  %v4484_v8 = vpop.permute.xlu0 %4483  ;;  %vm8784_vm10 = vcmask 786048   ;;  %v2993_v33 = vld [vmem:[#allocation3 + $0x81] sm:$0xff] }
 0x3ea   : > { %4531 = vst.msk [vmem:[#allocation4 + $0x60] sm:$0xff] %vm8780_vm7, %v4484_v8  ;;  %4493 = vrot.lane.b32.xlu1 %v4446_v1, %s5564_s13  ;;  %vm8785_vm7 = vmmov %vm8784_vm10  ;;  %v4920_v8 = vld [vmem:[#allocation4 + $0x88] sm:$0xff]  ;;  %v4922_v1 = vld [vmem:[#allocation4 + $0x98] sm:$0xff] }
 0x3eb   : > { %3365 = vrot.lane.b32.xlu0 %v3315_v17, %s5564_s13 }
 0x3ec   : > { %v4486_v11 = vpop.permute.xlu1 %4485 }
 0x3ed   : > { %4532 = vst.msk [vmem:[#allocation4 + $0x70] sm:$0xff] %vm8781_vm4, %v4486_v11  ;;  %v3358_v37 = vpop.permute.xlu0 %3357  ;;  %vm8786_vm4 = vmmov %vm8785_vm7 }
 0x3ee   : > { %3401 = vst.msk [vmem:[#allocation4 + $0xa0] sm:$0xff] %vm8782_vm2, %v3358_v37  ;;  %3367 = vrot.lane.b32.xlu1 %v3316_v48, %s5564_s13  ;;  %vm8787_vm2 = vmmov %vm8786_vm4 }
 0x3ef   : > { %4599 = vrot.lane.b32.xlu0 %v7851_v7, %s5565_s23  ;;  %v7945_v7 = vld [vmem:[#allocation3 + $0x104] sm:$0xff] }
 0x3f0   : > { %v3360_v53 = vpop.permute.xlu1 %3359 }
 0x3f1   : > { %3402 = vst.msk [vmem:[#allocation4 + $0xb0] sm:$0xff] %vm8783_vm1, %v3360_v53  ;;  %v4592_v39 = vpop.permute.xlu0 %4591  ;;  %vm8788_vm1 = vcmask 917248   ;;  %v2994_v53 = vld [vmem:[#allocation3 + $0x89] sm:$0xff] }
 0x3f2   : > { %4639 = vst.msk [vmem:[#allocation4 + $0x60] sm:$0xff] %vm8784_vm10, %v4592_v39  ;;  %4601 = vrot.lane.b32.xlu1 %v7856_v5, %s5565_s23  ;;  %vm8789_vm10 = vmmov %vm8788_vm1 }
 0x3f3   : > { %3473 = vrot.lane.b32.xlu0 %v7861_v28, %s5565_s23  ;;  %v7955_v28 = vld [vmem:[#allocation3 + $0x94] sm:$0xff] }
 0x3f4   : > { %v4594_v54 = vpop.permute.xlu1 %4593 }
 0x3f5   : > { %4640 = vst.msk [vmem:[#allocation4 + $0x70] sm:$0xff] %vm8785_vm7, %v4594_v54  ;;  %v3466_v55 = vpop.permute.xlu0 %3465  ;;  %vm8790_vm7 = vmmov %vm8788_vm1 }
 0x3f6   : > { %3509 = vst.msk [vmem:[#allocation4 + $0xa0] sm:$0xff] %vm8786_vm4, %v3466_v55  ;;  %3475 = vrot.lane.b32.xlu1 %v7866_v12, %s5565_s23  ;;  %vm8791_vm4 = vmmov %vm8788_vm1  ;;  %v4085_v55 = vld [vmem:[#allocation3 + $0xe0] sm:$0xff] }
 0x3f7   : > { %4707 = vrot.lane.b32.xlu0 %v7945_v7, %s5566_s30 }
 0x3f8   : > { %v3468_v25 = vpop.permute.xlu1 %3467 }
 0x3f9   : > { %3510 = vst.msk [vmem:[#allocation4 + $0xb0] sm:$0xff] %vm8787_vm2, %v3468_v25  ;;  %v4700_v5 = vpop.permute.xlu0 %4699  ;;  %vm8792_vm2 = vcmask 1048448   ;;  %v4948_v25 = vpack.c.bf16 %v4922_v1, %v4920_v8 }
 0x3fa   : > { %4747 = vst.msk [vmem:[#allocation4 + $0x60] sm:$0xff] %vm8788_vm1, %v4700_v5  ;;  %4709 = vrot.lane.b32.xlu1 %v7950_v38, %s5566_s30  ;;  %vm8793_vm1 = vmmov %vm8792_vm2 }
 0x3fb   : > { %3581 = vrot.lane.b32.xlu0 %v7955_v28, %s5566_s30 }
 0x3fc   : > { %v4702_v12 = vpop.permute.xlu1 %4701 }
 0x3fd   : > { %4748 = vst.msk [vmem:[#allocation4 + $0x70] sm:$0xff] %vm8789_vm10, %v4702_v12  ;;  %v3574_v22 = vpop.permute.xlu0 %3573  ;;  %vm8794_vm10 = vmmov %vm8793_vm1 }
 0x3fe   : > { %3617 = vst.msk [vmem:[#allocation4 + $0xa0] sm:$0xff] %vm8790_vm7, %v3574_v22  ;;  %3583 = vrot.lane.b32.xlu1 %v7960_v3, %s5566_s30  ;;  %vm8795_vm7 = vcmask 130048   ;;  %v4086_v22 = vld [vmem:[#allocation3 + $0xe8] sm:$0xff] }
 0x3ff   : > { %4815 = vrot.lane.b32.xlu0 %v4769_v30, %s5567_s6  ;;  %4901 = vst.msk [vmem:[#allocation4 + $0x108] sm:$0xff] %vm8795_vm7, %v4883_v29 }
 0x400   : > { %v3576_v43 = vpop.permute.xlu1 %3575 }
 0x401   : > { %3618 = vst.msk [vmem:[#allocation4 + $0xb0] sm:$0xff] %vm8791_vm4, %v3576_v43  ;;  %v4808_v45 = vpop.permute.xlu0 %4807  ;;  %vm8796_vm4 = vmmov %vm8795_vm7 }
 0x402   : > { %4855 = vst.msk [vmem:[#allocation4 + $0x60] sm:$0xff] %vm8792_vm2, %v4808_v45  ;;  %4817 = vrot.lane.b32.xlu1 %v4770_v58, %s5567_s6  ;;  %vm8797_vm2 = vmmov %vm8793_vm1 }
 0x403   : > { %3689 = vrot.lane.b32.xlu0 %v3639_v34, %s5567_s6  ;;  %4902 = vst.msk [vmem:[#allocation4 + $0x118] sm:$0xff] %vm8796_vm4, %v4884_v10  ;;  %v8005_v34 = vld [vmem:[#allocation3 + $0x102] sm:$0xff]  ;;  %v4448_v10 = vld [vmem:[#allocation3 + $0x10b] sm:$0xff] }
 0x404   : > { %v4810_v52 = vpop.permute.xlu1 %4809 }
 0x405   : > { %4856 = vst.msk [vmem:[#allocation4 + $0x70] sm:$0xff] %vm8793_vm1, %v4810_v52  ;;  %v3682_v15 = vpop.permute.xlu0 %3681  ;;  %vm8798_vm1 = vcmask 261248  }
 0x406   : > { %3725 = vst.msk [vmem:[#allocation4 + $0xa0] sm:$0xff] %vm8794_vm10, %v3682_v15  ;;  %3691 = vrot.lane.b32.xlu1 %v3640_v18, %s5567_s6  ;;  %vm8799_vm10 = vmmov %vm8798_vm1  ;;  %v3210_v15 = vld [vmem:[#allocation3 + $0x9a] sm:$0xff]  ;;  %v4447_v18 = vld [vmem:[#allocation3 + $0x103] sm:$0xff] }
 0x407   : > { %4171 = vrot.lane.b32.xlu0 %v4123_v26, %s5560_s10  ;;  %vm8800_vm7 = vmmov %vm8798_vm1 }
 0x408   : > { %v3684_v57 = vpop.permute.xlu1 %3683 }
 0x409   : > { %3726 = vst.msk [vmem:[#allocation4 + $0xb0] sm:$0xff] %vm8797_vm2, %v3684_v57  ;;  %v4164_v20 = vpop.permute.xlu0 %4163  ;;  %v4915_v11 = vld [vmem:[#allocation4 + $0x60] sm:$0xff]  ;;  %vm8801_vm2 = vmmov %vm8796_vm4 }
 0x40a   : > { %4209 = vst.msk [vmem:[#allocation4 + $0x80] sm:$0xff] %vm8798_vm1, %v4164_v20  ;;  %4173 = vrot.lane.b32.xlu1 %v4124_v35, %s5560_s10  ;;  %v3317_v57 = vld [vmem:[#allocation3 + $0x93] sm:$0xff] }
 0x40b   : > { %3045 = vrot.lane.b32.xlu0 %v2993_v33, %s5560_s10  ;;  %v3318_v33 = vld [vmem:[#allocation3 + $0x9b] sm:$0xff] }
 0x40c   : > { %v4166_v17 = vpop.permute.xlu1 %4165  ;;  %v4917_v37 = vld [vmem:[#allocation4 + $0x70] sm:$0xff] }
 0x40d   : > { %4210 = vst.msk [vmem:[#allocation4 + $0x90] sm:$0xff] %vm8799_vm10, %v4166_v17  ;;  %v3038_v48 = vpop.permute.xlu0 %3037  ;;  %v4945_v39 = vpack.c.bf16 %v4917_v37, %v4915_v11  ;;  %v3789_v54 = vld [vmem:[#allocation4 + $0xa0] sm:$0xff]  ;;  %vm8802_vm10 = vmmov %vm8801_vm2 }
 0x40e   : > { %3079 = vst.msk [vmem:[#allocation4 + $0xc0] sm:$0xff] %vm8800_vm7, %v3038_v48  ;;  %3047 = vrot.lane.b32.xlu1 %v2994_v53, %s5560_s10  ;;  %vm8803_vm7 = vcmask 392448  }
 0x40f   : > { %4103 = vst.msk [vmem:[#allocation4 + $0xa0] sm:$0xff] %vm8796_vm4, %v4085_v55  ;;  %4279 = vrot.lane.b32.xlu0 %v7905_v21, %s5561_s11  ;;  %5041 = vmatmul.mubr.bf16.gmra.mxu1 %v4945_v39  ;;  %v3818_v21 = vpack.c.bf16 %v7713_v4, %v7659_v50  ;;  %vm8804_vm4 = vmmov %vm8801_vm2 }
 0x410   : > { %v3040_v5 = vpop.permute.xlu1 %3039  ;;  %5371 = vmatprep.mubr.msk.bf16.mxu1 %vm8801_vm2, %v4948_v25  ;;  %v3791_v12 = vld [vmem:[#allocation4 + $0xb0] sm:$0xff]  ;;  %vm8805_vm2 = vmmov %vm8803_vm7 }
 0x411   : > { %3080 = vst.msk [vmem:[#allocation4 + $0xd0] sm:$0xff] %vm8798_vm1, %v3040_v5  ;;  %v4272_v30 = vpop.permute.xlu0 %4271  ;;  %v3815_v43 = vpack.c.bf16 %v3791_v12, %v3789_v54  ;;  %vm8806_vm1 = vmmov %vm8805_vm2 }
 0x412   : > { %4104 = vst.msk [vmem:[#allocation4 + $0xb0] sm:$0xff] %vm8802_vm10, %v4086_v22  ;;  %4281 = vrot.lane.b32.xlu1 %v7910_v6, %s5561_s11  ;;  %vm8807_vm10 = vmmov %vm8806_vm1  ;;  %v8010_v6 = vld [vmem:[#allocation3 + $0x10a] sm:$0xff] }
 0x413   : > { %4317 = vst.msk [vmem:[#allocation4 + $0x80] sm:$0xff] %vm8803_vm7, %v4272_v30  ;;  %3153 = vrot.lane.b32.xlu0 %v7915_v60, %s5561_s11  ;;  %3983 = vmatmul.mubr.bf16.gmra.mxu0 %v3815_v43  ;;  %vm8808_vm7 = vcmask 523648   ;;  %v3209_v60 = vld [vmem:[#allocation3 + $0x92] sm:$0xff] }
 0x414   : > { %v4274_v45 = vpop.permute.xlu1 %4273  ;;  %5364 = vmatprep.mubr.msk.bf16.mxu0 %vm8804_vm4, %v3818_v21  ;;  %vm8809_vm4 = vmmov %vm8808_vm7 }
 0x415   : > { %4318 = vst.msk [vmem:[#allocation4 + $0x90] sm:$0xff] %vm8805_vm2, %v4274_v45  ;;  %v3146_v58 = vpop.permute.xlu0 %3145  ;;  %vm8810_vm2 = vmmov %vm8809_vm4 }
 0x416   : > { %3187 = vst.msk [vmem:[#allocation4 + $0xc0] sm:$0xff] %vm8806_vm1, %v3146_v58  ;;  %3155 = vrot.lane.b32.xlu1 %v7920_v41, %s5561_s11  ;;  %vm8811_vm1 = vmmov %vm8810_vm2 }
 0x417   : > { %4387 = vrot.lane.b32.xlu0 %v8005_v34, %s5562_s12 }
 0x418   : > { %v3148_v50 = vpop.permute.xlu1 %3147 }
 0x419   : > { %3188 = vst.msk [vmem:[#allocation4 + $0xd0] sm:$0xff] %vm8807_vm10, %v3148_v50  ;;  %v4380_v4 = vpop.permute.xlu0 %4379  ;;  %vm8812_vm10 = vcmask 654848  }
 0x41a   : > { %4425 = vst.msk [vmem:[#allocation4 + $0x80] sm:$0xff] %vm8808_vm7, %v4380_v4  ;;  %4389 = vrot.lane.b32.xlu1 %v8010_v6, %s5562_s12  ;;  %vm8813_vm7 = vmmov %vm8812_vm10 }
 0x41b   : > { %3261 = vrot.lane.b32.xlu0 %v3209_v60, %s5562_s12  ;;  %v8060_v60 = vld [vmem:[#allocation3 + $0x11c] sm:$0xff] }
 0x41c   : > { %v4382_v41 = vpop.permute.xlu1 %4381 }
 0x41d   : > { %4426 = vst.msk [vmem:[#allocation4 + $0x90] sm:$0xff] %vm8809_vm4, %v4382_v41  ;;  %v3254_v52 = vpop.permute.xlu0 %3253  ;;  %vm8814_vm4 = vmmov %vm8813_vm7 }
 0x41e   : > { %3295 = vst.msk [vmem:[#allocation4 + $0xc0] sm:$0xff] %vm8810_vm2, %v3254_v52  ;;  %3263 = vrot.lane.b32.xlu1 %v3210_v15, %s5562_s12  ;;  %vm8815_vm2 = vmmov %vm8814_vm4 }
 0x41f   : > { %4495 = vrot.lane.b32.xlu0 %v4447_v18, %s5564_s13 }
 0x420   : > { %v3256_v26 = vpop.permute.xlu1 %3255 }
 0x421   : > { %3296 = vst.msk [vmem:[#allocation4 + $0xd0] sm:$0xff] %vm8811_vm1, %v3256_v26  ;;  %v4488_v29 = vpop.permute.xlu0 %4487  ;;  %vm8816_vm1 = vcmask 786048   ;;  %v3534_v26 = vld [vmem:[#allocation3 + $0xac] sm:$0xff] }
 0x422   : > { %4533 = vst.msk [vmem:[#allocation4 + $0x80] sm:$0xff] %vm8812_vm10, %v4488_v29  ;;  %4497 = vrot.lane.b32.xlu1 %v4448_v10, %s5564_s13  ;;  %vm8817_vm10 = vmmov %vm8816_vm1  ;;  %v4771_v29 = vld [vmem:[#allocation3 + $0x115] sm:$0xff] }
 0x423   : > { %3369 = vrot.lane.b32.xlu0 %v3317_v57, %s5564_s13 }
 0x424   : > { %v4490_v20 = vpop.permute.xlu1 %4489 }
 0x425   : > { %4534 = vst.msk [vmem:[#allocation4 + $0x90] sm:$0xff] %vm8813_vm7, %v4490_v20  ;;  %v3362_v35 = vpop.permute.xlu0 %3361  ;;  %vm8818_vm7 = vmmov %vm8816_vm1  ;;  %v4772_v20 = vld [vmem:[#allocation3 + $0x11d] sm:$0xff] }
 0x426   : > { %3403 = vst.msk [vmem:[#allocation4 + $0xc0] sm:$0xff] %vm8814_vm4, %v3362_v35  ;;  %3371 = vrot.lane.b32.xlu1 %v3318_v33, %s5564_s13  ;;  %v3641_v35 = vld [vmem:[#allocation3 + $0xa5] sm:$0xff] }
 0x427   : > { %4603 = vrot.lane.b32.xlu0 %v7945_v7, %s5565_s23  ;;  %v5018_v8 = vpop.f32.mrf.mxu1 }
 0x428   : > { %v5019_v1 = vadd.f32 %v7755_v9, %v5018_v8  ;;  %v3364_v17 = vpop.permute.xlu1 %3363 }
 0x429   : > { %3404 = vst.msk [vmem:[#allocation4 + $0xd0] sm:$0xff] %vm8815_vm2, %v3364_v17  ;;  %v4596_v11 = vpop.permute.xlu0 %4595  ;;  %v5020_v37 = vpop.f32.mrf.mxu1  ;;  %v4125_v17 = vld [vmem:[#allocation3 + $0x101] sm:$0xff] }
 0x42a   : > { %4641 = vst.msk [vmem:[#allocation4 + $0x80] sm:$0xff] %vm8816_vm1, %v4596_v11  ;;  %4605 = vrot.lane.b32.xlu1 %v7950_v38, %s5565_s23  ;;  %v5089_v7 = vsel %vm8728_vm5, %v5019_v1, 0.0  ;;  %vm8819_vm5 = vcmask 130048   ;;  %v3642_v1 = vld [vmem:[#allocation3 + $0xad] sm:$0xff] }
 0x42b   : > { %3477 = vrot.lane.b32.xlu0 %v7955_v28, %s5565_s23  ;;  %v3960_v48 = vpop.f32.mrf.mxu0  ;;  %v5021_v53 = vpop.f32.mrf.mxu1  ;;  %v5107_v22 = vsel %vm8819_vm5, %v5089_v7, 0.0  ;;  %vm8820_vm4 = vmmov %vm8819_vm5  ;;  %v4926_v7 = vld [vmem:[#allocation4 + $0xb8] sm:$0xff] }
 0x42c   : > { %v3961_v39 = vadd.f32 %v7755_v9, %v3960_v48  ;;  %v5022_v54 = vadd.f32 %v7755_v9, %v5021_v53  ;;  %v4598_v55 = vpop.permute.xlu1 %4597  ;;  %vm8821_vm2 = vmmov %vm8820_vm4  ;;  %v4126_v48 = vld [vmem:[#allocation3 + $0x109] sm:$0xff]  ;;  %v4924_v53 = vld [vmem:[#allocation4 + $0xa8] sm:$0xff] }
 0x42d   : > { %4642 = vst.msk [vmem:[#allocation4 + $0x90] sm:$0xff] %vm8817_vm10, %v4598_v55  ;;  %v3470_v25 = vpop.permute.xlu0 %3469  ;;  %v3962_v5 = vpop.f32.mrf.mxu0  ;;  %vm8824_vm10 = vmmov %vm8821_vm2 }
 0x42e   : > { %v4019_v38 = vsel %vm6767_vm11, %v3961_v39, 0.0  ;;  %v5090_v28 = vsel %vm8729_vm13, %v5022_v54, 0.0  ;;  %3511 = vst.msk [vmem:[#allocation4 + $0xc0] sm:$0xff] %vm8818_vm7, %v3470_v25  ;;  %v5023_v12 = vpop.f32.mrf.mxu1  ;;  %3479 = vrot.lane.b32.xlu1 %v7960_v3, %s5565_s23  ;;  %vm8822_vm13 = vmmov %vm8816_vm1  ;;  %vm8823_vm1 = vcmask 917248  }
 0x42f   : > { %v4040_v30 = vsel %vm8820_vm4, %v4019_v38, 0.0  ;;  %v5108_v43 = vsel %vm8821_vm2, %v5090_v28, 0.0  ;;  %4711 = vrot.lane.b32.xlu0 %v8048_v19, %s5566_s30  ;;  %v3963_v21 = vpop.f32.mrf.mxu0  ;;  %vm8825_vm7 = vmmov %vm8823_vm1  ;;  %vm8828_vm2 = vcmask 1048448   ;;  %v4087_v28 = vld [vmem:[#allocation3 + $0xf0] sm:$0xff] }
 0x430   : > { %v4041_v49 = vadd.f32 %v4040_v30, %v7837_v63  ;;  %v8056_v45 = vadd.f32 %v5108_v43, %v5107_v22  ;;  %v3964_v58 = vadd.f32 %v7755_v9, %v3963_v21  ;;  %v3472_v50 = vpop.permute.xlu1 %3471  ;;  %v3533_v63 = vld [vmem:[#allocation3 + $0xa4] sm:$0xff]  ;;  %vm8826_vm5 = vmmov %vm8823_vm1  ;;  %v4341_v12 = vld [vmem:[#allocation3 + $0x112] sm:$0xff]  ;;  %v4950_v22 = vpack.c.bf16 %v4926_v7, %v4924_v53 }
 0x431   : > { %3512 = vst.msk [vmem:[#allocation4 + $0xd0] sm:$0xff] %vm8822_vm13, %v3472_v50  ;;  %v4704_v3 = vpop.permute.xlu0 %4703  ;;  %v3965_v4 = vpop.f32.mrf.mxu0  ;;  %vm8827_vm4 = vmmov %vm8823_vm1  ;;  %v4088_v43 = vld [vmem:[#allocation3 + $0xf8] sm:$0xff]  ;;  %v3820_v50 = vpack.c.bf16 %v7724_v42, %v7721_v36  ;;  %v8112_v42 = vld [vmem:[#allocation3 + $0x124] sm:$0xff] }
 0x432   : > { %v4020_v41 = vsel %vm6792_vm3, %v3964_v58, 0.0  ;;  %4749 = vst.msk [vmem:[#allocation4 + $0x80] sm:$0xff] %vm8823_vm1, %v4704_v3  ;;  %4713 = vrot.lane.b32.xlu1 %v8060_v60, %s5566_s30  ;;  %vm8829_vm13 = vmmov %vm8828_vm2  ;;  %v4343_v53 = vld [vmem:[#allocation3 + $0x122] sm:$0xff] }
 0x433   : > { %v4042_v52 = vsel %vm8824_vm10, %v4020_v41, 0.0  ;;  %3585 = vrot.lane.b32.xlu0 %v3533_v63, %s5566_s30  ;;  %vm8830_vm1 = vmmov %vm8828_vm2  ;;  %v4450_v41 = vld [vmem:[#allocation3 + $0x11b] sm:$0xff] }
 0x434   : > { %v8069_v9 = vadd.f32 %v4042_v52, %v4041_v49  ;;  %v4706_v15 = vpop.permute.xlu1 %4705  ;;  %vm8831_vm10 = vmmov %vm8830_vm1  ;;  %v4342_v49 = vld [vmem:[#allocation3 + $0x11a] sm:$0xff] }
 0x435   : > { %4750 = vst.msk [vmem:[#allocation4 + $0x90] sm:$0xff] %vm8825_vm7, %v4706_v15  ;;  %v3578_v18 = vpop.permute.xlu0 %3577  ;;  %vm8832_vm7 = vcmask 261248  }
 0x436   : > { %3619 = vst.msk [vmem:[#allocation4 + $0xc0] sm:$0xff] %vm8826_vm5, %v3578_v18  ;;  %3587 = vrot.lane.b32.xlu1 %v3534_v26, %s5566_s30  ;;  %vm8833_vm5 = vmmov %vm8832_vm7  ;;  %v8117_v18 = vld [vmem:[#allocation3 + $0x12c] sm:$0xff] }
 0x437   : > { %4819 = vrot.lane.b32.xlu0 %v4771_v29, %s5567_s6  ;;  %v4774_v29 = vld [vmem:[#allocation3 + $0x12d] sm:$0xff] }
 0x438   : > { %v3580_v10 = vpop.permute.xlu1 %3579 }
 0x439   : > { %3620 = vst.msk [vmem:[#allocation4 + $0xd0] sm:$0xff] %vm8827_vm4, %v3580_v10  ;;  %v4812_v57 = vpop.permute.xlu0 %4811  ;;  %vm8834_vm4 = vmmov %vm8833_vm5  ;;  %v4127_v10 = vld [vmem:[#allocation3 + $0x111] sm:$0xff] }
 0x43a   : > { %4857 = vst.msk [vmem:[#allocation4 + $0x80] sm:$0xff] %vm8828_vm2, %v4812_v57  ;;  %4821 = vrot.lane.b32.xlu1 %v4772_v20, %s5567_s6  ;;  %vm8835_vm2 = vcmask 130048  }
 0x43b   : > { %3693 = vrot.lane.b32.xlu0 %v3641_v35, %s5567_s6  ;;  %v4128_v35 = vld [vmem:[#allocation3 + $0x119] sm:$0xff] }
 0x43c   : > { %v4814_v33 = vpop.permute.xlu1 %4813 }
 0x43d   : > { %4858 = vst.msk [vmem:[#allocation4 + $0x90] sm:$0xff] %vm8829_vm13, %v4814_v33  ;;  %v3686_v8 = vpop.permute.xlu0 %3685  ;;  %vm8836_vm13 = vmmov %vm8835_vm2 }
 0x43e   : > { %3727 = vst.msk [vmem:[#allocation4 + $0xc0] sm:$0xff] %vm8830_vm1, %v3686_v8  ;;  %3695 = vrot.lane.b32.xlu1 %v3642_v1, %s5567_s6  ;;  %vm8837_vm1 = vmmov %vm8834_vm4  ;;  %v8134_v8 = vld [vmem:[%s8408_s2 + $0x1] ss:$0 sm:$0xff] }
 0x43f   : > { %4175 = vrot.lane.b32.xlu0 %v4125_v17, %s5560_s10 }
 0x440   : > { %v3688_v11 = vpop.permute.xlu1 %3687 }
 0x441   : > { %3728 = vst.msk [vmem:[#allocation4 + $0xd0] sm:$0xff] %vm8831_vm10, %v3688_v11  ;;  %v4168_v37 = vpop.permute.xlu0 %4167  ;;  %v4919_v54 = vld [vmem:[#allocation4 + $0x80] sm:$0xff]  ;;  %vm8838_vm10 = vmmov %vm8835_vm2 }
 0x442   : > { %4211 = vst.msk [vmem:[#allocation4 + $0xa0] sm:$0xff] %vm8832_vm7, %v4168_v37  ;;  %4177 = vrot.lane.b32.xlu1 %v4126_v48, %s5560_s10  ;;  %vm8839_vm7 = vcmask 392448  }
 0x443   : > { %4283 = vrot.lane.b32.xlu0 %v8005_v34, %s5561_s11 }
 0x444   : > { %v4170_v39 = vpop.permute.xlu1 %4169  ;;  %v4921_v55 = vld [vmem:[#allocation4 + $0x90] sm:$0xff] }
 0x445   : > { %4212 = vst.msk [vmem:[#allocation4 + $0xb0] sm:$0xff] %vm8833_vm5, %v4170_v39  ;;  %v3042_v25 = vpop.permute.xlu0 %3041  ;;  %v4947_v5 = vpack.c.bf16 %v4921_v55, %v4919_v54  ;;  %v3793_v38 = vld [vmem:[#allocation4 + $0xc0] sm:$0xff]  ;;  %vm8840_vm5 = vmmov %vm8835_vm2 }
 0x446   : > { %3081 = vst.msk [vmem:[#allocation4 + $0xe0] sm:$0xff] %vm8834_vm4, %v3042_v25  ;;  %4285 = vrot.lane.b32.xlu1 %v8010_v6, %s5561_s11  ;;  %v4449_v6 = vld [vmem:[#allocation3 + $0x113] sm:$0xff]  ;;  %vm8841_vm4 = vmmov %vm8839_vm7 }
 0x447   : > { %4105 = vst.msk [vmem:[#allocation4 + $0xc0] sm:$0xff] %vm8835_vm2, %v4087_v28  ;;  %4391 = vrot.lane.b32.xlu0 %v4341_v12, %s5562_s12  ;;  %5049 = vmatmul.mubr.bf16.gmra.mxu1 %v4947_v5  ;;  %vm8842_vm2 = vmmov %vm8841_vm4 }
 0x448   : > { %v3044_v34 = vpop.permute.xlu1 %3043  ;;  %5372 = vmatprep.mubr.msk.bf16.mxu1 %vm8836_vm13, %v4950_v22  ;;  %v3795_v30 = vld [vmem:[#allocation4 + $0xd0] sm:$0xff]  ;;  %vm8843_vm13 = vmmov %vm8842_vm2 }
 0x449   : > { %3082 = vst.msk [vmem:[#allocation4 + $0xf0] sm:$0xff] %vm8837_vm1, %v3044_v34  ;;  %v4276_v21 = vpop.permute.xlu0 %4275  ;;  %v3817_v58 = vpack.c.bf16 %v3795_v30, %v3793_v38  ;;  %vm8844_vm1 = vcmask 523648  }
 0x44a   : > { %4106 = vst.msk [vmem:[#allocation4 + $0xd0] sm:$0xff] %vm8838_vm10, %v4088_v43  ;;  %4393 = vrot.lane.b32.xlu1 %v4342_v49, %s5562_s12  ;;  %vm8845_vm10 = vmmov %vm8844_vm1 }
 0x44b   : > { %4319 = vst.msk [vmem:[#allocation4 + $0xa0] sm:$0xff] %vm8839_vm7, %v4276_v21  ;;  %4499 = vrot.lane.b32.xlu0 %v4449_v6, %s5564_s13  ;;  %3991 = vmatmul.mubr.bf16.gmra.mxu0 %v3817_v58  ;;  %vm8846_vm7 = vmmov %vm8844_vm1 }
 0x44c   : > { %v4278_v3 = vpop.permute.xlu1 %4277  ;;  %5365 = vmatprep.mubr.msk.bf16.mxu0 %vm8840_vm5, %v3820_v50  ;;  %vm8847_vm5 = vmmov %vm8844_vm1 }
 0x44d   : > { %4320 = vst.msk [vmem:[#allocation4 + $0xb0] sm:$0xff] %vm8841_vm4, %v4278_v3  ;;  %v3150_v4 = vpop.permute.xlu0 %3149  ;;  %vm8848_vm4 = vcmask 654848  }
 0x44e   : > { %3189 = vst.msk [vmem:[#allocation4 + $0xe0] sm:$0xff] %vm8842_vm2, %v3150_v4  ;;  %4501 = vrot.lane.b32.xlu1 %v4450_v41, %s5564_s13  ;;  %vm8849_vm2 = vmmov %vm8848_vm4  ;;  %v4452_v41 = vld [vmem:[#allocation3 + $0x12b] sm:$0xff] }
 0x44f   : > { %4607 = vrot.lane.b32.xlu0 %v8048_v19, %s5565_s23  ;;  %v4773_v19 = vld [vmem:[#allocation3 + $0x125] sm:$0xff] }
 0x450   : > { %v3152_v63 = vpop.permute.xlu1 %3151 }
 0x451   : > { %3190 = vst.msk [vmem:[#allocation4 + $0xf0] sm:$0xff] %vm8843_vm13, %v3152_v63  ;;  %v4384_v36 = vpop.permute.xlu0 %4383  ;;  %vm8850_vm13 = vmmov %vm8849_vm2 }
 0x452   : > { %4427 = vst.msk [vmem:[#allocation4 + $0xa0] sm:$0xff] %vm8844_vm1, %v4384_v36  ;;  %4609 = vrot.lane.b32.xlu1 %v8060_v60, %s5565_s23  ;;  %vm8851_vm1 = vmmov %vm8849_vm2 }
 0x453   : > { %4715 = vrot.lane.b32.xlu0 %v8112_v42, %s5566_s30 }
 0x454   : > { %v4386_v52 = vpop.permute.xlu1 %4385 }
 0x455   : > { %4428 = vst.msk [vmem:[#allocation4 + $0xb0] sm:$0xff] %vm8845_vm10, %v4386_v52  ;;  %v3258_v15 = vpop.permute.xlu0 %3257  ;;  %vm8852_vm10 = vcmask 786048  }
 0x456   : > { %3297 = vst.msk [vmem:[#allocation4 + $0xe0] sm:$0xff] %vm8846_vm7, %v3258_v15  ;;  %4717 = vrot.lane.b32.xlu1 %v8117_v18, %s5566_s30  ;;  %vm8853_vm7 = vcmask 130048   ;;  %v4667_v15 = vld [vmem:[#allocation3 + $0x134] sm:$0xff] }
 0x457   : > { %4823 = vrot.lane.b32.xlu0 %v4773_v19, %s5567_s6 }
 0x458   : > { %v3260_v60 = vpop.permute.xlu1 %3259 }
 0x459   : > { %3298 = vst.msk [vmem:[#allocation4 + $0xf0] sm:$0xff] %vm8847_vm5, %v3260_v60  ;;  %v4492_v26 = vpop.permute.xlu0 %4491  ;;  %vm8854_vm5 = vmmov %vm8852_vm10  ;;  %v4668_v60 = vld [vmem:[#allocation3 + $0x13c] sm:$0xff] }
 0x45a   : > { %4535 = vst.msk [vmem:[#allocation4 + $0xa0] sm:$0xff] %vm8848_vm4, %v4492_v26  ;;  %4825 = vrot.lane.b32.xlu1 %v4774_v29, %s5567_s6  ;;  %vm8856_vm4 = vmmov %vm8853_vm7  ;;  %v4775_v29 = vld [vmem:[#allocation3 + $0x135] sm:$0xff] }
 0x45b   : > { %4179 = vrot.lane.b32.xlu0 %v4127_v10, %s5560_s10  ;;  %v4776_v10 = vld [vmem:[#allocation3 + $0x13d] sm:$0xff] }
 0x45c   : > { %v4494_v57 = vpop.permute.xlu1 %4493 }
 0x45d   : > { %4536 = vst.msk [vmem:[#allocation4 + $0xb0] sm:$0xff] %vm8849_vm2, %v4494_v57  ;;  %v3366_v20 = vpop.permute.xlu0 %3365  ;;  %vm8857_vm2 = vmmov %vm8856_vm4 }
 0x45e   : > { %3405 = vst.msk [vmem:[#allocation4 + $0xe0] sm:$0xff] %vm8850_vm13, %v3366_v20  ;;  %4181 = vrot.lane.b32.xlu1 %v4128_v35, %s5560_s10  ;;  %vm8859_vm13 = vcmask 917248   ;;  %s5503_s10 = scalar_lea.vmem %s5502_s22, 32 }
 0x45f   : > { %4287 = vrot.lane.b32.xlu0 %v4341_v12, %s5561_s11  ;;  %v5026_v33 = vpop.f32.mrf.mxu1  ;;  %v4344_v12 = vld [vmem:[#allocation3 + $0x12a] sm:$0xff] }
 0x460   : > { %v5027_v1 = vadd.f32 %v8134_v8, %v5026_v33  ;;  %v3368_v17 = vpop.permute.xlu1 %3367  ;;  %v4928_v33 = vld [vmem:[#allocation4 + $0xc8] sm:$0xff] }
 0x461   : > { %3406 = vst.msk [vmem:[#allocation4 + $0xf0] sm:$0xff] %vm8851_vm1, %v3368_v17  ;;  %v4600_v11 = vpop.permute.xlu0 %4599  ;;  %v5028_v37 = vpop.f32.mrf.mxu1  ;;  %vm8860_vm1 = vmmov %vm8857_vm2 }
 0x462   : > { %v5091_v48 = vsel %vm6688_vm8, %v5027_v1, 0.0  ;;  %4643 = vst.msk [vmem:[#allocation4 + $0xa0] sm:$0xff] %vm8852_vm10, %v4600_v11  ;;  %4289 = vrot.lane.b32.xlu1 %v4342_v49, %s5561_s11  ;;  %vm8855_vm8 = vmmov %vm8854_vm5  ;;  %v4930_v1 = vld [vmem:[#allocation4 + $0xd8] sm:$0xff] }
 0x463   : > { %v5110_v7 = vsel %vm8853_vm7, %v5091_v48, 0.0  ;;  %4395 = vrot.lane.b32.xlu0 %v4343_v53, %s5562_s12  ;;  %v3968_v39 = vpop.f32.mrf.mxu0  ;;  %v5029_v54 = vpop.f32.mrf.mxu1  ;;  %vm8861_vm10 = vmmov %vm8859_vm13 }
 0x464   : > { %v5111_v55 = vadd.f32 %v5110_v7, %v8056_v45  ;;  %v3969_v25 = vadd.f32 %v8134_v8, %v3968_v39  ;;  %v5030_v5 = vadd.f32 %v8134_v8, %v5029_v54  ;;  %v4602_v38 = vpop.permute.xlu1 %4601  ;;  %v4451_v45 = vld [vmem:[#allocation3 + $0x123] sm:$0xff]  ;;  %vm8862_vm7 = vmmov %vm8861_vm10  ;;  %v4952_v54 = vpack.c.bf16 %v4930_v1, %v4928_v33 }
 0x465   : > { %4644 = vst.msk [vmem:[#allocation4 + $0xb0] sm:$0xff] %vm8854_vm5, %v4602_v38  ;;  %v3474_v23 = vpop.permute.xlu0 %3473  ;;  %v3970_v28 = vpop.f32.mrf.mxu0  ;;  %v4089_v39 = vld [vmem:[#allocation3 + $0x100] sm:$0xff] }
 0x466   : > { %v4021_v22 = vsel %vm6853_vm6, %v3969_v25, 0.0  ;;  %v5092_v34 = vsel %vm6714_vm9, %v5030_v5, 0.0  ;;  %3513 = vst.msk [vmem:[#allocation4 + $0xe0] sm:$0xff] %vm8855_vm8, %v3474_v23  ;;  %v5031_v30 = vpop.f32.mrf.mxu1  ;;  %4397 = vrot.lane.b32.xlu1 %v4344_v12, %s5562_s12  ;;  %vm8858_vm9 = vmmov %vm8854_vm5  ;;  %vm8864_vm8 = vcmask 1048448   ;;  %v4090_v5 = vld [vmem:[#allocation3 + $0x108] sm:$0xff]  ;;  %v3822_v28 = vpack.c.bf16 %v7973_v16, %v7971_v59 }
 0x467   : > { %v4044_v43 = vsel %vm8856_vm4, %v4021_v22, 0.0  ;;  %v5112_v21 = vsel %vm8857_vm2, %v5092_v34, 0.0  ;;  %4503 = vrot.lane.b32.xlu0 %v4451_v45, %s5564_s13  ;;  %v3971_v49 = vpop.f32.mrf.mxu0  ;;  %vm8863_vm5 = vmmov %vm8862_vm7 }
 0x468   : > { %v4045_v58 = vadd.f32 %v4044_v43, %v8069_v9  ;;  %v8158_v6 = vadd.f32 %v5112_v21, %v5111_v55  ;;  %v3972_v44 = vadd.f32 %v8134_v8, %v3971_v49  ;;  %v3476_v50 = vpop.permute.xlu1 %3475  ;;  %vm8865_vm4 = vmmov %vm8864_vm8 }
 0x469   : > { %3514 = vst.msk [vmem:[#allocation4 + $0xf0] sm:$0xff] %vm8858_vm9, %v3476_v50  ;;  %v4708_v3 = vpop.permute.xlu0 %4707  ;;  %v3973_v4 = vpop.f32.mrf.mxu0  ;;  %vm8866_vm2 = vmmov %vm8865_vm4 }
 0x46a   : > { %v4022_v63 = vsel %vm8642_vm12, %v3972_v44, 0.0  ;;  %4751 = vst.msk [vmem:[#allocation4 + $0xa0] sm:$0xff] %vm8859_vm13, %v4708_v3  ;;  %4505 = vrot.lane.b32.xlu1 %v4452_v41, %s5564_s13  ;;  %vm8867_vm9 = vmmov %vm8866_vm2  ;;  %vm8868_vm13 = vcmask 261248  }
 0x46b   : > { %v4046_v36 = vsel %vm8860_vm1, %v4022_v63, 0.0  ;;  %4611 = vrot.lane.b32.xlu0 %v8112_v42, %s5565_s23  ;;  %vm8869_vm1 = vmmov %vm8868_vm13 }
 0x46c   : > { %v8169_v9 = vadd.f32 %v4046_v36, %v4045_v58  ;;  %v4710_v52 = vpop.permute.xlu1 %4709 }
 0x46d   : > { %4752 = vst.msk [vmem:[#allocation4 + $0xb0] sm:$0xff] %vm8861_vm10, %v4710_v52  ;;  %v3582_v19 = vpop.permute.xlu0 %3581  ;;  %vm8870_vm10 = vmmov %vm8869_vm1 }
 0x46e   : > { %3621 = vst.msk [vmem:[#allocation4 + $0xe0] sm:$0xff] %vm8862_vm7, %v3582_v19  ;;  %4613 = vrot.lane.b32.xlu1 %v8117_v18, %s5565_s23  ;;  %vm8871_vm7 = vcmask 130048   ;;  %s215_s23 = sand.u32 1, %s5549_s19  }
 0x46f   : > { %4719 = vrot.lane.b32.xlu0 %v4667_v15, %s5566_s30  ;;  %s216_s8 = scalar_lea.vmem [#allocation5], %s215_s23  ;;  %s5228_s25 = scalar_lea.sflag [#allocation6], %s215_s23 }
 0x470   : > { %v3584_v26 = vpop.permute.xlu1 %3583  ;;  %s5240_s14 = sshll.u32 %s216_s8, 4  ;;  %s5241_s14 = int_to_ptr.vmem [resolvable:$true] %s5240_s14 }
 0x471   : > { %3622 = vst.msk [vmem:[#allocation4 + $0xf0] sm:$0xff] %vm8863_vm5, %v3584_v26  ;;  %v4816_v42 = vpop.permute.xlu0 %4815  ;;  %vm8872_vm5 = vmmov %vm8871_vm7  ;;  %s5497_s26 = scalar_lea.vmem %s5241_s14, 16  ;;  %p5504_p0 = scmp.lt.s32.totalorder %s5241_s14, %s5502_s22 }
 0x472   : > { %4859 = vst.msk [vmem:[#allocation4 + $0xa0] sm:$0xff] %vm8864_vm8, %v4816_v42  ;;  %4721 = vrot.lane.b32.xlu1 %v4668_v60, %s5566_s30  ;;  %vm8873_vm8 = vmmov %vm8869_vm1  ;;  %p5498_p11 = scmp.ne.s32.totalorder %s5241_s14, %s5497_s26  ;;  %p5505_p1 = scmp.lt.s32.totalorder %s5503_s10, %s5497_s26 }
 0x473   : > { %4827 = vrot.lane.b32.xlu0 %v4775_v29, %s5567_s6 }
 0x474   : > { %v4818_v57 = vpop.permute.xlu1 %4817  ;;  %p5499_p12 = pnand %p5498_p11, %p5638_p5  ;;  %p5506_p2 = por %p5505_p1, %p5504_p0 }
 0x475   : > { %4860 = vst.msk [vmem:[#allocation4 + $0xb0] sm:$0xff] %vm8865_vm4, %v4818_v57  ;;  %v3690_v20 = vpop.permute.xlu0 %3689  ;;  %vm8874_vm4 = vmmov %vm8872_vm5 }
 0x476   : > { %3729 = vst.msk [vmem:[#allocation4 + $0xe0] sm:$0xff] %vm8866_vm2, %v3690_v20  ;;  %4829 = vrot.lane.b32.xlu1 %v4776_v10, %s5567_s6  ;;  %vm8875_vm2 = vcmask 392448   ;;  %p5500_p13 = pneg %p5499_p12 }
 0x478   : > { %v3692_v18 = vpop.permute.xlu1 %3691  ;;  %p5507_p3 = pnand %p5506_p2, %p5500_p13 }
 0x479   : > { %3730 = vst.msk [vmem:[#allocation4 + $0xf0] sm:$0xff] %vm8867_vm9, %v3692_v18  ;;  %v4172_v35 = vpop.permute.xlu0 %4171  ;;  %v4923_v11 = vld [vmem:[#allocation4 + $0xa0] sm:$0xff]  ;;  %vm8876_vm9 = vmmov %vm8874_vm4 }
 0x47a   : > { %4213 = vst.msk [vmem:[#allocation4 + $0xc0] sm:$0xff] %vm8868_vm13, %v4172_v35  ;;  %vm8877_vm13 = vmmov %vm8875_vm2 }
 0x47c   : > { %v4174_v17 = vpop.permute.xlu1 %4173  ;;  %v4925_v37 = vld [vmem:[#allocation4 + $0xb0] sm:$0xff] }
 0x47d   : > { %4214 = vst.msk [vmem:[#allocation4 + $0xd0] sm:$0xff] %vm8869_vm1, %v4174_v17  ;;  %v3046_v48 = vpop.permute.xlu0 %3045  ;;  %v4949_v53 = vpack.c.bf16 %v4925_v37, %v4923_v11  ;;  %v3797_v7 = vld [vmem:[#allocation4 + $0xe0] sm:$0xff]  ;;  %vm8878_vm1 = vmmov %vm8875_vm2 }
 0x47e   : > { %3083 = vst.msk [vmem:[#allocation4 + $0x100] sm:$0xff] %vm8870_vm10, %v3046_v48  ;;  %vm8879_vm10 = vmmov %vm8878_vm1 }
 0x47f   : > { %4107 = vst.msk [vmem:[#allocation4 + $0xe0] sm:$0xff] %vm8871_vm7, %v4089_v39  ;;  %5057 = vmatmul.mubr.bf16.gmra.mxu1 %v4949_v53  ;;  %vm8880_vm7 = vcmask 523648  }
 0x480   : > { %v3048_v55 = vpop.permute.xlu1 %3047  ;;  %5373 = vmatprep.mubr.msk.bf16.mxu1 %vm8872_vm5, %v4952_v54  ;;  %v3799_v25 = vld [vmem:[#allocation4 + $0xf0] sm:$0xff]  ;;  %vm8881_vm5 = vmmov %vm8880_vm7 }
 0x481   : > { %3084 = vst.msk [vmem:[#allocation4 + $0x110] sm:$0xff] %vm8873_vm8, %v3048_v55  ;;  %v4280_v38 = vpop.permute.xlu0 %4279  ;;  %v3819_v23 = vpack.c.bf16 %v3799_v25, %v3797_v7  ;;  %vm8882_vm8 = vmmov %vm8881_vm5 }
 0x482   : > { %4108 = vst.msk [vmem:[#allocation4 + $0xf0] sm:$0xff] %vm8874_vm4, %v4090_v5  ;;  %vm8883_vm4 = vmmov %vm8881_vm5 }
 0x483   : > { %4321 = vst.msk [vmem:[#allocation4 + $0xc0] sm:$0xff] %vm8875_vm2, %v4280_v38  ;;  %3999 = vmatmul.mubr.bf16.gmra.mxu0 %v3819_v23  ;;  %vm8884_vm2 = vcmask 654848   ;;  %v4932_v23 = vld [vmem:[#allocation4 + $0xe8] sm:$0xff] }
 0x484   : > { %v4282_v12 = vpop.permute.xlu1 %4281  ;;  %5366 = vmatprep.mubr.msk.bf16.mxu0 %vm8876_vm9, %v3822_v28  ;;  %vm8885_vm9 = vmmov %vm8884_vm2  ;;  %v4934_v28 = vld [vmem:[#allocation4 + $0xf8] sm:$0xff] }
 0x485   : > { %4322 = vst.msk [vmem:[#allocation4 + $0xd0] sm:$0xff] %vm8877_vm13, %v4282_v12  ;;  %v3154_v22 = vpop.permute.xlu0 %3153  ;;  %vm8886_vm13 = vmmov %vm8884_vm2 }
 0x486   : > { %3191 = vst.msk [vmem:[#allocation4 + $0x100] sm:$0xff] %vm8878_vm1, %v3154_v22  ;;  %vm8887_vm1 = vmmov %vm8884_vm2 }
 0x488   : > { %v3156_v34 = vpop.permute.xlu1 %3155 }
 0x489   : > { %3192 = vst.msk [vmem:[#allocation4 + $0x110] sm:$0xff] %vm8879_vm10, %v3156_v34  ;;  %v4388_v30 = vpop.permute.xlu0 %4387  ;;  %vm8888_vm10 = vcmask 786048  }
 0x48a   : > { %4429 = vst.msk [vmem:[#allocation4 + $0xc0] sm:$0xff] %vm8880_vm7, %v4388_v30  ;;  %vm8889_vm7 = vcmask 130048  }
 0x48c   : > { %v4390_v45 = vpop.permute.xlu1 %4389 }
 0x48d   : > { %4430 = vst.msk [vmem:[#allocation4 + $0xd0] sm:$0xff] %vm8881_vm5, %v4390_v45  ;;  %v3262_v43 = vpop.permute.xlu0 %3261  ;;  %vm8890_vm5 = vmmov %vm8888_vm10 }
 0x48e   : > { %3299 = vst.msk [vmem:[#allocation4 + $0x100] sm:$0xff] %vm8882_vm8, %v3262_v43  ;;  %vm8892_vm8 = vmmov %vm8889_vm7 }
 0x490   : > { %v3264_v59 = vpop.permute.xlu1 %3263 }
 0x491   : > { %3300 = vst.msk [vmem:[#allocation4 + $0x110] sm:$0xff] %vm8883_vm4, %v3264_v59  ;;  %v4496_v16 = vpop.permute.xlu0 %4495  ;;  %vm8893_vm4 = vmmov %vm8889_vm7  ;;  %v4091_v59 = vld [vmem:[#allocation3 + $0x110] sm:$0xff] }
 0x492   : > { %4537 = vst.msk [vmem:[#allocation4 + $0xc0] sm:$0xff] %vm8884_vm2, %v4496_v16  ;;  %vm8894_vm2 = vmmov %vm8890_vm5  ;;  %v4954_v16 = vpack.c.bf16 %v4934_v28, %v4932_v23 }
 0x494   : > { %v4498_v21 = vpop.permute.xlu1 %4497 }
 0x495   : > { %4538 = vst.msk [vmem:[#allocation4 + $0xd0] sm:$0xff] %vm8885_vm9, %v4498_v21  ;;  %v3370_v49 = vpop.permute.xlu0 %3369  ;;  %vm8896_vm9 = vmmov %vm8893_vm4 }
 0x496   : > { %3407 = vst.msk [vmem:[#allocation4 + $0x100] sm:$0xff] %vm8886_vm13, %v3370_v49 }
 0x497   : > { %v5034_v58 = vpop.f32.mrf.mxu1 }
 0x498   : > { %v5035_v44 = vadd.f32 %v8134_v8, %v5034_v58  ;;  %v3372_v50 = vpop.permute.xlu1 %3371  ;;  %v4092_v58 = vld [vmem:[#allocation3 + $0x118] sm:$0xff] }
 0x499   : > { %3408 = vst.msk [vmem:[#allocation4 + $0x110] sm:$0xff] %vm8887_vm1, %v3372_v50  ;;  %v4604_v3 = vpop.permute.xlu0 %4603  ;;  %v5036_v4 = vpop.f32.mrf.mxu1 }
 0x49a   : > { %v5093_v41 = vsel %vm6767_vm11, %v5035_v44, 0.0  ;;  %4645 = vst.msk [vmem:[#allocation4 + $0xc0] sm:$0xff] %vm8888_vm10, %v4604_v3  ;;  %vm8891_vm11 = vmmov %vm8890_vm5 }
 0x49b   : > { %v5114_v63 = vsel %vm8889_vm7, %v5093_v41, 0.0  ;;  %v3976_v36 = vpop.f32.mrf.mxu0  ;;  %v5037_v52 = vpop.f32.mrf.mxu1  ;;  %vm8900_vm7 = vcmask 1048448  }
 0x49c   : > { %v5115_v15 = vadd.f32 %v5114_v63, %v8158_v6  ;;  %v3977_v19 = vadd.f32 %v8134_v8, %v3976_v36  ;;  %v5038_v60 = vadd.f32 %v8134_v8, %v5037_v52  ;;  %v4606_v26 = vpop.permute.xlu1 %4605 }
 0x49d   : > { %4646 = vst.msk [vmem:[#allocation4 + $0xd0] sm:$0xff] %vm8890_vm5, %v4606_v26  ;;  %v3478_v29 = vpop.permute.xlu0 %3477  ;;  %v3978_v42 = vpop.f32.mrf.mxu0  ;;  %vm8901_vm5 = vmmov %vm8900_vm7 }
 0x49e   : > { %v4023_v2 = vsel %vm8646_vm14, %v3977_v19, 0.0  ;;  %v5094_v10 = vsel %vm6792_vm3, %v5038_v60, 0.0  ;;  %3515 = vst.msk [vmem:[#allocation4 + $0x100] sm:$0xff] %vm8891_vm11, %v3478_v29  ;;  %v5039_v57 = vpop.f32.mrf.mxu1  ;;  %vm8895_vm3 = vcmask 917248   ;;  %vm8902_vm11 = vmmov %vm8901_vm5 }
 0x49f   : > { %v4048_v6 = vsel %vm8892_vm8, %v4023_v2, 0.0  ;;  %v5116_v20 = vsel %vm8893_vm4, %v5094_v10, 0.0  ;;  %v3979_v18 = vpop.f32.mrf.mxu0  ;;  %vm8897_vm13 = vmmov %vm8895_vm3  ;;  %vm8904_vm4 = vcmask 261248  }
 0x4a0   : > { %v4049_v35 = vadd.f32 %v4048_v6, %v8169_v9  ;;  %v8223_v33 = vadd.f32 %v5116_v20, %v5115_v15  ;;  %v3980_v1 = vadd.f32 %v8134_v8, %v3979_v18  ;;  %v3480_v17 = vpop.permute.xlu1 %3479  ;;  %vm8898_vm1 = vmmov %vm8895_vm3  ;;  %v4936_v6 = vld [vmem:[#allocation4 + $0x108] sm:$0xff]  ;;  %v4938_v20 = vld [vmem:[#allocation4 + $0x118] sm:$0xff] }
 0x4a1   : > { %3516 = vst.msk [vmem:[#allocation4 + $0x110] sm:$0xff] %vm8894_vm2, %v3480_v17  ;;  %v4712_v11 = vpop.permute.xlu0 %4711  ;;  %v3981_v56 = vpop.f32.mrf.mxu0  ;;  %vm8899_vm10 = vmmov %vm8898_vm1 }
 0x4a2   : > { %v4024_v37 = vsel %vm8648_vm0, %v3980_v1, 0.0  ;;  %4753 = vst.msk [vmem:[#allocation4 + $0xc0] sm:$0xff] %vm8895_vm3, %v4712_v11  ;;  %vm8903_vm8 = vmmov %vm8901_vm5  ;;  %vm8906_vm3 = vcmask 392448  }
 0x4a3   : > { %v4050_v48 = vsel %vm8896_vm9, %v4024_v37, 0.0  ;;  %vm8905_vm2 = vmmov %vm8904_vm4 }
 0x4a4   : > { %v8231_v53 = vadd.f32 %v4050_v48, %v4049_v35  ;;  %v4714_v7 = vpop.permute.xlu1 %4713 }
 0x4a5   : > { %4754 = vst.msk [vmem:[#allocation4 + $0xd0] sm:$0xff] %vm8897_vm13, %v4714_v7  ;;  %v3586_v9 = vpop.permute.xlu0 %3585  ;;  %vm8907_vm13 = vmmov %vm8896_vm9 }
 0x4a6   : > { %3623 = vst.msk [vmem:[#allocation4 + $0x100] sm:$0xff] %vm8898_vm1, %v3586_v9  ;;  %vm8908_vm1 = vmmov %vm8906_vm3 }
 0x4a8   : > { %v3588_v39 = vpop.permute.xlu1 %3587 }
 0x4a9   : > { %3624 = vst.msk [vmem:[#allocation4 + $0x110] sm:$0xff] %vm8899_vm10, %v3588_v39  ;;  %v4820_v54 = vpop.permute.xlu0 %4819  ;;  %vm8909_vm10 = vmmov %vm8896_vm9  ;;  %v4956_v39 = vpack.c.bf16 %v4938_v20, %v4936_v6 }
 0x4aa   : > { %4861 = vst.msk [vmem:[#allocation4 + $0xc0] sm:$0xff] %vm8900_vm7, %v4820_v54  ;;  %vm8910_vm7 = vcmask 523648  }
 0x4ac   : > { %v4822_v55 = vpop.permute.xlu1 %4821 }
 0x4ad   : > { %4862 = vst.msk [vmem:[#allocation4 + $0xd0] sm:$0xff] %vm8901_vm5, %v4822_v55  ;;  %v3694_v25 = vpop.permute.xlu0 %3693  ;;  %vm8911_vm5 = vmmov %vm8910_vm7 }
 0x4ae   : > { %3731 = vst.msk [vmem:[#allocation4 + $0x100] sm:$0xff] %vm8902_vm11, %v3694_v25  ;;  %vm8912_vm11 = vcmask 654848  }
 0x4b0   : > { %v3696_v5 = vpop.permute.xlu1 %3695 }
 0x4b1   : > { %3732 = vst.msk [vmem:[#allocation4 + $0x110] sm:$0xff] %vm8903_vm8, %v3696_v5  ;;  %v4176_v38 = vpop.permute.xlu0 %4175  ;;  %v4927_v22 = vld [vmem:[#allocation4 + $0xc0] sm:$0xff]  ;;  %vm8913_vm8 = vmmov %vm8912_vm11 }
 0x4b2   : > { %4215 = vst.msk [vmem:[#allocation4 + $0xe0] sm:$0xff] %vm8904_vm4, %v4176_v38  ;;  %vm8914_vm4 = vcmask 786048  }
 0x4b4   : > { %v4178_v12 = vpop.permute.xlu1 %4177  ;;  %v4929_v34 = vld [vmem:[#allocation4 + $0xd0] sm:$0xff] }
 0x4b5   : > { %4216 = vst.msk [vmem:[#allocation4 + $0xf0] sm:$0xff] %vm8905_vm2, %v4178_v12  ;;  %v4284_v30 = vpop.permute.xlu0 %4283  ;;  %v4951_v45 = vpack.c.bf16 %v4929_v34, %v4927_v22  ;;  %v3801_v43 = vld [vmem:[#allocation4 + $0x100] sm:$0xff]  ;;  %vm8915_vm2 = vmmov %vm8914_vm4 }
 0x4b6   : > { %4323 = vst.msk [vmem:[#allocation4 + $0xe0] sm:$0xff] %vm8906_vm3, %v4284_v30  ;;  %vm8916_vm3 = vcmask 917248  }
 0x4b7   : > { %4109 = vst.msk [vmem:[#allocation4 + $0x100] sm:$0xff] %vm8896_vm9, %v4091_v59  ;;  %5065 = vmatmul.mubr.bf16.gmra.mxu1 %v4951_v45  ;;  %vm8917_vm9 = vmmov %vm8916_vm3 }
 0x4b8   : > { %v4286_v21 = vpop.permute.xlu1 %4285  ;;  %5374 = vmatprep.mubr.msk.bf16.mxu1 %vm8907_vm13, %v4954_v16  ;;  %v3803_v49 = vld [vmem:[#allocation4 + $0x110] sm:$0xff]  ;;  %vm8918_vm13 = vcmask 1048448  }
 0x4b9   : > { %4324 = vst.msk [vmem:[#allocation4 + $0xf0] sm:$0xff] %vm8908_vm1, %v4286_v21  ;;  %v4392_v44 = vpop.permute.xlu0 %4391  ;;  %v3821_v50 = vpack.c.bf16 %v3803_v49, %v3801_v43  ;;  %vm8919_vm1 = vmmov %vm8918_vm13 }
 0x4ba   : > { %4110 = vst.msk [vmem:[#allocation4 + $0x110] sm:$0xff] %vm8909_vm10, %v4092_v58  ;;  %vm8920_vm10 = vcmask 261248  }
 0x4bb   : > { %4431 = vst.msk [vmem:[#allocation4 + $0xe0] sm:$0xff] %vm8910_vm7, %v4392_v44  ;;  %4007 = vmatmul.mubr.bf16.gmra.mxu0 %v3821_v50  ;;  %vm8921_vm7 = vmmov %vm8920_vm10 }
 0x4bc   : > { %v4394_v3 = vpop.permute.xlu1 %4393 }
 0x4bd   : > { %4432 = vst.msk [vmem:[#allocation4 + $0xf0] sm:$0xff] %vm8911_vm5, %v4394_v3  ;;  %v4500_v4 = vpop.permute.xlu0 %4499  ;;  %vm8922_vm5 = vcmask 392448  }
 0x4be   : > { %4539 = vst.msk [vmem:[#allocation4 + $0xe0] sm:$0xff] %vm8912_vm11, %v4500_v4  ;;  %vm8923_vm11 = vcmask 130048  }
 0x4c0   : > { %v4502_v41 = vpop.permute.xlu1 %4501 }
 0x4c1   : > { %4540 = vst.msk [vmem:[#allocation4 + $0xf0] sm:$0xff] %vm8913_vm8, %v4502_v41  ;;  %v4608_v63 = vpop.permute.xlu0 %4607  ;;  %vm8924_vm8 = vmmov %vm8922_vm5 }
 0x4c2   : > { %4647 = vst.msk [vmem:[#allocation4 + $0xe0] sm:$0xff] %vm8914_vm4, %v4608_v63  ;;  %vm8926_vm4 = vmmov %vm8923_vm11 }
 0x4c4   : > { %v4610_v36 = vpop.permute.xlu1 %4609 }
 0x4c5   : > { %4648 = vst.msk [vmem:[#allocation4 + $0xf0] sm:$0xff] %vm8915_vm2, %v4610_v36  ;;  %v4716_v52 = vpop.permute.xlu0 %4715  ;;  %vm8927_vm2 = vmmov %vm8926_vm4 }
 0x4c6   : > { %4755 = vst.msk [vmem:[#allocation4 + $0xe0] sm:$0xff] %vm8916_vm3, %v4716_v52  ;;  %vm8928_vm3 = vmmov %vm8927_vm2 }
 0x4c8   : > { %v4718_v15 = vpop.permute.xlu1 %4717 }
 0x4c9   : > { %4756 = vst.msk [vmem:[#allocation4 + $0xf0] sm:$0xff] %vm8917_vm9, %v4718_v15  ;;  %v4824_v19 = vpop.permute.xlu0 %4823 }
 0x4ca   : > { %4863 = vst.msk [vmem:[#allocation4 + $0xe0] sm:$0xff] %vm8918_vm13, %v4824_v19  ;;  %vm8931_vm13 = vcmask 654848  }
 0x4cc   : > { %v4826_v60 = vpop.permute.xlu1 %4825 }
 0x4cd   : > { %4864 = vst.msk [vmem:[#allocation4 + $0xf0] sm:$0xff] %vm8919_vm1, %v4826_v60  ;;  %v4180_v26 = vpop.permute.xlu0 %4179  ;;  %vm8932_vm1 = vmmov %vm8927_vm2 }
 0x4ce   : > { %4217 = vst.msk [vmem:[#allocation4 + $0x100] sm:$0xff] %vm8920_vm10, %v4180_v26  ;;  %vm8933_vm10 = vmmov %vm8931_vm13 }
 0x4cf   : > { %v5042_v29 = vpop.f32.mrf.mxu1 }
 0x4d0   : > { %v5043_v42 = vadd.f32 %v8134_v8, %v5042_v29  ;;  %v4182_v2 = vpop.permute.xlu1 %4181 }
 0x4d1   : > { %4218 = vst.msk [vmem:[#allocation4 + $0x110] sm:$0xff] %vm8921_vm7, %v4182_v2  ;;  %v4288_v10 = vpop.permute.xlu0 %4287  ;;  %v5044_v57 = vpop.f32.mrf.mxu1  ;;  %v4931_v7 = vld [vmem:[#allocation4 + $0xe0] sm:$0xff]  ;;  %vm8934_vm7 = vcmask 786048  }
 0x4d2   : > { %v5095_v18 = vsel %vm6853_vm6, %v5043_v42, 0.0  ;;  %4325 = vst.msk [vmem:[#allocation4 + $0x100] sm:$0xff] %vm8922_vm5, %v4288_v10  ;;  %vm8925_vm6 = vcmask 523648   ;;  %vm8935_vm5 = vmmov %vm8934_vm7 }
 0x4d3   : > { %v5118_v35 = vsel %vm8923_vm11, %v5095_v18, 0.0  ;;  %v3984_v1 = vpop.f32.mrf.mxu0  ;;  %v5045_v17 = vpop.f32.mrf.mxu1  ;;  %vm8929_vm9 = vmmov %vm8925_vm6  ;;  %vm8936_vm11 = vcmask 917248  }
 0x4d4   : > { %v5119_v11 = vadd.f32 %v5118_v35, %v8223_v33  ;;  %v3985_v56 = vadd.f32 %v8134_v8, %v3984_v1  ;;  %v5046_v37 = vadd.f32 %v8134_v8, %v5045_v17  ;;  %v4290_v48 = vpop.permute.xlu1 %4289  ;;  %v4933_v9 = vld [vmem:[#allocation4 + $0xf0] sm:$0xff] }
 0x4d5   : > { %4326 = vst.msk [vmem:[#allocation4 + $0x110] sm:$0xff] %vm8924_vm8, %v4290_v48  ;;  %v4396_v62 = vpop.permute.xlu0 %4395  ;;  %v3986_v54 = vpop.f32.mrf.mxu0  ;;  %v4953_v55 = vpack.c.bf16 %v4933_v9, %v4931_v7  ;;  %vm8937_vm8 = vmmov %vm8936_vm11 }
 0x4d6   : > { %v4025_v25 = vsel %vm8652_vm15, %v3985_v56, 0.0  ;;  %v5096_v5 = vsel %vm8642_vm12, %v5046_v37, 0.0  ;;  %4433 = vst.msk [vmem:[#allocation4 + $0x100] sm:$0xff] %vm8925_vm6, %v4396_v62  ;;  %v5047_v33 = vpop.f32.mrf.mxu1  ;;  %vm8930_vm12 = vnez %v8508_v14  ;;  %vm8938_vm6 = vcmask 1048448   ;;  %v5151_v37 = vld [vmem:[%s8409_s3 + $0x8] sm:$0xff] }
 0x4d7   : > { %v4052_v38 = vsel %vm8926_vm4, %v4025_v25, 0.0  ;;  %v5120_v23 = vsel %vm8927_vm2, %v5096_v5, 0.0  ;;  %v3987_v28 = vpop.f32.mrf.mxu0  ;;  %5073 = vmatmul.mubr.bf16.gmra.mxu1 %v4953_v55  ;;  %vm8939_vm4 = vmmov %vm8938_vm6  ;;  %5385 = vmatpush3.msra.mxu0 %v5151_v37 }
 0x4d8   : > { %v4053_v12 = vadd.f32 %v4052_v38, %v8231_v53  ;;  %v5121_v22 = vadd.f32 %v5120_v23, %v5119_v11  ;;  %v3988_v34 = vadd.f32 %v8134_v8, %v3987_v28  ;;  %v4398_v30 = vpop.permute.xlu1 %4397  ;;  %5375 = vmatprep.mubr.msk.bf16.mxu1 %vm8928_vm3, %v4956_v39  ;;  %vm8940_vm2 = vmmov %vm8932_vm1  ;;  %vm8941_vm3 = vnez %v8520_v46  ;;  %v5150_v39 = vld [vmem:[%s8409_s3] sm:$0xff] }
 0x4d9   : > { %4434 = vst.msk [vmem:[#allocation4 + $0x110] sm:$0xff] %vm8929_vm9, %v4398_v30  ;;  %v4504_v31 = vpop.permute.xlu0 %4503  ;;  %v3989_v45 = vpop.f32.mrf.mxu0  ;;  %vm8942_vm9 = vmmov %vm8932_vm1  ;;  %5386 = vmatprep.subr.mxu0 %v5559_v0 }
 0x4da   : > { %v4026_v43 = vsel %vm8930_vm12, %v3988_v34, 0.0  ;;  %4541 = vst.msk [vmem:[#allocation4 + $0x100] sm:$0xff] %vm8931_vm13, %v4504_v31  ;;  %vm8944_vm13 = vnez %v8527_v27  ;;  %5387 = vmatpush3.msra.mxu0 %v5150_v39 }
 0x4db   : > { %v4054_v59 = vsel %vm8932_vm1, %v4026_v43, 0.0 }
 0x4dc   : > { %v4055_v16 = vadd.f32 %v4054_v59, %v4053_v12  ;;  %v4506_v21 = vpop.permute.xlu1 %4505 }
 0x4dd   : > { %4542 = vst.msk [vmem:[#allocation4 + $0x110] sm:$0xff] %vm8933_vm10, %v4506_v21  ;;  %v4612_v53 = vpop.permute.xlu0 %4611  ;;  %vm8947_vm10 = vnez %v8553_v47 }
 0x4de   : > { %4649 = vst.msk [vmem:[#allocation4 + $0x100] sm:$0xff] %vm8934_vm7, %v4612_v53 }
 0x4e0   : > { %v4614_v49 = vpop.permute.xlu1 %4613 }
 0x4e1   : > { %4650 = vst.msk [vmem:[#allocation4 + $0x110] sm:$0xff] %vm8935_vm5, %v4614_v49  ;;  %v4720_v58 = vpop.permute.xlu0 %4719  ;;  %vm8950_vm5 = vnez %v8559_v61 }
 0x4e2   : > { %4757 = vst.msk [vmem:[#allocation4 + $0x100] sm:$0xff] %vm8936_vm11, %v4720_v58 }
 0x4e4   : > { %v4722_v44 = vpop.permute.xlu1 %4721 }
 0x4e5   : > { %4758 = vst.msk [vmem:[#allocation4 + $0x110] sm:$0xff] %vm8937_vm8, %v4722_v44  ;;  %v4828_v50 = vpop.permute.xlu0 %4827  ;;  %vm5568_vm8 = vmmov 0  }
 0x4e6   : > { %4865 = vst.msk [vmem:[#allocation4 + $0x100] sm:$0xff] %vm8938_vm6, %v4828_v50  ;;  %5388 = vmatprep.mubr.msk.f32.mxu0 %vm5568_vm8, %v5559_v0  ;;  %vm8953_vm6 = vnez %v8595_v32  ;;  %v5152_v32 = vld [vmem:[%s8410_s4] sm:$0x1] }
 0x4e8   : > { %v4830_v3 = vpop.permute.xlu1 %4829 }
 0x4e9   : > { %4866 = vst.msk [vmem:[#allocation4 + $0x110] sm:$0xff] %vm8939_vm4, %v4830_v3 }
 0x4ed   : > { %v4935_v4 = vld [vmem:[#allocation4 + $0x100] sm:$0xff] }
 0x4f0   : > { %v4937_v41 = vld [vmem:[#allocation4 + $0x110] sm:$0xff] }
 0x4f1   : > { %v4955_v63 = vpack.c.bf16 %v4937_v41, %v4935_v4 }
 0x4f3   : > { %5081 = vmatmul.mubr.bf16.gmra.mxu1 %v4955_v63 }
 0x507   : > { %v5050_v36 = vpop.f32.mrf.mxu1 }
 0x508   : > { %v5051_v52 = vadd.f32 %v8134_v8, %v5050_v36 }
 0x509   : > { %v5052_v15 = vpop.f32.mrf.mxu1 }
 0x50a   : > { %v5097_v19 = vsel %vm8646_vm14, %v5051_v52, 0.0  ;;  %vm8943_vm14 = vmmov %vm8932_vm1 }
 0x50b   : > { %v5122_v60 = vsel %vm8940_vm2, %v5097_v19, 0.0  ;;  %v3992_v26 = vpop.f32.mrf.mxu0  ;;  %v5053_v29 = vpop.f32.mrf.mxu1 }
 0x50c   : > { %v5123_v42 = vadd.f32 %v5122_v60, %v5121_v22  ;;  %v3993_v2 = vadd.f32 %v8134_v8, %v3992_v26  ;;  %v5054_v10 = vadd.f32 %v8134_v8, %v5053_v29 }
 0x50d   : > { %v3994_v57 = vpop.f32.mrf.mxu0  ;;  %v5055_v6 = vpop.f32.mrf.mxu1 }
 0x50e   : > { %v4027_v20 = vsel %vm8941_vm3, %v3993_v2, 0.0  ;;  %v5098_v18 = vsel %vm8648_vm0, %v5054_v10, 0.0  ;;  %vm8945_vm0 = vmmov %vm8932_vm1 }
 0x50f   : > { %v4056_v51 = vsel %vm8942_vm9, %v4027_v20, 0.0  ;;  %v5124_v35 = vsel %vm8943_vm14, %v5098_v18, 0.0  ;;  %v3995_v1 = vpop.f32.mrf.mxu0  ;;  %vm8946_vm1 = vmmov %vm8945_vm0 }
 0x510   : > { %v4057_v17 = vadd.f32 %v4056_v51, %v4055_v16  ;;  %v5125_v11 = vadd.f32 %v5124_v35, %v5123_v42  ;;  %v3996_v56 = vadd.f32 %v8134_v8, %v3995_v1  ;;  %vm8948_vm7 = vmmov %vm8945_vm0 }
 0x511   : > { %v3997_v48 = vpop.f32.mrf.mxu0  ;;  %vm8951_vm11 = vmmov %vm8945_vm0 }
 0x512   : > { %v4028_v7 = vsel %vm8944_vm13, %v3996_v56, 0.0  ;;  %vm8954_vm4 = vmmov %vm8945_vm0 }
 0x513   : > { %v4058_v40 = vsel %vm8945_vm0, %v4028_v7, 0.0  ;;  %vm8955_vm2 = vmmov %vm8945_vm0 }
 0x514   : > { %v4059_v9 = vadd.f32 %v4058_v40, %v4057_v17  ;;  %vm8956_vm9 = vmmov %vm8945_vm0 }
 0x515   : > { %vm8957_vm14 = vmmov %vm8945_vm0 }
 0x53f   : > { %v5058_v62 = vpop.f32.mrf.mxu1 }
 0x540   : > { %v5059_v54 = vadd.f32 %v8134_v8, %v5058_v62 }
 0x541   : > { %v5060_v55 = vpop.f32.mrf.mxu1 }
 0x542   : > { %v5099_v25 = vsel %vm8652_vm15, %v5059_v54, 0.0  ;;  %vm8949_vm15 = vmmov %vm8945_vm0 }
 0x543   : > { %v5126_v5 = vsel %vm8946_vm1, %v5099_v25, 0.0  ;;  %v4000_v33 = vpop.f32.mrf.mxu0  ;;  %v5061_v38 = vpop.f32.mrf.mxu1  ;;  %vm8960_vm1 = vmmov %vm8945_vm0 }
 0x544   : > { %v5127_v23 = vadd.f32 %v5126_v5, %v5125_v11  ;;  %v4001_v28 = vadd.f32 %v8134_v8, %v4000_v33  ;;  %v5062_v12 = vadd.f32 %v8134_v8, %v5061_v38 }
 0x545   : > { %v4002_v22 = vpop.f32.mrf.mxu0  ;;  %v5063_v34 = vpop.f32.mrf.mxu1 }
 0x546   : > { %v4029_v30 = vsel %vm8947_vm10, %v4001_v28, 0.0  ;;  %v5100_v31 = vsel %vm8930_vm12, %v5062_v12, 0.0  ;;  %vm8952_vm12 = vnez %v8591_v13 }
 0x547   : > { %v4060_v24 = vsel %vm8948_vm7, %v4029_v30, 0.0  ;;  %v5128_v45 = vsel %vm8949_vm15, %v5100_v31, 0.0  ;;  %v4003_v43 = vpop.f32.mrf.mxu0 }
 0x548   : > { %v4061_v59 = vadd.f32 %v4060_v24, %v4059_v9  ;;  %v5129_v16 = vadd.f32 %v5128_v45, %v5127_v23  ;;  %v4004_v21 = vadd.f32 %v8134_v8, %v4003_v43 }
 0x549   : > { %v4005_v53 = vpop.f32.mrf.mxu0 }
 0x54a   : > { %v4030_v49 = vsel %vm8950_vm5, %v4004_v21, 0.0 }
 0x54b   : > { %v4062_v58 = vsel %vm8951_vm11, %v4030_v49, 0.0 }
 0x54c   : > { %v4063_v44 = vadd.f32 %v4062_v58, %v4061_v59 }
 0x577   : > { %v5066_v14 = vpop.f32.mrf.mxu1 }
 0x578   : > { %v5067_v2 = vadd.f32 %v8134_v8, %v5066_v14 }
 0x579   : > { %v5068_v50 = vpop.f32.mrf.mxu1 }
 0x57a   : > { %v5101_v20 = vsel %vm8941_vm3, %v5067_v2, 0.0  ;;  %vm8958_vm3 = vmmov %vm8945_vm0 }
 0x57b   : > { %v4008_v3 = vpop.f32.mrf.mxu0  ;;  %v5069_v4 = vpop.f32.mrf.mxu1  ;;  %v5130_v11 = vsel %vm8956_vm9, %v5101_v20, 0.0 }
 0x57c   : > { %v4009_v29 = vadd.f32 %v8134_v8, %v4008_v3  ;;  %v5070_v10 = vadd.f32 %v8134_v8, %v5069_v4  ;;  %v5131_v46 = vadd.f32 %v5130_v11, %v5129_v16 }
 0x57d   : > { %v4010_v41 = vpop.f32.mrf.mxu0  ;;  %v5071_v63 = vpop.f32.mrf.mxu1 }
 0x57e   : > { %v4031_v0 = vsel %vm8952_vm12, %v4009_v29, 0.0  ;;  %v5102_v1 = vsel %vm8944_vm13, %v5070_v10, 0.0  ;;  %vm8959_vm13 = vmmov %vm8945_vm0 }
 0x57f   : > { %v4011_v36 = vpop.f32.mrf.mxu0  ;;  %v4064_v6 = vsel %vm8954_vm4, %v4031_v0, 0.0  ;;  %v5132_v48 = vsel %vm8957_vm14, %v5102_v1, 0.0 }
 0x580   : > { %v4012_v42 = vadd.f32 %v8134_v8, %v4011_v36  ;;  %v4065_v35 = vadd.f32 %v4064_v6, %v4063_v44  ;;  %v5133_v39 = vadd.f32 %v5132_v48, %v5131_v46 }
 0x581   : > { %v4013_v52 = vpop.f32.mrf.mxu0 }
 0x582   : > { %v4032_v57 = vsel %vm8953_vm6, %v4012_v42, 0.0 }
 0x583   : > { %v4066_v51 = vsel %vm8955_vm2, %v4032_v57, 0.0 }
 0x584   : > { %v4067_v56 = vadd.f32 %v4066_v51, %v4065_v35 }
 0x586   : > { %v4068_v27 = vrot.slane %v4067_v56, 4 }
 0x588   : > { %v4069_v38 = vadd.f32 %v4068_v27, %v4067_v56 }
 0x58a   : > { %v4070_v30 = vrot.slane %v4069_v38, 2 }
 0x58c   : > { %v4071_v24 = vadd.f32 %v4070_v30, %v4069_v38 }
 0x58e   : > { %v4072_v59 = vrot.slane %v4071_v24, 1 }
 0x590   : > { %v4073_v53 = vadd.f32 %v4072_v59, %v4071_v24 }
 0x597   : > { %v5074_v15 = vpop.f32.mrf.mxu1 }
 0x598   : > { %v5075_v18 = vadd.f32 %v8134_v8, %v5074_v15 }
 0x599   : > { %v5076_v19 = vpop.f32.mrf.mxu1 }
 0x59a   : > { %v5103_v37 = vsel %vm8947_vm10, %v5075_v18, 0.0  ;;  %vm8961_vm10 = vmmov %vm8945_vm0 }
 0x59b   : > { %v5077_v60 = vpop.f32.mrf.mxu1  ;;  %v5134_v40 = vsel %vm8958_vm3, %v5103_v37, 0.0 }
 0x59c   : > { %v5078_v17 = vadd.f32 %v8134_v8, %v5077_v60  ;;  %v5135_v25 = vadd.f32 %v5134_v40, %v5133_v39 }
 0x59d   : > { %v5079_v26 = vpop.f32.mrf.mxu1 }
 0x59e   : > { %v5104_v7 = vsel %vm8950_vm5, %v5078_v17, 0.0 }
 0x59f   : > { %v5136_v54 = vsel %vm8959_vm13, %v5104_v7, 0.0 }
 0x5a0   : > { %v5137_v61 = vadd.f32 %v5136_v54, %v5135_v25 }
 0x5b3   : > { %v5082_v9 = vpop.f32.mrf.mxu1 }
 0x5b4   : > { %v5083_v62 = vadd.f32 %v8134_v8, %v5082_v9 }
 0x5b5   : > { %v5084_v55 = vpop.f32.mrf.mxu1 }
 0x5b6   : > { %v5105_v47 = vsel %vm8952_vm12, %v5083_v62, 0.0 }
 0x5b7   : > { %v5138_v5 = vsel %vm8945_vm0, %v5105_v47, 0.0  ;;  %v5085_v33 = vpop.f32.mrf.mxu1 }
 0x5b8   : > { %v5086_v23 = vadd.f32 %v8134_v8, %v5085_v33  ;;  %v5139_v12 = vadd.f32 %v5138_v5, %v5137_v61 }
 0x5b9   : > { %v5087_v28 = vpop.f32.mrf.mxu1 }
 0x5ba   : > { %v5106_v22 = vsel %vm8953_vm6, %v5086_v23, 0.0 }
 0x5bb   : > { %v5140_v34 = vsel %vm8960_vm1, %v5106_v22, 0.0 }
 0x5bc   : > { %v5141_v31 = vadd.f32 %v5140_v34, %v5139_v12 }
 0x5be   : > { %v5142_v13 = vrot.slane %v5141_v31, 4 }
 0x5c0   : > { %v5143_v45 = vadd.f32 %v5142_v13, %v5141_v31 }
 0x5c2   : > { %v5144_v43 = vrot.slane %v5143_v45, 2 }
 0x5c4   : > { %v5145_v16 = vadd.f32 %v5144_v43, %v5143_v45 }
 0x5c6   : > { %v5146_v21 = vrot.slane %v5145_v16, 1 }
 0x5c8   : > { %v5147_v8 = vadd.f32 %v5146_v21, %v5145_v16 }
 0x5ca   : > { %v5148_v49 = vadd.f32 %v5147_v8, %v4073_v53 }
 0x5cc   : > { %v5149_v58 = vmul.f32 0.00390625, %v5148_v49 }
 0x5ce   : > { %5389 = vmatmul.mubr.msk.f32.vlgmr.msra.gmra.mxu0 %vm8961_vm10, %v5149_v58 }
 0x68e   : > { %v5222_v44 = vpop.f32.mrf.mxu0 }
 0x68f   : > { %v5223_v14 = vadd.f32 %v5222_v44, %v5152_v32 }
 0x690   : > { %v5390_v50 = vpop.f32.mrf.mxu0 }
 0x691   : > { %5226 = vst [vmem:[%s216_s8] sm:$0x1] %v5223_v14 }
 0x692   : > { %5510 = shalt.err (!%p5507_p3)
}
 0x693   : > { %s5511_s11 = scalar_lea.hbm %s8371_s17, 16  ;;  %s5515_s23 = scalar_lea.hbm %s8411_s5, 32 }
 0x694   : > { %p5512_p4 = scmp.ne.s32.totalorder %s8371_s17, %s5511_s11  ;;  %p5516_p9 = scmp.lt.s32.totalorder %s8371_s17, %s8411_s5 }
 0x695   : > { %p5517_p10 = scmp.lt.s32.totalorder %s5515_s23, %s5511_s11 }
 0x696   : > { %p5513_p7 = pnand %p5512_p4, %p5638_p5 }
 0x697   : > { %p5518_p11 = por %p5517_p10, %p5516_p9 }
 0x698   : > { %p5514_p8 = pneg %p5513_p7 }
 0x69a   : > { %p5519_p12 = pnand %p5518_p11, %p5514_p8 }
 0x69c   : > { %5522 = shalt.err (!%p5519_p12)
}
 0x69d   : > { %5427 = dma.vmem_to_hbm [thread:$0]  (%p5638_p5), %s5241_s14, 16, %s8371_s17, %s5228_s25  }
 0x69e PF: > { %p5433_p13 = scmp.ge.s32.totalorder %s5557_s21, 2  ;;  %s5252_s7 = sand.u32 1, %s5545_s18  }
 0x69f   : > { %s5253_s8 = scalar_lea.sflag [#allocation6], %s5252_s7 }
 0x6a0   : > { %p5430_p0 = pnand %p5433_p13, %p5642_p6 }
 0x6a2   : > { %p5431_p1 = pneg %p5430_p0 }
 0x6a4   : > { %5540 = dma.done.wait (%p5431_p1), %s5253_s8, 16  }
 0x6a5   : > { %5542 = vsyncadd (%p5431_p1), %s5253_s8, 4294967280  ;;  %p15_p2 = scmp.ge.s32.totalorder %s5625_s24, 4   ;;  %s8962_s18 = smov %s5549_s19 }
 0x6a6   : > { %s8963_s19 = smov %s5553_s20  ;;  %s8964_s20 = smov %s5636_s27 }
 0x6a7   : > { %s8965_s21 = smov %s5625_s24  ;;  %17 = sbr.rel (!%p15_p2) target bundleno = 3 (0x3), region = 77 }
 0x6ac   :  { %5257 = vsyncpa [#allocation6], 1 }
 0x6ad   :  { %5259 = vsyncpa [#allocation6 + $0x1], 1 }

</bundles_post_ra>
